<compile_context>
chip_gen: v6e
topology: v6e:2x2x1
jax: 0.10.0
libtpu: 0.0.40
codegen_flags: <defaults>
</compile_context>

<pallas_src>
import math

import jax
import jax.numpy as jnp
from jax.experimental import pallas as pl
from jax.experimental.pallas import tpu as pltpu

# MXU operand dtype (accumulation stays f32 via preferred_element_type).
# Set to jnp.float32 to reproduce exact-f32 matmul numerics.
_MXU_DTYPE = jnp.bfloat16


# ----------------------------------------------------------------------------
# Kernel 1: per-batch 1x1 conv (qkv projection).  NCHW is kept as (C, H*W) so the
# matmul output is lane-dense and no transposes are needed.
# ----------------------------------------------------------------------------
def _qkv_kernel(x_ref, w_ref, o_ref):
    o_ref[...] = jnp.dot(w_ref[...].astype(_MXU_DTYPE),
                         x_ref[...].astype(_MXU_DTYPE),
                         preferred_element_type=jnp.float32)


def qkv_conv1x1(x_flat, w_qkv):
    # x_flat: (B, C, HW) f32, w_qkv: (3C, C) f32  ->  (B, 3C, HW) f32
    B, C, HW = x_flat.shape
    C3 = w_qkv.shape[0]
    return pl.pallas_call(
        _qkv_kernel,
        out_shape=jax.ShapeDtypeStruct((B, C3, HW), jnp.float32),
        grid=(B,),
        in_specs=[pl.BlockSpec((None, C, HW), lambda b: (b, 0, 0)),
                  pl.BlockSpec((C3, C), lambda b: (0, 0))],
        out_specs=pl.BlockSpec((None, C3, HW), lambda b: (b, 0, 0)),
        compiler_params=pltpu.CompilerParams(dimension_semantics=("parallel",)),
    )(x_flat, w_qkv)


# ----------------------------------------------------------------------------
# Kernel 2: fused depthwise 3x3 conv (stride 1, pad 1) over the whole q|k|v stack
# with per-(batch, channel) 3x3 taps.
# ----------------------------------------------------------------------------
def _dw_kernel(xp_ref, w_ref, o_ref):
    Cz, H, W = o_ref.shape
    w = w_ref[...]                                        # (Cz, 3, 3)
    acc = jnp.zeros((Cz, H, W), jnp.float32)
    for i in range(3):
        for j in range(3):
            acc = acc + xp_ref[:, pl.ds(i, H), pl.ds(j, W)] * w[:, i:i + 1, j:j + 1]
    o_ref[...] = acc


def depthwise3x3(x, w_per_bc):
    # x: (B, Cz, H, W), w_per_bc: (B, Cz, 3, 3)
    B, Cz, H, W = x.shape
    xp = jnp.pad(x, ((0, 0), (0, 0), (1, 1), (1, 1)))
    return pl.pallas_call(
        _dw_kernel,
        out_shape=jax.ShapeDtypeStruct((B, Cz, H, W), jnp.float32),
        grid=(B,),
        in_specs=[pl.BlockSpec((None, Cz, H + 2, W + 2), lambda b: (b, 0, 0, 0)),
                  pl.BlockSpec((None, Cz, 3, 3), lambda b: (b, 0, 0, 0))],
        out_specs=pl.BlockSpec((None, Cz, H, W), lambda b: (b, 0, 0, 0)),
        compiler_params=pltpu.CompilerParams(dimension_semantics=("parallel",)),
    )(xp, w_per_bc)


# ----------------------------------------------------------------------------
# Kernel 3: fused channel attention (all heads at once) + project_out.
#   q,k l2-normalized over HW; scores = qn @ kn^T (full C x C); per-head temperature
#   applied row-wise; off-head entries masked to -inf-ish so the row softmax equals
#   the reference per-head softmax; out = Wproj @ (attn @ v).
# ----------------------------------------------------------------------------
def _attn_proj_kernel(qkv_ref, temp_ref, mask_ref, wp_ref, o_ref):
    C = o_ref.shape[0]
    qkv = qkv_ref[...]                                    # (3C, HW)
    q, k, v = qkv[:C], qkv[C:2 * C], qkv[2 * C:]
    # F.normalize(dim=-1): x / max(||x||_2, 1e-12), per channel row.
    qn = q / jnp.maximum(jnp.sqrt(jnp.sum(q * q, axis=-1, keepdims=True)), 1e-12)
    kn = k / jnp.maximum(jnp.sqrt(jnp.sum(k * k, axis=-1, keepdims=True)), 1e-12)
    s = jax.lax.dot_general(qn.astype(_MXU_DTYPE), kn.astype(_MXU_DTYPE),
                            (((1,), (1,)), ((), ())),
                            preferred_element_type=jnp.float32)   # (C, C)
    s = s * temp_ref[...]                                  # per-head temperature, (C, 1)
    s = jnp.where(mask_ref[...] > 0.5, s, -1e30)           # block-diagonal head mask
    s = s - jnp.max(s, axis=-1, keepdims=True)
    e = jnp.exp(s)
    p = e / jnp.sum(e, axis=-1, keepdims=True)
    av = jnp.dot(p.astype(_MXU_DTYPE), v.astype(_MXU_DTYPE),
                 preferred_element_type=jnp.float32)       # (C, HW)
    o_ref[...] = jnp.dot(wp_ref[...].astype(_MXU_DTYPE), av.astype(_MXU_DTYPE),
                         preferred_element_type=jnp.float32)   # project_out (1x1 conv)


def channel_attention_project(qkv_flat, temp_c, head_mask, w_proj):
    # qkv_flat: (B, 3C, HW); temp_c: (C, 1); head_mask/w_proj: (C, C)
    B, C3, HW = qkv_flat.shape
    C = C3 // 3
    return pl.pallas_call(
        _attn_proj_kernel,
        out_shape=jax.ShapeDtypeStruct((B, C, HW), jnp.float32),
        grid=(B,),
        in_specs=[pl.BlockSpec((None, C3, HW), lambda b: (b, 0, 0)),
                  pl.BlockSpec((C, 1), lambda b: (0, 0)),
                  pl.BlockSpec((C, C), lambda b: (0, 0)),
                  pl.BlockSpec((C, C), lambda b: (0, 0))],
        out_specs=pl.BlockSpec((None, C, HW), lambda b: (b, 0, 0)),
        compiler_params=pltpu.CompilerParams(dimension_semantics=("parallel",)),
    )(qkv_flat, temp_c, head_mask, w_proj)


# ----------------------------------------------------------------------------
# DYNAMIC_ATTENTION forward.
# ----------------------------------------------------------------------------
def dynamic_attention_forward(params, x, num_heads):
    B, C, H, W = x.shape
    HW = H * W
    D = C // num_heads

    # 1) qkv 1x1 conv (Pallas, lane-dense layout).
    qkv = qkv_conv1x1(x.reshape(B, C, HW), params['qkv_w'])          # (B, 3C, HW)

    # 2) Dynamic_conv2d attention branch (attention2d) -- tiny, plain XLA.
    pooled = jnp.mean(qkv[:, :C, :], axis=-1)                        # AdaptiveAvgPool2d(1) on q
    h1 = jnp.maximum(pooled @ params['fc1_w'].T, 0.0)                # fc1 (1x1 conv) + ReLU
    logits = h1 @ params['fc2_w'].T + params['fc2_b'][None, :]       # fc2 (1x1 conv, bias)
    att = jax.nn.softmax(logits / 34.0, axis=1)                      # temperature = 34
    Kd = params['dyn_weight'].shape[0]
    agg_q_w = (att @ params['dyn_weight'].reshape(Kd, C * 9)).reshape(B, C, 3, 3)

    # 3) One fused depthwise 3x3 pass over q|k|v (dynamic taps for q, shared for k/v).
    kv_w = jnp.concatenate([params['k_w'].reshape(C, 3, 3),
                            params['v_w'].reshape(C, 3, 3)], axis=0)          # (2C, 3, 3)
    dw_w = jnp.concatenate(
        [agg_q_w, jnp.broadcast_to(kv_w[None], (B, 2 * C, 3, 3))], axis=1)    # (B, 3C, 3, 3)
    qkv_dw = depthwise3x3(qkv.reshape(B, 3 * C, H, W), dw_w)                  # (B, 3C, H, W)

    # 4) Channel attention over all heads + project_out, fused in one kernel.
    temp_c = jnp.repeat(params['temperature'].reshape(num_heads), D).reshape(C, 1)
    head = jnp.arange(C, dtype=jnp.int32) // D
    head_mask = (head[:, None] == head[None, :]).astype(jnp.float32)          # (C, C)
    out = channel_attention_project(qkv_dw.reshape(B, 3 * C, HW),
                                    temp_c, head_mask, params['proj_w'])
    return out.reshape(B, C, H, W)


# ----------------------------------------------------------------------------
# Pure-JAX f32 reference of the PyTorch forward (for the in-script sanity check).
# ----------------------------------------------------------------------------
def reference_forward(params, x, num_heads):
    B, C, H, W = x.shape
    HW = H * W
    D = C // num_heads
    qkv = jnp.einsum('oc,bchw->bohw', params['qkv_w'], x)
    q, k, v = qkv[:, :C], qkv[:, C:2 * C], qkv[:, 2 * C:]

    pooled = q.mean(axis=(2, 3))
    h1 = jax.nn.relu(pooled @ params['fc1_w'].T)
    logits = h1 @ params['fc2_w'].T + params['fc2_b']
    att = jax.nn.softmax(logits / 34.0, axis=1)
    Kd = params['dyn_weight'].shape[0]
    agg = (att @ params['dyn_weight'].reshape(Kd, C * 9)).reshape(B, C, 3, 3)

    def dwconv(z, w):                                       # w: (B, C, 3, 3)
        zp = jnp.pad(z, ((0, 0), (0, 0), (1, 1), (1, 1)))
        out = jnp.zeros_like(z)
        for i in range(3):
            for j in range(3):
                out = out + zp[:, :, i:i + H, j:j + W] * w[..., i, j][..., None, None]
        return out

    q = dwconv(q, agg)
    k = dwconv(k, jnp.broadcast_to(params['k_w'].reshape(1, C, 3, 3), (B, C, 3, 3)))
    v = dwconv(v, jnp.broadcast_to(params['v_w'].reshape(1, C, 3, 3), (B, C, 3, 3)))

    qh = q.reshape(B, num_heads, D, HW)
    kh = k.reshape(B, num_heads, D, HW)
    vh = v.reshape(B, num_heads, D, HW)
    qn = qh / jnp.maximum(jnp.linalg.norm(qh, axis=-1, keepdims=True), 1e-12)
    kn = kh / jnp.maximum(jnp.linalg.norm(kh, axis=-1, keepdims=True), 1e-12)
    scores = jnp.einsum('bhdk,bhek->bhde', qn, kn) * params['temperature'].reshape(
        1, num_heads, 1, 1)
    attn = jax.nn.softmax(scores, axis=-1)
    o = jnp.einsum('bhde,bhek->bhdk', attn, vh).reshape(B, C, HW)
    o = jnp.einsum('oc,bck->bok', params['proj_w'], o)
    return o.reshape(B, C, H, W)


# ----------------------------------------------------------------------------
# Deterministic parameter initialization (shapes follow DYNAMIC_ATTENTION.__init__).
# ----------------------------------------------------------------------------
def init_params(key, channels, num_heads, K=4, ratio=0.25):
    C = channels
    hidden = (int(C * ratio) + 1) if C != 3 else K
    keys = jax.random.split(key, 8)

    def nrm(k, shape, fan_in):
        return (1.0 / math.sqrt(fan_in)) * jax.random.normal(k, shape, jnp.float32)

    return dict(
        qkv_w=nrm(keys[0], (3 * C, C), C),                 # Conv2d(C, 3C, 1, bias=False)
        fc1_w=nrm(keys[1], (hidden, C), C),                # attention2d.fc1 (1x1, no bias)
        fc2_w=nrm(keys[2], (K, hidden), hidden),           # attention2d.fc2 (1x1, bias)
        fc2_b=jnp.zeros((K,), jnp.float32),
        dyn_weight=nrm(keys[3], (K, C, 1, 3, 3), 9),       # Dynamic_conv2d.weight
        k_w=nrm(keys[4], (C, 1, 3, 3), 9),                 # k_conv depthwise 3x3
        v_w=nrm(keys[5], (C, 1, 3, 3), 9),                 # v_conv depthwise 3x3
        proj_w=nrm(keys[6], (C, C), C),                    # project_out 1x1
        temperature=1.0 + 0.1 * jax.random.normal(keys[7], (1, num_heads, 1, 1),
                                                  jnp.float32),
    )


if __name__ == "__main__":
    B, C, H, W = 2, 16, 16, 16
    NUM_HEADS = 4
    key = jax.random.PRNGKey(0)
    x = jax.random.normal(jax.random.fold_in(key, 1), (B, C, H, W), jnp.float32)
    params = init_params(jax.random.fold_in(key, 2), C, NUM_HEADS)

    fwd = jax.jit(lambda p, xx: dynamic_attention_forward(p, xx, NUM_HEADS))
    out = fwd(params, x)
    jax.block_until_ready(out)

    assert out.shape == (B, C, H, W) and out.dtype == jnp.float32
    assert bool(jnp.all(jnp.isfinite(out)))

    # Sanity check against a pure-JAX f32 reference (loose tolerance: MXU runs bf16).
    ref = jax.jit(lambda p, xx: reference_forward(p, xx, NUM_HEADS))(params, x)
    rel_err = float(jnp.linalg.norm(out - ref) / (jnp.linalg.norm(ref) + 1e-8))
    assert rel_err < 5e-2, f"relative error too high: {rel_err}"

    print("KERNEL_OK")
</pallas_src>

<mosaic_0001>
module attributes {stable_mosaic.version = 11 : i64} {
  func.func @_qkv_kernel(%arg0: i32, %arg1: memref<1x16x256xf32, #tpu.memory_space<vmem>>, %arg2: memref<48x16xf32, #tpu.memory_space<vmem>>, %arg3: memref<1x48x256xf32, #tpu.memory_space<vmem>>) attributes {dimension_semantics = [#tpu.dimension_semantics<parallel>], iteration_bounds = array<i64: 2>, scalar_prefetch = 0 : i64, scratch_operands = 0 : i64, tpu.core_type = #tpu.core_type<tc>, window_params = [{transform_indices = @transform_0, window_bounds = array<i64: 1, 16, 256>}, {pipeline_mode = #tpu.pipeline_mode<synchronous>, transform_indices = @transform_1, window_bounds = array<i64: 48, 16>}, {transform_indices = @transform_2, window_bounds = array<i64: 1, 48, 256>}]} {
    %c0 = arith.constant 0 : index
    %c0_0 = arith.constant 0 : index
    %0 = vector.load %arg2[%c0, %c0_0] : memref<48x16xf32, #tpu.memory_space<vmem>>, vector<48x16xf32>
    %1 = arith.truncf %0 : vector<48x16xf32> to vector<48x16xbf16>
    %c0_1 = arith.constant 0 : index
    %c0_2 = arith.constant 0 : index
    %c0_3 = arith.constant 0 : index
    %2 = vector.load %arg1[%c0_1, %c0_2, %c0_3] : memref<1x16x256xf32, #tpu.memory_space<vmem>>, vector<1x16x256xf32>
    %3 = vector.shape_cast %2 : vector<1x16x256xf32> to vector<16x256xf32>
    %4 = arith.truncf %3 : vector<16x256xf32> to vector<16x256xbf16>
    %cst = arith.constant dense<0.000000e+00> : vector<48x256xf32>
    %5 = tpu.matmul %1, %4, %cst {dimension_numbers = #tpu.dot_dimension_numbers<[1], [0], [0], [1], [0, 0, 1, 1], [], []>} : vector<48x16xbf16>, vector<16x256xbf16>, vector<48x256xf32> -> vector<48x256xf32>
    %c0_4 = arith.constant 0 : index
    %c0_5 = arith.constant 0 : index
    %c0_6 = arith.constant 0 : index
    %6 = vector.load %arg3[%c0_4, %c0_5, %c0_6] : memref<1x48x256xf32, #tpu.memory_space<vmem>>, vector<1x48x256xf32>
    %7 = vector.shape_cast %6 : vector<1x48x256xf32> to vector<48x256xf32>
    %8 = vector.shape_cast %5 : vector<48x256xf32> to vector<1x48x256xf32>
    tpu.vector_store %arg3[%c0_4, %c0_5, %c0_6], %8 {strides = array<i32>} : memref<1x48x256xf32, #tpu.memory_space<vmem>>, vector<1x48x256xf32>,
    return
  }
  func.func @transform_0(%arg0: i32) -> (i32, i32, i32) {
    %c0_i32 = arith.constant 0 : i32
    %c0_i32_0 = arith.constant 0 : i32
    %c0_i32_1 = arith.constant 0 : i32
    return %arg0, %c0_i32, %c0_i32_0 : i32, i32, i32
  }
  func.func @transform_1(%arg0: i32) -> (i32, i32) {
    %c0_i32 = arith.constant 0 : i32
    %c0_i32_0 = arith.constant 0 : i32
    %c0_i32_1 = arith.constant 0 : i32
    return %c0_i32, %c0_i32_0 : i32, i32
  }
  func.func @transform_2(%arg0: i32) -> (i32, i32, i32) {
    %c0_i32 = arith.constant 0 : i32
    %c0_i32_0 = arith.constant 0 : i32
    %c0_i32_1 = arith.constant 0 : i32
    return %arg0, %c0_i32, %c0_i32_0 : i32, i32, i32
  }
}

module attributes {stable_mosaic.version = 11 : i64} {
  func.func @_dw_kernel(%arg0: i32, %arg1: memref<1x48x18x18xf32, #tpu.memory_space<vmem>>, %arg2: memref<1x48x3x3xf32, #tpu.memory_space<vmem>>, %arg3: memref<1x48x16x16xf32, #tpu.memory_space<vmem>>) attributes {dimension_semantics = [#tpu.dimension_semantics<parallel>], iteration_bounds = array<i64: 2>, scalar_prefetch = 0 : i64, scratch_operands = 0 : i64, tpu.core_type = #tpu.core_type<tc>, window_params = [{transform_indices = @transform_0, window_bounds = array<i64: 1, 48, 18, 18>}, {transform_indices = @transform_1, window_bounds = array<i64: 1, 48, 3, 3>}, {transform_indices = @transform_2, window_bounds = array<i64: 1, 48, 16, 16>}]} {
    %c0 = arith.constant 0 : index
    %c0_0 = arith.constant 0 : index
    %c0_1 = arith.constant 0 : index
    %c0_2 = arith.constant 0 : index
    %0 = vector.load %arg2[%c0, %c0_0, %c0_1, %c0_2] : memref<1x48x3x3xf32, #tpu.memory_space<vmem>>, vector<1x48x3x3xf32>
    %1 = vector.shape_cast %0 : vector<1x48x3x3xf32> to vector<48x3x3xf32>
    %cst = arith.constant 0.000000e+00 : f32
    %2 = vector.broadcast %cst : f32 to vector<48x16x16xf32>
    %c0_3 = arith.constant 0 : index
    %c0_4 = arith.constant 0 : index
    %c0_5 = arith.constant 0 : index
    %c0_6 = arith.constant 0 : index
    %3 = vector.load %arg1[%c0_3, %c0_4, %c0_5, %c0_6] : memref<1x48x18x18xf32, #tpu.memory_space<vmem>>, vector<1x48x16x16xf32>
    %4 = vector.shape_cast %3 : vector<1x48x16x16xf32> to vector<48x16x16xf32>
    %5 = vector.extract_strided_slice %1 {offsets = [0, 0, 0], sizes = [48, 1, 1], strides = [1, 1, 1]} : vector<48x3x3xf32> to vector<48x1x1xf32>
    %6 = vector.broadcast %5 : vector<48x1x1xf32> to vector<48x16x16xf32>
    %7 = arith.mulf %4, %6 : vector<48x16x16xf32>
    %8 = arith.addf %2, %7 : vector<48x16x16xf32>
    %c0_7 = arith.constant 0 : index
    %c0_8 = arith.constant 0 : index
    %c0_9 = arith.constant 0 : index
    %c1 = arith.constant 1 : index
    %9 = vector.load %arg1[%c0_7, %c0_8, %c0_9, %c1] : memref<1x48x18x18xf32, #tpu.memory_space<vmem>>, vector<1x48x16x16xf32>
    %10 = vector.shape_cast %9 : vector<1x48x16x16xf32> to vector<48x16x16xf32>
    %11 = vector.extract_strided_slice %1 {offsets = [0, 0, 1], sizes = [48, 1, 1], strides = [1, 1, 1]} : vector<48x3x3xf32> to vector<48x1x1xf32>
    %12 = vector.broadcast %11 : vector<48x1x1xf32> to vector<48x16x16xf32>
    %13 = arith.mulf %10, %12 : vector<48x16x16xf32>
    %14 = arith.addf %8, %13 : vector<48x16x16xf32>
    %c0_10 = arith.constant 0 : index
    %c0_11 = arith.constant 0 : index
    %c0_12 = arith.constant 0 : index
    %c2 = arith.constant 2 : index
    %15 = vector.load %arg1[%c0_10, %c0_11, %c0_12, %c2] : memref<1x48x18x18xf32, #tpu.memory_space<vmem>>, vector<1x48x16x16xf32>
    %16 = vector.shape_cast %15 : vector<1x48x16x16xf32> to vector<48x16x16xf32>
    %17 = vector.extract_strided_slice %1 {offsets = [0, 0, 2], sizes = [48, 1, 1], strides = [1, 1, 1]} : vector<48x3x3xf32> to vector<48x1x1xf32>
    %18 = vector.broadcast %17 : vector<48x1x1xf32> to vector<48x16x16xf32>
    %19 = arith.mulf %16, %18 : vector<48x16x16xf32>
    %20 = arith.addf %14, %19 : vector<48x16x16xf32>
    %c0_13 = arith.constant 0 : index
    %c0_14 = arith.constant 0 : index
    %c1_15 = arith.constant 1 : index
    %c0_16 = arith.constant 0 : index
    %21 = vector.load %arg1[%c0_13, %c0_14, %c1_15, %c0_16] : memref<1x48x18x18xf32, #tpu.memory_space<vmem>>, vector<1x48x16x16xf32>
    %22 = vector.shape_cast %21 : vector<1x48x16x16xf32> to vector<48x16x16xf32>
    %23 = vector.extract_strided_slice %1 {offsets = [0, 1, 0], sizes = [48, 1, 1], strides = [1, 1, 1]} : vector<48x3x3xf32> to vector<48x1x1xf32>
    %24 = vector.broadcast %23 : vector<48x1x1xf32> to vector<48x16x16xf32>
    %25 = arith.mulf %22, %24 : vector<48x16x16xf32>
    %26 = arith.addf %20, %25 : vector<48x16x16xf32>
    %c0_17 = arith.constant 0 : index
    %c0_18 = arith.constant 0 : index
    %c1_19 = arith.constant 1 : index
    %c1_20 = arith.constant 1 : index
    %27 = vector.load %arg1[%c0_17, %c0_18, %c1_19, %c1_20] : memref<1x48x18x18xf32, #tpu.memory_space<vmem>>, vector<1x48x16x16xf32>
    %28 = vector.shape_cast %27 : vector<1x48x16x16xf32> to vector<48x16x16xf32>
    %29 = vector.extract_strided_slice %1 {offsets = [0, 1, 1], sizes = [48, 1, 1], strides = [1, 1, 1]} : vector<48x3x3xf32> to vector<48x1x1xf32>
    %30 = vector.broadcast %29 : vector<48x1x1xf32> to vector<48x16x16xf32>
    %31 = arith.mulf %28, %30 : vector<48x16x16xf32>
    %32 = arith.addf %26, %31 : vector<48x16x16xf32>
    %c0_21 = arith.constant 0 : index
    %c0_22 = arith.constant 0 : index
    %c1_23 = arith.constant 1 : index
    %c2_24 = arith.constant 2 : index
    %33 = vector.load %arg1[%c0_21, %c0_22, %c1_23, %c2_24] : memref<1x48x18x18xf32, #tpu.memory_space<vmem>>, vector<1x48x16x16xf32>
    %34 = vector.shape_cast %33 : vector<1x48x16x16xf32> to vector<48x16x16xf32>
    %35 = vector.extract_strided_slice %1 {offsets = [0, 1, 2], sizes = [48, 1, 1], strides = [1, 1, 1]} : vector<48x3x3xf32> to vector<48x1x1xf32>
    %36 = vector.broadcast %35 : vector<48x1x1xf32> to vector<48x16x16xf32>
    %37 = arith.mulf %34, %36 : vector<48x16x16xf32>
    %38 = arith.addf %32, %37 : vector<48x16x16xf32>
    %c0_25 = arith.constant 0 : index
    %c0_26 = arith.constant 0 : index
    %c2_27 = arith.constant 2 : index
    %c0_28 = arith.constant 0 : index
    %39 = vector.load %arg1[%c0_25, %c0_26, %c2_27, %c0_28] : memref<1x48x18x18xf32, #tpu.memory_space<vmem>>, vector<1x48x16x16xf32>
    %40 = vector.shape_cast %39 : vector<1x48x16x16xf32> to vector<48x16x16xf32>
    %41 = vector.extract_strided_slice %1 {offsets = [0, 2, 0], sizes = [48, 1, 1], strides = [1, 1, 1]} : vector<48x3x3xf32> to vector<48x1x1xf32>
    %42 = vector.broadcast %41 : vector<48x1x1xf32> to vector<48x16x16xf32>
    %43 = arith.mulf %40, %42 : vector<48x16x16xf32>
    %44 = arith.addf %38, %43 : vector<48x16x16xf32>
    %c0_29 = arith.constant 0 : index
    %c0_30 = arith.constant 0 : index
    %c2_31 = arith.constant 2 : index
    %c1_32 = arith.constant 1 : index
    %45 = vector.load %arg1[%c0_29, %c0_30, %c2_31, %c1_32] : memref<1x48x18x18xf32, #tpu.memory_space<vmem>>, vector<1x48x16x16xf32>
    %46 = vector.shape_cast %45 : vector<1x48x16x16xf32> to vector<48x16x16xf32>
    %47 = vector.extract_strided_slice %1 {offsets = [0, 2, 1], sizes = [48, 1, 1], strides = [1, 1, 1]} : vector<48x3x3xf32> to vector<48x1x1xf32>
    %48 = vector.broadcast %47 : vector<48x1x1xf32> to vector<48x16x16xf32>
    %49 = arith.mulf %46, %48 : vector<48x16x16xf32>
    %50 = arith.addf %44, %49 : vector<48x16x16xf32>
    %c0_33 = arith.constant 0 : index
    %c0_34 = arith.constant 0 : index
    %c2_35 = arith.constant 2 : index
    %c2_36 = arith.constant 2 : index
    %51 = vector.load %arg1[%c0_33, %c0_34, %c2_35, %c2_36] : memref<1x48x18x18xf32, #tpu.memory_space<vmem>>, vector<1x48x16x16xf32>
    %52 = vector.shape_cast %51 : vector<1x48x16x16xf32> to vector<48x16x16xf32>
    %53 = vector.extract_strided_slice %1 {offsets = [0, 2, 2], sizes = [48, 1, 1], strides = [1, 1, 1]} : vector<48x3x3xf32> to vector<48x1x1xf32>
    %54 = vector.broadcast %53 : vector<48x1x1xf32> to vector<48x16x16xf32>
    %55 = arith.mulf %52, %54 : vector<48x16x16xf32>
    %56 = arith.addf %50, %55 : vector<48x16x16xf32>
    %c0_37 = arith.constant 0 : index
    %c0_38 = arith.constant 0 : index
    %c0_39 = arith.constant 0 : index
    %c0_40 = arith.constant 0 : index
    %57 = vector.load %arg3[%c0_37, %c0_38, %c0_39, %c0_40] : memref<1x48x16x16xf32, #tpu.memory_space<vmem>>, vector<1x48x16x16xf32>
    %58 = vector.shape_cast %57 : vector<1x48x16x16xf32> to vector<48x16x16xf32>
    %59 = vector.shape_cast %56 : vector<48x16x16xf32> to vector<1x48x16x16xf32>
    tpu.vector_store %arg3[%c0_37, %c0_38, %c0_39, %c0_40], %59 {strides = array<i32>} : memref<1x48x16x16xf32, #tpu.memory_space<vmem>>, vector<1x48x16x16xf32>,
    return
  }
  func.func @transform_0(%arg0: i32) -> (i32, i32, i32, i32) {
    %c0_i32 = arith.constant 0 : i32
    %c0_i32_0 = arith.constant 0 : i32
    %c0_i32_1 = arith.constant 0 : i32
    %c0_i32_2 = arith.constant 0 : i32
    return %arg0, %c0_i32, %c0_i32_0, %c0_i32_1 : i32, i32, i32, i32
  }
  func.func @transform_1(%arg0: i32) -> (i32, i32, i32, i32) {
    %c0_i32 = arith.constant 0 : i32
    %c0_i32_0 = arith.constant 0 : i32
    %c0_i32_1 = arith.constant 0 : i32
    %c0_i32_2 = arith.constant 0 : i32
    return %arg0, %c0_i32, %c0_i32_0, %c0_i32_1 : i32, i32, i32, i32
  }
  func.func @transform_2(%arg0: i32) -> (i32, i32, i32, i32) {
    %c0_i32 = arith.constant 0 : i32
    %c0_i32_0 = arith.constant 0 : i32
    %c0_i32_1 = arith.constant 0 : i32
    %c0_i32_2 = arith.constant 0 : i32
    return %arg0, %c0_i32, %c0_i32_0, %c0_i32_1 : i32, i32, i32, i32
  }
}

module attributes {stable_mosaic.version = 11 : i64} {
  func.func @_attn_proj_kernel(%arg0: i32, %arg1: memref<1x48x256xf32, #tpu.memory_space<vmem>>, %arg2: memref<16x1xf32, #tpu.memory_space<vmem>>, %arg3: memref<16x16xf32, #tpu.memory_space<vmem>>, %arg4: memref<16x16xf32, #tpu.memory_space<vmem>>, %arg5: memref<1x16x256xf32, #tpu.memory_space<vmem>>) attributes {dimension_semantics = [#tpu.dimension_semantics<parallel>], iteration_bounds = array<i64: 2>, scalar_prefetch = 0 : i64, scratch_operands = 0 : i64, tpu.core_type = #tpu.core_type<tc>, window_params = [{transform_indices = @transform_0, window_bounds = array<i64: 1, 48, 256>}, {pipeline_mode = #tpu.pipeline_mode<synchronous>, transform_indices = @transform_1, window_bounds = array<i64: 16, 1>}, {pipeline_mode = #tpu.pipeline_mode<synchronous>, transform_indices = @transform_2, window_bounds = array<i64: 16, 16>}, {pipeline_mode = #tpu.pipeline_mode<synchronous>, transform_indices = @transform_3, window_bounds = array<i64: 16, 16>}, {transform_indices = @transform_4, window_bounds = array<i64: 1, 16, 256>}]} {
    %c0 = arith.constant 0 : index
    %c0_0 = arith.constant 0 : index
    %c0_1 = arith.constant 0 : index
    %0 = vector.load %arg1[%c0, %c0_0, %c0_1] : memref<1x48x256xf32, #tpu.memory_space<vmem>>, vector<1x48x256xf32>
    %1 = vector.shape_cast %0 : vector<1x48x256xf32> to vector<48x256xf32>
    %2 = vector.extract_strided_slice %1 {offsets = [0, 0], sizes = [16, 256], strides = [1, 1]} : vector<48x256xf32> to vector<16x256xf32>
    %3 = vector.extract_strided_slice %1 {offsets = [16, 0], sizes = [16, 256], strides = [1, 1]} : vector<48x256xf32> to vector<16x256xf32>
    %4 = vector.extract_strided_slice %1 {offsets = [32, 0], sizes = [16, 256], strides = [1, 1]} : vector<48x256xf32> to vector<16x256xf32>
    %5 = arith.mulf %2, %2 : vector<16x256xf32>
    %cst = arith.constant dense<0.000000e+00> : vector<16xf32>
    %6 = vector.multi_reduction <add>, %5, %cst [1] : vector<16x256xf32> to vector<16xf32>
    %7 = vector.shape_cast %6 : vector<16xf32> to vector<16x1xf32>
    %8 = math.sqrt %7 : vector<16x1xf32>
    %cst_2 = arith.constant 9.99999996E-13 : f32
    %9 = vector.broadcast %cst_2 : f32 to vector<16x1xf32>
    %10 = arith.maximumf %8, %9 : vector<16x1xf32>
    %11 = vector.broadcast %10 : vector<16x1xf32> to vector<16x256xf32>
    %12 = arith.divf %2, %11 : vector<16x256xf32>
    %13 = arith.mulf %3, %3 : vector<16x256xf32>
    %cst_3 = arith.constant dense<0.000000e+00> : vector<16xf32>
    %14 = vector.multi_reduction <add>, %13, %cst_3 [1] : vector<16x256xf32> to vector<16xf32>
    %15 = vector.shape_cast %14 : vector<16xf32> to vector<16x1xf32>
    %16 = math.sqrt %15 : vector<16x1xf32>
    %cst_4 = arith.constant 9.99999996E-13 : f32
    %17 = vector.broadcast %cst_4 : f32 to vector<16x1xf32>
    %18 = arith.maximumf %16, %17 : vector<16x1xf32>
    %19 = vector.broadcast %18 : vector<16x1xf32> to vector<16x256xf32>
    %20 = arith.divf %3, %19 : vector<16x256xf32>
    %21 = arith.truncf %12 : vector<16x256xf32> to vector<16x256xbf16>
    %22 = arith.truncf %20 : vector<16x256xf32> to vector<16x256xbf16>
    %cst_5 = arith.constant dense<0.000000e+00> : vector<16x16xf32>
    %23 = tpu.matmul %21, %22, %cst_5 {dimension_numbers = #tpu.dot_dimension_numbers<[1], [1], [0], [0], [0, 0, 1, 0], [], []>} : vector<16x256xbf16>, vector<16x256xbf16>, vector<16x16xf32> -> vector<16x16xf32>
    %c0_6 = arith.constant 0 : index
    %c0_7 = arith.constant 0 : index
    %24 = vector.load %arg2[%c0_6, %c0_7] : memref<16x1xf32, #tpu.memory_space<vmem>>, vector<16x1xf32>
    %25 = vector.broadcast %24 : vector<16x1xf32> to vector<16x16xf32>
    %26 = arith.mulf %23, %25 : vector<16x16xf32>
    %c0_8 = arith.constant 0 : index
    %c0_9 = arith.constant 0 : index
    %27 = vector.load %arg3[%c0_8, %c0_9] : memref<16x16xf32, #tpu.memory_space<vmem>>, vector<16x16xf32>
    %cst_10 = arith.constant 5.000000e-01 : f32
    %28 = vector.broadcast %cst_10 : f32 to vector<16x16xf32>
    %29 = arith.cmpf ogt, %27, %28 : vector<16x16xf32>
    %cst_11 = arith.constant -1.000000e+30 : f32
    %30 = vector.broadcast %cst_11 : f32 to vector<16x16xf32>
    %31 = arith.select %29, %26, %30 : vector<16x16xi1>, vector<16x16xf32>
    %cst_12 = arith.constant dense<0xFF800000> : vector<16xf32>
    %32 = vector.multi_reduction <maximumf>, %31, %cst_12 [1] : vector<16x16xf32> to vector<16xf32>
    %33 = vector.shape_cast %32 : vector<16xf32> to vector<16x1xf32>
    %34 = vector.broadcast %33 : vector<16x1xf32> to vector<16x16xf32>
    %35 = arith.subf %31, %34 : vector<16x16xf32>
    %36 = math.exp %35 : vector<16x16xf32>
    %cst_13 = arith.constant dense<0.000000e+00> : vector<16xf32>
    %37 = vector.multi_reduction <add>, %36, %cst_13 [1] : vector<16x16xf32> to vector<16xf32>
    %38 = vector.shape_cast %37 : vector<16xf32> to vector<16x1xf32>
    %39 = vector.broadcast %38 : vector<16x1xf32> to vector<16x16xf32>
    %40 = arith.divf %36, %39 : vector<16x16xf32>
    %41 = arith.truncf %40 : vector<16x16xf32> to vector<16x16xbf16>
    %42 = arith.truncf %4 : vector<16x256xf32> to vector<16x256xbf16>
    %cst_14 = arith.constant dense<0.000000e+00> : vector<16x256xf32>
    %43 = tpu.matmul %41, %42, %cst_14 {dimension_numbers = #tpu.dot_dimension_numbers<[1], [0], [0], [1], [0, 0, 1, 1], [], []>} : vector<16x16xbf16>, vector<16x256xbf16>, vector<16x256xf32> -> vector<16x256xf32>
    %c0_15 = arith.constant 0 : index
    %c0_16 = arith.constant 0 : index
    %44 = vector.load %arg4[%c0_15, %c0_16] : memref<16x16xf32, #tpu.memory_space<vmem>>, vector<16x16xf32>
    %45 = arith.truncf %44 : vector<16x16xf32> to vector<16x16xbf16>
    %46 = arith.truncf %43 : vector<16x256xf32> to vector<16x256xbf16>
    %cst_17 = arith.constant dense<0.000000e+00> : vector<16x256xf32>
    %47 = tpu.matmul %45, %46, %cst_17 {dimension_numbers = #tpu.dot_dimension_numbers<[1], [0], [0], [1], [0, 0, 1, 1], [], []>} : vector<16x16xbf16>, vector<16x256xbf16>, vector<16x256xf32> -> vector<16x256xf32>
    %c0_18 = arith.constant 0 : index
    %c0_19 = arith.constant 0 : index
    %c0_20 = arith.constant 0 : index
    %48 = vector.load %arg5[%c0_18, %c0_19, %c0_20] : memref<1x16x256xf32, #tpu.memory_space<vmem>>, vector<1x16x256xf32>
    %49 = vector.shape_cast %48 : vector<1x16x256xf32> to vector<16x256xf32>
    %50 = vector.shape_cast %47 : vector<16x256xf32> to vector<1x16x256xf32>
    tpu.vector_store %arg5[%c0_18, %c0_19, %c0_20], %50 {strides = array<i32>} : memref<1x16x256xf32, #tpu.memory_space<vmem>>, vector<1x16x256xf32>,
    return
  }
  func.func @transform_0(%arg0: i32) -> (i32, i32, i32) {
    %c0_i32 = arith.constant 0 : i32
    %c0_i32_0 = arith.constant 0 : i32
    %c0_i32_1 = arith.constant 0 : i32
    return %arg0, %c0_i32, %c0_i32_0 : i32, i32, i32
  }
  func.func @transform_1(%arg0: i32) -> (i32, i32) {
    %c0_i32 = arith.constant 0 : i32
    %c0_i32_0 = arith.constant 0 : i32
    %c0_i32_1 = arith.constant 0 : i32
    return %c0_i32, %c0_i32_0 : i32, i32
  }
  func.func @transform_2(%arg0: i32) -> (i32, i32) {
    %c0_i32 = arith.constant 0 : i32
    %c0_i32_0 = arith.constant 0 : i32
    %c0_i32_1 = arith.constant 0 : i32
    return %c0_i32, %c0_i32_0 : i32, i32
  }
  func.func @transform_3(%arg0: i32) -> (i32, i32) {
    %c0_i32 = arith.constant 0 : i32
    %c0_i32_0 = arith.constant 0 : i32
    %c0_i32_1 = arith.constant 0 : i32
    return %c0_i32, %c0_i32_0 : i32, i32
  }
  func.func @transform_4(%arg0: i32) -> (i32, i32, i32) {
    %c0_i32 = arith.constant 0 : i32
    %c0_i32_0 = arith.constant 0 : i32
    %c0_i32_1 = arith.constant 0 : i32
    return %arg0, %c0_i32, %c0_i32_0 : i32, i32, i32
  }
}

</mosaic_0001>

<bundles_post_ra>
// kernel: _lambda_.3
= control target key start
LH: loop header
LB: loop body
LE: loop exit
PB: predicated region body
PF: predicated region fallthrough
CT: control target
= control target key end

     0   :  { %s350_s9 = smov 0   ;;  %s389_s0 = inlined_call_operand.vmem [shape: f32[2,16,256], index: 0, kind: input, shape index: {}]   ;;  %s390_s1 = inlined_call_operand.vmem [shape: f32[48,16], index: 1, kind: input, shape index: {}]   ;;  %s391_s2 = inlined_call_operand.vmem [shape: f32[2,48,256], index: 2, kind: output, shape index: {}]  }
   0x1 LB: > { %s300_s10 = sadd.s32 4294967295, %s332_s9   ;;  %p304_p0 = scmp.ge.s32.totalorder %s332_s9, 1  ;;  %s332_s9 = sphi %s350_s9, %s12_s9  }
   0x2   : > { %p112_p1 = scmp.lt.s32.totalorder %s332_s9, 3 }
   0x4   : > { %p113_p2 = pnand %p304_p0, %p112_p1 }
   0x5   : > { %p134_p3 = scmp.lt.s32.totalorder (!%p113_p2), %s300_s10, 1 }
   0x6   : > { %116 = sbr.rel (%p113_p2) target bundleno = 229 (0xe5), region = 28 }
   0xb   : > { %v334_v0 = vmov 0   ;;  %s393_s10 = smov (!%p134_p3, %s300_s10), 1  ;;  %v147_v1 = vld [vmem:[%s390_s1 + $0x10] sm:$0xff]  ;;  %v148_v2 = vld [vmem:[%s390_s1 + $0x18] sm:$0xff]  ;;  %v145_v3 = vld [vmem:[%s390_s1] sm:$0xff]  ;;  %vm160_vm0 = vcmask 130048  }
   0xc   : > { %212 = vmatprep.mubr.bf16.mxu1 %v334_v0  ;;  %202 = vmatprep.mubr.bf16.mxu0 %v334_v0  ;;  %s313_s11 = sshll.u32 %s393_s10, 5  ;;  %v146_v4 = vld [vmem:[%s390_s1 + $0x8] sm:$0xff]  ;;  %v152_v11 = vpack.c.bf16 %v148_v2, %v147_v1  ;;  %v149_v13 = vld [vmem:[%s390_s1 + $0x20] sm:$0xff]  ;;  %s316_s27 = smul.u32 96, %s393_s10 }
   0xd   : > { %s138_s16 = scalar_lea.vmem %s389_s0, %s313_s11  ;;  %v151_v12 = vpack.c.bf16 %v146_v4, %v145_v3  ;;  %v150_v14 = vld [vmem:[%s390_s1 + $0x28] sm:$0xff] }
   0xe   : > { %v155_v5 = vld [vmem:[%s138_s16 + $0x8] sm:$0xff]  ;;  %v157_v6 = vld [vmem:[%s138_s16 + $0x18] sm:$0xff]  ;;  %v154_v7 = vld [vmem:[%s138_s16] sm:$0xff]  ;;  %v153_v15 = vpack.c.bf16 %v150_v14, %v149_v13  ;;  %s143_s30 = scalar_lea.vmem %s391_s2, %s316_s27 }
   0xf   : > { %v159_v8 = vpack.c.bf16 %v157_v6, %v155_v5  ;;  %v156_v9 = vld [vmem:[%s138_s16 + $0x10] sm:$0xff] }
  0x10   : > { %v158_v10 = vpack.c.bf16 %v156_v9, %v154_v7 }
  0x11   : > { %314 = vmatprep.subr.bf16.mxu1 %v159_v8  ;;  %184 = vmatprep.subr.bf16.mxu0 %v159_v8 }
  0x12   : > { %315 = vmatpush1.bf16.msra.mxu1 %v158_v10  ;;  %185 = vmatpush1.bf16.msra.mxu0 %v158_v10 }
  0x15   : > { %309 = vmatmul.mubr.msk.bf16.vlgmr.msra.gmra.mxu1 %vm160_vm0, %v152_v11  ;;  %308 = vmatmul.mubr.msk.bf16.vlgmr.msra.gmra.mxu0 %vm160_vm0, %v151_v12 }
  0x16   : > { %222 = vmatprep.mubr.bf16.mxu1 %v334_v0 }
  0x1d   : > { %310 = vmatmul.mubr.msk.bf16.gmra.mxu1 %vm160_vm0, %v153_v15 }
  0xd5   : > { %v214_v16 = vpop.f32.mrf.mxu1  ;;  %v204_v17 = vpop.f32.mrf.mxu0 }
  0xd6   : > { %237 = vst [vmem:[%s143_s30 + $0x20] sm:$0xff] %v214_v16  ;;  %233 = vst [vmem:[%s143_s30] sm:$0xff] %v204_v17 }
  0xd7   : > { %v216_v18 = vpop.f32.mrf.mxu1  ;;  %v206_v19 = vpop.f32.mrf.mxu0 }
  0xd8   : > { %238 = vst [vmem:[%s143_s30 + $0x28] sm:$0xff] %v216_v18  ;;  %234 = vst [vmem:[%s143_s30 + $0x8] sm:$0xff] %v206_v19 }
  0xd9   : > { %v218_v20 = vpop.f32.mrf.mxu1  ;;  %v208_v21 = vpop.f32.mrf.mxu0 }
  0xda   : > { %239 = vst [vmem:[%s143_s30 + $0x30] sm:$0xff] %v218_v20  ;;  %235 = vst [vmem:[%s143_s30 + $0x10] sm:$0xff] %v208_v21 }
  0xdb   : > { %v220_v22 = vpop.f32.mrf.mxu1  ;;  %v210_v23 = vpop.f32.mrf.mxu0 }
  0xdc   : > { %240 = vst [vmem:[%s143_s30 + $0x38] sm:$0xff] %v220_v22  ;;  %236 = vst [vmem:[%s143_s30 + $0x18] sm:$0xff] %v210_v23 }
  0xdd   : > { %v224_v24 = vpop.f32.mrf.mxu1 }
  0xde   : > { %241 = vst [vmem:[%s143_s30 + $0x40] sm:$0xff] %v224_v24 }
  0xdf   : > { %v226_v25 = vpop.f32.mrf.mxu1 }
  0xe0   : > { %242 = vst [vmem:[%s143_s30 + $0x48] sm:$0xff] %v226_v25 }
  0xe1   : > { %v228_v26 = vpop.f32.mrf.mxu1 }
  0xe2   : > { %243 = vst [vmem:[%s143_s30 + $0x50] sm:$0xff] %v228_v26 }
  0xe3   : > { %v230_v27 = vpop.f32.mrf.mxu1 }
  0xe4   : > { %244 = vst [vmem:[%s143_s30 + $0x58] sm:$0xff] %v230_v27 }
  0xe5 PF: > { %s12_s9 = sadd.s32 1, %s332_s9  }
  0xe6   : > { %p9_p4 = scmp.ge.s32.totalorder %s12_s9, 4  }
  0xe8   :  { %11 = sbr.rel (!%p9_p4) target bundleno = 1 (0x1), region = 58 }

// kernel: _lambda_.5
= control target key start
LH: loop header
LB: loop body
LE: loop exit
PB: predicated region body
PF: predicated region fallthrough
CT: control target
= control target key end

     0   :  { %s605_s15 = smov 0   ;;  %s708_s0 = inlined_call_operand.vmem [shape: f32[2,48,256], index: 0, kind: input, shape index: {}]   ;;  %s709_s1 = inlined_call_operand.vmem [shape: f32[16,1], index: 1, kind: input, shape index: {}]   ;;  %s710_s2 = inlined_call_operand.vmem [shape: f32[16,16], index: 2, kind: input, shape index: {}]   ;;  %s711_s3 = inlined_call_operand.vmem [shape: f32[16,16], index: 3, kind: input, shape index: {}]   ;;  %s712_s4 = inlined_call_operand.vmem [shape: f32[2,16,256], index: 4, kind: output, shape index: {}]  }
   0x1 LB: > { %s522_s16 = sadd.s32 4294967295, %s577_s15   ;;  %p526_p0 = scmp.ge.s32.totalorder %s577_s15, 1  ;;  %s577_s15 = sphi %s605_s15, %s14_s15  }
   0x2   : > { %p162_p1 = scmp.lt.s32.totalorder %s577_s15, 3 }
   0x4   : > { %p163_p2 = pnand %p526_p0, %p162_p1 }
   0x5   : > { %p188_p3 = scmp.lt.s32.totalorder (!%p163_p2), %s522_s16, 1 }
   0x6   : > { %166 = sbr.rel (%p163_p2) target bundleno = 1127 (0x467), region = 36 }
   0xb   : > { %s714_s16 = smov (!%p188_p3, %s522_s16), 1  ;;  %v320_v20 = vld [vmem:[%s709_s1] sm:$0xff]  ;;  %v321_v21 = vld [vmem:[%s709_s1 + $0x8] sm:$0xff]  ;;  %v579_v22 = vmov 0   ;;  %vm340_vm9 = vcmask 130048  }
   0xc   : > { %s535_s17 = smul.u32 96, %s714_s16  ;;  %545 = vset.pattern.permute.xlu0 %v579_v22  ;;  %546 = vset.pattern.permute.xlu1 %v579_v22  ;;  %s534_s7 = sshll.u32 %s714_s16, 5 }
   0xd   : > { %401 = vmatprep.mubr.bf16.mxu1 %v579_v22  ;;  %s197_s10 = scalar_lea.vmem %s712_s4, %s534_s7 }
   0xe   : > { %s619_s20 = scalar_lea.vmem %s708_s0, %s535_s17 }
   0xf   : > { %v622_v0 = vld [vmem:[%s619_s20 + $0x20] sm:$0xff]  ;;  %v625_v1 = vld [vmem:[%s619_s20 + $0x28] sm:$0xff]  ;;  %v640_v7 = vld [vmem:[%s619_s20 + $0x30] sm:$0xff] }
  0x10   : > { %v628_v2 = vld [vmem:[%s619_s20] sm:$0xff]  ;;  %v243_v3 = vmul.f32 %v622_v0, %v622_v0  ;;  %v244_v4 = vmul.f32 %v625_v1, %v625_v1  ;;  %v635_v5 = vld [vmem:[%s619_s20 + $0x8] sm:$0xff]  ;;  %v643_v8 = vld [vmem:[%s619_s20 + $0x38] sm:$0xff]  ;;  %v245_v10 = vmul.f32 %v640_v7, %v640_v7 }
  0x11   : > { %v211_v6 = vmul.f32 %v628_v2, %v628_v2  ;;  %v212_v9 = vmul.f32 %v635_v5, %v635_v5  ;;  %v246_v11 = vmul.f32 %v643_v8, %v643_v8  ;;  %v652_v12 = vld [vmem:[%s619_s20 + $0x10] sm:$0xff]  ;;  %v655_v13 = vld [vmem:[%s619_s20 + $0x18] sm:$0xff] }
  0x12   : > { %v247_v14 = vadd.f32 %v244_v4, %v243_v3  ;;  %v213_v15 = vmul.f32 %v652_v12, %v652_v12  ;;  %v214_v16 = vmul.f32 %v655_v13, %v655_v13 }
  0x13   : > { %v215_v17 = vadd.f32 %v212_v9, %v211_v6  ;;  %v250_v18 = vadd.f32 %v246_v11, %v245_v10 }
  0x14   : > { %248 = vadd.xlane.f32.xlu0 %v247_v14  ;;  %v218_v19 = vadd.f32 %v214_v16, %v213_v15 }
  0x15   : > { %216 = vadd.xlane.f32.xlu1 %v215_v17 }
  0x18   : > { %251 = vadd.xlane.f32.xlu0 %v250_v18 }
  0x19   : > { %219 = vadd.xlane.f32.xlu1 %v218_v19 }
  0x2a   : > { %329 = vperm.xlu1 %546, %v321_v21  }
  0x2e   : > { %324 = vperm.xlu0 %545, %v320_v20  }
  0x9d   : > { %v249_v23 = vpop.xlane.xlu0 %248 }
  0x9e   : > { %547 = vrsqrt.f32 %v249_v23  ;;  %v217_v24 = vpop.xlane.xlu1 %216  ;;  %vm255_vm0 = vcmp.eq.f32.partialorder %v249_v23, inf  ;;  %v258_v30 = vand.u32 2147483648, %v249_v23  ;;  %vm257_vm1 = vcmp.eq.f32.partialorder %v249_v23, 0.0 }
  0x9f   : > { %549 = vrsqrt.f32 %v217_v24  ;;  %vm223_vm2 = vcmp.eq.f32.partialorder %v217_v24, inf  ;;  %v226_v33 = vand.u32 2147483648, %v217_v24  ;;  %vm225_vm3 = vcmp.eq.f32.partialorder %v217_v24, 0.0 }
  0xa1   : > { %v252_v25 = vpop.xlane.xlu0 %251 }
  0xa2   : > { %551 = vrsqrt.f32 %v252_v25  ;;  %v220_v26 = vpop.xlane.xlu1 %219  ;;  %vm262_vm4 = vcmp.eq.f32.partialorder %v252_v25, inf  ;;  %v265_v42 = vand.u32 2147483648, %v252_v25  ;;  %vm264_vm5 = vcmp.eq.f32.partialorder %v252_v25, 0.0 }
  0xa3   : > { %553 = vrsqrt.f32 %v220_v26  ;;  %vm230_vm6 = vcmp.eq.f32.partialorder %v220_v26, inf  ;;  %v233_v45 = vand.u32 2147483648, %v220_v26  ;;  %vm232_vm7 = vcmp.eq.f32.partialorder %v220_v26, 0.0 }
  0xa6   : > { %v330_v10 = vpop.permute.xlu1 %329 }
  0xa9   : > { %v325_v6 = vpop.permute.xlu0 %324 }
  0xab   : > { %v548_v27 = vpop.eup %547 }
  0xac   : > { %v550_v28 = vpop.eup %549  ;;  %v254_v29 = vmul.f32 %v548_v27, %v249_v23 }
  0xad   : > { %v222_v31 = vmul.f32 %v550_v28, %v217_v24  ;;  %v208_v28 = vld [vmem:[%s619_s20 + $0x48] sm:$0xff] }
  0xae   : > { %v256_v32 = vsel %vm255_vm0, %v249_v23, %v254_v29  ;;  %v210_v29 = vld [vmem:[%s619_s20 + $0x58] sm:$0xff] }
  0xaf   : > { %v552_v34 = vpop.eup %551  ;;  %v259_v35 = vsel %vm257_vm1, %v258_v30, %v256_v32  ;;  %v224_v36 = vsel %vm223_vm2, %v217_v24, %v222_v31  ;;  %v207_v30 = vld [vmem:[%s619_s20 + $0x40] sm:$0xff]  ;;  %v365_v31 = vpack.c.bf16 %v210_v29, %v208_v28  ;;  %v209_v32 = vld [vmem:[%s619_s20 + $0x50] sm:$0xff] }
  0xb0   : > { %v554_v37 = vpop.eup %553  ;;  %v267_v38 = vmax.f32 %v259_v35, 1e-12  ;;  %v227_v39 = vsel %vm225_vm3, %v226_v33, %v224_v36  ;;  %v261_v40 = vmul.f32 %v552_v34, %v252_v25  ;;  %v364_v33 = vpack.c.bf16 %v209_v32, %v207_v30 }
  0xb1   : > { %v235_v41 = vmax.f32 %v227_v39, 1e-12  ;;  %v229_v43 = vmul.f32 %v554_v37, %v220_v26  ;;  %383 = vmatprep.subr.bf16.mxu1 %v365_v31 }
  0xb2   : > { %v263_v44 = vsel %vm262_vm4, %v252_v25, %v261_v40  ;;  %555 = vrcp.f32 %v267_v38  ;;  %384 = vmatpush1.bf16.msra.mxu1 %v364_v33 }
  0xb3   : > { %v266_v46 = vsel %vm264_vm5, %v265_v42, %v263_v44  ;;  %v231_v47 = vsel %vm230_vm6, %v220_v26, %v229_v43  ;;  %557 = vrcp.f32 %v235_v41 }
  0xb4   : > { %v268_v48 = vmax.f32 %v266_v46, 1e-12  ;;  %v234_v49 = vsel %vm232_vm7, %v233_v45, %v231_v47  ;;  %v412_v45 = vld [vmem:[%s711_s3] sm:$0xff]  ;;  %v413_v46 = vld [vmem:[%s711_s3 + $0x8] sm:$0xff] }
  0xb5   : > { %v236_v50 = vmax.f32 %v234_v49, 1e-12  ;;  %v414_v49 = vpack.c.bf16 %v413_v46, %v412_v45 }
  0xb6   : > { %559 = vrcp.f32 %v268_v48 }
  0xb7   : > { %561 = vrcp.f32 %v236_v50 }
  0xbf   : > { %v556_v51 = vpop.eup %555 }
  0xc0   : > { %v558_v52 = vpop.eup %557  ;;  %v271_v55 = vmul.f32 %v556_v51, %v625_v1  ;;  %v270_v57 = vmul.f32 %v556_v51, %v622_v0  ;;  %v334_v0 = vld [vmem:[%s710_s2] sm:$0xff] }
  0xc1   : > { %v239_v59 = vmul.f32 %v558_v52, %v635_v5  ;;  %v238_v1 = vmul.f32 %v558_v52, %v628_v2  ;;  %vm336_vm8 = vcmp.gt.f32.partialorder %v334_v0, 0.5 }
  0xc3   : > { %v560_v53 = vpop.eup %559 }
  0xc4   : > { %v562_v54 = vpop.eup %561  ;;  %v274_v56 = vmul.f32 %v560_v53, %v643_v8  ;;  %v273_v58 = vmul.f32 %v560_v53, %v640_v7  ;;  %v335_v8 = vld [vmem:[%s710_s2 + $0x8] sm:$0xff] }
  0xc5   : > { %v242_v60 = vmul.f32 %v562_v54, %v655_v13  ;;  %v241_v3 = vmul.f32 %v562_v54, %v652_v12  ;;  %vm337_vm10 = vcmp.gt.f32.partialorder %v335_v8, 0.5 }
  0xc6   : > { %v278_v61 = vpack.c.bf16 %v274_v56, %v271_v55  ;;  %v277_v62 = vpack.c.bf16 %v273_v58, %v270_v57 }
  0xc7   : > { %v276_v63 = vpack.c.bf16 %v242_v60, %v239_v59  ;;  %v275_v4 = vpack.c.bf16 %v241_v3, %v238_v1 }
  0xc8   : > { %293 = vmatprep.subr.bf16.mxu0 %v278_v61 }
  0xc9   : > { %311 = vmatprep.mubr.bf16.mxu0 %v276_v63  ;;  %294 = vmatpush1.bf16.xpose.msra.mxu0 %v277_v62 }
  0xd0   : > { %312 = vmatmul.mubr.bf16.vlgmr.msra.gmra.mxu0 %v275_v4 }
 0x190   : > { %v313_v5 = vpop.f32.mrf.mxu0 }
 0x191   : > { %v332_v7 = vmul.f32 %v325_v6, %v313_v5 }
 0x192   : > { %v315_v9 = vpop.f32.mrf.mxu0 }
 0x193   : > { %v338_v11 = vsel %vm336_vm8, %v332_v7, -1e+30 }
 0x194   : > { %v316_v12 = vpop.f32.mrf.mxu0  ;;  %v341_v2 = vsel %vm340_vm9, %v338_v11, -inf }
 0x195   : > { %v333_v13 = vmul.f32 %v330_v10, %v316_v12  ;;  %342 = vmax.xlane.f32.xlu1 %v341_v2 }
 0x196   : > { %v318_v14 = vpop.f32.mrf.mxu0 }
 0x197   : > { %v339_v15 = vsel %vm337_vm10, %v333_v13, -1e+30 }
 0x198   : > { %v344_v16 = vsel %vm340_vm9, %v339_v15, -inf }
 0x199   : > { %345 = vmax.xlane.f32.xlu0 %v344_v16 }
 0x21e   : > { %v343_v17 = vpop.xlane.xlu1 %342 }
 0x21f   : > { %v347_v18 = vsub.f32 %v338_v11, %v343_v17 }
 0x221   : > { %v349_v19 = vmul.f32 1.442695, %v347_v18 }
 0x222   : > { %v346_v20 = vpop.xlane.xlu0 %345 }
 0x223   : > { %563 = vpow2.f32 %v349_v19  ;;  %v348_v21 = vsub.f32 %v339_v15, %v346_v20 }
 0x225   : > { %v351_v23 = vmul.f32 1.442695, %v348_v21 }
 0x227   : > { %565 = vpow2.f32 %v351_v23 }
 0x230   : > { %v564_v24 = vpop.eup %563 }
 0x231   : > { %v353_v25 = vsel %vm340_vm9, %v564_v24, 0.0 }
 0x232   : > { %354 = vadd.xlane.f32.xlu1 %v353_v25 }
 0x234   : > { %v566_v26 = vpop.eup %565 }
 0x235   : > { %v356_v27 = vsel %vm340_vm9, %v566_v26, 0.0 }
 0x236   : > { %357 = vadd.xlane.f32.xlu1 %v356_v27 }
 0x2bb   : > { %v355_v34 = vpop.xlane.xlu1 %354 }
 0x2bc   : > { %567 = vrcp.f32 %v355_v34 }
 0x2bf   : > { %v358_v35 = vpop.xlane.xlu1 %357 }
 0x2c0   : > { %569 = vrcp.f32 %v358_v35 }
 0x2c9   : > { %v568_v36 = vpop.eup %567 }
 0x2ca   : > { %v360_v38 = vmul.f32 %v568_v36, %v564_v24 }
 0x2cd   : > { %v570_v37 = vpop.eup %569 }
 0x2ce   : > { %v362_v39 = vmul.f32 %v570_v37, %v566_v26 }
 0x2d0   : > { %v363_v40 = vpack.c.bf16 %v362_v39, %v360_v38 }
 0x2d2   : > { %530 = vmatmul.mubr.msk.bf16.vlgmr.msra.gmra.mxu1 %vm340_vm9, %v363_v40 }
 0x2d3   : > { %452 = vmatprep.mubr.bf16.mxu1 %v579_v22 }
 0x392   : > { %v403_v41 = vpop.f32.mrf.mxu1 }
 0x394   : > { %v405_v42 = vpop.f32.mrf.mxu1 }
 0x396   : > { %v407_v43 = vpop.f32.mrf.mxu1 }
 0x397   : > { %v415_v48 = vpack.c.bf16 %v407_v43, %v403_v41 }
 0x398   : > { %v409_v44 = vpop.f32.mrf.mxu1 }
 0x399   : > { %v416_v47 = vpack.c.bf16 %v409_v44, %v405_v42 }
 0x39b   : > { %434 = vmatprep.subr.bf16.mxu1 %v416_v47 }
 0x39c   : > { %435 = vmatpush1.bf16.msra.mxu1 %v415_v48 }
 0x39f   : > { %531 = vmatmul.mubr.msk.bf16.vlgmr.msra.gmra.mxu1 %vm340_vm9, %v414_v49 }
 0x45f   : > { %v454_v22 = vpop.f32.mrf.mxu1 }
 0x460   : > { %463 = vst [vmem:[%s197_s10] sm:$0xff] %v454_v22 }
 0x461   : > { %v456_v50 = vpop.f32.mrf.mxu1 }
 0x462   : > { %464 = vst [vmem:[%s197_s10 + $0x8] sm:$0xff] %v456_v50 }
 0x463   : > { %v458_v51 = vpop.f32.mrf.mxu1 }
 0x464   : > { %465 = vst [vmem:[%s197_s10 + $0x10] sm:$0xff] %v458_v51 }
 0x465   : > { %v460_v52 = vpop.f32.mrf.mxu1 }
 0x466   : > { %466 = vst [vmem:[%s197_s10 + $0x18] sm:$0xff] %v460_v52 }
 0x467 PF: > { %s14_s15 = sadd.s32 1, %s577_s15  }
 0x468   : > { %p11_p4 = scmp.ge.s32.totalorder %s14_s15, 4  }
 0x46a   :  { %13 = sbr.rel (!%p11_p4) target bundleno = 1 (0x1), region = 66 }

// kernel: _lambda_.4
= control target key start
LH: loop header
LB: loop body
LE: loop exit
PB: predicated region body
PF: predicated region fallthrough
CT: control target
= control target key end

     0   :  { %s8296_s9 = smov 0   ;;  %s14306_s0 = inlined_call_operand.vmem [shape: f32[2,48,18,18], index: 0, kind: input, shape index: {}]   ;;  %s14307_s1 = inlined_call_operand.vmem [shape: f32[2,48,3,3], index: 1, kind: input, shape index: {}]   ;;  %s14308_s2 = inlined_call_operand.vmem [shape: f32[2,48,16,16], index: 2, kind: output, shape index: {}]  }
   0x1   :  { %14315 = sst [smem:[#allocation647_spill]] %s14306_s0 }
   0x2   :  { %14316 = sst [smem:[#allocation648_spill]] %s14307_s1 }
   0x3   :  { %14317 = sst [smem:[#allocation649_spill]] %s14308_s2 }
   0x4 LB: > { %14318 = sst [smem:[#allocation2_spill]] %s8277_s9  ;;  %s6712_s10 = sadd.s32 4294967295, %s8277_s9   ;;  %s8277_s9 = sphi %s8296_s9, %s12_s9  }
   0x5   : > { %p6716_p0 = scmp.ge.s32.totalorder %s8277_s9, 1  ;;  %p122_p1 = scmp.lt.s32.totalorder %s8277_s9, 3 }
   0x7   : > { %p123_p2 = pnand %p6716_p0, %p122_p1 }
   0x9   : > { %126 = sbr.rel (%p123_p2) target bundleno = 2359 (0x937), region = 28 }
   0xe   : > { %p149_p3 = scmp.lt.s32.totalorder %s6712_s10, 1  ;;  %s14320_s1 = sld [smem:[#allocation648_spill]]  ;;  %vm6548_vm0 = vcmask 130048  }
   0xf   : > { %s14309_s15 = smov 127   ;;  %s14347_s0 = sld [smem:[#allocation647_spill]] }
  0x10   : > { %s15940_s10 = smov (!%p149_p3, %s6712_s10), 1 }
  0x11   : > { %14319 = sst [smem:[#allocation3_spill]] %s15940_s10  ;;  %s6723_s11 = smul.u32 192, %s15940_s10 }
  0x14   : > { %s8310_s14 = scalar_lea.vmem %s14320_s1, %s6723_s11 }
  0x15   : > { %v164_v0 = vld [vmem:[%s8310_s14] sm:$0x7]  ;;  %v166_v1 = vld [vmem:[%s8310_s14 + $0x8] sm:$0x7]  ;;  %v165_v2 = vld [vmem:[%s8310_s14 + $0x4] sm:$0x7] }
  0x16   : > { %692 = vrot.lane.b32.xlu0 %v164_v0, %s14309_s15  ;;  %696 = vrot.lane.b32.xlu1 %v166_v1, %s14309_s15  ;;  %6725 = vpush %v164_v0  ;;  %v167_v3 = vld [vmem:[%s8310_s14 + $0xc] sm:$0x7]  ;;  %v168_v4 = vld [vmem:[%s8310_s14 + $0x10] sm:$0x7] }
  0x17   : > { %6727 = vpush %v165_v2  ;;  %v169_v5 = vld [vmem:[%s8310_s14 + $0x14] sm:$0x7]  ;;  %v170_v6 = vld [vmem:[%s8310_s14 + $0x18] sm:$0x7]  ;;  %v171_v7 = vld [vmem:[%s8310_s14 + $0x1c] sm:$0x7] }
  0x18   : > { %6729 = vpush %v166_v1  ;;  %v172_v8 = vld [vmem:[%s8310_s14 + $0x20] sm:$0x7]  ;;  %v173_v9 = vld [vmem:[%s8310_s14 + $0x24] sm:$0x7]  ;;  %v174_v10 = vld [vmem:[%s8310_s14 + $0x28] sm:$0x7] }
  0x19   : > { %6731 = vpush %v167_v3  ;;  %v175_v11 = vld [vmem:[%s8310_s14 + $0x2c] sm:$0x7]  ;;  %v176_v12 = vld [vmem:[%s8310_s14 + $0x30] sm:$0x7]  ;;  %v177_v13 = vld [vmem:[%s8310_s14 + $0x34] sm:$0x7] }
  0x1a   : > { %694 = vrot.lane.b32.xlu0 %v165_v2, %s14309_s15  ;;  %698 = vrot.lane.b32.xlu1 %v167_v3, %s14309_s15  ;;  %6733 = vpush %v168_v4  ;;  %v178_v14 = vld [vmem:[%s8310_s14 + $0x38] sm:$0x7]  ;;  %v179_v15 = vld [vmem:[%s8310_s14 + $0x3c] sm:$0x7] }
  0x1b   : > { %6735 = vpush %v169_v5  ;;  %v180_v16 = vld [vmem:[%s8310_s14 + $0x40] sm:$0x7]  ;;  %v181_v17 = vld [vmem:[%s8310_s14 + $0x44] sm:$0x7]  ;;  %v182_v18 = vld [vmem:[%s8310_s14 + $0x48] sm:$0x7] }
  0x1c   : > { %6737 = vpush %v170_v6  ;;  %v183_v19 = vld [vmem:[%s8310_s14 + $0x4c] sm:$0x7]  ;;  %v184_v20 = vld [vmem:[%s8310_s14 + $0x50] sm:$0x7]  ;;  %v185_v21 = vld [vmem:[%s8310_s14 + $0x54] sm:$0x7] }
  0x1d   : > { %6739 = vpush %v171_v7  ;;  %v186_v22 = vld [vmem:[%s8310_s14 + $0x58] sm:$0x7]  ;;  %v187_v23 = vld [vmem:[%s8310_s14 + $0x5c] sm:$0x7]  ;;  %v188_v24 = vld [vmem:[%s8310_s14 + $0x60] sm:$0x7] }
  0x1e   : > { %700 = vrot.lane.b32.xlu0 %v168_v4, %s14309_s15  ;;  %702 = vrot.lane.b32.xlu1 %v169_v5, %s14309_s15  ;;  %6741 = vpush %v172_v8  ;;  %v189_v25 = vld [vmem:[%s8310_s14 + $0x64] sm:$0x7]  ;;  %v190_v26 = vld [vmem:[%s8310_s14 + $0x68] sm:$0x7] }
  0x1f   : > { %6743 = vpush %v173_v9  ;;  %v191_v27 = vld [vmem:[%s8310_s14 + $0x6c] sm:$0x7]  ;;  %v193_v28 = vld [vmem:[%s8310_s14 + $0x74] sm:$0x7]  ;;  %v192_v29 = vld [vmem:[%s8310_s14 + $0x70] sm:$0x7] }
  0x20   : > { %6745 = vpush %v174_v10  ;;  %v194_v30 = vld [vmem:[%s8310_s14 + $0x78] sm:$0x7]  ;;  %v195_v31 = vld [vmem:[%s8310_s14 + $0x7c] sm:$0x7]  ;;  %v196_v32 = vld [vmem:[%s8310_s14 + $0x80] sm:$0x7] }
  0x21   : > { %6747 = vpush %v175_v11  ;;  %v197_v33 = vld [vmem:[%s8310_s14 + $0x84] sm:$0x7]  ;;  %v198_v34 = vld [vmem:[%s8310_s14 + $0x88] sm:$0x7]  ;;  %v199_v35 = vld [vmem:[%s8310_s14 + $0x8c] sm:$0x7] }
  0x22   : > { %704 = vrot.lane.b32.xlu0 %v170_v6, %s14309_s15  ;;  %706 = vrot.lane.b32.xlu1 %v171_v7, %s14309_s15  ;;  %6749 = vpush %v176_v12  ;;  %v200_v36 = vld [vmem:[%s8310_s14 + $0x90] sm:$0x7]  ;;  %v201_v37 = vld [vmem:[%s8310_s14 + $0x94] sm:$0x7] }
  0x23   : > { %6751 = vpush %v177_v13  ;;  %v202_v38 = vld [vmem:[%s8310_s14 + $0x98] sm:$0x7]  ;;  %v203_v39 = vld [vmem:[%s8310_s14 + $0x9c] sm:$0x7]  ;;  %v204_v40 = vld [vmem:[%s8310_s14 + $0xa0] sm:$0x7] }
  0x24   : > { %6753 = vpush %v178_v14  ;;  %v205_v41 = vld [vmem:[%s8310_s14 + $0xa4] sm:$0x7]  ;;  %v206_v42 = vld [vmem:[%s8310_s14 + $0xa8] sm:$0x7]  ;;  %v207_v43 = vld [vmem:[%s8310_s14 + $0xac] sm:$0x7] }
  0x25   : > { %6755 = vpush %v179_v15  ;;  %v208_v44 = vld [vmem:[%s8310_s14 + $0xb0] sm:$0x7]  ;;  %v209_v45 = vld [vmem:[%s8310_s14 + $0xb4] sm:$0x7]  ;;  %v210_v46 = vld [vmem:[%s8310_s14 + $0xb8] sm:$0x7] }
  0x26   : > { %708 = vrot.lane.b32.xlu0 %v172_v8, %s14309_s15  ;;  %710 = vrot.lane.b32.xlu1 %v173_v9, %s14309_s15  ;;  %6757 = vpush %v180_v16  ;;  %v211_v47 = vld [vmem:[%s8310_s14 + $0xbc] sm:$0x7] }
  0x27   : > { %6759 = vpush %v181_v17 }
  0x28   : > { %6761 = vpush %v182_v18 }
  0x29   : > { %6763 = vpush %v183_v19 }
  0x2a   : > { %712 = vrot.lane.b32.xlu0 %v174_v10, %s14309_s15  ;;  %714 = vrot.lane.b32.xlu1 %v175_v11, %s14309_s15  ;;  %6765 = vpush %v184_v20 }
  0x2b   : > { %6767 = vpush %v185_v21 }
  0x2c   : > { %6769 = vpush %v186_v22 }
  0x2d   : > { %6771 = vpush %v187_v23 }
  0x2e   : > { %716 = vrot.lane.b32.xlu0 %v176_v12, %s14309_s15  ;;  %718 = vrot.lane.b32.xlu1 %v177_v13, %s14309_s15  ;;  %6773 = vpush %v188_v24 }
  0x2f   : > { %6775 = vpush %v189_v25 }
  0x30   : > { %6777 = vpush %v190_v26 }
  0x31   : > { %6779 = vpush %v191_v27 }
  0x32   : > { %720 = vrot.lane.b32.xlu0 %v178_v14, %s14309_s15  ;;  %722 = vrot.lane.b32.xlu1 %v179_v15, %s14309_s15  ;;  %6781 = vpush %v192_v29 }
  0x33   : > { %6783 = vpush %v193_v28 }
  0x34   : > { %6785 = vpush %v194_v30 }
  0x35   : > { %6787 = vpush %v195_v31 }
  0x36   : > { %724 = vrot.lane.b32.xlu0 %v180_v16, %s14309_s15  ;;  %726 = vrot.lane.b32.xlu1 %v181_v17, %s14309_s15  ;;  %6789 = vpush %v196_v32 }
  0x37   : > { %6791 = vpush %v197_v33 }
  0x38   : > { %6793 = vpush %v198_v34 }
  0x39   : > { %6795 = vpush %v199_v35 }
  0x3a   : > { %728 = vrot.lane.b32.xlu0 %v182_v18, %s14309_s15  ;;  %730 = vrot.lane.b32.xlu1 %v183_v19, %s14309_s15  ;;  %6797 = vpush %v200_v36 }
  0x3b   : > { %6799 = vpush %v201_v37 }
  0x3c   : > { %6801 = vpush %v202_v38 }
  0x3d   : > { %6803 = vpush %v203_v39 }
  0x3e   : > { %732 = vrot.lane.b32.xlu0 %v184_v20, %s14309_s15  ;;  %734 = vrot.lane.b32.xlu1 %v185_v21, %s14309_s15  ;;  %6805 = vpush %v204_v40 }
  0x3f   : > { %6807 = vpush %v205_v41 }
  0x40   : > { %6809 = vpush %v206_v42 }
  0x41   : > { %6811 = vpush %v207_v43 }
  0x42   : > { %736 = vrot.lane.b32.xlu0 %v186_v22, %s14309_s15  ;;  %738 = vrot.lane.b32.xlu1 %v187_v23, %s14309_s15  ;;  %6813 = vpush %v208_v44 }
  0x43   : > { %6815 = vpush %v209_v45 }
  0x44   : > { %6817 = vpush %v210_v46 }
  0x45   : > { %6819 = vpush %v211_v47 }
  0x46   : > { %740 = vrot.lane.b32.xlu0 %v188_v24, %s14309_s15  ;;  %742 = vrot.lane.b32.xlu1 %v189_v25, %s14309_s15 }
  0x47   : > { %s8396_s16 = spop %6725 }
  0x48   : > { %s8398_s17 = spop %6727 }
  0x49   : > { %s8402_s18 = spop %6729 }
  0x4a   : > { %744 = vrot.lane.b32.xlu0 %v190_v26, %s14309_s15  ;;  %746 = vrot.lane.b32.xlu1 %v191_v27, %s14309_s15  ;;  %s8404_s19 = spop %6731 }
  0x4b   : > { %s8408_s20 = spop %6733 }
  0x4c   : > { %s8410_s21 = spop %6735 }
  0x4d   : > { %s8414_s22 = spop %6737 }
  0x4e   : > { %748 = vrot.lane.b32.xlu0 %v192_v29, %s14309_s15  ;;  %750 = vrot.lane.b32.xlu1 %v193_v28, %s14309_s15  ;;  %s8416_s23 = spop %6739 }
  0x4f   : > { %s8420_s24 = spop %6741 }
  0x50   : > { %s8422_s25 = spop %6743 }
  0x51   : > { %s8426_s26 = spop %6745 }
  0x52   : > { %752 = vrot.lane.b32.xlu0 %v194_v30, %s14309_s15  ;;  %754 = vrot.lane.b32.xlu1 %v195_v31, %s14309_s15  ;;  %s8428_s27 = spop %6747 }
  0x53   : > { %s8432_s28 = spop %6749 }
  0x54   : > { %s8434_s29 = spop %6751 }
  0x55   : > { %s8436_s30 = spop %6753 }
  0x56   : > { %756 = vrot.lane.b32.xlu0 %v196_v32, %s14309_s15  ;;  %758 = vrot.lane.b32.xlu1 %v197_v33, %s14309_s15  ;;  %s8438_s3 = spop %6755 }
  0x57   : > { %s8440_s4 = spop %6757 }
  0x58   : > { %s8442_s5 = spop %6759 }
  0x59   : > { %s8444_s6 = spop %6761 }
  0x5a   : > { %760 = vrot.lane.b32.xlu0 %v198_v34, %s14309_s15  ;;  %762 = vrot.lane.b32.xlu1 %v199_v35, %s14309_s15  ;;  %s8446_s7 = spop %6763 }
  0x5b   : > { %s8448_s8 = spop %6765 }
  0x5c   : > { %14321 = sst [smem:[#allocation4_spill]] %s8448_s8  ;;  %s8450_s11 = spop %6767 }
  0x5d   : > { %14322 = sst [smem:[#allocation5_spill]] %s8450_s11  ;;  %s8452_s12 = spop %6769 }
  0x5e   : > { %766 = vrot.lane.b32.xlu1 %v201_v37, %s14309_s15  ;;  %764 = vrot.lane.b32.xlu0 %v200_v36, %s14309_s15  ;;  %14323 = sst [smem:[#allocation6_spill]] %s8452_s12  ;;  %s8454_s13 = spop %6771 }
  0x5f   : > { %14324 = sst [smem:[#allocation7_spill]] %s8454_s13 }
  0x62   : > { %770 = vrot.lane.b32.xlu1 %v203_v39, %s14309_s15  ;;  %768 = vrot.lane.b32.xlu0 %v202_v38, %s14309_s15 }
  0x66   : > { %774 = vrot.lane.b32.xlu1 %v205_v41, %s14309_s15  ;;  %772 = vrot.lane.b32.xlu0 %v204_v40, %s14309_s15 }
  0x6a   : > { %778 = vrot.lane.b32.xlu1 %v207_v43, %s14309_s15  ;;  %776 = vrot.lane.b32.xlu0 %v206_v42, %s14309_s15 }
  0x6e   : > { %782 = vrot.lane.b32.xlu1 %v209_v45, %s14309_s15  ;;  %780 = vrot.lane.b32.xlu0 %v208_v44, %s14309_s15 }
  0x72   : > { %786 = vrot.lane.b32.xlu1 %v211_v47, %s14309_s15  ;;  %784 = vrot.lane.b32.xlu0 %v210_v46, %s14309_s15  ;;  %s8456_s15 = spop %6773 }
  0x73   : > { %14325 = sst [smem:[#allocation8_spill]] %s8456_s15  ;;  %s8458_s1 = spop %6775 }
  0x74   : > { %14326 = sst [smem:[#allocation9_spill]] %s8458_s1  ;;  %s8460_s9 = spop %6777 }
  0x75   : > { %14327 = sst [smem:[#allocation10_spill]] %s8460_s9  ;;  %s8462_s2 = spop %6779 }
  0x76   : > { %14328 = sst [smem:[#allocation11_spill]] %s8462_s2  ;;  %s8464_s12 = spop %6781 }
  0x77   : > { %14329 = sst [smem:[#allocation12_spill]] %s8464_s12  ;;  %s8466_s15 = spop %6783 }
  0x78   : > { %14330 = sst [smem:[#allocation13_spill]] %s8466_s15  ;;  %s8468_s1 = spop %6785 }
  0x79   : > { %14331 = sst [smem:[#allocation14_spill]] %s8468_s1  ;;  %s8470_s9 = spop %6787 }
  0x7a   : > { %14332 = sst [smem:[#allocation15_spill]] %s8470_s9  ;;  %s8472_s13 = spop %6789 }
  0x7b   : > { %14333 = sst [smem:[#allocation16_spill]] %s8472_s13  ;;  %s8474_s2 = spop %6791 }
  0x7c   : > { %14334 = sst [smem:[#allocation17_spill]] %s8474_s2  ;;  %s8476_s12 = spop %6793 }
  0x7d   : > { %14335 = sst [smem:[#allocation18_spill]] %s8476_s12  ;;  %s8478_s15 = spop %6795 }
  0x7e   : > { %14336 = sst [smem:[#allocation19_spill]] %s8478_s15  ;;  %s8480_s1 = spop %6797 }
  0x7f   : > { %14337 = sst [smem:[#allocation20_spill]] %s8480_s1  ;;  %s8482_s9 = spop %6799 }
  0x80   : > { %14338 = sst [smem:[#allocation21_spill]] %s8482_s9  ;;  %s8484_s13 = spop %6801 }
  0x81   : > { %14339 = sst [smem:[#allocation22_spill]] %s8484_s13  ;;  %s8486_s2 = spop %6803 }
  0x82   : > { %14340 = sst [smem:[#allocation23_spill]] %s8486_s2  ;;  %s8488_s15 = spop %6805 }
  0x83   : > { %14341 = sst [smem:[#allocation24_spill]] %s8488_s15  ;;  %s8490_s12 = spop %6807 }
  0x84   : > { %14342 = sst [smem:[#allocation25_spill]] %s8490_s12  ;;  %s8492_s9 = spop %6809 }
  0x85   : > { %14343 = sst [smem:[#allocation26_spill]] %s8492_s9  ;;  %s8494_s1 = spop %6811 }
  0x86   : > { %14344 = sst [smem:[#allocation27_spill]] %s8494_s1  ;;  %s6722_s2 = smul.u32 1152, %s15940_s10 }
  0x87   : > { %s8497_s13 = spop %6813  ;;  %s14350_s15 = smov 127  }
  0x88   : > { %v693_v48 = vpop.permute.xlu0 %692  ;;  %v697_v49 = vpop.permute.xlu1 %696  ;;  %14345 = sst [smem:[#allocation28_spill]] %s8497_s13  ;;  %s8499_s11 = spop %6815 }
  0x89   : > { %6821 = vpush %v693_v48  ;;  %14346 = sst [smem:[#allocation29_spill]] %s8499_s11  ;;  %s8504_s8 = scalar_lea.vmem %s14347_s0, %s6722_s2 }
  0x8a   : > { %s8506_s1 = spop %6817  ;;  %v212_v10 = vld [vmem:[%s8504_s8] sm:$0xff]  ;;  %v213_v11 = vld [vmem:[%s8504_s8 + $0x8] sm:$0xff]  ;;  %v214_v17 = vld [vmem:[%s8504_s8 + $0x18] sm:$0xff] }
  0x8b   : > { %14348 = sst [smem:[#allocation30_spill]] %s8506_s1  ;;  %s8508_s9 = spop %6819  ;;  %v215_v18 = vld [vmem:[%s8504_s8 + $0x20] sm:$0xff]  ;;  %v216_v25 = vld [vmem:[%s8504_s8 + $0x30] sm:$0xff]  ;;  %v217_v26 = vld [vmem:[%s8504_s8 + $0x38] sm:$0xff] }
  0x8c   : > { %v695_v50 = vpop.permute.xlu0 %694  ;;  %v699_v51 = vpop.permute.xlu1 %698  ;;  %14349 = sst [smem:[#allocation31_spill]] %s8508_s9  ;;  %v218_v32 = vld [vmem:[%s8504_s8 + $0x48] sm:$0xff]  ;;  %v219_v33 = vld [vmem:[%s8504_s8 + $0x50] sm:$0xff]  ;;  %v220_v39 = vld [vmem:[%s8504_s8 + $0x60] sm:$0xff] }
  0x8d   : > { %6823 = vpush %v695_v50  ;;  %v221_v40 = vld [vmem:[%s8504_s8 + $0x68] sm:$0xff]  ;;  %v222_v46 = vld [vmem:[%s8504_s8 + $0x78] sm:$0xff]  ;;  %v223_v47 = vld [vmem:[%s8504_s8 + $0x80] sm:$0xff] }
  0x8e   : > { %6825 = vpush %v697_v49 }
  0x8f   : > { %6827 = vpush %v699_v51 }
  0x90   : > { %v701_v52 = vpop.permute.xlu0 %700  ;;  %v703_v53 = vpop.permute.xlu1 %702 }
  0x91   : > { %6829 = vpush %v701_v52 }
  0x92   : > { %6831 = vpush %v703_v53  ;;  %v224_v53 = vld [vmem:[%s8504_s8 + $0x90] sm:$0xff] }
  0x94   : > { %v705_v54 = vpop.permute.xlu0 %704  ;;  %v707_v55 = vpop.permute.xlu1 %706 }
  0x95   : > { %6833 = vpush %v705_v54  ;;  %v225_v54 = vld [vmem:[%s8504_s8 + $0x98] sm:$0xff] }
  0x96   : > { %6835 = vpush %v707_v55 }
  0x98   : > { %v709_v56 = vpop.permute.xlu0 %708  ;;  %v711_v57 = vpop.permute.xlu1 %710 }
  0x99   : > { %6837 = vpush %v709_v56 }
  0x9a   : > { %6839 = vpush %v711_v57 }
  0x9c   : > { %v713_v58 = vpop.permute.xlu0 %712  ;;  %v715_v59 = vpop.permute.xlu1 %714 }
  0x9d   : > { %6841 = vpush %v713_v58 }
  0x9e   : > { %6843 = vpush %v715_v59 }
  0xa0   : > { %v717_v60 = vpop.permute.xlu0 %716  ;;  %v719_v61 = vpop.permute.xlu1 %718 }
  0xa1   : > { %6845 = vpush %v717_v60  ;;  %v226_v60 = vld [vmem:[%s8504_s8 + $0xa8] sm:$0xff] }
  0xa2   : > { %6847 = vpush %v719_v61  ;;  %v227_v61 = vld [vmem:[%s8504_s8 + $0xb0] sm:$0xff] }
  0xa4   : > { %v721_v62 = vpop.permute.xlu0 %720  ;;  %v723_v63 = vpop.permute.xlu1 %722 }
  0xa5   : > { %6849 = vpush %v721_v62 }
  0xa6   : > { %6851 = vpush %v723_v63 }
  0xa8   : > { %v725_v0 = vpop.permute.xlu0 %724  ;;  %v727_v1 = vpop.permute.xlu1 %726 }
  0xa9   : > { %6853 = vpush %v725_v0 }
  0xaa   : > { %6855 = vpush %v727_v1 }
  0xac   : > { %v729_v2 = vpop.permute.xlu0 %728  ;;  %v731_v3 = vpop.permute.xlu1 %730 }
  0xad   : > { %6857 = vpush %v729_v2 }
  0xae   : > { %6859 = vpush %v731_v3  ;;  %v228_v3 = vld [vmem:[%s8504_s8 + $0xc0] sm:$0xff] }
  0xb0   : > { %v733_v4 = vpop.permute.xlu0 %732  ;;  %v735_v5 = vpop.permute.xlu1 %734 }
  0xb1   : > { %6861 = vpush %v733_v4  ;;  %v229_v4 = vld [vmem:[%s8504_s8 + $0xc8] sm:$0xff] }
  0xb2   : > { %6863 = vpush %v735_v5 }
  0xb4   : > { %v737_v6 = vpop.permute.xlu0 %736  ;;  %v739_v7 = vpop.permute.xlu1 %738 }
  0xb5   : > { %6865 = vpush %v737_v6 }
  0xb6   : > { %6867 = vpush %v739_v7 }
  0xb8   : > { %v741_v8 = vpop.permute.xlu0 %740  ;;  %v743_v9 = vpop.permute.xlu1 %742 }
  0xb9   : > { %6869 = vpush %v741_v8 }
  0xba   : > { %s6822_s10 = spop %6821  ;;  %6871 = vpush %v743_v9 }
  0xbb   : > { %v789_v12 = vstv %s6822_s10 }
  0xbc   : > { %v932_v13 = vmul.f32 %v789_v12, %v212_v10  ;;  %v933_v14 = vmul.f32 %v789_v12, %v213_v11  ;;  %v745_v15 = vpop.permute.xlu0 %744  ;;  %v747_v16 = vpop.permute.xlu1 %746  ;;  %v230_v10 = vld [vmem:[%s8504_s8 + $0xd8] sm:$0xff]  ;;  %v231_v11 = vld [vmem:[%s8504_s8 + $0xe0] sm:$0xff] }
  0xbd   : > { %6873 = vpush %v745_v15 }
  0xbe   : > { %s6824_s2 = spop %6823  ;;  %1126 = vrot.lane.b32.xlu1 %v933_v14, %s14350_s15  ;;  %1124 = vrot.lane.b32.xlu0 %v932_v13, %s14350_s15  ;;  %6875 = vpush %v747_v16 }
  0xbf   : > { %v792_v19 = vstv %s6824_s2  ;;  %s6826_s12 = spop %6825 }
  0xc0   : > { %v934_v20 = vmul.f32 %v792_v19, %v214_v17  ;;  %v935_v21 = vmul.f32 %v792_v19, %v215_v18  ;;  %v795_v22 = vstv %s6826_s12  ;;  %s6828_s10 = spop %6827  ;;  %v749_v23 = vpop.permute.xlu0 %748  ;;  %v751_v24 = vpop.permute.xlu1 %750  ;;  %v232_v17 = vld [vmem:[%s8504_s8 + $0xf0] sm:$0xff]  ;;  %v233_v18 = vld [vmem:[%s8504_s8 + $0xf8] sm:$0xff] }
  0xc1   : > { %6877 = vpush %v749_v23  ;;  %v936_v27 = vmul.f32 %v795_v22, %v216_v25  ;;  %v937_v28 = vmul.f32 %v795_v22, %v217_v26  ;;  %v798_v29 = vstv %s6828_s10  ;;  %v234_v23 = vld [vmem:[%s8504_s8 + $0x108] sm:$0xff] }
  0xc2   : > { %1130 = vrot.lane.b32.xlu1 %v935_v21, %s14350_s15  ;;  %1128 = vrot.lane.b32.xlu0 %v934_v20, %s14350_s15  ;;  %6879 = vpush %v751_v24  ;;  %s6830_s2 = spop %6829  ;;  %v938_v34 = vmul.f32 %v798_v29, %v218_v32  ;;  %v939_v35 = vmul.f32 %v798_v29, %v219_v33  ;;  %v235_v24 = vld [vmem:[%s8504_s8 + $0x110] sm:$0xff]  ;;  %v236_v29 = vld [vmem:[%s8504_s8 + $0x120] sm:$0xff] }
  0xc3   : > { %v801_v36 = vstv %s6830_s2  ;;  %s6832_s12 = spop %6831 }
  0xc4   : > { %v753_v30 = vpop.permute.xlu0 %752  ;;  %v755_v31 = vpop.permute.xlu1 %754  ;;  %v940_v41 = vmul.f32 %v801_v36, %v220_v39  ;;  %v941_v42 = vmul.f32 %v801_v36, %v221_v40  ;;  %v804_v43 = vstv %s6832_s12  ;;  %v240_v39 = vld [vmem:[%s8504_s8 + $0x150] sm:$0xff]  ;;  %v241_v40 = vld [vmem:[%s8504_s8 + $0x158] sm:$0xff] }
  0xc5   : > { %6881 = vpush %v753_v30  ;;  %v942_v48 = vmul.f32 %v804_v43, %v222_v46  ;;  %v943_v49 = vmul.f32 %v804_v43, %v223_v47  ;;  %v237_v30 = vld [vmem:[%s8504_s8 + $0x128] sm:$0xff] }
  0xc6   : > { %1134 = vrot.lane.b32.xlu1 %v937_v28, %s14350_s15  ;;  %1132 = vrot.lane.b32.xlu0 %v936_v27, %s14350_s15  ;;  %6883 = vpush %v755_v31  ;;  %s6834_s10 = spop %6833 }
  0xc7   : > { %v807_v50 = vstv %s6834_s10  ;;  %s6836_s2 = spop %6835 }
  0xc8   : > { %v757_v37 = vpop.permute.xlu0 %756  ;;  %v759_v38 = vpop.permute.xlu1 %758  ;;  %v944_v55 = vmul.f32 %v807_v50, %v224_v53  ;;  %v945_v56 = vmul.f32 %v807_v50, %v225_v54  ;;  %v810_v57 = vstv %s6836_s2  ;;  %v245_v50 = vld [vmem:[%s8504_s8 + $0x188] sm:$0xff]  ;;  %v246_v54 = vld [vmem:[%s8504_s8 + $0x198] sm:$0xff] }
  0xc9   : > { %6885 = vpush %v757_v37  ;;  %v946_v62 = vmul.f32 %v810_v57, %v226_v60  ;;  %v947_v63 = vmul.f32 %v810_v57, %v227_v61  ;;  %v249_v60 = vld [vmem:[%s8504_s8 + $0x1b8] sm:$0xff] }
  0xca   : > { %1138 = vrot.lane.b32.xlu1 %v939_v35, %s14350_s15  ;;  %1136 = vrot.lane.b32.xlu0 %v938_v34, %s14350_s15  ;;  %6887 = vpush %v759_v38  ;;  %s6838_s12 = spop %6837  ;;  %v238_v34 = vld [vmem:[%s8504_s8 + $0x138] sm:$0xff]  ;;  %v239_v35 = vld [vmem:[%s8504_s8 + $0x140] sm:$0xff] }
  0xcb   : > { %v813_v0 = vstv %s6838_s12  ;;  %s6840_s10 = spop %6839 }
  0xcc   : > { %v761_v44 = vpop.permute.xlu0 %760  ;;  %v763_v45 = vpop.permute.xlu1 %762  ;;  %v948_v5 = vmul.f32 %v813_v0, %v228_v3  ;;  %v949_v6 = vmul.f32 %v813_v0, %v229_v4  ;;  %v816_v7 = vstv %s6840_s10  ;;  %v250_v0 = vld [vmem:[%s8504_s8 + $0x1c8] sm:$0xff] }
  0xcd   : > { %6889 = vpush %v761_v44  ;;  %v950_v12 = vmul.f32 %v816_v7, %v230_v10  ;;  %v951_v13 = vmul.f32 %v816_v7, %v231_v11  ;;  %v242_v44 = vld [vmem:[%s8504_s8 + $0x168] sm:$0xff]  ;;  %v254_v10 = vld [vmem:[%s8504_s8 + $0x1f8] sm:$0xff]  ;;  %v255_v11 = vld [vmem:[%s8504_s8 + $0x200] sm:$0xff] }
  0xce   : > { %1142 = vrot.lane.b32.xlu1 %v941_v42, %s14350_s15  ;;  %1140 = vrot.lane.b32.xlu0 %v940_v41, %s14350_s15  ;;  %6891 = vpush %v763_v45  ;;  %s6842_s2 = spop %6841  ;;  %v243_v45 = vld [vmem:[%s8504_s8 + $0x170] sm:$0xff] }
  0xcf   : > { %v819_v14 = vstv %s6842_s2  ;;  %s6844_s12 = spop %6843 }
  0xd0   : > { %v767_v51 = vpop.permute.xlu1 %766  ;;  %v765_v52 = vpop.permute.xlu0 %764  ;;  %v952_v19 = vmul.f32 %v819_v14, %v232_v17  ;;  %v953_v20 = vmul.f32 %v819_v14, %v233_v18  ;;  %v822_v21 = vstv %s6844_s12 }
  0xd1   : > { %6893 = vpush %v765_v52  ;;  %v954_v26 = vmul.f32 %v822_v21, %v234_v23  ;;  %v955_v27 = vmul.f32 %v822_v21, %v235_v24  ;;  %v259_v21 = vld [vmem:[%s8504_s8 + $0x230] sm:$0xff] }
  0xd2   : > { %1146 = vrot.lane.b32.xlu1 %v943_v49, %s14350_s15  ;;  %1144 = vrot.lane.b32.xlu0 %v942_v48, %s14350_s15  ;;  %6895 = vpush %v767_v51  ;;  %s6846_s10 = spop %6845  ;;  %v244_v49 = vld [vmem:[%s8504_s8 + $0x180] sm:$0xff] }
  0xd3   : > { %v825_v28 = vstv %s6846_s10  ;;  %s6848_s2 = spop %6847 }
  0xd4   : > { %v771_v58 = vpop.permute.xlu1 %770  ;;  %v769_v59 = vpop.permute.xlu0 %768  ;;  %v956_v31 = vmul.f32 %v825_v28, %v236_v29  ;;  %v957_v32 = vmul.f32 %v825_v28, %v237_v30  ;;  %v828_v33 = vstv %s6848_s2  ;;  %v262_v30 = vld [vmem:[%s8504_s8 + $0x258] sm:$0xff] }
  0xd5   : > { %6897 = vpush %v769_v59  ;;  %v958_v36 = vmul.f32 %v828_v33, %v238_v34  ;;  %v959_v37 = vmul.f32 %v828_v33, %v239_v35  ;;  %v248_v59 = vld [vmem:[%s8504_s8 + $0x1b0] sm:$0xff] }
  0xd6   : > { %1150 = vrot.lane.b32.xlu1 %v945_v56, %s14350_s15  ;;  %1148 = vrot.lane.b32.xlu0 %v944_v55, %s14350_s15  ;;  %6899 = vpush %v771_v58  ;;  %s6850_s12 = spop %6849  ;;  %v247_v55 = vld [vmem:[%s8504_s8 + $0x1a0] sm:$0xff]  ;;  %v264_v35 = vld [vmem:[%s8504_s8 + $0x270] sm:$0xff] }
  0xd7   : > { %v831_v38 = vstv %s6850_s12  ;;  %s6852_s10 = spop %6851 }
  0xd8   : > { %v775_v1 = vpop.permute.xlu1 %774  ;;  %v773_v2 = vpop.permute.xlu0 %772  ;;  %v960_v41 = vmul.f32 %v831_v38, %v240_v39  ;;  %v961_v42 = vmul.f32 %v831_v38, %v241_v40  ;;  %v834_v43 = vstv %s6852_s10  ;;  %v266_v40 = vld [vmem:[%s8504_s8 + $0x288] sm:$0xff] }
  0xd9   : > { %6901 = vpush %v773_v2  ;;  %v962_v46 = vmul.f32 %v834_v43, %v242_v44  ;;  %v963_v47 = vmul.f32 %v834_v43, %v243_v45  ;;  %v268_v45 = vld [vmem:[%s8504_s8 + $0x2a0] sm:$0xff] }
  0xda   : > { %1154 = vrot.lane.b32.xlu1 %v947_v63, %s14350_s15  ;;  %1152 = vrot.lane.b32.xlu0 %v946_v62, %s14350_s15  ;;  %6903 = vpush %v775_v1  ;;  %s6854_s2 = spop %6853  ;;  %v251_v1 = vld [vmem:[%s8504_s8 + $0x1d0] sm:$0xff] }
  0xdb   : > { %v837_v48 = vstv %s6854_s2  ;;  %s6856_s12 = spop %6855 }
  0xdc   : > { %v779_v8 = vpop.permute.xlu1 %778  ;;  %v777_v9 = vpop.permute.xlu0 %776  ;;  %v964_v51 = vmul.f32 %v837_v48, %v244_v49  ;;  %v965_v52 = vmul.f32 %v837_v48, %v245_v50  ;;  %v840_v53 = vstv %s6856_s12  ;;  %v270_v50 = vld [vmem:[%s8504_s8 + $0x2b8] sm:$0xff] }
  0xdd   : > { %6905 = vpush %v777_v9  ;;  %v966_v56 = vmul.f32 %v840_v53, %v246_v54  ;;  %v967_v57 = vmul.f32 %v840_v53, %v247_v55 }
  0xde   : > { %1158 = vrot.lane.b32.xlu1 %v949_v6, %s14350_s15  ;;  %1156 = vrot.lane.b32.xlu0 %v948_v5, %s14350_s15  ;;  %6907 = vpush %v779_v8  ;;  %s6858_s10 = spop %6857  ;;  %v252_v5 = vld [vmem:[%s8504_s8 + $0x1e0] sm:$0xff]  ;;  %v253_v6 = vld [vmem:[%s8504_s8 + $0x1e8] sm:$0xff] }
  0xdf   : > { %v843_v58 = vstv %s6858_s10  ;;  %s6860_s2 = spop %6859 }
  0xe0   : > { %v783_v15 = vpop.permute.xlu1 %782  ;;  %v781_v16 = vpop.permute.xlu0 %780  ;;  %v968_v61 = vmul.f32 %v843_v58, %v248_v59  ;;  %v969_v62 = vmul.f32 %v843_v58, %v249_v60  ;;  %v846_v63 = vstv %s6860_s2  ;;  %v273_v58 = vld [vmem:[%s8504_s8 + $0x2d8] sm:$0xff] }
  0xe1   : > { %6909 = vpush %v781_v16  ;;  %v970_v2 = vmul.f32 %v846_v63, %v250_v0  ;;  %v971_v3 = vmul.f32 %v846_v63, %v251_v1  ;;  %v257_v16 = vld [vmem:[%s8504_s8 + $0x218] sm:$0xff]  ;;  %v274_v0 = vld [vmem:[%s8504_s8 + $0x2e8] sm:$0xff]  ;;  %v275_v1 = vld [vmem:[%s8504_s8 + $0x2f0] sm:$0xff] }
  0xe2   : > { %1162 = vrot.lane.b32.xlu1 %v951_v13, %s14350_s15  ;;  %1160 = vrot.lane.b32.xlu0 %v950_v12, %s14350_s15  ;;  %6911 = vpush %v783_v15  ;;  %s6862_s12 = spop %6861  ;;  %v256_v15 = vld [vmem:[%s8504_s8 + $0x210] sm:$0xff] }
  0xe3   : > { %v849_v4 = vstv %s6862_s12  ;;  %s6864_s10 = spop %6863 }
  0xe4   : > { %v785_v22 = vpop.permute.xlu0 %784  ;;  %v787_v25 = vpop.permute.xlu1 %786  ;;  %v972_v7 = vmul.f32 %v849_v4, %v252_v5  ;;  %v973_v8 = vmul.f32 %v849_v4, %v253_v6  ;;  %v852_v9 = vstv %s6864_s10 }
  0xe5   : > { %6913 = vpush %v785_v22  ;;  %v974_v12 = vmul.f32 %v852_v9, %v254_v10  ;;  %v975_v13 = vmul.f32 %v852_v9, %v255_v11 }
  0xe6   : > { %1166 = vrot.lane.b32.xlu1 %v953_v20, %s14350_s15  ;;  %1164 = vrot.lane.b32.xlu0 %v952_v19, %s14350_s15  ;;  %6915 = vpush %v787_v25  ;;  %s6866_s2 = spop %6865  ;;  %v258_v20 = vld [vmem:[%s8504_s8 + $0x228] sm:$0xff]  ;;  %v260_v25 = vld [vmem:[%s8504_s8 + $0x240] sm:$0xff] }
  0xe7   : > { %v855_v14 = vstv %s6866_s2  ;;  %s6868_s12 = spop %6867 }
  0xe8   : > { %v976_v17 = vmul.f32 %v855_v14, %v256_v15  ;;  %v977_v18 = vmul.f32 %v855_v14, %v257_v16  ;;  %v858_v19 = vstv %s6868_s12  ;;  %v278_v14 = vld [vmem:[%s8504_s8 + $0x318] sm:$0xff]  ;;  %v279_v15 = vld [vmem:[%s8504_s8 + $0x320] sm:$0xff] }
  0xe9   : > { %v978_v22 = vmul.f32 %v858_v19, %v258_v20  ;;  %v979_v23 = vmul.f32 %v858_v19, %v259_v21  ;;  %v280_v21 = vld [vmem:[%s8504_s8 + $0x330] sm:$0xff] }
  0xea   : > { %1170 = vrot.lane.b32.xlu1 %v955_v27, %s14350_s15  ;;  %1168 = vrot.lane.b32.xlu0 %v954_v26, %s14350_s15  ;;  %s6870_s10 = spop %6869  ;;  %v261_v26 = vld [vmem:[%s8504_s8 + $0x248] sm:$0xff] }
  0xeb   : > { %v861_v24 = vstv %s6870_s10  ;;  %s6872_s2 = spop %6871 }
  0xec   : > { %v980_v27 = vmul.f32 %v861_v24, %v260_v25  ;;  %v981_v28 = vmul.f32 %v861_v24, %v261_v26  ;;  %v864_v29 = vstv %s6872_s2 }
  0xee   : > { %1174 = vrot.lane.b32.xlu1 %v957_v32, %s14350_s15  ;;  %1172 = vrot.lane.b32.xlu0 %v956_v31, %s14350_s15  ;;  %s6874_s12 = spop %6873  ;;  %v263_v31 = vld [vmem:[%s8504_s8 + $0x260] sm:$0xff]  ;;  %v982_v32 = vmul.f32 %v864_v29, %v262_v30 }
  0xef   : > { %v983_v33 = vmul.f32 %v864_v29, %v263_v31  ;;  %v867_v34 = vstv %s6874_s12  ;;  %s6876_s10 = spop %6875  ;;  %v283_v29 = vld [vmem:[%s8504_s8 + $0x350] sm:$0xff] }
  0xf0   : > { %v870_v39 = vstv %s6876_s10 }
  0xf2   : > { %1178 = vrot.lane.b32.xlu1 %v959_v37, %s14350_s15  ;;  %1176 = vrot.lane.b32.xlu0 %v958_v36, %s14350_s15  ;;  %v265_v36 = vld [vmem:[%s8504_s8 + $0x278] sm:$0xff]  ;;  %v984_v37 = vmul.f32 %v867_v34, %v264_v35  ;;  %s6878_s2 = spop %6877  ;;  %v284_v35 = vld [vmem:[%s8504_s8 + $0x360] sm:$0xff] }
  0xf3   : > { %v985_v38 = vmul.f32 %v867_v34, %v265_v36  ;;  %v873_v44 = vstv %s6878_s2  ;;  %s6880_s12 = spop %6879  ;;  %v285_v36 = vld [vmem:[%s8504_s8 + $0x368] sm:$0xff] }
  0xf4   : > { %v876_v49 = vstv %s6880_s12 }
  0xf6   : > { %1182 = vrot.lane.b32.xlu1 %v961_v42, %s14350_s15  ;;  %1180 = vrot.lane.b32.xlu0 %v960_v41, %s14350_s15  ;;  %v267_v41 = vld [vmem:[%s8504_s8 + $0x290] sm:$0xff]  ;;  %v986_v42 = vmul.f32 %v870_v39, %v266_v40  ;;  %s6882_s10 = spop %6881 }
  0xf7   : > { %v987_v43 = vmul.f32 %v870_v39, %v267_v41  ;;  %v879_v54 = vstv %s6882_s10  ;;  %s6884_s2 = spop %6883 }
  0xf8   : > { %v993_v60 = vmul.f32 %v879_v54, %v273_v58  ;;  %v290_v58 = vld [vmem:[%s8504_s8 + $0x3a8] sm:$0xff] }
  0xfa   : > { %1186 = vrot.lane.b32.xlu1 %v963_v47, %s14350_s15  ;;  %1184 = vrot.lane.b32.xlu0 %v962_v46, %s14350_s15  ;;  %v269_v46 = vld [vmem:[%s8504_s8 + $0x2a8] sm:$0xff]  ;;  %v988_v47 = vmul.f32 %v873_v44, %v268_v45  ;;  %s6886_s12 = spop %6885 }
  0xfb   : > { %v989_v48 = vmul.f32 %v873_v44, %v269_v46  ;;  %v885_v4 = vstv %s6886_s12  ;;  %s6888_s10 = spop %6887 }
  0xfc   : > { %v888_v11 = vstv %s6888_s10 }
  0xfd   : > { %v998_v16 = vmul.f32 %v888_v11, %v278_v14  ;;  %v294_v14 = vld [vmem:[%s8504_s8 + $0x3d8] sm:$0xff] }
  0xfe   : > { %1190 = vrot.lane.b32.xlu1 %v965_v52, %s14350_s15  ;;  %1188 = vrot.lane.b32.xlu0 %v964_v51, %s14350_s15  ;;  %v271_v51 = vld [vmem:[%s8504_s8 + $0x2c0] sm:$0xff]  ;;  %v990_v52 = vmul.f32 %v876_v49, %v270_v50  ;;  %v289_v50 = vld [vmem:[%s8504_s8 + $0x398] sm:$0xff] }
  0xff   : > { %v991_v53 = vmul.f32 %v876_v49, %v271_v51  ;;  %v288_v49 = vld [vmem:[%s8504_s8 + $0x390] sm:$0xff] }
 0x102   : > { %1194 = vrot.lane.b32.xlu1 %v967_v57, %s14350_s15  ;;  %1192 = vrot.lane.b32.xlu0 %v966_v56, %s14350_s15  ;;  %v272_v57 = vld [vmem:[%s8504_s8 + $0x2d0] sm:$0xff] }
 0x103   : > { %v992_v59 = vmul.f32 %v879_v54, %v272_v57 }
 0x106   : > { %1198 = vrot.lane.b32.xlu1 %v969_v62, %s14350_s15  ;;  %1196 = vrot.lane.b32.xlu0 %v968_v61, %s14350_s15  ;;  %v882_v61 = vstv %s6884_s2  ;;  %s6890_s2 = spop %6889 }
 0x107   : > { %s6892_s12 = spop %6891 }
 0x108   : > { %v894_v25 = vstv %s6892_s12  ;;  %s6894_s10 = spop %6893 }
 0x109   : > { %v1003_v31 = vmul.f32 %v894_v25, %v283_v29 }
 0x10a   : > { %1202 = vrot.lane.b32.xlu1 %v971_v3, %s14350_s15  ;;  %1200 = vrot.lane.b32.xlu0 %v970_v2, %s14350_s15  ;;  %v994_v2 = vmul.f32 %v882_v61, %v274_v0  ;;  %v995_v3 = vmul.f32 %v882_v61, %v275_v1 }
 0x10e   : > { %1206 = vrot.lane.b32.xlu1 %v973_v8, %s14350_s15  ;;  %1204 = vrot.lane.b32.xlu0 %v972_v7, %s14350_s15  ;;  %v276_v7 = vld [vmem:[%s8504_s8 + $0x300] sm:$0xff]  ;;  %v277_v8 = vld [vmem:[%s8504_s8 + $0x308] sm:$0xff] }
 0x10f   : > { %v996_v9 = vmul.f32 %v885_v4, %v276_v7  ;;  %v997_v10 = vmul.f32 %v885_v4, %v277_v8  ;;  %v293_v4 = vld [vmem:[%s8504_s8 + $0x3c8] sm:$0xff] }
 0x112   : > { %1210 = vrot.lane.b32.xlu1 %v975_v13, %s14350_s15  ;;  %1208 = vrot.lane.b32.xlu0 %v974_v12, %s14350_s15 }
 0x116   : > { %1214 = vrot.lane.b32.xlu1 %v977_v18, %s14350_s15  ;;  %1212 = vrot.lane.b32.xlu0 %v976_v17, %s14350_s15  ;;  %v999_v17 = vmul.f32 %v888_v11, %v279_v15  ;;  %v891_v18 = vstv %s6890_s2  ;;  %s6896_s2 = spop %6895  ;;  %v295_v15 = vld [vmem:[%s8504_s8 + $0x3e0] sm:$0xff] }
 0x117   : > { %v900_v39 = vstv %s6896_s2  ;;  %s6898_s12 = spop %6897 }
 0x11a   : > { %1218 = vrot.lane.b32.xlu1 %v979_v23, %s14350_s15  ;;  %1216 = vrot.lane.b32.xlu0 %v978_v22, %s14350_s15  ;;  %v281_v22 = vld [vmem:[%s8504_s8 + $0x338] sm:$0xff]  ;;  %v1000_v23 = vmul.f32 %v891_v18, %v280_v21 }
 0x11b   : > { %v1001_v24 = vmul.f32 %v891_v18, %v281_v22 }
 0x11e   : > { %1222 = vrot.lane.b32.xlu1 %v981_v28, %s14350_s15  ;;  %1220 = vrot.lane.b32.xlu0 %v980_v27, %s14350_s15  ;;  %v282_v28 = vld [vmem:[%s8504_s8 + $0x348] sm:$0xff] }
 0x11f   : > { %v1002_v30 = vmul.f32 %v894_v25, %v282_v28 }
 0x122   : > { %1226 = vrot.lane.b32.xlu1 %v983_v33, %s14350_s15  ;;  %1224 = vrot.lane.b32.xlu0 %v982_v32, %s14350_s15  ;;  %v897_v32 = vstv %s6894_s10  ;;  %s6900_s10 = spop %6899 }
 0x123   : > { %v906_v57 = vstv %s6900_s10  ;;  %s6902_s2 = spop %6901 }
 0x126   : > { %1230 = vrot.lane.b32.xlu1 %v985_v38, %s14350_s15  ;;  %1228 = vrot.lane.b32.xlu0 %v984_v37, %s14350_s15  ;;  %v1004_v37 = vmul.f32 %v897_v32, %v284_v35  ;;  %v1005_v38 = vmul.f32 %v897_v32, %v285_v36  ;;  %v298_v32 = vld [vmem:[%s8504_s8 + $0x408] sm:$0xff]  ;;  %v299_v35 = vld [vmem:[%s8504_s8 + $0x410] sm:$0xff] }
 0x12a   : > { %1234 = vrot.lane.b32.xlu1 %v987_v43, %s14350_s15  ;;  %1232 = vrot.lane.b32.xlu0 %v986_v42, %s14350_s15  ;;  %v286_v42 = vld [vmem:[%s8504_s8 + $0x378] sm:$0xff]  ;;  %v287_v43 = vld [vmem:[%s8504_s8 + $0x380] sm:$0xff] }
 0x12b   : > { %v1006_v44 = vmul.f32 %v900_v39, %v286_v42  ;;  %v1007_v45 = vmul.f32 %v900_v39, %v287_v43  ;;  %v300_v43 = vld [vmem:[%s8504_s8 + $0x420] sm:$0xff] }
 0x12e   : > { %1238 = vrot.lane.b32.xlu1 %v989_v48, %s14350_s15  ;;  %1236 = vrot.lane.b32.xlu0 %v988_v47, %s14350_s15  ;;  %v903_v48 = vstv %s6898_s12  ;;  %s6904_s12 = spop %6903 }
 0x12f   : > { %v1008_v51 = vmul.f32 %v903_v48, %v288_v49  ;;  %v912_v11 = vstv %s6904_s12  ;;  %s6906_s10 = spop %6905 }
 0x130   : > { %v8628_v55 = vpop.permute.xlu1 %1126  ;;  %v8630_v56 = vpop.permute.xlu0 %1124  ;;  %v915_v22 = vstv %s6906_s10 }
 0x131   : > { %14351 = vst [vmem:[#allocation32_spill] sm:$0xff] %v8628_v55  ;;  %14352 = vst [vmem:[#allocation33_spill] sm:$0xff] %v8630_v56  ;;  %v7654_v56 = vld [vmem:[%s8504_s8 + $0x50] sm:$0xff] }
 0x132   : > { %1242 = vrot.lane.b32.xlu1 %v991_v53, %s14350_s15  ;;  %1240 = vrot.lane.b32.xlu0 %v990_v52, %s14350_s15  ;;  %v1009_v52 = vmul.f32 %v903_v48, %v289_v50 }
 0x134   : > { %v8636_v62 = vpop.permute.xlu1 %1130  ;;  %v8638_v63 = vpop.permute.xlu0 %1128 }
 0x135   : > { %14353 = vst [vmem:[#allocation34_spill] sm:$0xff] %v8636_v62  ;;  %14354 = vst [vmem:[#allocation35_spill] sm:$0xff] %v8638_v63  ;;  %v7650_v63 = vld [vmem:[%s8504_s8 + $0x20] sm:$0xff] }
 0x136   : > { %1246 = vrot.lane.b32.xlu1 %v993_v60, %s14350_s15  ;;  %1244 = vrot.lane.b32.xlu0 %v992_v59, %s14350_s15  ;;  %v291_v59 = vld [vmem:[%s8504_s8 + $0x3b0] sm:$0xff]  ;;  %v1010_v60 = vmul.f32 %v906_v57, %v290_v58 }
 0x137   : > { %v1011_v61 = vmul.f32 %v906_v57, %v291_v59  ;;  %v303_v57 = vld [vmem:[%s8504_s8 + $0x440] sm:$0xff] }
 0x138   : > { %v8644_v5 = vpop.permute.xlu1 %1134  ;;  %v8646_v6 = vpop.permute.xlu0 %1132 }
 0x139   : > { %14355 = vst [vmem:[#allocation36_spill] sm:$0xff] %v8644_v5  ;;  %14356 = vst [vmem:[#allocation37_spill] sm:$0xff] %v8646_v6 }
 0x13a   : > { %1250 = vrot.lane.b32.xlu1 %v995_v3, %s14350_s15  ;;  %1248 = vrot.lane.b32.xlu0 %v994_v2, %s14350_s15  ;;  %v909_v2 = vstv %s6902_s2  ;;  %v292_v3 = vld [vmem:[%s8504_s8 + $0x3c0] sm:$0xff]  ;;  %s6908_s2 = spop %6907 }
 0x13b   : > { %v1012_v7 = vmul.f32 %v909_v2, %v292_v3  ;;  %v1013_v8 = vmul.f32 %v909_v2, %v293_v4  ;;  %s6910_s12 = spop %6909  ;;  %v304_v3 = vld [vmem:[%s8504_s8 + $0x450] sm:$0xff]  ;;  %v305_v4 = vld [vmem:[%s8504_s8 + $0x458] sm:$0xff] }
 0x13c   : > { %v8652_v12 = vpop.permute.xlu1 %1138  ;;  %v8654_v13 = vpop.permute.xlu0 %1136  ;;  %v921_v42 = vstv %s6910_s12  ;;  %s6912_s10 = spop %6911 }
 0x13d   : > { %14357 = vst [vmem:[#allocation38_spill] sm:$0xff] %v8652_v12  ;;  %14358 = vst [vmem:[#allocation39_spill] sm:$0xff] %v8654_v13 }
 0x13e   : > { %1254 = vrot.lane.b32.xlu1 %v997_v10, %s14350_s15  ;;  %1252 = vrot.lane.b32.xlu0 %v996_v9, %s14350_s15 }
 0x140   : > { %v8660_v19 = vpop.permute.xlu1 %1142  ;;  %v8662_v20 = vpop.permute.xlu0 %1140 }
 0x141   : > { %14359 = vst [vmem:[#allocation40_spill] sm:$0xff] %v8660_v19  ;;  %14360 = vst [vmem:[#allocation41_spill] sm:$0xff] %v8662_v20 }
 0x142   : > { %1258 = vrot.lane.b32.xlu1 %v999_v17, %s14350_s15  ;;  %1256 = vrot.lane.b32.xlu0 %v998_v16, %s14350_s15  ;;  %v1014_v16 = vmul.f32 %v912_v11, %v294_v14  ;;  %v1015_v17 = vmul.f32 %v912_v11, %v295_v15 }
 0x144   : > { %v8668_v26 = vpop.permute.xlu1 %1146  ;;  %v8670_v27 = vpop.permute.xlu0 %1144 }
 0x145   : > { %14361 = vst [vmem:[#allocation42_spill] sm:$0xff] %v8668_v26  ;;  %14362 = vst [vmem:[#allocation43_spill] sm:$0xff] %v8670_v27 }
 0x146   : > { %1262 = vrot.lane.b32.xlu1 %v1001_v24, %s14350_s15  ;;  %1260 = vrot.lane.b32.xlu0 %v1000_v23, %s14350_s15  ;;  %v296_v23 = vld [vmem:[%s8504_s8 + $0x3f0] sm:$0xff]  ;;  %v297_v24 = vld [vmem:[%s8504_s8 + $0x3f8] sm:$0xff] }
 0x147   : > { %v1016_v25 = vmul.f32 %v915_v22, %v296_v23  ;;  %v1017_v28 = vmul.f32 %v915_v22, %v297_v24 }
 0x148   : > { %v8676_v33 = vpop.permute.xlu1 %1150  ;;  %v8678_v34 = vpop.permute.xlu0 %1148 }
 0x149   : > { %14363 = vst [vmem:[#allocation44_spill] sm:$0xff] %v8676_v33  ;;  %14364 = vst [vmem:[#allocation45_spill] sm:$0xff] %v8678_v34  ;;  %v9105_v34 = vld [vmem:[%s8310_s14 + $0xbc] sm:$0x7] }
 0x14a   : > { %1266 = vrot.lane.b32.xlu1 %v1003_v31, %s14350_s15  ;;  %1264 = vrot.lane.b32.xlu0 %v1002_v30, %s14350_s15  ;;  %v918_v31 = vstv %s6908_s2  ;;  %s6914_s2 = spop %6913 }
 0x14b   : > { %v1018_v36 = vmul.f32 %v918_v31, %v298_v32  ;;  %v927_v2 = vstv %s6914_s2  ;;  %s6916_s12 = spop %6915  ;;  %v8783_v32 = vld [vmem:[%s8310_s14] sm:$0x7] }
 0x14c   : > { %v8684_v40 = vpop.permute.xlu1 %1154  ;;  %v8686_v41 = vpop.permute.xlu0 %1152  ;;  %v930_v15 = vstv %s6916_s12 }
 0x14d   : > { %14365 = vst [vmem:[#allocation46_spill] sm:$0xff] %v8684_v40  ;;  %14366 = vst [vmem:[#allocation47_spill] sm:$0xff] %v8686_v41  ;;  %v9091_v41 = vld [vmem:[%s8310_s14 + $0xb4] sm:$0x7] }
 0x14e   : > { %1270 = vrot.lane.b32.xlu1 %v1005_v38, %s14350_s15  ;;  %1268 = vrot.lane.b32.xlu0 %v1004_v37, %s14350_s15  ;;  %v1019_v37 = vmul.f32 %v918_v31, %v299_v35  ;;  %v8788_v35 = vld [vmem:[%s8310_s14 + $0x4] sm:$0x7] }
 0x150   : > { %v8692_v46 = vpop.permute.xlu1 %1158  ;;  %v8694_v47 = vpop.permute.xlu0 %1156 }
 0x151   : > { %14367 = vst [vmem:[#allocation48_spill] sm:$0xff] %v8692_v46  ;;  %14368 = vst [vmem:[#allocation49_spill] sm:$0xff] %v8694_v47 }
 0x152   : > { %1274 = vrot.lane.b32.xlu1 %v1007_v45, %s14350_s15  ;;  %1272 = vrot.lane.b32.xlu0 %v1006_v44, %s14350_s15  ;;  %v301_v44 = vld [vmem:[%s8504_s8 + $0x428] sm:$0xff]  ;;  %v1020_v45 = vmul.f32 %v921_v42, %v300_v43 }
 0x153   : > { %v1021_v48 = vmul.f32 %v921_v42, %v301_v44  ;;  %v8797_v42 = vld [vmem:[%s8310_s14 + $0x8] sm:$0x7]  ;;  %v8802_v43 = vld [vmem:[%s8310_s14 + $0xc] sm:$0x7] }
 0x154   : > { %v8700_v53 = vpop.permute.xlu1 %1162  ;;  %v8702_v54 = vpop.permute.xlu0 %1160 }
 0x155   : > { %14369 = vst [vmem:[#allocation50_spill] sm:$0xff] %v8700_v53  ;;  %14370 = vst [vmem:[#allocation51_spill] sm:$0xff] %v8702_v54 }
 0x156   : > { %1278 = vrot.lane.b32.xlu1 %v1009_v52, %s14350_s15  ;;  %1276 = vrot.lane.b32.xlu0 %v1008_v51, %s14350_s15  ;;  %v924_v51 = vstv %s6912_s10  ;;  %v302_v52 = vld [vmem:[%s8504_s8 + $0x438] sm:$0xff]  ;;  %s14313_s10 = smov 126  }
 0x157   : > { %v1022_v58 = vmul.f32 %v924_v51, %v302_v52  ;;  %v1023_v59 = vmul.f32 %v924_v51, %v303_v57  ;;  %v8816_v51 = vld [vmem:[%s8310_s14 + $0x14] sm:$0x7] }
 0x158   : > { %v8708_v0 = vpop.permute.xlu1 %1166  ;;  %v8710_v1 = vpop.permute.xlu0 %1164 }
 0x159   : > { %14371 = vst [vmem:[#allocation52_spill] sm:$0xff] %v8708_v0  ;;  %14372 = vst [vmem:[#allocation53_spill] sm:$0xff] %v8710_v1 }
 0x15a   : > { %1282 = vrot.lane.b32.xlu1 %v1011_v61, %s14350_s15  ;;  %1280 = vrot.lane.b32.xlu0 %v1010_v60, %s14350_s15 }
 0x15c   : > { %v8716_v9 = vpop.permute.xlu1 %1170  ;;  %v8718_v10 = vpop.permute.xlu0 %1168 }
 0x15d   : > { %14373 = vst [vmem:[#allocation54_spill] sm:$0xff] %v8716_v9  ;;  %14374 = vst [vmem:[#allocation55_spill] sm:$0xff] %v8718_v10 }
 0x15e   : > { %1286 = vrot.lane.b32.xlu1 %v1013_v8, %s14350_s15  ;;  %1284 = vrot.lane.b32.xlu0 %v1012_v7, %s14350_s15  ;;  %v1024_v7 = vmul.f32 %v927_v2, %v304_v3  ;;  %v1025_v8 = vmul.f32 %v927_v2, %v305_v4  ;;  %v8839_v4 = vld [vmem:[%s8310_s14 + $0x20] sm:$0x7] }
 0x160   : > { %v8724_v18 = vpop.permute.xlu1 %1174  ;;  %v8726_v21 = vpop.permute.xlu0 %1172 }
 0x161   : > { %14375 = vst [vmem:[#allocation56_spill] sm:$0xff] %v8724_v18  ;;  %14376 = vst [vmem:[#allocation57_spill] sm:$0xff] %v8726_v21 }
 0x162   : > { %1290 = vrot.lane.b32.xlu1 %v1015_v17, %s14350_s15  ;;  %1288 = vrot.lane.b32.xlu0 %v1014_v16, %s14350_s15  ;;  %v306_v16 = vld [vmem:[%s8504_s8 + $0x468] sm:$0xff]  ;;  %v307_v17 = vld [vmem:[%s8504_s8 + $0x470] sm:$0xff] }
 0x163   : > { %v1026_v22 = vmul.f32 %v930_v15, %v306_v16  ;;  %v1027_v23 = vmul.f32 %v930_v15, %v307_v17  ;;  %v8853_v16 = vld [vmem:[%s8310_s14 + $0x28] sm:$0x7]  ;;  %v8858_v17 = vld [vmem:[%s8310_s14 + $0x2c] sm:$0x7] }
 0x164   : > { %v8732_v29 = vpop.permute.xlu1 %1178  ;;  %v8734_v30 = vpop.permute.xlu0 %1176 }
 0x165   : > { %14377 = vst [vmem:[#allocation58_spill] sm:$0xff] %v8732_v29  ;;  %14378 = vst [vmem:[#allocation59_spill] sm:$0xff] %v8734_v30 }
 0x166   : > { %1294 = vrot.lane.b32.xlu1 %v1017_v28, %s14350_s15  ;;  %1292 = vrot.lane.b32.xlu0 %v1016_v25, %s14350_s15 }
 0x168   : > { %v8740_v38 = vpop.permute.xlu1 %1182  ;;  %v8742_v39 = vpop.permute.xlu0 %1180 }
 0x169   : > { %14379 = vst [vmem:[#allocation60_spill] sm:$0xff] %v8740_v38  ;;  %14380 = vst [vmem:[#allocation61_spill] sm:$0xff] %v8742_v39 }
 0x16a   : > { %1298 = vrot.lane.b32.xlu1 %v1019_v37, %s14350_s15  ;;  %1296 = vrot.lane.b32.xlu0 %v1018_v36, %s14350_s15 }
 0x16c   : > { %v8748_v49 = vpop.permute.xlu1 %1186  ;;  %v8750_v50 = vpop.permute.xlu0 %1184 }
 0x16d   : > { %14381 = vst [vmem:[#allocation62_spill] sm:$0xff] %v8748_v49  ;;  %14382 = vst [vmem:[#allocation63_spill] sm:$0xff] %v8750_v50 }
 0x16e   : > { %1302 = vrot.lane.b32.xlu1 %v1021_v48, %s14350_s15  ;;  %1300 = vrot.lane.b32.xlu0 %v1020_v45, %s14350_s15  ;;  %v8811_v48 = vld [vmem:[%s8310_s14 + $0x10] sm:$0x7] }
 0x170   : > { %v8756_v60 = vpop.permute.xlu1 %1190  ;;  %v8758_v61 = vpop.permute.xlu0 %1188 }
 0x171   : > { %14383 = vst [vmem:[#allocation64_spill] sm:$0xff] %v8756_v60  ;;  %14384 = vst [vmem:[#allocation65_spill] sm:$0xff] %v8758_v61 }
 0x172   : > { %1306 = vrot.lane.b32.xlu1 %v1023_v59, %s14350_s15  ;;  %1304 = vrot.lane.b32.xlu0 %v1022_v58, %s14350_s15  ;;  %v8825_v58 = vld [vmem:[%s8310_s14 + $0x18] sm:$0x7]  ;;  %v8830_v59 = vld [vmem:[%s8310_s14 + $0x1c] sm:$0x7] }
 0x174   : > { %v8764_v11 = vpop.permute.xlu1 %1194  ;;  %v8766_v14 = vpop.permute.xlu0 %1192 }
 0x175   : > { %14385 = vst [vmem:[#allocation66_spill] sm:$0xff] %v8764_v11  ;;  %14386 = vst [vmem:[#allocation67_spill] sm:$0xff] %v8766_v14 }
 0x176   : > { %1310 = vrot.lane.b32.xlu1 %v1025_v8, %s14350_s15  ;;  %1308 = vrot.lane.b32.xlu0 %v1024_v7, %s14350_s15  ;;  %v8844_v7 = vld [vmem:[%s8310_s14 + $0x24] sm:$0x7] }
 0x178   : > { %v8772_v24 = vpop.permute.xlu1 %1198  ;;  %v8774_v25 = vpop.permute.xlu0 %1196 }
 0x179   : > { %14387 = vst [vmem:[#allocation68_spill] sm:$0xff] %v8772_v24  ;;  %14388 = vst [vmem:[#allocation69_spill] sm:$0xff] %v8774_v25 }
 0x17a   : > { %1314 = vrot.lane.b32.xlu1 %v1027_v23, %s14350_s15  ;;  %1312 = vrot.lane.b32.xlu0 %v1026_v22, %s14350_s15 }
 0x17c   : > { %v8778_v28 = vpop.permute.xlu1 %1202  ;;  %v8780_v31 = vpop.permute.xlu0 %1200 }
 0x17d   : > { %14389 = vst [vmem:[#allocation70_spill] sm:$0xff] %v8778_v28  ;;  %14390 = vst [vmem:[#allocation71_spill] sm:$0xff] %v8780_v31 }
 0x17e   : > { %1508 = vrot.lane.b32.xlu0 %v8783_v32, %s14313_s10  ;;  %1510 = vrot.lane.b32.xlu1 %v8788_v35, %s14313_s10 }
 0x180   : > { %v8792_v36 = vpop.permute.xlu1 %1206  ;;  %v8794_v37 = vpop.permute.xlu0 %1204 }
 0x181   : > { %14391 = vst [vmem:[#allocation72_spill] sm:$0xff] %v8792_v36  ;;  %14392 = vst [vmem:[#allocation73_spill] sm:$0xff] %v8794_v37 }
 0x182   : > { %1512 = vrot.lane.b32.xlu0 %v8797_v42, %s14313_s10  ;;  %1514 = vrot.lane.b32.xlu1 %v8802_v43, %s14313_s10 }
 0x184   : > { %v8806_v44 = vpop.permute.xlu1 %1210  ;;  %v8808_v45 = vpop.permute.xlu0 %1208 }
 0x185   : > { %14393 = vst [vmem:[#allocation74_spill] sm:$0xff] %v8806_v44  ;;  %14394 = vst [vmem:[#allocation75_spill] sm:$0xff] %v8808_v45 }
 0x186   : > { %1516 = vrot.lane.b32.xlu0 %v8811_v48, %s14313_s10  ;;  %1518 = vrot.lane.b32.xlu1 %v8816_v51, %s14313_s10 }
 0x188   : > { %v8820_v52 = vpop.permute.xlu1 %1214  ;;  %v8822_v57 = vpop.permute.xlu0 %1212 }
 0x189   : > { %14395 = vst [vmem:[#allocation76_spill] sm:$0xff] %v8820_v52  ;;  %14396 = vst [vmem:[#allocation77_spill] sm:$0xff] %v8822_v57 }
 0x18a   : > { %1520 = vrot.lane.b32.xlu0 %v8825_v58, %s14313_s10  ;;  %1522 = vrot.lane.b32.xlu1 %v8830_v59, %s14313_s10 }
 0x18c   : > { %v8834_v2 = vpop.permute.xlu1 %1218  ;;  %v8836_v3 = vpop.permute.xlu0 %1216 }
 0x18d   : > { %14397 = vst [vmem:[#allocation78_spill] sm:$0xff] %v8834_v2  ;;  %14398 = vst [vmem:[#allocation79_spill] sm:$0xff] %v8836_v3 }
 0x18e   : > { %1524 = vrot.lane.b32.xlu0 %v8839_v4, %s14313_s10  ;;  %1526 = vrot.lane.b32.xlu1 %v8844_v7, %s14313_s10 }
 0x190   : > { %v8848_v8 = vpop.permute.xlu1 %1222  ;;  %v8850_v15 = vpop.permute.xlu0 %1220 }
 0x191   : > { %14399 = vst [vmem:[#allocation80_spill] sm:$0xff] %v8848_v8  ;;  %14400 = vst [vmem:[#allocation81_spill] sm:$0xff] %v8850_v15  ;;  %v8867_v8 = vld [vmem:[%s8310_s14 + $0x30] sm:$0x7]  ;;  %v8872_v15 = vld [vmem:[%s8310_s14 + $0x34] sm:$0x7] }
 0x192   : > { %1528 = vrot.lane.b32.xlu0 %v8853_v16, %s14313_s10  ;;  %1530 = vrot.lane.b32.xlu1 %v8858_v17, %s14313_s10 }
 0x194   : > { %v8862_v22 = vpop.permute.xlu1 %1226  ;;  %v8864_v23 = vpop.permute.xlu0 %1224 }
 0x195   : > { %14401 = vst [vmem:[#allocation82_spill] sm:$0xff] %v8862_v22  ;;  %14402 = vst [vmem:[#allocation83_spill] sm:$0xff] %v8864_v23  ;;  %v8881_v22 = vld [vmem:[%s8310_s14 + $0x3c] sm:$0x7]  ;;  %v8886_v23 = vld [vmem:[%s8310_s14 + $0x38] sm:$0x7] }
 0x196   : > { %1532 = vrot.lane.b32.xlu0 %v8867_v8, %s14313_s10  ;;  %1534 = vrot.lane.b32.xlu1 %v8872_v15, %s14313_s10 }
 0x198   : > { %v8876_v3 = vpop.permute.xlu1 %1230  ;;  %v8878_v2 = vpop.permute.xlu0 %1228 }
 0x199   : > { %14403 = vst [vmem:[#allocation84_spill] sm:$0xff] %v8876_v3  ;;  %14404 = vst [vmem:[#allocation85_spill] sm:$0xff] %v8878_v2  ;;  %v8895_v3 = vld [vmem:[%s8310_s14 + $0x44] sm:$0x7]  ;;  %v8900_v2 = vld [vmem:[%s8310_s14 + $0x40] sm:$0x7] }
 0x19a   : > { %1538 = vrot.lane.b32.xlu1 %v8881_v22, %s14313_s10  ;;  %1536 = vrot.lane.b32.xlu0 %v8886_v23, %s14313_s10 }
 0x19c   : > { %v8890_v57 = vpop.permute.xlu1 %1234  ;;  %v8892_v52 = vpop.permute.xlu0 %1232 }
 0x19d   : > { %14405 = vst [vmem:[#allocation86_spill] sm:$0xff] %v8890_v57  ;;  %14406 = vst [vmem:[#allocation87_spill] sm:$0xff] %v8892_v52  ;;  %v8909_v57 = vld [vmem:[%s8310_s14 + $0x4c] sm:$0x7]  ;;  %v8914_v52 = vld [vmem:[%s8310_s14 + $0x48] sm:$0x7] }
 0x19e   : > { %1542 = vrot.lane.b32.xlu1 %v8895_v3, %s14313_s10  ;;  %1540 = vrot.lane.b32.xlu0 %v8900_v2, %s14313_s10 }
 0x1a0   : > { %v8904_v45 = vpop.permute.xlu1 %1238  ;;  %v8906_v44 = vpop.permute.xlu0 %1236 }
 0x1a1   : > { %14407 = vst [vmem:[#allocation88_spill] sm:$0xff] %v8904_v45  ;;  %14408 = vst [vmem:[#allocation89_spill] sm:$0xff] %v8906_v44  ;;  %v8923_v45 = vld [vmem:[%s8310_s14 + $0x54] sm:$0x7]  ;;  %v8928_v44 = vld [vmem:[%s8310_s14 + $0x50] sm:$0x7] }
 0x1a2   : > { %1546 = vrot.lane.b32.xlu1 %v8909_v57, %s14313_s10  ;;  %1544 = vrot.lane.b32.xlu0 %v8914_v52, %s14313_s10 }
 0x1a4   : > { %v8918_v37 = vpop.permute.xlu1 %1242  ;;  %v8920_v36 = vpop.permute.xlu0 %1240 }
 0x1a5   : > { %14409 = vst [vmem:[#allocation90_spill] sm:$0xff] %v8918_v37  ;;  %14410 = vst [vmem:[#allocation91_spill] sm:$0xff] %v8920_v36  ;;  %v8937_v37 = vld [vmem:[%s8310_s14 + $0x5c] sm:$0x7]  ;;  %v8942_v36 = vld [vmem:[%s8310_s14 + $0x58] sm:$0x7] }
 0x1a6   : > { %1550 = vrot.lane.b32.xlu1 %v8923_v45, %s14313_s10  ;;  %1548 = vrot.lane.b32.xlu0 %v8928_v44, %s14313_s10 }
 0x1a8   : > { %v8932_v31 = vpop.permute.xlu1 %1246  ;;  %v8934_v28 = vpop.permute.xlu0 %1244 }
 0x1a9   : > { %14411 = vst [vmem:[#allocation92_spill] sm:$0xff] %v8932_v31  ;;  %14412 = vst [vmem:[#allocation93_spill] sm:$0xff] %v8934_v28  ;;  %v8951_v31 = vld [vmem:[%s8310_s14 + $0x64] sm:$0x7]  ;;  %v8956_v28 = vld [vmem:[%s8310_s14 + $0x60] sm:$0x7] }
 0x1aa   : > { %1554 = vrot.lane.b32.xlu1 %v8937_v37, %s14313_s10  ;;  %1552 = vrot.lane.b32.xlu0 %v8942_v36, %s14313_s10 }
 0x1ac   : > { %v8946_v25 = vpop.permute.xlu1 %1250  ;;  %v8948_v24 = vpop.permute.xlu0 %1248 }
 0x1ad   : > { %14413 = vst [vmem:[#allocation94_spill] sm:$0xff] %v8946_v25  ;;  %14414 = vst [vmem:[#allocation95_spill] sm:$0xff] %v8948_v24  ;;  %v8965_v25 = vld [vmem:[%s8310_s14 + $0x6c] sm:$0x7]  ;;  %v8970_v24 = vld [vmem:[%s8310_s14 + $0x68] sm:$0x7] }
 0x1ae   : > { %1558 = vrot.lane.b32.xlu1 %v8951_v31, %s14313_s10  ;;  %1556 = vrot.lane.b32.xlu0 %v8956_v28, %s14313_s10 }
 0x1b0   : > { %v8960_v14 = vpop.permute.xlu1 %1254  ;;  %v8962_v11 = vpop.permute.xlu0 %1252 }
 0x1b1   : > { %14415 = vst [vmem:[#allocation96_spill] sm:$0xff] %v8960_v14  ;;  %14416 = vst [vmem:[#allocation97_spill] sm:$0xff] %v8962_v11  ;;  %v8979_v14 = vld [vmem:[%s8310_s14 + $0x74] sm:$0x7]  ;;  %v8984_v11 = vld [vmem:[%s8310_s14 + $0x70] sm:$0x7] }
 0x1b2   : > { %1562 = vrot.lane.b32.xlu1 %v8965_v25, %s14313_s10  ;;  %1560 = vrot.lane.b32.xlu0 %v8970_v24, %s14313_s10 }
 0x1b4   : > { %v8974_v61 = vpop.permute.xlu1 %1258  ;;  %v8976_v60 = vpop.permute.xlu0 %1256 }
 0x1b5   : > { %14417 = vst [vmem:[#allocation98_spill] sm:$0xff] %v8974_v61  ;;  %14418 = vst [vmem:[#allocation99_spill] sm:$0xff] %v8976_v60  ;;  %v8993_v61 = vld [vmem:[%s8310_s14 + $0x7c] sm:$0x7]  ;;  %v8998_v60 = vld [vmem:[%s8310_s14 + $0x78] sm:$0x7] }
 0x1b6   : > { %1566 = vrot.lane.b32.xlu1 %v8979_v14, %s14313_s10  ;;  %1564 = vrot.lane.b32.xlu0 %v8984_v11, %s14313_s10 }
 0x1b8   : > { %v8988_v50 = vpop.permute.xlu1 %1262  ;;  %v8990_v49 = vpop.permute.xlu0 %1260 }
 0x1b9   : > { %14419 = vst [vmem:[#allocation100_spill] sm:$0xff] %v8988_v50  ;;  %14420 = vst [vmem:[#allocation101_spill] sm:$0xff] %v8990_v49  ;;  %v9007_v50 = vld [vmem:[%s8310_s14 + $0x84] sm:$0x7]  ;;  %v9012_v49 = vld [vmem:[%s8310_s14 + $0x80] sm:$0x7] }
 0x1ba   : > { %1570 = vrot.lane.b32.xlu1 %v8993_v61, %s14313_s10  ;;  %1568 = vrot.lane.b32.xlu0 %v8998_v60, %s14313_s10 }
 0x1bc   : > { %v9002_v39 = vpop.permute.xlu1 %1266  ;;  %v9004_v38 = vpop.permute.xlu0 %1264 }
 0x1bd   : > { %14421 = vst [vmem:[#allocation102_spill] sm:$0xff] %v9002_v39  ;;  %14422 = vst [vmem:[#allocation103_spill] sm:$0xff] %v9004_v38  ;;  %v9021_v39 = vld [vmem:[%s8310_s14 + $0x8c] sm:$0x7]  ;;  %v9026_v38 = vld [vmem:[%s8310_s14 + $0x88] sm:$0x7] }
 0x1be   : > { %1574 = vrot.lane.b32.xlu1 %v9007_v50, %s14313_s10  ;;  %1572 = vrot.lane.b32.xlu0 %v9012_v49, %s14313_s10 }
 0x1c0   : > { %v9016_v30 = vpop.permute.xlu1 %1270  ;;  %v9018_v29 = vpop.permute.xlu0 %1268 }
 0x1c1   : > { %14423 = vst [vmem:[#allocation104_spill] sm:$0xff] %v9016_v30  ;;  %14424 = vst [vmem:[#allocation105_spill] sm:$0xff] %v9018_v29  ;;  %v9035_v30 = vld [vmem:[%s8310_s14 + $0x94] sm:$0x7]  ;;  %v9040_v29 = vld [vmem:[%s8310_s14 + $0x90] sm:$0x7] }
 0x1c2   : > { %1578 = vrot.lane.b32.xlu1 %v9021_v39, %s14313_s10  ;;  %1576 = vrot.lane.b32.xlu0 %v9026_v38, %s14313_s10 }
 0x1c4   : > { %v9030_v21 = vpop.permute.xlu1 %1274  ;;  %v9032_v18 = vpop.permute.xlu0 %1272 }
 0x1c5   : > { %14425 = vst [vmem:[#allocation106_spill] sm:$0xff] %v9030_v21  ;;  %14426 = vst [vmem:[#allocation107_spill] sm:$0xff] %v9032_v18  ;;  %v9049_v21 = vld [vmem:[%s8310_s14 + $0x9c] sm:$0x7]  ;;  %v9054_v18 = vld [vmem:[%s8310_s14 + $0x98] sm:$0x7] }
 0x1c6   : > { %1582 = vrot.lane.b32.xlu1 %v9035_v30, %s14313_s10  ;;  %1580 = vrot.lane.b32.xlu0 %v9040_v29, %s14313_s10 }
 0x1c8   : > { %v9044_v10 = vpop.permute.xlu1 %1278  ;;  %v9046_v9 = vpop.permute.xlu0 %1276 }
 0x1c9   : > { %14427 = vst [vmem:[#allocation108_spill] sm:$0xff] %v9044_v10  ;;  %14428 = vst [vmem:[#allocation109_spill] sm:$0xff] %v9046_v9  ;;  %v9063_v10 = vld [vmem:[%s8310_s14 + $0xa4] sm:$0x7]  ;;  %v9068_v9 = vld [vmem:[%s8310_s14 + $0xa0] sm:$0x7] }
 0x1ca   : > { %1586 = vrot.lane.b32.xlu1 %v9049_v21, %s14313_s10  ;;  %1584 = vrot.lane.b32.xlu0 %v9054_v18, %s14313_s10 }
 0x1cc   : > { %v9058_v1 = vpop.permute.xlu1 %1282  ;;  %v9060_v0 = vpop.permute.xlu0 %1280 }
 0x1cd   : > { %14429 = vst [vmem:[#allocation110_spill] sm:$0xff] %v9058_v1  ;;  %14430 = vst [vmem:[#allocation111_spill] sm:$0xff] %v9060_v0  ;;  %v9077_v1 = vld [vmem:[%s8310_s14 + $0xac] sm:$0x7]  ;;  %v9082_v0 = vld [vmem:[%s8310_s14 + $0xa8] sm:$0x7] }
 0x1ce   : > { %1590 = vrot.lane.b32.xlu1 %v9063_v10, %s14313_s10  ;;  %1588 = vrot.lane.b32.xlu0 %v9068_v9, %s14313_s10 }
 0x1d0   : > { %v9072_v54 = vpop.permute.xlu1 %1286  ;;  %v9074_v53 = vpop.permute.xlu0 %1284 }
 0x1d1   : > { %14431 = vst [vmem:[#allocation112_spill] sm:$0xff] %v9072_v54  ;;  %14432 = vst [vmem:[#allocation113_spill] sm:$0xff] %v9074_v53  ;;  %v9096_v53 = vld [vmem:[%s8310_s14 + $0xb0] sm:$0x7] }
 0x1d2   : > { %1594 = vrot.lane.b32.xlu1 %v9077_v1, %s14313_s10  ;;  %1592 = vrot.lane.b32.xlu0 %v9082_v0, %s14313_s10 }
 0x1d4   : > { %v9086_v47 = vpop.permute.xlu1 %1290  ;;  %v9088_v46 = vpop.permute.xlu0 %1288 }
 0x1d5   : > { %14433 = vst [vmem:[#allocation114_spill] sm:$0xff] %v9086_v47  ;;  %14434 = vst [vmem:[#allocation115_spill] sm:$0xff] %v9088_v46  ;;  %v9110_v46 = vld [vmem:[%s8310_s14 + $0xb8] sm:$0x7] }
 0x1d6   : > { %1598 = vrot.lane.b32.xlu1 %v9091_v41, %s14313_s10  ;;  %1596 = vrot.lane.b32.xlu0 %v9096_v53, %s14313_s10 }
 0x1d8   : > { %v9100_v54 = vpop.permute.xlu1 %1294  ;;  %v9102_v40 = vpop.permute.xlu0 %1292 }
 0x1d9   : > { %14435 = vst [vmem:[#allocation116_spill] sm:$0xff] %v9100_v54  ;;  %14436 = vst [vmem:[#allocation117_spill] sm:$0xff] %v9102_v40 }
 0x1da   : > { %1602 = vrot.lane.b32.xlu1 %v9105_v34, %s14313_s10  ;;  %1600 = vrot.lane.b32.xlu0 %v9110_v46, %s14313_s10 }
 0x1dc   : > { %v9114_v47 = vpop.permute.xlu1 %1298  ;;  %v9116_v33 = vpop.permute.xlu0 %1296 }
 0x1dd   : > { %14437 = vst [vmem:[#allocation118_spill] sm:$0xff] %v9114_v47  ;;  %14438 = vst [vmem:[#allocation119_spill] sm:$0xff] %v9116_v33 }
 0x1e0   : > { %v9118_v27 = vpop.permute.xlu1 %1302  ;;  %v9120_v26 = vpop.permute.xlu0 %1300 }
 0x1e1   : > { %14439 = vst [vmem:[#allocation120_spill] sm:$0xff] %v9118_v27  ;;  %14440 = vst [vmem:[#allocation121_spill] sm:$0xff] %v9120_v26 }
 0x1e4   : > { %v9122_v54 = vpop.permute.xlu1 %1306  ;;  %v9124_v40 = vpop.permute.xlu0 %1304 }
 0x1e5   : > { %14441 = vst [vmem:[#allocation122_spill] sm:$0xff] %v9122_v54  ;;  %14442 = vst [vmem:[#allocation123_spill] sm:$0xff] %v9124_v40 }
 0x1e8   : > { %v9126_v20 = vpop.permute.xlu1 %1310  ;;  %v9128_v19 = vpop.permute.xlu0 %1308 }
 0x1e9   : > { %14443 = vst [vmem:[#allocation124_spill] sm:$0xff] %v9126_v20  ;;  %14444 = vst [vmem:[#allocation125_spill] sm:$0xff] %v9128_v19 }
 0x1ec   : > { %v9130_v13 = vpop.permute.xlu1 %1314  ;;  %v9132_v12 = vpop.permute.xlu0 %1312 }
 0x1ed   : > { %14445 = vst [vmem:[#allocation126_spill] sm:$0xff] %v9130_v13  ;;  %14446 = vst [vmem:[#allocation127_spill] sm:$0xff] %v9132_v12 }
 0x1f0   : > { %v1509_v6 = vpop.permute.xlu0 %1508  ;;  %v1511_v47 = vpop.permute.xlu1 %1510 }
 0x1f1   : > { %6917 = vpush %v1509_v6 }
 0x1f2   : > { %6919 = vpush %v1511_v47 }
 0x1f4   : > { %v1513_v33 = vpop.permute.xlu0 %1512  ;;  %v1515_v27 = vpop.permute.xlu1 %1514 }
 0x1f5   : > { %6921 = vpush %v1513_v33 }
 0x1f6   : > { %6923 = vpush %v1515_v27 }
 0x1f8   : > { %v1517_v26 = vpop.permute.xlu0 %1516  ;;  %v1519_v54 = vpop.permute.xlu1 %1518 }
 0x1f9   : > { %6925 = vpush %v1517_v26 }
 0x1fa   : > { %6927 = vpush %v1519_v54 }
 0x1fc   : > { %v1521_v40 = vpop.permute.xlu0 %1520  ;;  %v1523_v20 = vpop.permute.xlu1 %1522 }
 0x1fd   : > { %6929 = vpush %v1521_v40 }
 0x1fe   : > { %6931 = vpush %v1523_v20 }
 0x200   : > { %v1525_v19 = vpop.permute.xlu0 %1524  ;;  %v1527_v13 = vpop.permute.xlu1 %1526 }
 0x201   : > { %6933 = vpush %v1525_v19 }
 0x202   : > { %6935 = vpush %v1527_v13 }
 0x204   : > { %v1529_v12 = vpop.permute.xlu0 %1528  ;;  %v1531_v5 = vpop.permute.xlu1 %1530 }
 0x205   : > { %6937 = vpush %v1529_v12 }
 0x206   : > { %6939 = vpush %v1531_v5 }
 0x208   : > { %v1533_v6 = vpop.permute.xlu0 %1532  ;;  %v1535_v47 = vpop.permute.xlu1 %1534 }
 0x209   : > { %6941 = vpush %v1533_v6 }
 0x20a   : > { %6943 = vpush %v1535_v47 }
 0x20c   : > { %v1539_v27 = vpop.permute.xlu1 %1538  ;;  %v1537_v33 = vpop.permute.xlu0 %1536 }
 0x20d   : > { %6945 = vpush %v1537_v33  ;;  %v7647_v33 = vld [vmem:[%s8504_s8] sm:$0xff] }
 0x20e   : > { %6947 = vpush %v1539_v27 }
 0x210   : > { %v1543_v26 = vpop.permute.xlu1 %1542  ;;  %v1541_v54 = vpop.permute.xlu0 %1540 }
 0x211   : > { %6949 = vpush %v1541_v54  ;;  %v7648_v54 = vld [vmem:[%s8504_s8 + $0x8] sm:$0xff] }
 0x212   : > { %6951 = vpush %v1543_v26 }
 0x214   : > { %v1547_v20 = vpop.permute.xlu1 %1546  ;;  %v1545_v40 = vpop.permute.xlu0 %1544 }
 0x215   : > { %6953 = vpush %v1545_v40 }
 0x216   : > { %6955 = vpush %v1547_v20 }
 0x218   : > { %v1551_v13 = vpop.permute.xlu1 %1550  ;;  %v1549_v12 = vpop.permute.xlu0 %1548 }
 0x219   : > { %6957 = vpush %v1549_v12 }
 0x21a   : > { %6959 = vpush %v1551_v13 }
 0x21c   : > { %v1555_v5 = vpop.permute.xlu1 %1554  ;;  %v1553_v19 = vpop.permute.xlu0 %1552 }
 0x21d   : > { %6961 = vpush %v1553_v19  ;;  %v7649_v19 = vld [vmem:[%s8504_s8 + $0x18] sm:$0xff] }
 0x21e   : > { %6963 = vpush %v1555_v5 }
 0x220   : > { %v1559_v6 = vpop.permute.xlu1 %1558  ;;  %v1557_v47 = vpop.permute.xlu0 %1556 }
 0x221   : > { %6965 = vpush %v1557_v47 }
 0x222   : > { %s6918_s2 = spop %6917  ;;  %6967 = vpush %v1559_v6 }
 0x223   : > { %v1605_v27 = vstv %s6918_s2  ;;  %s6920_s12 = spop %6919 }
 0x224   : > { %v1748_v26 = vmul.f32 %v7647_v33, %v1605_v27  ;;  %v1749_v20 = vmul.f32 %v7648_v54, %v1605_v27  ;;  %v1608_v40 = vstv %s6920_s12  ;;  %v1563_v12 = vpop.permute.xlu1 %1562  ;;  %v1561_v13 = vpop.permute.xlu0 %1560  ;;  %v7651_v33 = vld [vmem:[%s8504_s8 + $0x30] sm:$0xff] }
 0x225   : > { %6969 = vpush %v1561_v13  ;;  %v1750_v5 = vmul.f32 %v7649_v19, %v1608_v40  ;;  %v1751_v62 = vmul.f32 %v7650_v63, %v1608_v40  ;;  %v7652_v63 = vld [vmem:[%s8504_s8 + $0x38] sm:$0xff]  ;;  %v7653_v13 = vld [vmem:[%s8504_s8 + $0x48] sm:$0xff] }
 0x226   : > { %1942 = vrot.lane.b32.xlu1 %v1749_v20, %s14313_s10  ;;  %1940 = vrot.lane.b32.xlu0 %v1748_v26, %s14313_s10  ;;  %s6922_s2 = spop %6921  ;;  %6971 = vpush %v1563_v12 }
 0x227   : > { %v1611_v6 = vstv %s6922_s2  ;;  %s6924_s0 = spop %6923 }
 0x228   : > { %v1567_v47 = vpop.permute.xlu1 %1566  ;;  %v1565_v27 = vpop.permute.xlu0 %1564  ;;  %v1752_v54 = vmul.f32 %v7651_v33, %v1611_v6  ;;  %v1753_v40 = vmul.f32 %v7652_v63, %v1611_v6  ;;  %v1614_v20 = vstv %s6924_s0  ;;  %v7656_v63 = vld [vmem:[%s8504_s8 + $0x68] sm:$0xff] }
 0x229   : > { %6973 = vpush %v1565_v27  ;;  %v1754_v19 = vmul.f32 %v7653_v13, %v1614_v20  ;;  %v1755_v27 = vmul.f32 %v7654_v56, %v1614_v20  ;;  %v7658_v13 = vld [vmem:[%s8504_s8 + $0x80] sm:$0xff] }
 0x22a   : > { %1946 = vrot.lane.b32.xlu1 %v1751_v62, %s14313_s10  ;;  %1944 = vrot.lane.b32.xlu0 %v1750_v5, %s14313_s10  ;;  %6975 = vpush %v1567_v47  ;;  %s6926_s12 = spop %6925  ;;  %v7655_v47 = vld [vmem:[%s8504_s8 + $0x60] sm:$0xff] }
 0x22b   : > { %v1617_v62 = vstv %s6926_s12  ;;  %s6928_s2 = spop %6927 }
 0x22c   : > { %v1571_v26 = vpop.permute.xlu1 %1570  ;;  %v1569_v12 = vpop.permute.xlu0 %1568  ;;  %v1756_v33 = vmul.f32 %v7655_v47, %v1617_v62  ;;  %v1757_v56 = vmul.f32 %v7656_v63, %v1617_v62  ;;  %v7660_v63 = vld [vmem:[%s8504_s8 + $0x98] sm:$0xff] }
 0x22d   : > { %6977 = vpush %v1569_v12 }
 0x22e   : > { %1950 = vrot.lane.b32.xlu1 %v1753_v40, %s14313_s10  ;;  %1948 = vrot.lane.b32.xlu0 %v1752_v54, %s14313_s10  ;;  %6979 = vpush %v1571_v26  ;;  %v1620_v40 = vstv %s6928_s2  ;;  %s6930_s0 = spop %6929  ;;  %v7657_v26 = vld [vmem:[%s8504_s8 + $0x78] sm:$0xff] }
 0x22f   : > { %v1758_v12 = vmul.f32 %v7657_v26, %v1620_v40  ;;  %s6932_s12 = spop %6931 }
 0x230   : > { %v1575_v5 = vpop.permute.xlu1 %1574  ;;  %v1573_v6 = vpop.permute.xlu0 %1572 }
 0x231   : > { %6981 = vpush %v1573_v6  ;;  %v1759_v6 = vmul.f32 %v7658_v13, %v1620_v40  ;;  %v7662_v13 = vld [vmem:[%s8504_s8 + $0xb0] sm:$0xff] }
 0x232   : > { %1954 = vrot.lane.b32.xlu1 %v1755_v27, %s14313_s10  ;;  %1952 = vrot.lane.b32.xlu0 %v1754_v19, %s14313_s10  ;;  %6983 = vpush %v1575_v5  ;;  %v1623_v19 = vstv %s6930_s0  ;;  %v7659_v5 = vld [vmem:[%s8504_s8 + $0x90] sm:$0xff]  ;;  %s6934_s2 = spop %6933 }
 0x233   : > { %v1760_v47 = vmul.f32 %v7659_v5, %v1623_v19  ;;  %v1761_v40 = vmul.f32 %v7660_v63, %v1623_v19  ;;  %s6936_s0 = spop %6935  ;;  %v7664_v63 = vld [vmem:[%s8504_s8 + $0xc8] sm:$0xff] }
 0x234   : > { %v1579_v54 = vpop.permute.xlu1 %1578  ;;  %v1577_v20 = vpop.permute.xlu0 %1576 }
 0x235   : > { %6985 = vpush %v1577_v20  ;;  %v7661_v20 = vld [vmem:[%s8504_s8 + $0xa8] sm:$0xff] }
 0x236   : > { %1958 = vrot.lane.b32.xlu1 %v1757_v56, %s14313_s10  ;;  %1956 = vrot.lane.b32.xlu0 %v1756_v33, %s14313_s10  ;;  %6987 = vpush %v1579_v54  ;;  %v1626_v56 = vstv %s6932_s12  ;;  %s6938_s12 = spop %6937 }
 0x237   : > { %v1762_v26 = vmul.f32 %v7661_v20, %v1626_v56 }
 0x238   : > { %v1583_v27 = vpop.permute.xlu1 %1582  ;;  %v1581_v62 = vpop.permute.xlu0 %1580 }
 0x239   : > { %6989 = vpush %v1581_v62  ;;  %v1763_v62 = vmul.f32 %v7662_v13, %v1626_v56  ;;  %v7666_v13 = vld [vmem:[%s8504_s8 + $0xe0] sm:$0xff] }
 0x23a   : > { %1962 = vrot.lane.b32.xlu1 %v1759_v6, %s14313_s10  ;;  %1960 = vrot.lane.b32.xlu0 %v1758_v12, %s14313_s10  ;;  %6991 = vpush %v1583_v27  ;;  %v1629_v12 = vstv %s6934_s2  ;;  %v7663_v27 = vld [vmem:[%s8504_s8 + $0xc0] sm:$0xff]  ;;  %s6940_s2 = spop %6939 }
 0x23b   : > { %v1764_v5 = vmul.f32 %v7663_v27, %v1629_v12  ;;  %v1765_v56 = vmul.f32 %v7664_v63, %v1629_v12  ;;  %v7668_v63 = vld [vmem:[%s8504_s8 + $0xf8] sm:$0xff] }
 0x23c   : > { %v1587_v33 = vpop.permute.xlu1 %1586  ;;  %v1585_v54 = vpop.permute.xlu0 %1584 }
 0x23d   : > { %6993 = vpush %v1585_v54  ;;  %v7665_v54 = vld [vmem:[%s8504_s8 + $0xd8] sm:$0xff] }
 0x23e   : > { %1966 = vrot.lane.b32.xlu1 %v1761_v40, %s14313_s10  ;;  %1964 = vrot.lane.b32.xlu0 %v1760_v47, %s14313_s10  ;;  %6995 = vpush %v1587_v33  ;;  %v1632_v40 = vstv %s6936_s0  ;;  %s6942_s0 = spop %6941 }
 0x23f   : > { %v1766_v20 = vmul.f32 %v7665_v54, %v1632_v40  ;;  %v9180_v54 = vrot.slane %v8788_v35, 1  ;;  %v1641_v35 = vstv %s6942_s0 }
 0x240   : > { %v1591_v6 = vpop.permute.xlu1 %1590  ;;  %v1589_v19 = vpop.permute.xlu0 %1588 }
 0x241   : > { %6997 = vpush %v1589_v19  ;;  %v1767_v19 = vmul.f32 %v7666_v13, %v1632_v40  ;;  %v9183_v13 = vrot.slane %v8797_v42, 1  ;;  %v9194_v42 = vrot.slane %v8811_v48, 1 }
 0x242   : > { %1970 = vrot.lane.b32.xlu1 %v1763_v62, %s14313_s10  ;;  %1968 = vrot.lane.b32.xlu0 %v1762_v26, %s14313_s10  ;;  %6999 = vpush %v1591_v6  ;;  %v1635_v26 = vstv %s6938_s12  ;;  %v7667_v6 = vld [vmem:[%s8504_s8 + $0xf0] sm:$0xff]  ;;  %s6944_s12 = spop %6943 }
 0x243   : > { %v1768_v27 = vmul.f32 %v7667_v6, %v1635_v26  ;;  %v1769_v40 = vmul.f32 %v7668_v63, %v1635_v26  ;;  %v9202_v6 = vrot.slane %v8825_v58, 1  ;;  %v9214_v58 = vrot.slane %v8839_v4, 1 }
 0x244   : > { %v1595_v47 = vpop.permute.xlu1 %1594  ;;  %v1593_v33 = vpop.permute.xlu0 %1592  ;;  %v9230_v4 = vrot.slane %v8858_v17, 1  ;;  %v7675_v17 = vld [vmem:[%s8504_s8 + $0x150] sm:$0xff] }
 0x245   : > { %7001 = vpush %v1593_v33 }
 0x246   : > { %1974 = vrot.lane.b32.xlu1 %v1765_v56, %s14313_s10  ;;  %1972 = vrot.lane.b32.xlu0 %v1764_v5, %s14313_s10  ;;  %7003 = vpush %v1595_v47  ;;  %v1638_v56 = vstv %s6940_s2  ;;  %v9177_v5 = vrot.slane %v8783_v32, 1  ;;  %v9190_v32 = vrot.slane %v8802_v43, 1  ;;  %v7671_v43 = vld [vmem:[%s8504_s8 + $0x120] sm:$0xff]  ;;  %s6946_s2 = spop %6945 }
 0x247   : > { %v1772_v48 = vmul.f32 %v7671_v43, %v1641_v35  ;;  %s6948_s0 = spop %6947 }
 0x248   : > { %v1599_v62 = vpop.permute.xlu1 %1598  ;;  %v1597_v12 = vpop.permute.xlu0 %1596 }
 0x249   : > { %7005 = vpush %v1597_v12  ;;  %v7670_v12 = vld [vmem:[%s8504_s8 + $0x110] sm:$0xff] }
 0x24a   : > { %1978 = vrot.lane.b32.xlu1 %v1767_v19, %s14313_s10  ;;  %1976 = vrot.lane.b32.xlu0 %v1766_v20, %s14313_s10  ;;  %7007 = vpush %v1599_v62  ;;  %v7669_v20 = vld [vmem:[%s8504_s8 + $0x108] sm:$0xff]  ;;  %v1771_v26 = vmul.f32 %v7670_v12, %v1638_v56  ;;  %v9198_v62 = vrot.slane %v8816_v51, 1  ;;  %v9210_v51 = vrot.slane %v8830_v59, 1  ;;  %v9238_v12 = vrot.slane %v8872_v15, 1 }
 0x24b   : > { %v1770_v19 = vmul.f32 %v7669_v20, %v1638_v56  ;;  %v9218_v56 = vrot.slane %v8844_v7, 1  ;;  %v7674_v20 = vld [vmem:[%s8504_s8 + $0x140] sm:$0xff]  ;;  %v1647_v7 = vstv %s6946_s2  ;;  %v9250_v15 = vrot.slane %v8881_v22, 1 }
 0x24c   : > { %v1603_v47 = vpop.permute.xlu1 %1602  ;;  %v1601_v33 = vpop.permute.xlu0 %1600 }
 0x24d   : > { %7009 = vpush %v1601_v33  ;;  %v7673_v33 = vld [vmem:[%s8504_s8 + $0x138] sm:$0xff] }
 0x24e   : > { %1982 = vrot.lane.b32.xlu1 %v1769_v40, %s14313_s10  ;;  %1980 = vrot.lane.b32.xlu0 %v1768_v27, %s14313_s10  ;;  %7011 = vpush %v1603_v47  ;;  %v7672_v27 = vld [vmem:[%s8504_s8 + $0x128] sm:$0xff]  ;;  %v1644_v40 = vstv %s6944_s12  ;;  %v9222_v47 = vrot.slane %v8853_v16, 1  ;;  %v9234_v16 = vrot.slane %v8867_v8, 1  ;;  %v1776_v8 = vmul.f32 %v7675_v17, %v1647_v7  ;;  %s6950_s12 = spop %6949 }
 0x24f   : > { %7013 = vpush %v9177_v5  ;;  %v1773_v63 = vmul.f32 %v7672_v27, %v1641_v35  ;;  %v1774_v59 = vmul.f32 %v7673_v33, %v1644_v40  ;;  %v7676_v35 = vld [vmem:[%s8504_s8 + $0x158] sm:$0xff]  ;;  %v9258_v27 = vrot.slane %v8895_v3, 1  ;;  %v7678_v33 = vld [vmem:[%s8504_s8 + $0x170] sm:$0xff]  ;;  %v1653_v3 = vstv %s6950_s12  ;;  %s6952_s2 = spop %6951 }
 0x250   : > { %7015 = vpush %v9180_v54  ;;  %v1777_v43 = vmul.f32 %v7676_v35, %v1647_v7  ;;  %v7680_v7 = vld [vmem:[%s8504_s8 + $0x188] sm:$0xff]  ;;  %v9298_v35 = vrot.slane %v8951_v31, 1 }
 0x251   : > { %7017 = vpush %v9183_v13  ;;  %v1781_v17 = vmul.f32 %v7680_v7, %v1653_v3  ;;  %v9338_v7 = vrot.slane %v9007_v50, 1  ;;  %v7687_v50 = vld [vmem:[%s8504_s8 + $0x1e0] sm:$0xff] }
 0x252   : > { %1986 = vrot.lane.b32.xlu1 %v1771_v26, %s14313_s10  ;;  %1984 = vrot.lane.b32.xlu0 %v1770_v19, %s14313_s10  ;;  %7019 = vpush %v9190_v32  ;;  %v1775_v19 = vmul.f32 %v7674_v20, %v1644_v40  ;;  %v9242_v26 = vrot.slane %v8886_v23, 1  ;;  %v9254_v23 = vrot.slane %v8900_v2, 1  ;;  %v7677_v40 = vld [vmem:[%s8504_s8 + $0x168] sm:$0xff]  ;;  %v9270_v2 = vrot.slane %v8909_v57, 1  ;;  %v7679_v57 = vld [vmem:[%s8504_s8 + $0x180] sm:$0xff] }
 0x253   : > { %7021 = vpush %v9194_v42  ;;  %v9278_v20 = vrot.slane %v8923_v45, 1  ;;  %v9290_v45 = vrot.slane %v8937_v37, 1 }
 0x254   : > { %7023 = vpush %v9198_v62 }
 0x255   : > { %7025 = vpush %v9202_v6 }
 0x256   : > { %1990 = vrot.lane.b32.xlu1 %v1773_v63, %s14313_s10  ;;  %1988 = vrot.lane.b32.xlu0 %v1772_v48, %s14313_s10  ;;  %7027 = vpush %v9210_v51  ;;  %v1650_v48 = vstv %s6948_s0  ;;  %v9262_v63 = vrot.slane %v8914_v52, 1  ;;  %v9274_v52 = vrot.slane %v8928_v44, 1  ;;  %v1780_v44 = vmul.f32 %v7679_v57, %v1653_v3  ;;  %s6954_s0 = spop %6953  ;;  %v7684_v3 = vld [vmem:[%s8504_s8 + $0x1b8] sm:$0xff] }
 0x257   : > { %7029 = vpush %v9214_v58  ;;  %v1778_v22 = vmul.f32 %v7677_v40, %v1650_v48  ;;  %v7682_v40 = vld [vmem:[%s8504_s8 + $0x1a0] sm:$0xff]  ;;  %v1659_v31 = vstv %s6954_s0  ;;  %s6956_s12 = spop %6955 }
 0x258   : > { %7031 = vpush %v9218_v56  ;;  %v1785_v57 = vmul.f32 %v7684_v3, %v1659_v31 }
 0x259   : > { %7033 = vpush %v9222_v47 }
 0x25a   : > { %1994 = vrot.lane.b32.xlu1 %v1775_v19, %s14313_s10  ;;  %1992 = vrot.lane.b32.xlu0 %v1774_v59, %s14313_s10  ;;  %7035 = vpush %v9230_v4  ;;  %v1779_v59 = vmul.f32 %v7678_v33, %v1650_v48  ;;  %v9282_v19 = vrot.slane %v8942_v36, 1  ;;  %v9294_v36 = vrot.slane %v8956_v28, 1  ;;  %v7681_v48 = vld [vmem:[%s8504_s8 + $0x198] sm:$0xff]  ;;  %v9310_v28 = vrot.slane %v8965_v25, 1  ;;  %v7683_v25 = vld [vmem:[%s8504_s8 + $0x1b0] sm:$0xff] }
 0x25b   : > { %7037 = vpush %v9234_v16  ;;  %v9318_v33 = vrot.slane %v8979_v14, 1  ;;  %v9330_v14 = vrot.slane %v8993_v61, 1  ;;  %v7685_v61 = vld [vmem:[%s8504_s8 + $0x1c8] sm:$0xff] }
 0x25c   : > { %7039 = vpush %v9238_v12 }
 0x25d   : > { %7041 = vpush %v9242_v26 }
 0x25e   : > { %1998 = vrot.lane.b32.xlu1 %v1777_v43, %s14313_s10  ;;  %1996 = vrot.lane.b32.xlu0 %v1776_v8, %s14313_s10  ;;  %7043 = vpush %v9250_v15  ;;  %v1656_v8 = vstv %s6952_s2  ;;  %v9302_v43 = vrot.slane %v8970_v24, 1  ;;  %v9314_v24 = vrot.slane %v8984_v11, 1  ;;  %v1784_v11 = vmul.f32 %v7683_v25, %v1659_v31  ;;  %s6958_s2 = spop %6957 }
 0x25f   : > { %7045 = vpush %v9254_v23  ;;  %v1782_v37 = vmul.f32 %v7681_v48, %v1656_v8  ;;  %v7686_v48 = vld [vmem:[%s8504_s8 + $0x1d0] sm:$0xff]  ;;  %s6960_s0 = spop %6959 }
 0x260   : > { %7047 = vpush %v9258_v27  ;;  %v1668_v25 = vstv %s6960_s0 }
 0x261   : > { %7049 = vpush %v9262_v63 }
 0x262   : > { %2002 = vrot.lane.b32.xlu1 %v1779_v59, %s14313_s10  ;;  %2000 = vrot.lane.b32.xlu0 %v1778_v22, %s14313_s10  ;;  %7051 = vpush %v9270_v2  ;;  %v1783_v22 = vmul.f32 %v7682_v40, %v1656_v8  ;;  %v9322_v59 = vrot.slane %v8998_v60, 1  ;;  %v9334_v60 = vrot.slane %v9012_v49, 1  ;;  %v1665_v49 = vstv %s6958_s2 }
 0x263   : > { %7053 = vpush %v9274_v52  ;;  %v1788_v40 = vmul.f32 %v7687_v50, %v1665_v49 }
 0x264   : > { %7055 = vpush %v9278_v20 }
 0x265   : > { %7057 = vpush %v9282_v19 }
 0x266   : > { %2006 = vrot.lane.b32.xlu1 %v1781_v17, %s14313_s10  ;;  %2004 = vrot.lane.b32.xlu0 %v1780_v44, %s14313_s10  ;;  %7059 = vpush %v9290_v45  ;;  %v1662_v44 = vstv %s6956_s12  ;;  %v9342_v17 = vrot.slane %v9026_v38, 1  ;;  %v9352_v38 = vrot.slane %v9021_v39, 1  ;;  %s6962_s12 = spop %6961  ;;  %v7689_v39 = vld [vmem:[%s8504_s8 + $0x1f8] sm:$0xff] }
 0x267   : > { %7061 = vpush %v9294_v36  ;;  %v1786_v8 = vmul.f32 %v7685_v61, %v1662_v44  ;;  %v1790_v3 = vmul.f32 %v7689_v39, %v1668_v25  ;;  %v1671_v61 = vstv %s6962_s12  ;;  %s6964_s2 = spop %6963 }
 0x268   : > { %7063 = vpush %v9298_v35  ;;  %v1674_v50 = vstv %s6964_s2  ;;  %s6966_s0 = spop %6965 }
 0x269   : > { %7065 = vpush %v9302_v43  ;;  %v1677_v39 = vstv %s6966_s0  ;;  %s6968_s12 = spop %6967 }
 0x26a   : > { %2010 = vrot.lane.b32.xlu1 %v1783_v22, %s14313_s10  ;;  %2008 = vrot.lane.b32.xlu0 %v1782_v37, %s14313_s10  ;;  %7067 = vpush %v9310_v28  ;;  %v1787_v37 = vmul.f32 %v7686_v48, %v1662_v44  ;;  %v7688_v22 = vld [vmem:[%s8504_s8 + $0x1e8] sm:$0xff]  ;;  %s6970_s2 = spop %6969 }
 0x26b   : > { %7069 = vpush %v9314_v24  ;;  %v1789_v31 = vmul.f32 %v7688_v22, %v1665_v49  ;;  %v7693_v22 = vld [vmem:[%s8504_s8 + $0x228] sm:$0xff]  ;;  %s6972_s0 = spop %6971 }
 0x26c   : > { %7071 = vpush %v9318_v33 }
 0x26d   : > { %7073 = vpush %v9322_v59 }
 0x26e   : > { %2014 = vrot.lane.b32.xlu1 %v1785_v57, %s14313_s10  ;;  %2012 = vrot.lane.b32.xlu0 %v1784_v11, %s14313_s10  ;;  %7075 = vpush %v9330_v14  ;;  %v9361_v11 = vrot.slane %v9040_v29, 1  ;;  %v7690_v57 = vld [vmem:[%s8504_s8 + $0x200] sm:$0xff]  ;;  %v7691_v29 = vld [vmem:[%s8504_s8 + $0x210] sm:$0xff] }
 0x26f   : > { %7077 = vpush %v9334_v60  ;;  %v1791_v44 = vmul.f32 %v7690_v57, %v1668_v25  ;;  %v1792_v48 = vmul.f32 %v7691_v29, %v1671_v61  ;;  %v1680_v29 = vstv %s6968_s12  ;;  %s6974_s12 = spop %6973 }
 0x270   : > { %7079 = vpush %v9338_v7 }
 0x271   : > { %7081 = vpush %v9342_v17 }
 0x272   : > { %2018 = vrot.lane.b32.xlu1 %v1787_v37, %s14313_s10  ;;  %2016 = vrot.lane.b32.xlu0 %v1786_v8, %s14313_s10  ;;  %7083 = vpush %v9352_v38  ;;  %v9369_v8 = vrot.slane %v9035_v30, 1  ;;  %v7692_v37 = vld [vmem:[%s8504_s8 + $0x218] sm:$0xff]  ;;  %v1794_v30 = vmul.f32 %v7693_v22, %v1674_v50  ;;  %v1683_v22 = vstv %s6970_s2  ;;  %s6976_s2 = spop %6975 }
 0x273   : > { %7085 = vpush %v9361_v11  ;;  %v1793_v49 = vmul.f32 %v7692_v37, %v1671_v61  ;;  %v7697_v37 = vld [vmem:[%s8504_s8 + $0x258] sm:$0xff] }
 0x274   : > { %7087 = vpush %v9369_v8 }
 0x276   : > { %2022 = vrot.lane.b32.xlu1 %v1789_v31, %s14313_s10  ;;  %2020 = vrot.lane.b32.xlu0 %v1788_v40, %s14313_s10  ;;  %v9377_v40 = vrot.slane %v9054_v18, 1  ;;  %v7694_v31 = vld [vmem:[%s8504_s8 + $0x230] sm:$0xff]  ;;  %v7695_v18 = vld [vmem:[%s8504_s8 + $0x240] sm:$0xff] }
 0x277   : > { %v1795_v25 = vmul.f32 %v7694_v31, %v1674_v50  ;;  %v1796_v57 = vmul.f32 %v7695_v18, %v1677_v39  ;;  %v1686_v18 = vstv %s6972_s0  ;;  %s6978_s0 = spop %6977 }
 0x278   : > { %7089 = vpush %v9377_v40 }
 0x27a   : > { %2026 = vrot.lane.b32.xlu1 %v1791_v44, %s14313_s10  ;;  %2024 = vrot.lane.b32.xlu0 %v1790_v3, %s14313_s10  ;;  %v9385_v3 = vrot.slane %v9049_v21, 1  ;;  %v7696_v44 = vld [vmem:[%s8504_s8 + $0x248] sm:$0xff]  ;;  %v1798_v21 = vmul.f32 %v7697_v37, %v1680_v29  ;;  %v1689_v37 = vstv %s6974_s12  ;;  %s6980_s12 = spop %6979 }
 0x27b   : > { %v1797_v61 = vmul.f32 %v7696_v44, %v1677_v39  ;;  %v7701_v44 = vld [vmem:[%s8504_s8 + $0x288] sm:$0xff] }
 0x27c   : > { %7091 = vpush %v9385_v3 }
 0x27e   : > { %2030 = vrot.lane.b32.xlu1 %v1793_v49, %s14313_s10  ;;  %2028 = vrot.lane.b32.xlu0 %v1792_v48, %s14313_s10  ;;  %v9393_v48 = vrot.slane %v9068_v9, 1  ;;  %v7698_v49 = vld [vmem:[%s8504_s8 + $0x260] sm:$0xff]  ;;  %v7699_v9 = vld [vmem:[%s8504_s8 + $0x270] sm:$0xff] }
 0x27f   : > { %v1799_v50 = vmul.f32 %v7698_v49, %v1680_v29  ;;  %v1800_v31 = vmul.f32 %v7699_v9, %v1683_v22  ;;  %v1692_v9 = vstv %s6976_s2  ;;  %s6982_s2 = spop %6981 }
 0x280   : > { %7093 = vpush %v9393_v48 }
 0x282   : > { %2034 = vrot.lane.b32.xlu1 %v1795_v25, %s14313_s10  ;;  %2032 = vrot.lane.b32.xlu0 %v1794_v30, %s14313_s10  ;;  %v9401_v30 = vrot.slane %v9063_v10, 1  ;;  %v7700_v25 = vld [vmem:[%s8504_s8 + $0x278] sm:$0xff]  ;;  %v1802_v10 = vmul.f32 %v7701_v44, %v1686_v18  ;;  %v1695_v44 = vstv %s6978_s0  ;;  %s6984_s0 = spop %6983 }
 0x283   : > { %v1801_v39 = vmul.f32 %v7700_v25, %v1683_v22  ;;  %v7705_v25 = vld [vmem:[%s8504_s8 + $0x2b8] sm:$0xff] }
 0x284   : > { %7095 = vpush %v9401_v30 }
 0x286   : > { %2038 = vrot.lane.b32.xlu1 %v1797_v61, %s14313_s10  ;;  %2036 = vrot.lane.b32.xlu0 %v1796_v57, %s14313_s10  ;;  %v9409_v57 = vrot.slane %v9082_v0, 1  ;;  %v7702_v61 = vld [vmem:[%s8504_s8 + $0x290] sm:$0xff]  ;;  %v7703_v0 = vld [vmem:[%s8504_s8 + $0x2a0] sm:$0xff] }
 0x287   : > { %v1803_v29 = vmul.f32 %v7702_v61, %v1686_v18  ;;  %v1804_v49 = vmul.f32 %v7703_v0, %v1689_v37  ;;  %v7708_v0 = vld [vmem:[%s8504_s8 + $0x2d8] sm:$0xff] }
 0x288   : > { %7097 = vpush %v9409_v57 }
 0x28a   : > { %2042 = vrot.lane.b32.xlu1 %v1799_v50, %s14313_s10  ;;  %2040 = vrot.lane.b32.xlu0 %v1798_v21, %s14313_s10  ;;  %v9417_v21 = vrot.slane %v9077_v1, 1  ;;  %v7704_v50 = vld [vmem:[%s8504_s8 + $0x2a8] sm:$0xff]  ;;  %v7706_v1 = vld [vmem:[%s8504_s8 + $0x2c0] sm:$0xff] }
 0x28b   : > { %v1805_v22 = vmul.f32 %v7704_v50, %v1689_v37  ;;  %v1807_v18 = vmul.f32 %v7706_v1, %v1692_v9  ;;  %v1809_v50 = vmul.f32 %v7708_v0, %v1695_v44 }
 0x28c   : > { %7099 = vpush %v9417_v21 }
 0x28e   : > { %2046 = vrot.lane.b32.xlu1 %v1801_v39, %s14313_s10  ;;  %2044 = vrot.lane.b32.xlu0 %v1800_v31, %s14313_s10  ;;  %v9425_v31 = vrot.slane %v9096_v53, 1  ;;  %v1806_v39 = vmul.f32 %v7705_v25, %v1692_v9  ;;  %v9437_v53 = vrot.slane %v9091_v41, 1  ;;  %v9449_v41 = vrot.slane %v9110_v46, 1  ;;  %v7709_v25 = vld [vmem:[%s8504_s8 + $0x2e8] sm:$0xff] }
 0x28f   : > { %v9461_v46 = vrot.slane %v9105_v34, 1  ;;  %v7713_v34 = vld [vmem:[%s8504_s8 + $0x318] sm:$0xff] }
 0x290   : > { %7101 = vpush %v9425_v31 }
 0x291   : > { %7103 = vpush %v9437_v53 }
 0x292   : > { %2050 = vrot.lane.b32.xlu1 %v1803_v29, %s14313_s10  ;;  %2048 = vrot.lane.b32.xlu0 %v1802_v10, %s14313_s10  ;;  %v7707_v29 = vld [vmem:[%s8504_s8 + $0x2d0] sm:$0xff]  ;;  %7105 = vpush %v9449_v41 }
 0x293   : > { %v1808_v37 = vmul.f32 %v7707_v29, %v1695_v44  ;;  %v7710_v44 = vld [vmem:[%s8504_s8 + $0x2f0] sm:$0xff]  ;;  %7107 = vpush %v9461_v46 }
 0x296   : > { %2054 = vrot.lane.b32.xlu1 %v1805_v22, %s14313_s10  ;;  %2052 = vrot.lane.b32.xlu0 %v1804_v49, %s14313_s10  ;;  %v1698_v49 = vstv %s6980_s12  ;;  %s6986_s12 = spop %6985 }
 0x297   : > { %v1810_v1 = vmul.f32 %v7709_v25, %v1698_v49  ;;  %v1811_v29 = vmul.f32 %v7710_v44, %v1698_v49  ;;  %v7711_v25 = vld [vmem:[%s8504_s8 + $0x300] sm:$0xff]  ;;  %v7712_v49 = vld [vmem:[%s8504_s8 + $0x308] sm:$0xff] }
 0x298   : > { %v9432_v10 = vpop.permute.xlu1 %1942  ;;  %v9434_v61 = vpop.permute.xlu0 %1940 }
 0x299   : > { %14447 = vst [vmem:[#allocation128_spill] sm:$0xff] %v9432_v10  ;;  %14448 = vst [vmem:[#allocation129_spill] sm:$0xff] %v9434_v61  ;;  %v7716_v61 = vld [vmem:[%s8504_s8 + $0x338] sm:$0xff] }
 0x29a   : > { %2058 = vrot.lane.b32.xlu1 %v1807_v18, %s14313_s10  ;;  %2056 = vrot.lane.b32.xlu0 %v1806_v39, %s14313_s10  ;;  %v1701_v39 = vstv %s6982_s2  ;;  %s6988_s2 = spop %6987 }
 0x29b   : > { %v1813_v44 = vmul.f32 %v7712_v49, %v1701_v39  ;;  %v7715_v49 = vld [vmem:[%s8504_s8 + $0x330] sm:$0xff] }
 0x29c   : > { %v9444_v22 = vpop.permute.xlu1 %1946  ;;  %v9446_v9 = vpop.permute.xlu0 %1944 }
 0x29d   : > { %14449 = vst [vmem:[#allocation130_spill] sm:$0xff] %v9444_v22  ;;  %14450 = vst [vmem:[#allocation131_spill] sm:$0xff] %v9446_v9  ;;  %v1812_v9 = vmul.f32 %v7711_v25, %v1701_v39  ;;  %v7714_v22 = vld [vmem:[%s8504_s8 + $0x320] sm:$0xff] }
 0x29e   : > { %2062 = vrot.lane.b32.xlu1 %v1809_v50, %s14313_s10  ;;  %2060 = vrot.lane.b32.xlu0 %v1808_v37, %s14313_s10  ;;  %v1704_v37 = vstv %s6984_s0  ;;  %s6990_s0 = spop %6989 }
 0x29f   : > { %v1815_v25 = vmul.f32 %v7714_v22, %v1704_v37  ;;  %v1710_v22 = vstv %s6988_s2 }
 0x2a0   : > { %v9456_v18 = vpop.permute.xlu1 %1950  ;;  %v9458_v0 = vpop.permute.xlu0 %1948 }
 0x2a1   : > { %14451 = vst [vmem:[#allocation132_spill] sm:$0xff] %v9456_v18  ;;  %14452 = vst [vmem:[#allocation133_spill] sm:$0xff] %v9458_v0  ;;  %v1814_v18 = vmul.f32 %v7713_v34, %v1704_v37  ;;  %v7717_v37 = vld [vmem:[%s8504_s8 + $0x348] sm:$0xff] }
 0x2a2   : > { %2066 = vrot.lane.b32.xlu1 %v1811_v29, %s14313_s10  ;;  %2064 = vrot.lane.b32.xlu0 %v1810_v1, %s14313_s10  ;;  %v1707_v1 = vstv %s6986_s12  ;;  %v1818_v34 = vmul.f32 %v7717_v37, %v1710_v22  ;;  %s6992_s12 = spop %6991 }
 0x2a3   : > { %s6994_s2 = spop %6993 }
 0x2a4   : > { %v9468_v50 = vpop.permute.xlu1 %1954  ;;  %v9470_v0 = vpop.permute.xlu0 %1952 }
 0x2a5   : > { %14453 = vst [vmem:[#allocation134_spill] sm:$0xff] %v9468_v50  ;;  %14454 = vst [vmem:[#allocation135_spill] sm:$0xff] %v9470_v0  ;;  %v1816_v50 = vmul.f32 %v7715_v49, %v1707_v1  ;;  %v1817_v0 = vmul.f32 %v7716_v61, %v1707_v1  ;;  %v1713_v61 = vstv %s6990_s0  ;;  %v7719_v1 = vld [vmem:[%s8504_s8 + $0x360] sm:$0xff]  ;;  %s6996_s0 = spop %6995 }
 0x2a6   : > { %2070 = vrot.lane.b32.xlu1 %v1813_v44, %s14313_s10  ;;  %2068 = vrot.lane.b32.xlu0 %v1812_v9, %s14313_s10  ;;  %v1820_v49 = vmul.f32 %v7719_v1, %v1713_v61 }
 0x2a8   : > { %v9476_v29 = vpop.permute.xlu1 %1958  ;;  %v9478_v39 = vpop.permute.xlu0 %1956 }
 0x2a9   : > { %14455 = vst [vmem:[#allocation136_spill] sm:$0xff] %v9476_v29  ;;  %14456 = vst [vmem:[#allocation137_spill] sm:$0xff] %v9478_v39  ;;  %v7718_v29 = vld [vmem:[%s8504_s8 + $0x350] sm:$0xff] }
 0x2aa   : > { %2074 = vrot.lane.b32.xlu1 %v1815_v25, %s14313_s10  ;;  %2072 = vrot.lane.b32.xlu0 %v1814_v18, %s14313_s10  ;;  %v1819_v39 = vmul.f32 %v7718_v29, %v1710_v22  ;;  %v1716_v29 = vstv %s6992_s12  ;;  %v7721_v22 = vld [vmem:[%s8504_s8 + $0x378] sm:$0xff]  ;;  %s6998_s12 = spop %6997 }
 0x2ab   : > { %v1822_v37 = vmul.f32 %v7721_v22, %v1716_v29  ;;  %v7724_v22 = vld [vmem:[%s8504_s8 + $0x398] sm:$0xff] }
 0x2ac   : > { %v9484_v44 = vpop.permute.xlu1 %1962  ;;  %v9486_v9 = vpop.permute.xlu0 %1960 }
 0x2ad   : > { %14457 = vst [vmem:[#allocation138_spill] sm:$0xff] %v9484_v44  ;;  %14458 = vst [vmem:[#allocation139_spill] sm:$0xff] %v9486_v9  ;;  %v7720_v44 = vld [vmem:[%s8504_s8 + $0x368] sm:$0xff] }
 0x2ae   : > { %2078 = vrot.lane.b32.xlu1 %v1817_v0, %s14313_s10  ;;  %2076 = vrot.lane.b32.xlu0 %v1816_v50, %s14313_s10  ;;  %v1821_v9 = vmul.f32 %v7720_v44, %v1713_v61  ;;  %v7723_v61 = vld [vmem:[%s8504_s8 + $0x390] sm:$0xff] }
 0x2b0   : > { %v9492_v25 = vpop.permute.xlu1 %1966  ;;  %v9494_v18 = vpop.permute.xlu0 %1964 }
 0x2b1   : > { %14459 = vst [vmem:[#allocation140_spill] sm:$0xff] %v9492_v25  ;;  %14460 = vst [vmem:[#allocation141_spill] sm:$0xff] %v9494_v18  ;;  %v7722_v25 = vld [vmem:[%s8504_s8 + $0x380] sm:$0xff] }
 0x2b2   : > { %2082 = vrot.lane.b32.xlu1 %v1819_v39, %s14313_s10  ;;  %2080 = vrot.lane.b32.xlu0 %v1818_v34, %s14313_s10  ;;  %v1823_v18 = vmul.f32 %v7722_v25, %v1716_v29  ;;  %v1719_v34 = vstv %s6994_s2  ;;  %v1722_v29 = vstv %s6996_s0  ;;  %s7000_s2 = spop %6999 }
 0x2b3   : > { %v1824_v1 = vmul.f32 %v7723_v61, %v1719_v34  ;;  %v1825_v25 = vmul.f32 %v7724_v22, %v1719_v34  ;;  %v1725_v22 = vstv %s6998_s12  ;;  %s7002_s0 = spop %7001 }
 0x2b4   : > { %v9500_v0 = vpop.permute.xlu1 %1970  ;;  %v9502_v50 = vpop.permute.xlu0 %1968  ;;  %s7004_s12 = spop %7003 }
 0x2b5   : > { %14461 = vst [vmem:[#allocation142_spill] sm:$0xff] %v9500_v0  ;;  %14462 = vst [vmem:[#allocation143_spill] sm:$0xff] %v9502_v50  ;;  %v7742_v50 = vld [vmem:[%s8504_s8 + $0x470] sm:$0xff] }
 0x2b6   : > { %2086 = vrot.lane.b32.xlu1 %v1821_v9, %s14313_s10  ;;  %2084 = vrot.lane.b32.xlu0 %v1820_v49, %s14313_s10 }
 0x2b8   : > { %v9508_v39 = vpop.permute.xlu1 %1974  ;;  %v9510_v44 = vpop.permute.xlu0 %1972 }
 0x2b9   : > { %14463 = vst [vmem:[#allocation144_spill] sm:$0xff] %v9508_v39  ;;  %14464 = vst [vmem:[#allocation145_spill] sm:$0xff] %v9510_v44  ;;  %v7725_v44 = vld [vmem:[%s8504_s8 + $0x3a8] sm:$0xff]  ;;  %v7726_v39 = vld [vmem:[%s8504_s8 + $0x3b0] sm:$0xff] }
 0x2ba   : > { %2090 = vrot.lane.b32.xlu1 %v1823_v18, %s14313_s10  ;;  %2088 = vrot.lane.b32.xlu0 %v1822_v37, %s14313_s10  ;;  %v1826_v18 = vmul.f32 %v7725_v44, %v1722_v29  ;;  %v1827_v37 = vmul.f32 %v7726_v39, %v1722_v29  ;;  %v1728_v29 = vstv %s7000_s2  ;;  %s7006_s2 = spop %7005 }
 0x2bc   : > { %v9516_v9 = vpop.permute.xlu1 %1978  ;;  %v9518_v49 = vpop.permute.xlu0 %1976 }
 0x2bd   : > { %14465 = vst [vmem:[#allocation146_spill] sm:$0xff] %v9516_v9  ;;  %14466 = vst [vmem:[#allocation147_spill] sm:$0xff] %v9518_v49  ;;  %v7727_v49 = vld [vmem:[%s8504_s8 + $0x3c0] sm:$0xff]  ;;  %v7728_v9 = vld [vmem:[%s8504_s8 + $0x3c8] sm:$0xff] }
 0x2be   : > { %2094 = vrot.lane.b32.xlu1 %v1825_v25, %s14313_s10  ;;  %2092 = vrot.lane.b32.xlu0 %v1824_v1, %s14313_s10  ;;  %v1828_v25 = vmul.f32 %v7727_v49, %v1725_v22  ;;  %v1829_v1 = vmul.f32 %v7728_v9, %v1725_v22  ;;  %v1731_v22 = vstv %s7002_s0  ;;  %s7008_s0 = spop %7007 }
 0x2c0   : > { %v9524_v61 = vpop.permute.xlu1 %1982  ;;  %v9526_v34 = vpop.permute.xlu0 %1980 }
 0x2c1   : > { %14467 = vst [vmem:[#allocation148_spill] sm:$0xff] %v9524_v61  ;;  %14468 = vst [vmem:[#allocation149_spill] sm:$0xff] %v9526_v34  ;;  %v7729_v34 = vld [vmem:[%s8504_s8 + $0x3d8] sm:$0xff]  ;;  %v7730_v61 = vld [vmem:[%s8504_s8 + $0x3e0] sm:$0xff] }
 0x2c2   : > { %2098 = vrot.lane.b32.xlu1 %v1827_v37, %s14313_s10  ;;  %2096 = vrot.lane.b32.xlu0 %v1826_v18, %s14313_s10  ;;  %v1830_v37 = vmul.f32 %v7729_v34, %v1728_v29  ;;  %v1831_v18 = vmul.f32 %v7730_v61, %v1728_v29  ;;  %v1734_v29 = vstv %s7004_s12  ;;  %s7010_s12 = spop %7009 }
 0x2c4   : > { %v9532_v44 = vpop.permute.xlu1 %1986  ;;  %v9534_v39 = vpop.permute.xlu0 %1984 }
 0x2c5   : > { %14469 = vst [vmem:[#allocation150_spill] sm:$0xff] %v9532_v44  ;;  %14470 = vst [vmem:[#allocation151_spill] sm:$0xff] %v9534_v39  ;;  %v7731_v39 = vld [vmem:[%s8504_s8 + $0x3f0] sm:$0xff]  ;;  %v7732_v44 = vld [vmem:[%s8504_s8 + $0x3f8] sm:$0xff] }
 0x2c6   : > { %2102 = vrot.lane.b32.xlu1 %v1829_v1, %s14313_s10  ;;  %2100 = vrot.lane.b32.xlu0 %v1828_v25, %s14313_s10  ;;  %v1832_v1 = vmul.f32 %v7731_v39, %v1731_v22  ;;  %v1833_v25 = vmul.f32 %v7732_v44, %v1731_v22  ;;  %v1737_v22 = vstv %s7006_s2  ;;  %s7012_s2 = spop %7011 }
 0x2c8   : > { %v9540_v49 = vpop.permute.xlu1 %1990  ;;  %v9542_v9 = vpop.permute.xlu0 %1988 }
 0x2c9   : > { %14471 = vst [vmem:[#allocation152_spill] sm:$0xff] %v9540_v49  ;;  %14472 = vst [vmem:[#allocation153_spill] sm:$0xff] %v9542_v9  ;;  %v7733_v9 = vld [vmem:[%s8504_s8 + $0x408] sm:$0xff]  ;;  %v7734_v49 = vld [vmem:[%s8504_s8 + $0x410] sm:$0xff] }
 0x2ca   : > { %2106 = vrot.lane.b32.xlu1 %v1831_v18, %s14313_s10  ;;  %2104 = vrot.lane.b32.xlu0 %v1830_v37, %s14313_s10  ;;  %v1834_v18 = vmul.f32 %v7733_v9, %v1734_v29  ;;  %v1835_v37 = vmul.f32 %v7734_v49, %v1734_v29  ;;  %v1740_v29 = vstv %s7008_s0  ;;  %s9806_s0 = spop %7013 }
 0x2cb   : > { %14543 = sst [smem:[#allocation224_spill]] %s9806_s0 }
 0x2cc   : > { %v9548_v34 = vpop.permute.xlu1 %1994  ;;  %v9550_v61 = vpop.permute.xlu0 %1992 }
 0x2cd   : > { %14473 = vst [vmem:[#allocation154_spill] sm:$0xff] %v9548_v34  ;;  %14474 = vst [vmem:[#allocation155_spill] sm:$0xff] %v9550_v61  ;;  %v7735_v61 = vld [vmem:[%s8504_s8 + $0x420] sm:$0xff]  ;;  %v7736_v34 = vld [vmem:[%s8504_s8 + $0x428] sm:$0xff] }
 0x2ce   : > { %2110 = vrot.lane.b32.xlu1 %v1833_v25, %s14313_s10  ;;  %2108 = vrot.lane.b32.xlu0 %v1832_v1, %s14313_s10  ;;  %v1836_v25 = vmul.f32 %v7735_v61, %v1737_v22  ;;  %v1837_v1 = vmul.f32 %v7736_v34, %v1737_v22  ;;  %v1743_v22 = vstv %s7010_s12  ;;  %s9808_s12 = spop %7015 }
 0x2cf   : > { %14544 = sst [smem:[#allocation225_spill]] %s9808_s12 }
 0x2d0   : > { %v9556_v39 = vpop.permute.xlu1 %1998  ;;  %v9558_v44 = vpop.permute.xlu0 %1996 }
 0x2d1   : > { %14475 = vst [vmem:[#allocation156_spill] sm:$0xff] %v9556_v39  ;;  %14476 = vst [vmem:[#allocation157_spill] sm:$0xff] %v9558_v44  ;;  %v7737_v44 = vld [vmem:[%s8504_s8 + $0x438] sm:$0xff]  ;;  %v7738_v39 = vld [vmem:[%s8504_s8 + $0x440] sm:$0xff] }
 0x2d2   : > { %2114 = vrot.lane.b32.xlu1 %v1835_v37, %s14313_s10  ;;  %2112 = vrot.lane.b32.xlu0 %v1834_v18, %s14313_s10  ;;  %v1838_v37 = vmul.f32 %v7737_v44, %v1740_v29  ;;  %v1839_v18 = vmul.f32 %v7738_v39, %v1740_v29  ;;  %v1746_v29 = vstv %s7012_s2  ;;  %s9810_s2 = spop %7017 }
 0x2d3   : > { %14545 = sst [smem:[#allocation226_spill]] %s9810_s2 }
 0x2d4   : > { %v9564_v9 = vpop.permute.xlu1 %2002  ;;  %v9566_v49 = vpop.permute.xlu0 %2000 }
 0x2d5   : > { %14477 = vst [vmem:[#allocation158_spill] sm:$0xff] %v9564_v9  ;;  %14478 = vst [vmem:[#allocation159_spill] sm:$0xff] %v9566_v49  ;;  %v7739_v49 = vld [vmem:[%s8504_s8 + $0x450] sm:$0xff]  ;;  %v7740_v9 = vld [vmem:[%s8504_s8 + $0x458] sm:$0xff] }
 0x2d6   : > { %2118 = vrot.lane.b32.xlu1 %v1837_v1, %s14313_s10  ;;  %2116 = vrot.lane.b32.xlu0 %v1836_v25, %s14313_s10  ;;  %v1840_v1 = vmul.f32 %v7739_v49, %v1743_v22  ;;  %v1841_v25 = vmul.f32 %v7740_v9, %v1743_v22 }
 0x2d8   : > { %v9572_v61 = vpop.permute.xlu1 %2006  ;;  %v9574_v34 = vpop.permute.xlu0 %2004 }
 0x2d9   : > { %14479 = vst [vmem:[#allocation160_spill] sm:$0xff] %v9572_v61  ;;  %14480 = vst [vmem:[#allocation161_spill] sm:$0xff] %v9574_v34  ;;  %v7741_v34 = vld [vmem:[%s8504_s8 + $0x468] sm:$0xff] }
 0x2da   : > { %2122 = vrot.lane.b32.xlu1 %v1839_v18, %s14313_s10  ;;  %2120 = vrot.lane.b32.xlu0 %v1838_v37, %s14313_s10  ;;  %v1842_v61 = vmul.f32 %v7741_v34, %v1746_v29  ;;  %v1843_v18 = vmul.f32 %v7742_v50, %v1746_v29 }
 0x2dc   : > { %v9580_v44 = vpop.permute.xlu1 %2010  ;;  %v9582_v39 = vpop.permute.xlu0 %2008 }
 0x2dd   : > { %14481 = vst [vmem:[#allocation162_spill] sm:$0xff] %v9580_v44  ;;  %14482 = vst [vmem:[#allocation163_spill] sm:$0xff] %v9582_v39 }
 0x2de   : > { %2126 = vrot.lane.b32.xlu1 %v1841_v25, %s14313_s10  ;;  %2124 = vrot.lane.b32.xlu0 %v1840_v1, %s14313_s10 }
 0x2e0   : > { %v9588_v0 = vpop.permute.xlu1 %2014  ;;  %v9590_v37 = vpop.permute.xlu0 %2012 }
 0x2e1   : > { %14483 = vst [vmem:[#allocation164_spill] sm:$0xff] %v9588_v0  ;;  %14484 = vst [vmem:[#allocation165_spill] sm:$0xff] %v9590_v37  ;;  %v2327_v0 = vld [vmem:[%s8504_s8 + $0x21] sm:$0xff] }
 0x2e2   : > { %2130 = vrot.lane.b32.xlu1 %v1843_v18, %s14313_s10  ;;  %2128 = vrot.lane.b32.xlu0 %v1842_v61, %s14313_s10  ;;  %s9812_s10 = spop %7019 }
 0x2e3   : > { %14546 = sst [smem:[#allocation227_spill]] %s9812_s10  ;;  %s9814_s9 = spop %7021 }
 0x2e4   : > { %v9594_v9 = vpop.permute.xlu1 %2018  ;;  %v9596_v49 = vpop.permute.xlu0 %2016  ;;  %14547 = sst [smem:[#allocation228_spill]] %s9814_s9  ;;  %s9816_s1 = spop %7023 }
 0x2e5   : > { %14485 = vst [vmem:[#allocation166_spill] sm:$0xff] %v9594_v9  ;;  %14486 = vst [vmem:[#allocation167_spill] sm:$0xff] %v9596_v49  ;;  %14548 = sst [smem:[#allocation229_spill]] %s9816_s1  ;;  %s9818_s11 = spop %7025 }
 0x2e6   : > { %2804 = vrot.lane.b32.xlu0 %v9177_v5, %s14350_s15  ;;  %2806 = vrot.lane.b32.xlu1 %v9180_v54, %s14350_s15  ;;  %14549 = sst [smem:[#allocation230_spill]] %s9818_s11  ;;  %s9820_s0 = spop %7027 }
 0x2e7   : > { %14550 = sst [smem:[#allocation231_spill]] %s9820_s0  ;;  %s9822_s12 = spop %7029 }
 0x2e8   : > { %v9602_v34 = vpop.permute.xlu1 %2022  ;;  %v9604_v50 = vpop.permute.xlu0 %2020  ;;  %14551 = sst [smem:[#allocation232_spill]] %s9822_s12  ;;  %s9824_s2 = spop %7031 }
 0x2e9   : > { %14487 = vst [vmem:[#allocation168_spill] sm:$0xff] %v9602_v34  ;;  %14488 = vst [vmem:[#allocation169_spill] sm:$0xff] %v9604_v50  ;;  %14552 = sst [smem:[#allocation233_spill]] %s9824_s2  ;;  %s9826_s13 = spop %7033 }
 0x2ea   : > { %2808 = vrot.lane.b32.xlu0 %v9183_v13, %s14350_s15  ;;  %2810 = vrot.lane.b32.xlu1 %v9190_v32, %s14350_s15  ;;  %14553 = sst [smem:[#allocation234_spill]] %s9826_s13  ;;  %s9828_s9 = spop %7035 }
 0x2eb   : > { %14554 = sst [smem:[#allocation235_spill]] %s9828_s9  ;;  %s9830_s1 = spop %7037 }
 0x2ec   : > { %v9610_v61 = vpop.permute.xlu1 %2026  ;;  %v9612_v22 = vpop.permute.xlu0 %2024  ;;  %14555 = sst [smem:[#allocation236_spill]] %s9830_s1  ;;  %s9832_s11 = spop %7039 }
 0x2ed   : > { %14489 = vst [vmem:[#allocation170_spill] sm:$0xff] %v9610_v61  ;;  %14490 = vst [vmem:[#allocation171_spill] sm:$0xff] %v9612_v22  ;;  %14556 = sst [smem:[#allocation237_spill]] %s9832_s11  ;;  %s9834_s10 = spop %7041 }
 0x2ee   : > { %2812 = vrot.lane.b32.xlu0 %v9194_v42, %s14350_s15  ;;  %2814 = vrot.lane.b32.xlu1 %v9198_v62, %s14350_s15  ;;  %14557 = sst [smem:[#allocation238_spill]] %s9834_s10  ;;  %s9836_s12 = spop %7043 }
 0x2ef   : > { %14558 = sst [smem:[#allocation239_spill]] %s9836_s12  ;;  %s9838_s2 = spop %7045 }
 0x2f0   : > { %v9618_v1 = vpop.permute.xlu1 %2030  ;;  %v9620_v25 = vpop.permute.xlu0 %2028  ;;  %14559 = sst [smem:[#allocation240_spill]] %s9838_s2  ;;  %s9840_s13 = spop %7047 }
 0x2f1   : > { %14491 = vst [vmem:[#allocation172_spill] sm:$0xff] %v9618_v1  ;;  %14492 = vst [vmem:[#allocation173_spill] sm:$0xff] %v9620_v25  ;;  %14560 = sst [smem:[#allocation241_spill]] %s9840_s13  ;;  %s9842_s0 = spop %7049 }
 0x2f2   : > { %2816 = vrot.lane.b32.xlu0 %v9202_v6, %s14350_s15  ;;  %2818 = vrot.lane.b32.xlu1 %v9210_v51, %s14350_s15  ;;  %14561 = sst [smem:[#allocation242_spill]] %s9842_s0  ;;  %s9844_s1 = spop %7051 }
 0x2f3   : > { %14562 = sst [smem:[#allocation243_spill]] %s9844_s1  ;;  %s9846_s11 = spop %7053 }
 0x2f4   : > { %v9626_v29 = vpop.permute.xlu1 %2034  ;;  %v9628_v18 = vpop.permute.xlu0 %2032  ;;  %14563 = sst [smem:[#allocation244_spill]] %s9846_s11  ;;  %s9848_s10 = spop %7055 }
 0x2f5   : > { %14493 = vst [vmem:[#allocation174_spill] sm:$0xff] %v9626_v29  ;;  %14494 = vst [vmem:[#allocation175_spill] sm:$0xff] %v9628_v18  ;;  %14564 = sst [smem:[#allocation245_spill]] %s9848_s10  ;;  %s9850_s9 = spop %7057 }
 0x2f6   : > { %2820 = vrot.lane.b32.xlu0 %v9214_v58, %s14350_s15  ;;  %2822 = vrot.lane.b32.xlu1 %v9218_v56, %s14350_s15  ;;  %14565 = sst [smem:[#allocation246_spill]] %s9850_s9  ;;  %s9852_s2 = spop %7059 }
 0x2f7   : > { %14566 = sst [smem:[#allocation247_spill]] %s9852_s2  ;;  %s9854_s13 = spop %7061 }
 0x2f8   : > { %v9634_v22 = vpop.permute.xlu1 %2038  ;;  %v9636_v1 = vpop.permute.xlu0 %2036  ;;  %14567 = sst [smem:[#allocation248_spill]] %s9854_s13  ;;  %s9856_s0 = spop %7063 }
 0x2f9   : > { %14495 = vst [vmem:[#allocation176_spill] sm:$0xff] %v9634_v22  ;;  %14496 = vst [vmem:[#allocation177_spill] sm:$0xff] %v9636_v1  ;;  %14568 = sst [smem:[#allocation249_spill]] %s9856_s0  ;;  %s9858_s12 = spop %7065 }
 0x2fa   : > { %2824 = vrot.lane.b32.xlu0 %v9222_v47, %s14350_s15  ;;  %2826 = vrot.lane.b32.xlu1 %v9230_v4, %s14350_s15  ;;  %14569 = sst [smem:[#allocation250_spill]] %s9858_s12  ;;  %s9860_s11 = spop %7067 }
 0x2fb   : > { %14570 = sst [smem:[#allocation251_spill]] %s9860_s11  ;;  %s9862_s10 = spop %7069 }
 0x2fc   : > { %v9642_v25 = vpop.permute.xlu1 %2042  ;;  %v9644_v29 = vpop.permute.xlu0 %2040  ;;  %14571 = sst [smem:[#allocation252_spill]] %s9862_s10  ;;  %s9864_s9 = spop %7071 }
 0x2fd   : > { %14497 = vst [vmem:[#allocation178_spill] sm:$0xff] %v9642_v25  ;;  %14498 = vst [vmem:[#allocation179_spill] sm:$0xff] %v9644_v29  ;;  %14572 = sst [smem:[#allocation253_spill]] %s9864_s9  ;;  %s9866_s1 = spop %7073 }
 0x2fe   : > { %2828 = vrot.lane.b32.xlu0 %v9234_v16, %s14350_s15  ;;  %2830 = vrot.lane.b32.xlu1 %v9238_v12, %s14350_s15  ;;  %14573 = sst [smem:[#allocation254_spill]] %s9866_s1  ;;  %s9868_s13 = spop %7075 }
 0x2ff   : > { %14574 = sst [smem:[#allocation255_spill]] %s9868_s13  ;;  %s9870_s0 = spop %7077 }
 0x300   : > { %v9650_v18 = vpop.permute.xlu1 %2046  ;;  %v9652_v22 = vpop.permute.xlu0 %2044  ;;  %14575 = sst [smem:[#allocation256_spill]] %s9870_s0  ;;  %s9872_s12 = spop %7079 }
 0x301   : > { %14499 = vst [vmem:[#allocation180_spill] sm:$0xff] %v9650_v18  ;;  %14500 = vst [vmem:[#allocation181_spill] sm:$0xff] %v9652_v22  ;;  %14576 = sst [smem:[#allocation257_spill]] %s9872_s12  ;;  %s9874_s2 = spop %7081 }
 0x302   : > { %2832 = vrot.lane.b32.xlu0 %v9242_v26, %s14350_s15  ;;  %2834 = vrot.lane.b32.xlu1 %v9250_v15, %s14350_s15  ;;  %14577 = sst [smem:[#allocation258_spill]] %s9874_s2  ;;  %s9876_s10 = spop %7083 }
 0x303   : > { %14578 = sst [smem:[#allocation259_spill]] %s9876_s10  ;;  %s9878_s9 = spop %7085 }
 0x304   : > { %v9658_v1 = vpop.permute.xlu1 %2050  ;;  %v9660_v25 = vpop.permute.xlu0 %2048  ;;  %14579 = sst [smem:[#allocation260_spill]] %s9878_s9  ;;  %s9880_s1 = spop %7087 }
 0x305   : > { %14501 = vst [vmem:[#allocation182_spill] sm:$0xff] %v9658_v1  ;;  %14502 = vst [vmem:[#allocation183_spill] sm:$0xff] %v9660_v25  ;;  %14580 = sst [smem:[#allocation261_spill]] %s9880_s1  ;;  %s9882_s11 = spop %7089 }
 0x306   : > { %2836 = vrot.lane.b32.xlu0 %v9254_v23, %s14350_s15  ;;  %2838 = vrot.lane.b32.xlu1 %v9258_v27, %s14350_s15  ;;  %14581 = sst [smem:[#allocation262_spill]] %s9882_s11  ;;  %s9884_s0 = spop %7091 }
 0x307   : > { %14582 = sst [smem:[#allocation263_spill]] %s9884_s0  ;;  %s9886_s12 = spop %7093 }
 0x308   : > { %v9666_v29 = vpop.permute.xlu1 %2054  ;;  %v9668_v18 = vpop.permute.xlu0 %2052  ;;  %14583 = sst [smem:[#allocation264_spill]] %s9886_s12  ;;  %s9888_s2 = spop %7095 }
 0x309   : > { %14503 = vst [vmem:[#allocation184_spill] sm:$0xff] %v9666_v29  ;;  %14504 = vst [vmem:[#allocation185_spill] sm:$0xff] %v9668_v18  ;;  %14584 = sst [smem:[#allocation265_spill]] %s9888_s2  ;;  %s9890_s10 = spop %7097 }
 0x30a   : > { %2840 = vrot.lane.b32.xlu0 %v9262_v63, %s14350_s15  ;;  %2842 = vrot.lane.b32.xlu1 %v9270_v2, %s14350_s15  ;;  %14585 = sst [smem:[#allocation266_spill]] %s9890_s10  ;;  %s9892_s9 = spop %7099 }
 0x30b   : > { %14586 = sst [smem:[#allocation267_spill]] %s9892_s9  ;;  %s9894_s11 = spop %7101 }
 0x30c   : > { %v9674_v22 = vpop.permute.xlu1 %2058  ;;  %v9676_v1 = vpop.permute.xlu0 %2056  ;;  %14587 = sst [smem:[#allocation268_spill]] %s9894_s11  ;;  %s9896_s1 = spop %7103 }
 0x30d   : > { %14505 = vst [vmem:[#allocation186_spill] sm:$0xff] %v9674_v22  ;;  %14506 = vst [vmem:[#allocation187_spill] sm:$0xff] %v9676_v1  ;;  %14588 = sst [smem:[#allocation269_spill]] %s9896_s1  ;;  %s9898_s0 = spop %7105 }
 0x30e   : > { %2844 = vrot.lane.b32.xlu0 %v9274_v52, %s14350_s15  ;;  %2846 = vrot.lane.b32.xlu1 %v9278_v20, %s14350_s15  ;;  %14589 = sst [smem:[#allocation270_spill]] %s9898_s0  ;;  %s9900_s2 = spop %7107 }
 0x30f   : > { %14590 = sst [smem:[#allocation271_spill]] %s9900_s2 }
 0x310   : > { %v9682_v25 = vpop.permute.xlu1 %2062  ;;  %v9684_v29 = vpop.permute.xlu0 %2060 }
 0x311   : > { %14507 = vst [vmem:[#allocation188_spill] sm:$0xff] %v9682_v25  ;;  %14508 = vst [vmem:[#allocation189_spill] sm:$0xff] %v9684_v29 }
 0x312   : > { %2848 = vrot.lane.b32.xlu0 %v9282_v19, %s14350_s15  ;;  %2850 = vrot.lane.b32.xlu1 %v9290_v45, %s14350_s15 }
 0x314   : > { %v9690_v18 = vpop.permute.xlu1 %2066  ;;  %v9692_v22 = vpop.permute.xlu0 %2064 }
 0x315   : > { %14509 = vst [vmem:[#allocation190_spill] sm:$0xff] %v9690_v18  ;;  %14510 = vst [vmem:[#allocation191_spill] sm:$0xff] %v9692_v22 }
 0x316   : > { %2852 = vrot.lane.b32.xlu0 %v9294_v36, %s14350_s15  ;;  %2854 = vrot.lane.b32.xlu1 %v9298_v35, %s14350_s15 }
 0x318   : > { %v9698_v1 = vpop.permute.xlu1 %2070  ;;  %v9700_v25 = vpop.permute.xlu0 %2068 }
 0x319   : > { %14511 = vst [vmem:[#allocation192_spill] sm:$0xff] %v9698_v1  ;;  %14512 = vst [vmem:[#allocation193_spill] sm:$0xff] %v9700_v25 }
 0x31a   : > { %2856 = vrot.lane.b32.xlu0 %v9302_v43, %s14350_s15  ;;  %2858 = vrot.lane.b32.xlu1 %v9310_v28, %s14350_s15 }
 0x31c   : > { %v9706_v29 = vpop.permute.xlu1 %2074  ;;  %v9708_v18 = vpop.permute.xlu0 %2072 }
 0x31d   : > { %14513 = vst [vmem:[#allocation194_spill] sm:$0xff] %v9706_v29  ;;  %14514 = vst [vmem:[#allocation195_spill] sm:$0xff] %v9708_v18 }
 0x31e   : > { %2860 = vrot.lane.b32.xlu0 %v9314_v24, %s14350_s15  ;;  %2862 = vrot.lane.b32.xlu1 %v9318_v33, %s14350_s15 }
 0x320   : > { %v9714_v22 = vpop.permute.xlu1 %2078  ;;  %v9716_v1 = vpop.permute.xlu0 %2076 }
 0x321   : > { %14515 = vst [vmem:[#allocation196_spill] sm:$0xff] %v9714_v22  ;;  %14516 = vst [vmem:[#allocation197_spill] sm:$0xff] %v9716_v1 }
 0x322   : > { %2864 = vrot.lane.b32.xlu0 %v9322_v59, %s14350_s15  ;;  %2866 = vrot.lane.b32.xlu1 %v9330_v14, %s14350_s15 }
 0x324   : > { %v9722_v25 = vpop.permute.xlu1 %2082  ;;  %v9724_v29 = vpop.permute.xlu0 %2080 }
 0x325   : > { %14517 = vst [vmem:[#allocation198_spill] sm:$0xff] %v9722_v25  ;;  %14518 = vst [vmem:[#allocation199_spill] sm:$0xff] %v9724_v29 }
 0x326   : > { %2868 = vrot.lane.b32.xlu0 %v9334_v60, %s14350_s15  ;;  %2870 = vrot.lane.b32.xlu1 %v9338_v7, %s14350_s15 }
 0x328   : > { %v9730_v18 = vpop.permute.xlu1 %2086  ;;  %v9732_v22 = vpop.permute.xlu0 %2084 }
 0x329   : > { %14519 = vst [vmem:[#allocation200_spill] sm:$0xff] %v9730_v18  ;;  %14520 = vst [vmem:[#allocation201_spill] sm:$0xff] %v9732_v22 }
 0x32a   : > { %2872 = vrot.lane.b32.xlu0 %v9342_v17, %s14350_s15  ;;  %2874 = vrot.lane.b32.xlu1 %v9352_v38, %s14350_s15 }
 0x32c   : > { %v9738_v1 = vpop.permute.xlu1 %2090  ;;  %v9740_v25 = vpop.permute.xlu0 %2088 }
 0x32d   : > { %14521 = vst [vmem:[#allocation202_spill] sm:$0xff] %v9738_v1  ;;  %14522 = vst [vmem:[#allocation203_spill] sm:$0xff] %v9740_v25 }
 0x32e   : > { %2878 = vrot.lane.b32.xlu1 %v9369_v8, %s14350_s15  ;;  %2876 = vrot.lane.b32.xlu0 %v9361_v11, %s14350_s15 }
 0x330   : > { %v9746_v29 = vpop.permute.xlu1 %2094  ;;  %v9748_v18 = vpop.permute.xlu0 %2092 }
 0x331   : > { %14523 = vst [vmem:[#allocation204_spill] sm:$0xff] %v9746_v29  ;;  %14524 = vst [vmem:[#allocation205_spill] sm:$0xff] %v9748_v18 }
 0x332   : > { %2882 = vrot.lane.b32.xlu1 %v9385_v3, %s14350_s15  ;;  %2880 = vrot.lane.b32.xlu0 %v9377_v40, %s14350_s15 }
 0x334   : > { %v9754_v22 = vpop.permute.xlu1 %2098  ;;  %v9756_v1 = vpop.permute.xlu0 %2096 }
 0x335   : > { %14525 = vst [vmem:[#allocation206_spill] sm:$0xff] %v9754_v22  ;;  %14526 = vst [vmem:[#allocation207_spill] sm:$0xff] %v9756_v1 }
 0x336   : > { %2886 = vrot.lane.b32.xlu1 %v9401_v30, %s14350_s15  ;;  %2884 = vrot.lane.b32.xlu0 %v9393_v48, %s14350_s15 }
 0x338   : > { %v9762_v25 = vpop.permute.xlu1 %2102  ;;  %v9764_v29 = vpop.permute.xlu0 %2100 }
 0x339   : > { %14527 = vst [vmem:[#allocation208_spill] sm:$0xff] %v9762_v25  ;;  %14528 = vst [vmem:[#allocation209_spill] sm:$0xff] %v9764_v29 }
 0x33a   : > { %2890 = vrot.lane.b32.xlu1 %v9417_v21, %s14350_s15  ;;  %2888 = vrot.lane.b32.xlu0 %v9409_v57, %s14350_s15 }
 0x33c   : > { %v9770_v18 = vpop.permute.xlu1 %2106  ;;  %v9772_v22 = vpop.permute.xlu0 %2104 }
 0x33d   : > { %14529 = vst [vmem:[#allocation210_spill] sm:$0xff] %v9770_v18  ;;  %14530 = vst [vmem:[#allocation211_spill] sm:$0xff] %v9772_v22 }
 0x33e   : > { %2894 = vrot.lane.b32.xlu1 %v9437_v53, %s14350_s15  ;;  %2892 = vrot.lane.b32.xlu0 %v9425_v31, %s14350_s15 }
 0x340   : > { %v9778_v1 = vpop.permute.xlu1 %2110  ;;  %v9780_v25 = vpop.permute.xlu0 %2108 }
 0x341   : > { %14531 = vst [vmem:[#allocation212_spill] sm:$0xff] %v9778_v1  ;;  %14532 = vst [vmem:[#allocation213_spill] sm:$0xff] %v9780_v25 }
 0x342   : > { %2898 = vrot.lane.b32.xlu1 %v9461_v46, %s14350_s15  ;;  %2896 = vrot.lane.b32.xlu0 %v9449_v41, %s14350_s15 }
 0x344   : > { %v9786_v29 = vpop.permute.xlu1 %2114  ;;  %v9788_v18 = vpop.permute.xlu0 %2112 }
 0x345   : > { %14533 = vst [vmem:[#allocation214_spill] sm:$0xff] %v9786_v29  ;;  %14534 = vst [vmem:[#allocation215_spill] sm:$0xff] %v9788_v18  ;;  %v2326_v18 = vld [vmem:[%s8504_s8 + $0x19] sm:$0xff] }
 0x348   : > { %v9790_v22 = vpop.permute.xlu1 %2118  ;;  %v9792_v61 = vpop.permute.xlu0 %2116 }
 0x349   : > { %14535 = vst [vmem:[#allocation216_spill] sm:$0xff] %v9790_v22  ;;  %14536 = vst [vmem:[#allocation217_spill] sm:$0xff] %v9792_v61 }
 0x34c   : > { %v9794_v50 = vpop.permute.xlu1 %2122  ;;  %v9796_v34 = vpop.permute.xlu0 %2120 }
 0x34d   : > { %14537 = vst [vmem:[#allocation218_spill] sm:$0xff] %v9794_v50  ;;  %14538 = vst [vmem:[#allocation219_spill] sm:$0xff] %v9796_v34 }
 0x350   : > { %v9798_v1 = vpop.permute.xlu1 %2126  ;;  %v9800_v25 = vpop.permute.xlu0 %2124 }
 0x351   : > { %14539 = vst [vmem:[#allocation220_spill] sm:$0xff] %v9798_v1  ;;  %14540 = vst [vmem:[#allocation221_spill] sm:$0xff] %v9800_v25 }
 0x354   : > { %v9802_v49 = vpop.permute.xlu1 %2130  ;;  %v9804_v9 = vpop.permute.xlu0 %2128 }
 0x355   : > { %14541 = vst [vmem:[#allocation222_spill] sm:$0xff] %v9802_v49  ;;  %14542 = vst [vmem:[#allocation223_spill] sm:$0xff] %v9804_v9  ;;  %v2325_v49 = vld [vmem:[%s8504_s8 + $0x9] sm:$0xff] }
 0x358   : > { %v2805_v37 = vpop.permute.xlu0 %2804  ;;  %v2807_v29 = vpop.permute.xlu1 %2806 }
 0x359   : > { %7109 = vpush %v2805_v37 }
 0x35a   : > { %7111 = vpush %v2807_v29 }
 0x35c   : > { %v2809_v50 = vpop.permute.xlu0 %2808  ;;  %v2811_v34 = vpop.permute.xlu1 %2810 }
 0x35d   : > { %7113 = vpush %v2809_v50 }
 0x35e   : > { %7115 = vpush %v2811_v34 }
 0x360   : > { %v2813_v37 = vpop.permute.xlu0 %2812  ;;  %v2815_v9 = vpop.permute.xlu1 %2814 }
 0x361   : > { %7117 = vpush %v2813_v37 }
 0x362   : > { %7119 = vpush %v2815_v9 }
 0x364   : > { %v2817_v50 = vpop.permute.xlu0 %2816  ;;  %v2819_v29 = vpop.permute.xlu1 %2818 }
 0x365   : > { %7121 = vpush %v2817_v50 }
 0x366   : > { %7123 = vpush %v2819_v29 }
 0x368   : > { %v2821_v34 = vpop.permute.xlu0 %2820  ;;  %v2823_v37 = vpop.permute.xlu1 %2822 }
 0x369   : > { %7125 = vpush %v2821_v34 }
 0x36a   : > { %7127 = vpush %v2823_v37 }
 0x36c   : > { %v2825_v9 = vpop.permute.xlu0 %2824  ;;  %v2827_v50 = vpop.permute.xlu1 %2826 }
 0x36d   : > { %7129 = vpush %v2825_v9 }
 0x36e   : > { %7131 = vpush %v2827_v50 }
 0x370   : > { %v2829_v29 = vpop.permute.xlu0 %2828  ;;  %v2831_v34 = vpop.permute.xlu1 %2830 }
 0x371   : > { %7133 = vpush %v2829_v29 }
 0x372   : > { %7135 = vpush %v2831_v34 }
 0x374   : > { %v2833_v37 = vpop.permute.xlu0 %2832  ;;  %v2835_v9 = vpop.permute.xlu1 %2834 }
 0x375   : > { %7137 = vpush %v2833_v37 }
 0x376   : > { %7139 = vpush %v2835_v9 }
 0x378   : > { %v2837_v50 = vpop.permute.xlu0 %2836  ;;  %v2839_v29 = vpop.permute.xlu1 %2838 }
 0x379   : > { %7141 = vpush %v2837_v50 }
 0x37a   : > { %7143 = vpush %v2839_v29 }
 0x37c   : > { %v2841_v34 = vpop.permute.xlu0 %2840  ;;  %v2843_v37 = vpop.permute.xlu1 %2842 }
 0x37d   : > { %7145 = vpush %v2841_v34 }
 0x37e   : > { %7147 = vpush %v2843_v37 }
 0x380   : > { %v2845_v9 = vpop.permute.xlu0 %2844  ;;  %v2847_v50 = vpop.permute.xlu1 %2846 }
 0x381   : > { %7149 = vpush %v2845_v9 }
 0x382   : > { %7151 = vpush %v2847_v50  ;;  %v2324_v50 = vld [vmem:[%s8504_s8 + $0x1] sm:$0xff] }
 0x384   : > { %v2849_v29 = vpop.permute.xlu0 %2848  ;;  %v2851_v34 = vpop.permute.xlu1 %2850 }
 0x385   : > { %7153 = vpush %v2849_v29 }
 0x386   : > { %7155 = vpush %v2851_v34 }
 0x388   : > { %v2853_v37 = vpop.permute.xlu0 %2852  ;;  %v2855_v9 = vpop.permute.xlu1 %2854 }
 0x389   : > { %7157 = vpush %v2853_v37 }
 0x38a   : > { %s7110_s10 = spop %7109  ;;  %7159 = vpush %v2855_v9  ;;  %v2328_v9 = vld [vmem:[%s8504_s8 + $0x31] sm:$0xff] }
 0x38b   : > { %v2901_v25 = vstv %s7110_s10  ;;  %s7112_s9 = spop %7111 }
 0x38c   : > { %v3044_v29 = vmul.f32 %v2901_v25, %v2324_v50  ;;  %v3045_v1 = vmul.f32 %v2901_v25, %v2325_v49  ;;  %v2904_v34 = vstv %s7112_s9  ;;  %v2857_v61 = vpop.permute.xlu0 %2856  ;;  %v2859_v22 = vpop.permute.xlu1 %2858  ;;  %v2329_v50 = vld [vmem:[%s8504_s8 + $0x39] sm:$0xff] }
 0x38d   : > { %7161 = vpush %v2857_v61  ;;  %v3046_v39 = vmul.f32 %v2904_v34, %v2326_v18  ;;  %v3047_v44 = vmul.f32 %v2904_v34, %v2327_v0  ;;  %v2331_v34 = vld [vmem:[%s8504_s8 + $0x51] sm:$0xff] }
 0x38e   : > { %3238 = vrot.lane.b32.xlu1 %v3045_v1, %s14350_s15  ;;  %3236 = vrot.lane.b32.xlu0 %v3044_v29, %s14350_s15  ;;  %s7114_s2 = spop %7113  ;;  %7163 = vpush %v2859_v22  ;;  %v2330_v29 = vld [vmem:[%s8504_s8 + $0x49] sm:$0xff] }
 0x38f   : > { %v2907_v37 = vstv %s7114_s2  ;;  %s7116_s10 = spop %7115 }
 0x390   : > { %v2861_v49 = vpop.permute.xlu0 %2860  ;;  %v2863_v25 = vpop.permute.xlu1 %2862  ;;  %v3048_v0 = vmul.f32 %v2907_v37, %v2328_v9  ;;  %v3049_v61 = vmul.f32 %v2907_v37, %v2329_v50  ;;  %v2910_v1 = vstv %s7116_s10 }
 0x391   : > { %7165 = vpush %v2861_v49  ;;  %v3050_v10 = vmul.f32 %v2910_v1, %v2330_v29  ;;  %v3051_v55 = vmul.f32 %v2910_v1, %v2331_v34  ;;  %v2332_v49 = vld [vmem:[%s8504_s8 + $0x61] sm:$0xff] }
 0x392   : > { %3242 = vrot.lane.b32.xlu1 %v3047_v44, %s14350_s15  ;;  %3240 = vrot.lane.b32.xlu0 %v3046_v39, %s14350_s15  ;;  %7167 = vpush %v2863_v25  ;;  %s7118_s9 = spop %7117  ;;  %v2333_v25 = vld [vmem:[%s8504_s8 + $0x69] sm:$0xff] }
 0x393   : > { %v2913_v44 = vstv %s7118_s9  ;;  %s7120_s2 = spop %7119 }
 0x394   : > { %v2865_v22 = vpop.permute.xlu0 %2864  ;;  %v2867_v18 = vpop.permute.xlu1 %2866  ;;  %v3052_v9 = vmul.f32 %v2913_v44, %v2332_v49  ;;  %v3053_v50 = vmul.f32 %v2913_v44, %v2333_v25 }
 0x395   : > { %7169 = vpush %v2865_v22  ;;  %v2334_v22 = vld [vmem:[%s8504_s8 + $0x79] sm:$0xff] }
 0x396   : > { %3246 = vrot.lane.b32.xlu1 %v3049_v61, %s14350_s15  ;;  %3244 = vrot.lane.b32.xlu0 %v3048_v0, %s14350_s15  ;;  %7171 = vpush %v2867_v18  ;;  %v2916_v61 = vstv %s7120_s2  ;;  %s7122_s10 = spop %7121  ;;  %v2335_v18 = vld [vmem:[%s8504_s8 + $0x81] sm:$0xff] }
 0x397   : > { %v3054_v29 = vmul.f32 %v2916_v61, %v2334_v22  ;;  %v3055_v34 = vmul.f32 %v2916_v61, %v2335_v18  ;;  %s7124_s9 = spop %7123 }
 0x398   : > { %v2869_v39 = vpop.permute.xlu0 %2868  ;;  %v2871_v37 = vpop.permute.xlu1 %2870 }
 0x399   : > { %7173 = vpush %v2869_v39  ;;  %v2336_v39 = vld [vmem:[%s8504_s8 + $0x91] sm:$0xff] }
 0x39a   : > { %3250 = vrot.lane.b32.xlu1 %v3051_v55, %s14350_s15  ;;  %3248 = vrot.lane.b32.xlu0 %v3050_v10, %s14350_s15  ;;  %7175 = vpush %v2871_v37  ;;  %v2919_v55 = vstv %s7122_s10  ;;  %v2337_v37 = vld [vmem:[%s8504_s8 + $0x99] sm:$0xff]  ;;  %s7126_s2 = spop %7125 }
 0x39b   : > { %v3056_v49 = vmul.f32 %v2919_v55, %v2336_v39  ;;  %v3057_v25 = vmul.f32 %v2919_v55, %v2337_v37  ;;  %s7128_s10 = spop %7127 }
 0x39c   : > { %v2873_v0 = vpop.permute.xlu0 %2872  ;;  %v2875_v1 = vpop.permute.xlu1 %2874 }
 0x39d   : > { %7177 = vpush %v2873_v0  ;;  %v2338_v0 = vld [vmem:[%s8504_s8 + $0xa9] sm:$0xff] }
 0x39e   : > { %3254 = vrot.lane.b32.xlu1 %v3053_v50, %s14350_s15  ;;  %3252 = vrot.lane.b32.xlu0 %v3052_v9, %s14350_s15  ;;  %7179 = vpush %v2875_v1  ;;  %v2922_v50 = vstv %s7124_s9  ;;  %v2339_v1 = vld [vmem:[%s8504_s8 + $0xb1] sm:$0xff]  ;;  %s7130_s9 = spop %7129 }
 0x39f   : > { %v3058_v22 = vmul.f32 %v2922_v50, %v2338_v0  ;;  %v3059_v18 = vmul.f32 %v2922_v50, %v2339_v1 }
 0x3a0   : > { %v2879_v10 = vpop.permute.xlu1 %2878  ;;  %v2877_v44 = vpop.permute.xlu0 %2876 }
 0x3a1   : > { %7181 = vpush %v2877_v44  ;;  %v2341_v44 = vld [vmem:[%s8504_s8 + $0xc9] sm:$0xff] }
 0x3a2   : > { %3258 = vrot.lane.b32.xlu1 %v3055_v34, %s14350_s15  ;;  %3256 = vrot.lane.b32.xlu0 %v3054_v29, %s14350_s15  ;;  %7183 = vpush %v2879_v10  ;;  %v2925_v29 = vstv %s7126_s2  ;;  %v2340_v10 = vld [vmem:[%s8504_s8 + $0xc1] sm:$0xff]  ;;  %s7132_s2 = spop %7131 }
 0x3a3   : > { %v3060_v39 = vmul.f32 %v2925_v29, %v2340_v10  ;;  %v3061_v37 = vmul.f32 %v2925_v29, %v2341_v44 }
 0x3a4   : > { %v2883_v9 = vpop.permute.xlu1 %2882  ;;  %v2881_v61 = vpop.permute.xlu0 %2880 }
 0x3a5   : > { %7185 = vpush %v2881_v61  ;;  %v2343_v61 = vld [vmem:[%s8504_s8 + $0xe1] sm:$0xff] }
 0x3a6   : > { %3262 = vrot.lane.b32.xlu1 %v3057_v25, %s14350_s15  ;;  %3260 = vrot.lane.b32.xlu0 %v3056_v49, %s14350_s15  ;;  %7187 = vpush %v2883_v9  ;;  %v2928_v25 = vstv %s7128_s10  ;;  %v2342_v9 = vld [vmem:[%s8504_s8 + $0xd9] sm:$0xff]  ;;  %s7134_s10 = spop %7133 }
 0x3a7   : > { %v3062_v0 = vmul.f32 %v2928_v25, %v2342_v9  ;;  %v3063_v1 = vmul.f32 %v2928_v25, %v2343_v61  ;;  %v2346_v25 = vld [vmem:[%s8504_s8 + $0x109] sm:$0xff] }
 0x3a8   : > { %v2887_v34 = vpop.permute.xlu1 %2886  ;;  %v2885_v55 = vpop.permute.xlu0 %2884 }
 0x3a9   : > { %7189 = vpush %v2885_v55  ;;  %v2345_v55 = vld [vmem:[%s8504_s8 + $0xf9] sm:$0xff] }
 0x3aa   : > { %3266 = vrot.lane.b32.xlu1 %v3059_v18, %s14350_s15  ;;  %3264 = vrot.lane.b32.xlu0 %v3058_v22, %s14350_s15  ;;  %7191 = vpush %v2887_v34  ;;  %v2931_v22 = vstv %s7130_s9  ;;  %v2344_v34 = vld [vmem:[%s8504_s8 + $0xf1] sm:$0xff]  ;;  %s7136_s9 = spop %7135 }
 0x3ab   : > { %v3064_v10 = vmul.f32 %v2931_v22, %v2344_v34  ;;  %v3065_v44 = vmul.f32 %v2931_v22, %v2345_v55  ;;  %v2349_v22 = vld [vmem:[%s8504_s8 + $0x129] sm:$0xff]  ;;  %v2940_v34 = vstv %s7136_s9  ;;  %v2350_v55 = vld [vmem:[%s8504_s8 + $0x139] sm:$0xff] }
 0x3ac   : > { %v2891_v49 = vpop.permute.xlu1 %2890  ;;  %v2889_v50 = vpop.permute.xlu0 %2888 }
 0x3ad   : > { %7193 = vpush %v2889_v50 }
 0x3ae   : > { %3270 = vrot.lane.b32.xlu1 %v3061_v37, %s14350_s15  ;;  %3268 = vrot.lane.b32.xlu0 %v3060_v39, %s14350_s15  ;;  %7195 = vpush %v2891_v49  ;;  %v2934_v39 = vstv %s7132_s2  ;;  %v2347_v49 = vld [vmem:[%s8504_s8 + $0x111] sm:$0xff]  ;;  %s7138_s2 = spop %7137 }
 0x3af   : > { %v3066_v9 = vmul.f32 %v2934_v39, %v2346_v25  ;;  %v3067_v61 = vmul.f32 %v2934_v39, %v2347_v49  ;;  %v2352_v25 = vld [vmem:[%s8504_s8 + $0x151] sm:$0xff]  ;;  %v2353_v49 = vld [vmem:[%s8504_s8 + $0x159] sm:$0xff] }
 0x3b0   : > { %v2895_v18 = vpop.permute.xlu1 %2894  ;;  %v2893_v29 = vpop.permute.xlu0 %2892 }
 0x3b1   : > { %7197 = vpush %v2893_v29 }
 0x3b2   : > { %3274 = vrot.lane.b32.xlu1 %v3063_v1, %s14350_s15  ;;  %3272 = vrot.lane.b32.xlu0 %v3062_v0, %s14350_s15  ;;  %7199 = vpush %v2895_v18  ;;  %v2937_v0 = vstv %s7134_s10  ;;  %v2348_v1 = vld [vmem:[%s8504_s8 + $0x121] sm:$0xff]  ;;  %s7140_s10 = spop %7139 }
 0x3b3   : > { %v3068_v18 = vmul.f32 %v2937_v0, %v2348_v1  ;;  %v3069_v29 = vmul.f32 %v2937_v0, %v2349_v22  ;;  %s7142_s9 = spop %7141  ;;  %v2354_v0 = vld [vmem:[%s8504_s8 + $0x169] sm:$0xff]  ;;  %v2355_v1 = vld [vmem:[%s8504_s8 + $0x171] sm:$0xff] }
 0x3b4   : > { %v2897_v37 = vpop.permute.xlu0 %2896  ;;  %v2899_v50 = vpop.permute.xlu1 %2898 }
 0x3b5   : > { %7201 = vpush %v2897_v37  ;;  %v2943_v37 = vstv %s7138_s2  ;;  %s7144_s2 = spop %7143 }
 0x3b6   : > { %3278 = vrot.lane.b32.xlu1 %v3065_v44, %s14350_s15  ;;  %3276 = vrot.lane.b32.xlu0 %v3064_v10, %s14350_s15  ;;  %7203 = vpush %v2899_v50  ;;  %v2351_v44 = vld [vmem:[%s8504_s8 + $0x141] sm:$0xff]  ;;  %v3070_v10 = vmul.f32 %v2940_v34, %v2350_v55  ;;  %v3072_v50 = vmul.f32 %v2943_v37, %v2352_v25  ;;  %v2357_v55 = vld [vmem:[%s8504_s8 + $0x189] sm:$0xff] }
 0x3b7   : > { %v3071_v39 = vmul.f32 %v2940_v34, %v2351_v44  ;;  %v2356_v34 = vld [vmem:[%s8504_s8 + $0x181] sm:$0xff] }
 0x3b8   : > { %v2359_v25 = vld [vmem:[%s8504_s8 + $0x1a1] sm:$0xff] }
 0x3ba   : > { %3282 = vrot.lane.b32.xlu1 %v3067_v61, %s14350_s15  ;;  %3280 = vrot.lane.b32.xlu0 %v3066_v9, %s14350_s15  ;;  %v3073_v9 = vmul.f32 %v2943_v37, %v2353_v49  ;;  %v2946_v61 = vstv %s7140_s10  ;;  %s7146_s10 = spop %7145  ;;  %v2358_v37 = vld [vmem:[%s8504_s8 + $0x199] sm:$0xff] }
 0x3bb   : > { %v3074_v22 = vmul.f32 %v2946_v61, %v2354_v0  ;;  %v2361_v0 = vld [vmem:[%s8504_s8 + $0x1b9] sm:$0xff] }
 0x3be   : > { %3286 = vrot.lane.b32.xlu1 %v3069_v29, %s14350_s15  ;;  %3284 = vrot.lane.b32.xlu0 %v3068_v18, %s14350_s15  ;;  %v3075_v18 = vmul.f32 %v2946_v61, %v2355_v1  ;;  %v2949_v29 = vstv %s7142_s9  ;;  %s7148_s9 = spop %7147  ;;  %v2360_v61 = vld [vmem:[%s8504_s8 + $0x1b1] sm:$0xff] }
 0x3bf   : > { %v3076_v44 = vmul.f32 %v2949_v29, %v2356_v34  ;;  %v2363_v34 = vld [vmem:[%s8504_s8 + $0x1d1] sm:$0xff] }
 0x3c2   : > { %3290 = vrot.lane.b32.xlu1 %v3071_v39, %s14350_s15  ;;  %3288 = vrot.lane.b32.xlu0 %v3070_v10, %s14350_s15  ;;  %v3077_v10 = vmul.f32 %v2949_v29, %v2357_v55  ;;  %v2952_v39 = vstv %s7144_s2  ;;  %s7150_s2 = spop %7149  ;;  %v2362_v29 = vld [vmem:[%s8504_s8 + $0x1c9] sm:$0xff] }
 0x3c3   : > { %v3078_v49 = vmul.f32 %v2952_v39, %v2358_v37  ;;  %v2365_v37 = vld [vmem:[%s8504_s8 + $0x1e9] sm:$0xff] }
 0x3c6   : > { %3294 = vrot.lane.b32.xlu1 %v3073_v9, %s14350_s15  ;;  %3292 = vrot.lane.b32.xlu0 %v3072_v50, %s14350_s15  ;;  %v3079_v50 = vmul.f32 %v2952_v39, %v2359_v25  ;;  %v2955_v9 = vstv %s7146_s10  ;;  %s7152_s10 = spop %7151  ;;  %v2364_v39 = vld [vmem:[%s8504_s8 + $0x1e1] sm:$0xff] }
 0x3c7   : > { %v3080_v1 = vmul.f32 %v2955_v9, %v2360_v61  ;;  %v2367_v61 = vld [vmem:[%s8504_s8 + $0x201] sm:$0xff] }
 0x3ca   : > { %3298 = vrot.lane.b32.xlu1 %v3075_v18, %s14350_s15  ;;  %3296 = vrot.lane.b32.xlu0 %v3074_v22, %s14350_s15  ;;  %v3081_v22 = vmul.f32 %v2955_v9, %v2361_v0  ;;  %v2958_v18 = vstv %s7148_s9  ;;  %s7154_s9 = spop %7153  ;;  %v2366_v9 = vld [vmem:[%s8504_s8 + $0x1f9] sm:$0xff] }
 0x3cb   : > { %v3082_v55 = vmul.f32 %v2958_v18, %v2362_v29  ;;  %v2369_v29 = vld [vmem:[%s8504_s8 + $0x219] sm:$0xff] }
 0x3ce   : > { %3302 = vrot.lane.b32.xlu1 %v3077_v10, %s14350_s15  ;;  %3300 = vrot.lane.b32.xlu0 %v3076_v44, %s14350_s15  ;;  %v3083_v44 = vmul.f32 %v2958_v18, %v2363_v34  ;;  %v2961_v10 = vstv %s7150_s2  ;;  %s7156_s2 = spop %7155  ;;  %v2368_v18 = vld [vmem:[%s8504_s8 + $0x211] sm:$0xff] }
 0x3cf   : > { %v3084_v25 = vmul.f32 %v2961_v10, %v2364_v39  ;;  %v2371_v39 = vld [vmem:[%s8504_s8 + $0x231] sm:$0xff] }
 0x3d2   : > { %3306 = vrot.lane.b32.xlu1 %v3079_v50, %s14350_s15  ;;  %3304 = vrot.lane.b32.xlu0 %v3078_v49, %s14350_s15  ;;  %v3085_v49 = vmul.f32 %v2961_v10, %v2365_v37  ;;  %v2964_v50 = vstv %s7152_s10  ;;  %s7158_s10 = spop %7157  ;;  %v2370_v10 = vld [vmem:[%s8504_s8 + $0x229] sm:$0xff] }
 0x3d3   : > { %v3086_v0 = vmul.f32 %v2964_v50, %v2366_v9  ;;  %v2373_v9 = vld [vmem:[%s8504_s8 + $0x249] sm:$0xff] }
 0x3d6   : > { %3310 = vrot.lane.b32.xlu1 %v3081_v22, %s14350_s15  ;;  %3308 = vrot.lane.b32.xlu0 %v3080_v1, %s14350_s15  ;;  %v3087_v1 = vmul.f32 %v2964_v50, %v2367_v61  ;;  %v2967_v22 = vstv %s7154_s9  ;;  %s7160_s9 = spop %7159  ;;  %v2372_v50 = vld [vmem:[%s8504_s8 + $0x241] sm:$0xff] }
 0x3d7   : > { %v3088_v34 = vmul.f32 %v2967_v22, %v2368_v18  ;;  %v2375_v18 = vld [vmem:[%s8504_s8 + $0x261] sm:$0xff] }
 0x3da   : > { %3314 = vrot.lane.b32.xlu1 %v3083_v44, %s14350_s15  ;;  %3312 = vrot.lane.b32.xlu0 %v3082_v55, %s14350_s15  ;;  %v3089_v55 = vmul.f32 %v2967_v22, %v2369_v29  ;;  %v2970_v44 = vstv %s7156_s2  ;;  %s7162_s2 = spop %7161  ;;  %v2374_v22 = vld [vmem:[%s8504_s8 + $0x259] sm:$0xff] }
 0x3db   : > { %v3090_v37 = vmul.f32 %v2970_v44, %v2370_v10  ;;  %v2377_v10 = vld [vmem:[%s8504_s8 + $0x279] sm:$0xff] }
 0x3de   : > { %3318 = vrot.lane.b32.xlu1 %v3085_v49, %s14350_s15  ;;  %3316 = vrot.lane.b32.xlu0 %v3084_v25, %s14350_s15  ;;  %v3091_v25 = vmul.f32 %v2970_v44, %v2371_v39  ;;  %v2973_v49 = vstv %s7158_s10  ;;  %s7164_s10 = spop %7163  ;;  %v2376_v44 = vld [vmem:[%s8504_s8 + $0x271] sm:$0xff] }
 0x3df   : > { %v3092_v61 = vmul.f32 %v2973_v49, %v2372_v50  ;;  %v2379_v50 = vld [vmem:[%s8504_s8 + $0x291] sm:$0xff] }
 0x3e2   : > { %3322 = vrot.lane.b32.xlu1 %v3087_v1, %s14350_s15  ;;  %3320 = vrot.lane.b32.xlu0 %v3086_v0, %s14350_s15  ;;  %v3093_v0 = vmul.f32 %v2973_v49, %v2373_v9  ;;  %v2976_v1 = vstv %s7160_s9  ;;  %s7166_s9 = spop %7165  ;;  %v2378_v49 = vld [vmem:[%s8504_s8 + $0x289] sm:$0xff] }
 0x3e3   : > { %v3094_v29 = vmul.f32 %v2976_v1, %v2374_v22  ;;  %v2381_v22 = vld [vmem:[%s8504_s8 + $0x2a9] sm:$0xff] }
 0x3e6   : > { %3326 = vrot.lane.b32.xlu1 %v3089_v55, %s14350_s15  ;;  %3324 = vrot.lane.b32.xlu0 %v3088_v34, %s14350_s15  ;;  %v3095_v34 = vmul.f32 %v2976_v1, %v2375_v18  ;;  %v2979_v55 = vstv %s7162_s2  ;;  %s7168_s2 = spop %7167  ;;  %v2380_v1 = vld [vmem:[%s8504_s8 + $0x2a1] sm:$0xff] }
 0x3e7   : > { %v3096_v39 = vmul.f32 %v2979_v55, %v2376_v44  ;;  %v2383_v44 = vld [vmem:[%s8504_s8 + $0x2c1] sm:$0xff] }
 0x3ea   : > { %3330 = vrot.lane.b32.xlu1 %v3091_v25, %s14350_s15  ;;  %3328 = vrot.lane.b32.xlu0 %v3090_v37, %s14350_s15  ;;  %v3097_v37 = vmul.f32 %v2979_v55, %v2377_v10  ;;  %v2982_v25 = vstv %s7164_s10  ;;  %s7170_s10 = spop %7169  ;;  %v2382_v55 = vld [vmem:[%s8504_s8 + $0x2b9] sm:$0xff] }
 0x3eb   : > { %v3098_v9 = vmul.f32 %v2982_v25, %v2378_v49 }
 0x3ee   : > { %3334 = vrot.lane.b32.xlu1 %v3093_v0, %s14350_s15  ;;  %3332 = vrot.lane.b32.xlu0 %v3092_v61, %s14350_s15  ;;  %v3099_v61 = vmul.f32 %v2982_v25, %v2379_v50  ;;  %v2985_v0 = vstv %s7166_s9  ;;  %s7172_s9 = spop %7171  ;;  %v2384_v50 = vld [vmem:[%s8504_s8 + $0x2d1] sm:$0xff] }
 0x3ef   : > { %v3100_v18 = vmul.f32 %v2985_v0, %v2380_v1  ;;  %v2994_v1 = vstv %s7172_s9 }
 0x3f2   : > { %3338 = vrot.lane.b32.xlu1 %v3095_v34, %s14350_s15  ;;  %3336 = vrot.lane.b32.xlu0 %v3094_v29, %s14350_s15  ;;  %v3101_v29 = vmul.f32 %v2985_v0, %v2381_v22  ;;  %v2988_v34 = vstv %s7168_s2  ;;  %s7174_s2 = spop %7173 }
 0x3f3   : > { %v3102_v10 = vmul.f32 %v2988_v34, %v2382_v55 }
 0x3f6   : > { %3342 = vrot.lane.b32.xlu1 %v3097_v37, %s14350_s15  ;;  %3340 = vrot.lane.b32.xlu0 %v3096_v39, %s14350_s15  ;;  %v3103_v37 = vmul.f32 %v2988_v34, %v2383_v44  ;;  %v2991_v39 = vstv %s7170_s10  ;;  %v2387_v34 = vld [vmem:[%s8504_s8 + $0x2f1] sm:$0xff]  ;;  %s7176_s10 = spop %7175 }
 0x3f7   : > { %v3107_v44 = vmul.f32 %v2994_v1, %v2387_v34  ;;  %s7178_s9 = spop %7177 }
 0x3fa   : > { %3346 = vrot.lane.b32.xlu1 %v3099_v61, %s14350_s15  ;;  %3344 = vrot.lane.b32.xlu0 %v3098_v9, %s14350_s15  ;;  %v2385_v9 = vld [vmem:[%s8504_s8 + $0x2d9] sm:$0xff]  ;;  %v3104_v61 = vmul.f32 %v2991_v39, %v2384_v50  ;;  %v2388_v50 = vld [vmem:[%s8504_s8 + $0x301] sm:$0xff] }
 0x3fb   : > { %v3105_v0 = vmul.f32 %v2991_v39, %v2385_v9  ;;  %v2389_v9 = vld [vmem:[%s8504_s8 + $0x309] sm:$0xff] }
 0x3fe   : > { %3350 = vrot.lane.b32.xlu1 %v3101_v29, %s14350_s15  ;;  %3348 = vrot.lane.b32.xlu0 %v3100_v18, %s14350_s15  ;;  %v2386_v29 = vld [vmem:[%s8504_s8 + $0x2e9] sm:$0xff] }
 0x3ff   : > { %v3106_v55 = vmul.f32 %v2994_v1, %v2386_v29 }
 0x400   : > { %v10020_v25 = vpop.permute.xlu1 %3238  ;;  %v10022_v49 = vpop.permute.xlu0 %3236 }
 0x401   : > { %14591 = vst [vmem:[#allocation272_spill] sm:$0xff] %v10020_v25  ;;  %14592 = vst [vmem:[#allocation273_spill] sm:$0xff] %v10022_v49 }
 0x402   : > { %3354 = vrot.lane.b32.xlu1 %v3103_v37, %s14350_s15  ;;  %3352 = vrot.lane.b32.xlu0 %v3102_v10, %s14350_s15  ;;  %v2997_v10 = vstv %s7174_s2  ;;  %s7180_s2 = spop %7179 }
 0x403   : > { %v3108_v29 = vmul.f32 %v2997_v10, %v2388_v50  ;;  %v3109_v1 = vmul.f32 %v2997_v10, %v2389_v9  ;;  %v2392_v50 = vld [vmem:[%s8504_s8 + $0x331] sm:$0xff]  ;;  %v2393_v9 = vld [vmem:[%s8504_s8 + $0x339] sm:$0xff] }
 0x404   : > { %v10028_v22 = vpop.permute.xlu1 %3242  ;;  %v10030_v18 = vpop.permute.xlu0 %3240 }
 0x405   : > { %14593 = vst [vmem:[#allocation274_spill] sm:$0xff] %v10028_v22  ;;  %14594 = vst [vmem:[#allocation275_spill] sm:$0xff] %v10030_v18  ;;  %v2391_v18 = vld [vmem:[%s8504_s8 + $0x321] sm:$0xff] }
 0x406   : > { %3358 = vrot.lane.b32.xlu1 %v3105_v0, %s14350_s15  ;;  %3356 = vrot.lane.b32.xlu0 %v3104_v61, %s14350_s15  ;;  %v3000_v0 = vstv %s7176_s10  ;;  %s7182_s10 = spop %7181 }
 0x407   : > { %v3111_v22 = vmul.f32 %v3000_v0, %v2391_v18 }
 0x408   : > { %v10036_v37 = vpop.permute.xlu1 %3246  ;;  %v10038_v39 = vpop.permute.xlu0 %3244 }
 0x409   : > { %14595 = vst [vmem:[#allocation276_spill] sm:$0xff] %v10036_v37  ;;  %14596 = vst [vmem:[#allocation277_spill] sm:$0xff] %v10038_v39  ;;  %v2390_v37 = vld [vmem:[%s8504_s8 + $0x319] sm:$0xff] }
 0x40a   : > { %3362 = vrot.lane.b32.xlu1 %v3107_v44, %s14350_s15  ;;  %3360 = vrot.lane.b32.xlu0 %v3106_v55, %s14350_s15  ;;  %v3110_v39 = vmul.f32 %v3000_v0, %v2390_v37  ;;  %v3003_v55 = vstv %s7178_s9  ;;  %s7184_s9 = spop %7183 }
 0x40b   : > { %v3112_v37 = vmul.f32 %v3003_v55, %v2392_v50  ;;  %v3113_v18 = vmul.f32 %v3003_v55, %v2393_v9  ;;  %v2396_v50 = vld [vmem:[%s8504_s8 + $0x361] sm:$0xff]  ;;  %v2397_v9 = vld [vmem:[%s8504_s8 + $0x369] sm:$0xff] }
 0x40c   : > { %v10044_v34 = vpop.permute.xlu1 %3250  ;;  %v10046_v61 = vpop.permute.xlu0 %3248 }
 0x40d   : > { %14597 = vst [vmem:[#allocation278_spill] sm:$0xff] %v10044_v34  ;;  %14598 = vst [vmem:[#allocation279_spill] sm:$0xff] %v10046_v61  ;;  %v2395_v61 = vld [vmem:[%s8504_s8 + $0x351] sm:$0xff] }
 0x40e   : > { %3366 = vrot.lane.b32.xlu1 %v3109_v1, %s14350_s15  ;;  %3364 = vrot.lane.b32.xlu0 %v3108_v29, %s14350_s15  ;;  %v3006_v1 = vstv %s7180_s2  ;;  %s7186_s2 = spop %7185 }
 0x40f   : > { %v3115_v34 = vmul.f32 %v3006_v1, %v2395_v61 }
 0x410   : > { %v10052_v44 = vpop.permute.xlu1 %3254  ;;  %v10054_v10 = vpop.permute.xlu0 %3252 }
 0x411   : > { %14599 = vst [vmem:[#allocation280_spill] sm:$0xff] %v10052_v44  ;;  %14600 = vst [vmem:[#allocation281_spill] sm:$0xff] %v10054_v10  ;;  %v2394_v44 = vld [vmem:[%s8504_s8 + $0x349] sm:$0xff] }
 0x412   : > { %3370 = vrot.lane.b32.xlu1 %v3111_v22, %s14350_s15  ;;  %3368 = vrot.lane.b32.xlu0 %v3110_v39, %s14350_s15  ;;  %v3114_v10 = vmul.f32 %v3006_v1, %v2394_v44  ;;  %v3009_v22 = vstv %s7182_s10  ;;  %v3012_v1 = vstv %s7184_s9  ;;  %s7188_s10 = spop %7187 }
 0x413   : > { %v3116_v44 = vmul.f32 %v3009_v22, %v2396_v50  ;;  %v3117_v61 = vmul.f32 %v3009_v22, %v2397_v9  ;;  %v3015_v22 = vstv %s7186_s2  ;;  %v2400_v50 = vld [vmem:[%s8504_s8 + $0x391] sm:$0xff]  ;;  %s7190_s9 = spop %7189 }
 0x414   : > { %v10060_v0 = vpop.permute.xlu1 %3258  ;;  %v10062_v29 = vpop.permute.xlu0 %3256  ;;  %s7192_s2 = spop %7191 }
 0x415   : > { %14601 = vst [vmem:[#allocation282_spill] sm:$0xff] %v10060_v0  ;;  %14602 = vst [vmem:[#allocation283_spill] sm:$0xff] %v10062_v29  ;;  %v2398_v29 = vld [vmem:[%s8504_s8 + $0x379] sm:$0xff] }
 0x416   : > { %3374 = vrot.lane.b32.xlu1 %v3113_v18, %s14350_s15  ;;  %3372 = vrot.lane.b32.xlu0 %v3112_v37, %s14350_s15  ;;  %v3118_v0 = vmul.f32 %v3012_v1, %v2398_v29  ;;  %v2401_v29 = vld [vmem:[%s8504_s8 + $0x399] sm:$0xff] }
 0x417   : > { %v3121_v9 = vmul.f32 %v3015_v22, %v2401_v29  ;;  %v2404_v29 = vld [vmem:[%s8504_s8 + $0x3c1] sm:$0xff] }
 0x418   : > { %v10068_v39 = vpop.permute.xlu1 %3262  ;;  %v10070_v55 = vpop.permute.xlu0 %3260 }
 0x419   : > { %14603 = vst [vmem:[#allocation284_spill] sm:$0xff] %v10068_v39  ;;  %14604 = vst [vmem:[#allocation285_spill] sm:$0xff] %v10070_v55  ;;  %v2399_v39 = vld [vmem:[%s8504_s8 + $0x381] sm:$0xff] }
 0x41a   : > { %3378 = vrot.lane.b32.xlu1 %v3115_v34, %s14350_s15  ;;  %3376 = vrot.lane.b32.xlu0 %v3114_v10, %s14350_s15  ;;  %v3119_v55 = vmul.f32 %v3012_v1, %v2399_v39  ;;  %v3120_v39 = vmul.f32 %v3015_v22, %v2400_v50  ;;  %v3018_v1 = vstv %s7188_s10  ;;  %v3021_v50 = vstv %s7190_s9  ;;  %s7194_s10 = spop %7193 }
 0x41b   : > { %s7196_s9 = spop %7195 }
 0x41c   : > { %v10076_v18 = vpop.permute.xlu1 %3266  ;;  %v10078_v37 = vpop.permute.xlu0 %3264 }
 0x41d   : > { %14605 = vst [vmem:[#allocation286_spill] sm:$0xff] %v10076_v18  ;;  %14606 = vst [vmem:[#allocation287_spill] sm:$0xff] %v10078_v37 }
 0x41e   : > { %3382 = vrot.lane.b32.xlu1 %v3117_v61, %s14350_s15  ;;  %3380 = vrot.lane.b32.xlu0 %v3116_v44, %s14350_s15 }
 0x420   : > { %v10084_v34 = vpop.permute.xlu1 %3270  ;;  %v10086_v10 = vpop.permute.xlu0 %3268 }
 0x421   : > { %14607 = vst [vmem:[#allocation288_spill] sm:$0xff] %v10084_v34  ;;  %14608 = vst [vmem:[#allocation289_spill] sm:$0xff] %v10086_v10  ;;  %v2403_v10 = vld [vmem:[%s8504_s8 + $0x3b1] sm:$0xff] }
 0x422   : > { %3386 = vrot.lane.b32.xlu1 %v3119_v55, %s14350_s15  ;;  %3384 = vrot.lane.b32.xlu0 %v3118_v0, %s14350_s15  ;;  %v2402_v55 = vld [vmem:[%s8504_s8 + $0x3a9] sm:$0xff]  ;;  %v3123_v34 = vmul.f32 %v3018_v1, %v2403_v10 }
 0x423   : > { %v3122_v0 = vmul.f32 %v3018_v1, %v2402_v55  ;;  %v3024_v1 = vstv %s7192_s2  ;;  %v2406_v55 = vld [vmem:[%s8504_s8 + $0x3d9] sm:$0xff]  ;;  %s7198_s2 = spop %7197 }
 0x424   : > { %v10092_v61 = vpop.permute.xlu1 %3274  ;;  %v10094_v44 = vpop.permute.xlu0 %3272 }
 0x425   : > { %14609 = vst [vmem:[#allocation290_spill] sm:$0xff] %v10092_v61  ;;  %14610 = vst [vmem:[#allocation291_spill] sm:$0xff] %v10094_v44  ;;  %v3124_v44 = vmul.f32 %v3021_v50, %v2404_v29  ;;  %v3027_v29 = vstv %s7194_s10  ;;  %s7200_s10 = spop %7199 }
 0x426   : > { %3390 = vrot.lane.b32.xlu1 %v3121_v9, %s14350_s15  ;;  %3388 = vrot.lane.b32.xlu0 %v3120_v39, %s14350_s15  ;;  %v2405_v9 = vld [vmem:[%s8504_s8 + $0x3c9] sm:$0xff] }
 0x427   : > { %v3125_v39 = vmul.f32 %v3021_v50, %v2405_v9  ;;  %v2408_v9 = vld [vmem:[%s8504_s8 + $0x3f1] sm:$0xff] }
 0x428   : > { %v10100_v37 = vpop.permute.xlu1 %3278  ;;  %v10102_v22 = vpop.permute.xlu0 %3276 }
 0x429   : > { %14611 = vst [vmem:[#allocation292_spill] sm:$0xff] %v10100_v37  ;;  %14612 = vst [vmem:[#allocation293_spill] sm:$0xff] %v10102_v22  ;;  %v3126_v22 = vmul.f32 %v3024_v1, %v2406_v55  ;;  %v3030_v55 = vstv %s7196_s9  ;;  %s7202_s9 = spop %7201 }
 0x42a   : > { %3394 = vrot.lane.b32.xlu1 %v3123_v34, %s14350_s15  ;;  %3392 = vrot.lane.b32.xlu0 %v3122_v0, %s14350_s15  ;;  %v2407_v34 = vld [vmem:[%s8504_s8 + $0x3e1] sm:$0xff] }
 0x42b   : > { %v3127_v0 = vmul.f32 %v3024_v1, %v2407_v34  ;;  %v2410_v34 = vld [vmem:[%s8504_s8 + $0x409] sm:$0xff] }
 0x42c   : > { %v10108_v61 = vpop.permute.xlu1 %3282  ;;  %v10110_v10 = vpop.permute.xlu0 %3280 }
 0x42d   : > { %14613 = vst [vmem:[#allocation294_spill] sm:$0xff] %v10108_v61  ;;  %14614 = vst [vmem:[#allocation295_spill] sm:$0xff] %v10110_v10  ;;  %v3128_v10 = vmul.f32 %v3027_v29, %v2408_v9  ;;  %v3033_v9 = vstv %s7198_s2  ;;  %s7204_s2 = spop %7203 }
 0x42e   : > { %3398 = vrot.lane.b32.xlu1 %v3125_v39, %s14350_s15  ;;  %3396 = vrot.lane.b32.xlu0 %v3124_v44, %s14350_s15  ;;  %v2409_v39 = vld [vmem:[%s8504_s8 + $0x3f9] sm:$0xff] }
 0x42f   : > { %v3129_v44 = vmul.f32 %v3027_v29, %v2409_v39  ;;  %v2412_v39 = vld [vmem:[%s8504_s8 + $0x421] sm:$0xff] }
 0x430   : > { %v10116_v37 = vpop.permute.xlu1 %3286  ;;  %v10118_v50 = vpop.permute.xlu0 %3284 }
 0x431   : > { %14615 = vst [vmem:[#allocation296_spill] sm:$0xff] %v10116_v37  ;;  %14616 = vst [vmem:[#allocation297_spill] sm:$0xff] %v10118_v50  ;;  %v3130_v50 = vmul.f32 %v3030_v55, %v2410_v34  ;;  %v3036_v34 = vstv %s7200_s10  ;;  %s14631_s10 = smov 126  }
 0x432   : > { %3402 = vrot.lane.b32.xlu1 %v3127_v0, %s14350_s15  ;;  %3400 = vrot.lane.b32.xlu0 %v3126_v22, %s14350_s15  ;;  %v2411_v0 = vld [vmem:[%s8504_s8 + $0x411] sm:$0xff] }
 0x433   : > { %v3131_v22 = vmul.f32 %v3030_v55, %v2411_v0  ;;  %v2414_v0 = vld [vmem:[%s8504_s8 + $0x439] sm:$0xff] }
 0x434   : > { %v10124_v61 = vpop.permute.xlu1 %3290  ;;  %v10126_v1 = vpop.permute.xlu0 %3288 }
 0x435   : > { %14617 = vst [vmem:[#allocation298_spill] sm:$0xff] %v10124_v61  ;;  %14618 = vst [vmem:[#allocation299_spill] sm:$0xff] %v10126_v1  ;;  %v3132_v1 = vmul.f32 %v3033_v9, %v2412_v39  ;;  %v3039_v39 = vstv %s7202_s9 }
 0x436   : > { %3406 = vrot.lane.b32.xlu1 %v3129_v44, %s14350_s15  ;;  %3404 = vrot.lane.b32.xlu0 %v3128_v10, %s14350_s15  ;;  %v2413_v44 = vld [vmem:[%s8504_s8 + $0x429] sm:$0xff] }
 0x437   : > { %v3133_v10 = vmul.f32 %v3033_v9, %v2413_v44  ;;  %v2416_v44 = vld [vmem:[%s8504_s8 + $0x451] sm:$0xff] }
 0x438   : > { %v10132_v37 = vpop.permute.xlu1 %3294  ;;  %v10134_v29 = vpop.permute.xlu0 %3292 }
 0x439   : > { %14619 = vst [vmem:[#allocation300_spill] sm:$0xff] %v10132_v37  ;;  %14620 = vst [vmem:[#allocation301_spill] sm:$0xff] %v10134_v29  ;;  %v3134_v29 = vmul.f32 %v3036_v34, %v2414_v0 }
 0x43a   : > { %3410 = vrot.lane.b32.xlu1 %v3131_v22, %s14350_s15  ;;  %3408 = vrot.lane.b32.xlu0 %v3130_v50, %s14350_s15  ;;  %v2415_v22 = vld [vmem:[%s8504_s8 + $0x441] sm:$0xff] }
 0x43b   : > { %v3135_v50 = vmul.f32 %v3036_v34, %v2415_v22  ;;  %v3042_v34 = vstv %s7204_s2  ;;  %v2418_v22 = vld [vmem:[%s8504_s8 + $0x469] sm:$0xff] }
 0x43c   : > { %v10140_v61 = vpop.permute.xlu1 %3298  ;;  %v10142_v55 = vpop.permute.xlu0 %3296 }
 0x43d   : > { %14621 = vst [vmem:[#allocation302_spill] sm:$0xff] %v10140_v61  ;;  %14622 = vst [vmem:[#allocation303_spill] sm:$0xff] %v10142_v55  ;;  %v3136_v55 = vmul.f32 %v3039_v39, %v2416_v44 }
 0x43e   : > { %3414 = vrot.lane.b32.xlu1 %v3133_v10, %s14350_s15  ;;  %3412 = vrot.lane.b32.xlu0 %v3132_v1, %s14350_s15  ;;  %v2417_v10 = vld [vmem:[%s8504_s8 + $0x459] sm:$0xff] }
 0x43f   : > { %v3137_v1 = vmul.f32 %v3039_v39, %v2417_v10 }
 0x440   : > { %v10148_v37 = vpop.permute.xlu1 %3302  ;;  %v10150_v9 = vpop.permute.xlu0 %3300 }
 0x441   : > { %14623 = vst [vmem:[#allocation304_spill] sm:$0xff] %v10148_v37  ;;  %14624 = vst [vmem:[#allocation305_spill] sm:$0xff] %v10150_v9  ;;  %v2419_v9 = vld [vmem:[%s8504_s8 + $0x471] sm:$0xff]  ;;  %v3138_v37 = vmul.f32 %v3042_v34, %v2418_v22 }
 0x442   : > { %3418 = vrot.lane.b32.xlu1 %v3135_v50, %s14350_s15  ;;  %3416 = vrot.lane.b32.xlu0 %v3134_v29, %s14350_s15  ;;  %v3139_v18 = vmul.f32 %v3042_v34, %v2419_v9 }
 0x444   : > { %v10156_v61 = vpop.permute.xlu1 %3306  ;;  %v10158_v0 = vpop.permute.xlu0 %3304 }
 0x445   : > { %14625 = vst [vmem:[#allocation306_spill] sm:$0xff] %v10156_v61  ;;  %14626 = vst [vmem:[#allocation307_spill] sm:$0xff] %v10158_v0  ;;  %v7853_v0 = vld [vmem:[%s8310_s14 + $0xb8] sm:$0x7] }
 0x446   : > { %3422 = vrot.lane.b32.xlu1 %v3137_v1, %s14350_s15  ;;  %3420 = vrot.lane.b32.xlu0 %v3136_v55, %s14350_s15  ;;  %v10729_v61 = vrot.slane %v7853_v0, 2  ;;  %v7856_v0 = vld [vmem:[%s8310_s14 + $0xbc] sm:$0x7] }
 0x448   : > { %v10164_v50 = vpop.permute.xlu1 %3310  ;;  %v10166_v29 = vpop.permute.xlu0 %3308 }
 0x449   : > { %14627 = vst [vmem:[#allocation308_spill] sm:$0xff] %v10164_v50  ;;  %14628 = vst [vmem:[#allocation309_spill] sm:$0xff] %v10166_v29 }
 0x44a   : > { %3426 = vrot.lane.b32.xlu1 %v3139_v18, %s14350_s15  ;;  %3424 = vrot.lane.b32.xlu0 %v3138_v37, %s14350_s15 }
 0x44c   : > { %v10170_v39 = vpop.permute.xlu1 %3314  ;;  %v10172_v44 = vpop.permute.xlu0 %3312 }
 0x44d   : > { %14629 = vst [vmem:[#allocation310_spill] sm:$0xff] %v10170_v39  ;;  %14630 = vst [vmem:[#allocation311_spill] sm:$0xff] %v10172_v44 }
 0x44e   : > { %3620 = vrot.lane.b32.xlu0 %v9177_v5, %s14631_s10  ;;  %3622 = vrot.lane.b32.xlu1 %v9180_v54, %s14631_s10 }
 0x450   : > { %v10178_v55 = vpop.permute.xlu1 %3318  ;;  %v10180_v9 = vpop.permute.xlu0 %3316 }
 0x451   : > { %14632 = vst [vmem:[#allocation312_spill] sm:$0xff] %v10178_v55  ;;  %14633 = vst [vmem:[#allocation313_spill] sm:$0xff] %v10180_v9  ;;  %v7841_v9 = vld [vmem:[%s8504_s8 + $0x291] sm:$0xff]  ;;  %v7846_v55 = vld [vmem:[%s8504_s8 + $0x2b9] sm:$0xff] }
 0x452   : > { %3624 = vrot.lane.b32.xlu0 %v9183_v13, %s14631_s10  ;;  %3626 = vrot.lane.b32.xlu1 %v9190_v32, %s14631_s10 }
 0x454   : > { %v10186_v18 = vpop.permute.xlu1 %3322  ;;  %v10188_v37 = vpop.permute.xlu0 %3320 }
 0x455   : > { %14634 = vst [vmem:[#allocation314_spill] sm:$0xff] %v10186_v18  ;;  %14635 = vst [vmem:[#allocation315_spill] sm:$0xff] %v10188_v37  ;;  %v7835_v37 = vld [vmem:[%s8504_s8 + $0x261] sm:$0xff] }
 0x456   : > { %3628 = vrot.lane.b32.xlu0 %v9194_v42, %s14631_s10  ;;  %3630 = vrot.lane.b32.xlu1 %v9198_v62, %s14631_s10 }
 0x458   : > { %v10194_v5 = vpop.permute.xlu1 %3326  ;;  %v10196_v54 = vpop.permute.xlu0 %3324 }
 0x459   : > { %14636 = vst [vmem:[#allocation316_spill] sm:$0xff] %v10194_v5  ;;  %14637 = vst [vmem:[#allocation317_spill] sm:$0xff] %v10196_v54  ;;  %v7829_v54 = vld [vmem:[%s8504_s8 + $0x231] sm:$0xff] }
 0x45a   : > { %3632 = vrot.lane.b32.xlu0 %v9202_v6, %s14631_s10  ;;  %3634 = vrot.lane.b32.xlu1 %v9210_v51, %s14631_s10 }
 0x45c   : > { %v10202_v13 = vpop.permute.xlu1 %3330  ;;  %v10204_v32 = vpop.permute.xlu0 %3328 }
 0x45d   : > { %14638 = vst [vmem:[#allocation318_spill] sm:$0xff] %v10202_v13  ;;  %14639 = vst [vmem:[#allocation319_spill] sm:$0xff] %v10204_v32  ;;  %v7823_v32 = vld [vmem:[%s8504_s8 + $0x201] sm:$0xff] }
 0x45e   : > { %3636 = vrot.lane.b32.xlu0 %v9214_v58, %s14631_s10  ;;  %3638 = vrot.lane.b32.xlu1 %v9218_v56, %s14631_s10 }
 0x460   : > { %v10210_v42 = vpop.permute.xlu1 %3334  ;;  %v10212_v62 = vpop.permute.xlu0 %3332 }
 0x461   : > { %14640 = vst [vmem:[#allocation320_spill] sm:$0xff] %v10210_v42  ;;  %14641 = vst [vmem:[#allocation321_spill] sm:$0xff] %v10212_v62 }
 0x462   : > { %3640 = vrot.lane.b32.xlu0 %v9222_v47, %s14631_s10  ;;  %3642 = vrot.lane.b32.xlu1 %v9230_v4, %s14631_s10 }
 0x464   : > { %v10218_v6 = vpop.permute.xlu1 %3338  ;;  %v10220_v51 = vpop.permute.xlu0 %3336 }
 0x465   : > { %14642 = vst [vmem:[#allocation322_spill] sm:$0xff] %v10218_v6  ;;  %14643 = vst [vmem:[#allocation323_spill] sm:$0xff] %v10220_v51  ;;  %v7821_v6 = vld [vmem:[%s8310_s14 + $0x90] sm:$0x7] }
 0x466   : > { %3644 = vrot.lane.b32.xlu0 %v9234_v16, %s14631_s10  ;;  %3646 = vrot.lane.b32.xlu1 %v9238_v12, %s14631_s10  ;;  %v10633_v62 = vrot.slane %v7821_v6, 2  ;;  %v7825_v6 = vld [vmem:[%s8504_s8 + $0x211] sm:$0xff] }
 0x468   : > { %v10226_v58 = vpop.permute.xlu1 %3342  ;;  %v10228_v56 = vpop.permute.xlu0 %3340 }
 0x469   : > { %14644 = vst [vmem:[#allocation324_spill] sm:$0xff] %v10226_v58  ;;  %14645 = vst [vmem:[#allocation325_spill] sm:$0xff] %v10228_v56  ;;  %v7817_v58 = vld [vmem:[%s8504_s8 + $0x1d1] sm:$0xff] }
 0x46a   : > { %3650 = vrot.lane.b32.xlu1 %v9250_v15, %s14631_s10  ;;  %3648 = vrot.lane.b32.xlu0 %v9242_v26, %s14631_s10 }
 0x46c   : > { %v10234_v47 = vpop.permute.xlu1 %3346  ;;  %v10236_v4 = vpop.permute.xlu0 %3344 }
 0x46d   : > { %14646 = vst [vmem:[#allocation326_spill] sm:$0xff] %v10234_v47  ;;  %14647 = vst [vmem:[#allocation327_spill] sm:$0xff] %v10236_v4 }
 0x46e   : > { %3654 = vrot.lane.b32.xlu1 %v9258_v27, %s14631_s10  ;;  %3652 = vrot.lane.b32.xlu0 %v9254_v23, %s14631_s10 }
 0x470   : > { %v10242_v16 = vpop.permute.xlu1 %3350  ;;  %v10244_v12 = vpop.permute.xlu0 %3348 }
 0x471   : > { %14648 = vst [vmem:[#allocation328_spill] sm:$0xff] %v10242_v16  ;;  %14649 = vst [vmem:[#allocation329_spill] sm:$0xff] %v10244_v12  ;;  %v7811_v12 = vld [vmem:[%s8504_s8 + $0x1b9] sm:$0xff] }
 0x472   : > { %3658 = vrot.lane.b32.xlu1 %v9270_v2, %s14631_s10  ;;  %3656 = vrot.lane.b32.xlu0 %v9262_v63, %s14631_s10 }
 0x474   : > { %v10250_v26 = vpop.permute.xlu1 %3354  ;;  %v10252_v15 = vpop.permute.xlu0 %3352 }
 0x475   : > { %14650 = vst [vmem:[#allocation330_spill] sm:$0xff] %v10250_v26  ;;  %14651 = vst [vmem:[#allocation331_spill] sm:$0xff] %v10252_v15 }
 0x476   : > { %3662 = vrot.lane.b32.xlu1 %v9278_v20, %s14631_s10  ;;  %3660 = vrot.lane.b32.xlu0 %v9274_v52, %s14631_s10 }
 0x478   : > { %v10258_v23 = vpop.permute.xlu1 %3358  ;;  %v10260_v27 = vpop.permute.xlu0 %3356 }
 0x479   : > { %14652 = vst [vmem:[#allocation332_spill] sm:$0xff] %v10258_v23  ;;  %14653 = vst [vmem:[#allocation333_spill] sm:$0xff] %v10260_v27  ;;  %v7805_v23 = vld [vmem:[%s8504_s8 + $0x1a1] sm:$0xff] }
 0x47a   : > { %3666 = vrot.lane.b32.xlu1 %v9290_v45, %s14631_s10  ;;  %3664 = vrot.lane.b32.xlu0 %v9282_v19, %s14631_s10 }
 0x47c   : > { %v10266_v63 = vpop.permute.xlu1 %3362  ;;  %v10268_v2 = vpop.permute.xlu0 %3360 }
 0x47d   : > { %14654 = vst [vmem:[#allocation334_spill] sm:$0xff] %v10266_v63  ;;  %14655 = vst [vmem:[#allocation335_spill] sm:$0xff] %v10268_v2 }
 0x47e   : > { %3670 = vrot.lane.b32.xlu1 %v9298_v35, %s14631_s10  ;;  %3668 = vrot.lane.b32.xlu0 %v9294_v36, %s14631_s10 }
 0x480   : > { %v10274_v52 = vpop.permute.xlu1 %3366  ;;  %v10276_v20 = vpop.permute.xlu0 %3364 }
 0x481   : > { %14656 = vst [vmem:[#allocation336_spill] sm:$0xff] %v10274_v52  ;;  %14657 = vst [vmem:[#allocation337_spill] sm:$0xff] %v10276_v20  ;;  %v7799_v20 = vld [vmem:[%s8504_s8 + $0x189] sm:$0xff] }
 0x482   : > { %3674 = vrot.lane.b32.xlu1 %v9310_v28, %s14631_s10  ;;  %3672 = vrot.lane.b32.xlu0 %v9302_v43, %s14631_s10 }
 0x484   : > { %v10282_v19 = vpop.permute.xlu1 %3370  ;;  %v10284_v45 = vpop.permute.xlu0 %3368 }
 0x485   : > { %14658 = vst [vmem:[#allocation338_spill] sm:$0xff] %v10282_v19  ;;  %14659 = vst [vmem:[#allocation339_spill] sm:$0xff] %v10284_v45 }
 0x486   : > { %3678 = vrot.lane.b32.xlu1 %v9318_v33, %s14631_s10  ;;  %3676 = vrot.lane.b32.xlu0 %v9314_v24, %s14631_s10 }
 0x488   : > { %v10290_v36 = vpop.permute.xlu1 %3374  ;;  %v10292_v35 = vpop.permute.xlu0 %3372 }
 0x489   : > { %14660 = vst [vmem:[#allocation340_spill] sm:$0xff] %v10290_v36  ;;  %14661 = vst [vmem:[#allocation341_spill] sm:$0xff] %v10292_v35  ;;  %v7793_v36 = vld [vmem:[%s8504_s8 + $0x171] sm:$0xff] }
 0x48a   : > { %3682 = vrot.lane.b32.xlu1 %v9330_v14, %s14631_s10  ;;  %3680 = vrot.lane.b32.xlu0 %v9322_v59, %s14631_s10 }
 0x48c   : > { %v10298_v43 = vpop.permute.xlu1 %3378  ;;  %v10300_v28 = vpop.permute.xlu0 %3376 }
 0x48d   : > { %14662 = vst [vmem:[#allocation342_spill] sm:$0xff] %v10298_v43  ;;  %14663 = vst [vmem:[#allocation343_spill] sm:$0xff] %v10300_v28 }
 0x48e   : > { %3686 = vrot.lane.b32.xlu1 %v9338_v7, %s14631_s10  ;;  %3684 = vrot.lane.b32.xlu0 %v9334_v60, %s14631_s10 }
 0x490   : > { %v10306_v24 = vpop.permute.xlu1 %3382  ;;  %v10308_v33 = vpop.permute.xlu0 %3380 }
 0x491   : > { %14664 = vst [vmem:[#allocation344_spill] sm:$0xff] %v10306_v24  ;;  %14665 = vst [vmem:[#allocation345_spill] sm:$0xff] %v10308_v33  ;;  %v7787_v33 = vld [vmem:[%s8504_s8 + $0x159] sm:$0xff] }
 0x492   : > { %3690 = vrot.lane.b32.xlu1 %v9352_v38, %s14631_s10  ;;  %3688 = vrot.lane.b32.xlu0 %v9342_v17, %s14631_s10 }
 0x494   : > { %v10314_v59 = vpop.permute.xlu1 %3386  ;;  %v10316_v14 = vpop.permute.xlu0 %3384 }
 0x495   : > { %14666 = vst [vmem:[#allocation346_spill] sm:$0xff] %v10314_v59  ;;  %14667 = vst [vmem:[#allocation347_spill] sm:$0xff] %v10316_v14 }
 0x496   : > { %3694 = vrot.lane.b32.xlu1 %v9369_v8, %s14631_s10  ;;  %3692 = vrot.lane.b32.xlu0 %v9361_v11, %s14631_s10 }
 0x498   : > { %v10322_v60 = vpop.permute.xlu1 %3390  ;;  %v10324_v7 = vpop.permute.xlu0 %3388 }
 0x499   : > { %14668 = vst [vmem:[#allocation348_spill] sm:$0xff] %v10322_v60  ;;  %14669 = vst [vmem:[#allocation349_spill] sm:$0xff] %v10324_v7  ;;  %v7781_v60 = vld [vmem:[%s8504_s8 + $0x141] sm:$0xff] }
 0x49a   : > { %3698 = vrot.lane.b32.xlu1 %v9385_v3, %s14631_s10  ;;  %3696 = vrot.lane.b32.xlu0 %v9377_v40, %s14631_s10 }
 0x49c   : > { %v10330_v17 = vpop.permute.xlu1 %3394  ;;  %v10332_v38 = vpop.permute.xlu0 %3392 }
 0x49d   : > { %14670 = vst [vmem:[#allocation350_spill] sm:$0xff] %v10330_v17  ;;  %14671 = vst [vmem:[#allocation351_spill] sm:$0xff] %v10332_v38 }
 0x49e   : > { %3702 = vrot.lane.b32.xlu1 %v9401_v30, %s14631_s10  ;;  %3700 = vrot.lane.b32.xlu0 %v9393_v48, %s14631_s10 }
 0x4a0   : > { %v10338_v11 = vpop.permute.xlu1 %3398  ;;  %v10340_v8 = vpop.permute.xlu0 %3396 }
 0x4a1   : > { %14672 = vst [vmem:[#allocation352_spill] sm:$0xff] %v10338_v11  ;;  %14673 = vst [vmem:[#allocation353_spill] sm:$0xff] %v10340_v8  ;;  %v7750_v8 = vld [vmem:[%s8504_s8 + $0x51] sm:$0xff] }
 0x4a2   : > { %3706 = vrot.lane.b32.xlu1 %v9417_v21, %s14631_s10  ;;  %3704 = vrot.lane.b32.xlu0 %v9409_v57, %s14631_s10 }
 0x4a4   : > { %v10346_v40 = vpop.permute.xlu1 %3402  ;;  %v10348_v3 = vpop.permute.xlu0 %3400 }
 0x4a5   : > { %14674 = vst [vmem:[#allocation354_spill] sm:$0xff] %v10346_v40  ;;  %14675 = vst [vmem:[#allocation355_spill] sm:$0xff] %v10348_v3  ;;  %v7746_v3 = vld [vmem:[%s8504_s8 + $0x21] sm:$0xff] }
 0x4a6   : > { %3710 = vrot.lane.b32.xlu1 %v9437_v53, %s14631_s10  ;;  %3708 = vrot.lane.b32.xlu0 %v9425_v31, %s14631_s10 }
 0x4a8   : > { %v10354_v48 = vpop.permute.xlu1 %3406  ;;  %v10356_v30 = vpop.permute.xlu0 %3404 }
 0x4a9   : > { %14676 = vst [vmem:[#allocation356_spill] sm:$0xff] %v10354_v48  ;;  %14677 = vst [vmem:[#allocation357_spill] sm:$0xff] %v10356_v30 }
 0x4aa   : > { %3714 = vrot.lane.b32.xlu1 %v9461_v46, %s14631_s10  ;;  %3712 = vrot.lane.b32.xlu0 %v9449_v41, %s14631_s10 }
 0x4ac   : > { %v10362_v57 = vpop.permute.xlu1 %3410  ;;  %v10364_v21 = vpop.permute.xlu0 %3408 }
 0x4ad   : > { %14678 = vst [vmem:[#allocation358_spill] sm:$0xff] %v10362_v57  ;;  %14679 = vst [vmem:[#allocation359_spill] sm:$0xff] %v10364_v21 }
 0x4b0   : > { %v10366_v10 = vpop.permute.xlu1 %3414  ;;  %v10368_v53 = vpop.permute.xlu0 %3412 }
 0x4b1   : > { %14680 = vst [vmem:[#allocation360_spill] sm:$0xff] %v10366_v10  ;;  %14681 = vst [vmem:[#allocation361_spill] sm:$0xff] %v10368_v53 }
 0x4b4   : > { %v10370_v1 = vpop.permute.xlu1 %3418  ;;  %v10372_v31 = vpop.permute.xlu0 %3416 }
 0x4b5   : > { %14682 = vst [vmem:[#allocation362_spill] sm:$0xff] %v10370_v1  ;;  %14683 = vst [vmem:[#allocation363_spill] sm:$0xff] %v10372_v31 }
 0x4b8   : > { %v10374_v34 = vpop.permute.xlu1 %3422  ;;  %v10376_v22 = vpop.permute.xlu0 %3420 }
 0x4b9   : > { %14684 = vst [vmem:[#allocation364_spill] sm:$0xff] %v10374_v34  ;;  %14685 = vst [vmem:[#allocation365_spill] sm:$0xff] %v10376_v22 }
 0x4bc   : > { %v10378_v46 = vpop.permute.xlu1 %3426  ;;  %v10380_v30 = vpop.permute.xlu0 %3424 }
 0x4bd   : > { %14686 = vst [vmem:[#allocation366_spill] sm:$0xff] %v10378_v46  ;;  %14687 = vst [vmem:[#allocation367_spill] sm:$0xff] %v10380_v30 }
 0x4c0   : > { %v3621_v41 = vpop.permute.xlu0 %3620  ;;  %v3623_v57 = vpop.permute.xlu1 %3622 }
 0x4c1   : > { %7205 = vpush %v3621_v41 }
 0x4c2   : > { %7207 = vpush %v3623_v57 }
 0x4c4   : > { %v3625_v21 = vpop.permute.xlu0 %3624  ;;  %v3627_v10 = vpop.permute.xlu1 %3626 }
 0x4c5   : > { %7209 = vpush %v3625_v21 }
 0x4c6   : > { %7211 = vpush %v3627_v10 }
 0x4c8   : > { %v3629_v53 = vpop.permute.xlu0 %3628  ;;  %v3631_v1 = vpop.permute.xlu1 %3630 }
 0x4c9   : > { %7213 = vpush %v3629_v53 }
 0x4ca   : > { %7215 = vpush %v3631_v1 }
 0x4cc   : > { %v3633_v31 = vpop.permute.xlu0 %3632  ;;  %v3635_v34 = vpop.permute.xlu1 %3634 }
 0x4cd   : > { %7217 = vpush %v3633_v31 }
 0x4ce   : > { %7219 = vpush %v3635_v34 }
 0x4d0   : > { %v3637_v22 = vpop.permute.xlu0 %3636  ;;  %v3639_v46 = vpop.permute.xlu1 %3638 }
 0x4d1   : > { %7221 = vpush %v3637_v22 }
 0x4d2   : > { %7223 = vpush %v3639_v46 }
 0x4d4   : > { %v3641_v30 = vpop.permute.xlu0 %3640  ;;  %v3643_v48 = vpop.permute.xlu1 %3642 }
 0x4d5   : > { %7225 = vpush %v3641_v30 }
 0x4d6   : > { %7227 = vpush %v3643_v48 }
 0x4d8   : > { %v3645_v57 = vpop.permute.xlu0 %3644  ;;  %v3647_v41 = vpop.permute.xlu1 %3646 }
 0x4d9   : > { %7229 = vpush %v3645_v57 }
 0x4da   : > { %7231 = vpush %v3647_v41 }
 0x4dc   : > { %v3651_v21 = vpop.permute.xlu1 %3650  ;;  %v3649_v10 = vpop.permute.xlu0 %3648 }
 0x4dd   : > { %7233 = vpush %v3649_v10  ;;  %v7743_v10 = vld [vmem:[%s8504_s8 + $0x1] sm:$0xff] }
 0x4de   : > { %7235 = vpush %v3651_v21 }
 0x4e0   : > { %v3655_v53 = vpop.permute.xlu1 %3654  ;;  %v3653_v1 = vpop.permute.xlu0 %3652 }
 0x4e1   : > { %7237 = vpush %v3653_v1  ;;  %v7744_v1 = vld [vmem:[%s8504_s8 + $0x9] sm:$0xff] }
 0x4e2   : > { %7239 = vpush %v3655_v53 }
 0x4e4   : > { %v3659_v31 = vpop.permute.xlu1 %3658  ;;  %v3657_v34 = vpop.permute.xlu0 %3656 }
 0x4e5   : > { %7241 = vpush %v3657_v34 }
 0x4e6   : > { %7243 = vpush %v3659_v31 }
 0x4e8   : > { %v3663_v22 = vpop.permute.xlu1 %3662  ;;  %v3661_v30 = vpop.permute.xlu0 %3660 }
 0x4e9   : > { %7245 = vpush %v3661_v30 }
 0x4ea   : > { %7247 = vpush %v3663_v22 }
 0x4ec   : > { %v3667_v48 = vpop.permute.xlu1 %3666  ;;  %v3665_v46 = vpop.permute.xlu0 %3664 }
 0x4ed   : > { %7249 = vpush %v3665_v46  ;;  %v7745_v46 = vld [vmem:[%s8504_s8 + $0x19] sm:$0xff] }
 0x4ee   : > { %7251 = vpush %v3667_v48 }
 0x4f0   : > { %v3671_v57 = vpop.permute.xlu1 %3670  ;;  %v3669_v41 = vpop.permute.xlu0 %3668 }
 0x4f1   : > { %7253 = vpush %v3669_v41 }
 0x4f2   : > { %s7206_s9 = spop %7205  ;;  %7255 = vpush %v3671_v57 }
 0x4f3   : > { %v3717_v21 = vstv %s7206_s9  ;;  %s7208_s2 = spop %7207 }
 0x4f4   : > { %v3860_v53 = vmul.f32 %v7743_v10, %v3717_v21  ;;  %v3861_v31 = vmul.f32 %v7744_v1, %v3717_v21  ;;  %v3720_v34 = vstv %s7208_s2  ;;  %v3675_v30 = vpop.permute.xlu1 %3674  ;;  %v3673_v22 = vpop.permute.xlu0 %3672  ;;  %v7747_v10 = vld [vmem:[%s8504_s8 + $0x31] sm:$0xff] }
 0x4f5   : > { %7257 = vpush %v3673_v22  ;;  %v3862_v48 = vmul.f32 %v7745_v46, %v3720_v34  ;;  %v3863_v40 = vmul.f32 %v7746_v3, %v3720_v34  ;;  %v7748_v3 = vld [vmem:[%s8504_s8 + $0x39] sm:$0xff]  ;;  %v7749_v22 = vld [vmem:[%s8504_s8 + $0x49] sm:$0xff] }
 0x4f6   : > { %4054 = vrot.lane.b32.xlu1 %v3861_v31, %s14631_s10  ;;  %4052 = vrot.lane.b32.xlu0 %v3860_v53, %s14631_s10  ;;  %s7210_s9 = spop %7209  ;;  %7259 = vpush %v3675_v30 }
 0x4f7   : > { %v3723_v57 = vstv %s7210_s9  ;;  %s7212_s0 = spop %7211 }
 0x4f8   : > { %v3679_v41 = vpop.permute.xlu1 %3678  ;;  %v3677_v21 = vpop.permute.xlu0 %3676  ;;  %v3864_v1 = vmul.f32 %v7747_v10, %v3723_v57  ;;  %v3865_v34 = vmul.f32 %v7748_v3, %v3723_v57  ;;  %v3726_v31 = vstv %s7212_s0  ;;  %v7752_v3 = vld [vmem:[%s8504_s8 + $0x69] sm:$0xff] }
 0x4f9   : > { %7261 = vpush %v3677_v21  ;;  %v3866_v46 = vmul.f32 %v7749_v22, %v3726_v31  ;;  %v3867_v21 = vmul.f32 %v7750_v8, %v3726_v31  ;;  %v7754_v22 = vld [vmem:[%s8504_s8 + $0x81] sm:$0xff] }
 0x4fa   : > { %4058 = vrot.lane.b32.xlu1 %v3863_v40, %s14631_s10  ;;  %4056 = vrot.lane.b32.xlu0 %v3862_v48, %s14631_s10  ;;  %7263 = vpush %v3679_v41  ;;  %s7214_s2 = spop %7213  ;;  %v7751_v41 = vld [vmem:[%s8504_s8 + $0x61] sm:$0xff] }
 0x4fb   : > { %v3729_v40 = vstv %s7214_s2  ;;  %s7216_s9 = spop %7215 }
 0x4fc   : > { %v3683_v53 = vpop.permute.xlu1 %3682  ;;  %v3681_v30 = vpop.permute.xlu0 %3680  ;;  %v3868_v10 = vmul.f32 %v7751_v41, %v3729_v40  ;;  %v3869_v8 = vmul.f32 %v7752_v3, %v3729_v40  ;;  %v7756_v3 = vld [vmem:[%s8504_s8 + $0x99] sm:$0xff] }
 0x4fd   : > { %7265 = vpush %v3681_v30 }
 0x4fe   : > { %4062 = vrot.lane.b32.xlu1 %v3865_v34, %s14631_s10  ;;  %4060 = vrot.lane.b32.xlu0 %v3864_v1, %s14631_s10  ;;  %7267 = vpush %v3683_v53  ;;  %v3732_v34 = vstv %s7216_s9  ;;  %s7218_s0 = spop %7217  ;;  %v7753_v53 = vld [vmem:[%s8504_s8 + $0x79] sm:$0xff] }
 0x4ff   : > { %v3870_v30 = vmul.f32 %v7753_v53, %v3732_v34  ;;  %s7220_s2 = spop %7219 }
 0x500   : > { %v3687_v48 = vpop.permute.xlu1 %3686  ;;  %v3685_v57 = vpop.permute.xlu0 %3684 }
 0x501   : > { %7269 = vpush %v3685_v57  ;;  %v3871_v57 = vmul.f32 %v7754_v22, %v3732_v34  ;;  %v7758_v22 = vld [vmem:[%s8504_s8 + $0xb1] sm:$0xff] }
 0x502   : > { %4066 = vrot.lane.b32.xlu1 %v3867_v21, %s14631_s10  ;;  %4064 = vrot.lane.b32.xlu0 %v3866_v46, %s14631_s10  ;;  %7271 = vpush %v3687_v48  ;;  %v3735_v46 = vstv %s7218_s0  ;;  %v7755_v48 = vld [vmem:[%s8504_s8 + $0x91] sm:$0xff]  ;;  %s7222_s9 = spop %7221 }
 0x503   : > { %v3872_v41 = vmul.f32 %v7755_v48, %v3735_v46  ;;  %v3873_v34 = vmul.f32 %v7756_v3, %v3735_v46  ;;  %s7224_s0 = spop %7223  ;;  %v7760_v3 = vld [vmem:[%s8504_s8 + $0xc9] sm:$0xff] }
 0x504   : > { %v3691_v1 = vpop.permute.xlu1 %3690  ;;  %v3689_v31 = vpop.permute.xlu0 %3688 }
 0x505   : > { %7273 = vpush %v3689_v31  ;;  %v7757_v31 = vld [vmem:[%s8504_s8 + $0xa9] sm:$0xff] }
 0x506   : > { %4070 = vrot.lane.b32.xlu1 %v3869_v8, %s14631_s10  ;;  %4068 = vrot.lane.b32.xlu0 %v3868_v10, %s14631_s10  ;;  %7275 = vpush %v3691_v1  ;;  %v3738_v8 = vstv %s7220_s2  ;;  %s7226_s2 = spop %7225 }
 0x507   : > { %v3874_v53 = vmul.f32 %v7757_v31, %v3738_v8 }
 0x508   : > { %v3695_v21 = vpop.permute.xlu1 %3694  ;;  %v3693_v40 = vpop.permute.xlu0 %3692 }
 0x509   : > { %7277 = vpush %v3693_v40  ;;  %v3875_v40 = vmul.f32 %v7758_v22, %v3738_v8  ;;  %v7762_v22 = vld [vmem:[%s8504_s8 + $0xe1] sm:$0xff] }
 0x50a   : > { %4074 = vrot.lane.b32.xlu1 %v3871_v57, %s14631_s10  ;;  %4072 = vrot.lane.b32.xlu0 %v3870_v30, %s14631_s10  ;;  %7279 = vpush %v3695_v21  ;;  %v3741_v30 = vstv %s7222_s9  ;;  %v7759_v21 = vld [vmem:[%s8504_s8 + $0xc1] sm:$0xff]  ;;  %s7228_s9 = spop %7227 }
 0x50b   : > { %v3876_v48 = vmul.f32 %v7759_v21, %v3741_v30  ;;  %v3877_v8 = vmul.f32 %v7760_v3, %v3741_v30  ;;  %v7764_v3 = vld [vmem:[%s8504_s8 + $0xf9] sm:$0xff] }
 0x50c   : > { %v3699_v10 = vpop.permute.xlu1 %3698  ;;  %v3697_v1 = vpop.permute.xlu0 %3696 }
 0x50d   : > { %7281 = vpush %v3697_v1  ;;  %v7761_v1 = vld [vmem:[%s8504_s8 + $0xd9] sm:$0xff] }
 0x50e   : > { %4078 = vrot.lane.b32.xlu1 %v3873_v34, %s14631_s10  ;;  %4076 = vrot.lane.b32.xlu0 %v3872_v41, %s14631_s10  ;;  %7283 = vpush %v3699_v10  ;;  %v3744_v34 = vstv %s7224_s0  ;;  %s10427_s0 = spop %7229 }
 0x50f   : > { %v3878_v31 = vmul.f32 %v7761_v1, %v3744_v34 }
 0x510   : > { %v3703_v57 = vpop.permute.xlu1 %3702  ;;  %v3701_v46 = vpop.permute.xlu0 %3700 }
 0x511   : > { %7285 = vpush %v3701_v46  ;;  %v3879_v46 = vmul.f32 %v7762_v22, %v3744_v34  ;;  %v7765_v34 = vld [vmem:[%s8310_s14] sm:$0x7]  ;;  %v7766_v22 = vld [vmem:[%s8310_s14 + $0x4] sm:$0x7] }
 0x512   : > { %4082 = vrot.lane.b32.xlu1 %v3875_v40, %s14631_s10  ;;  %4080 = vrot.lane.b32.xlu0 %v3874_v53, %s14631_s10  ;;  %7287 = vpush %v3703_v57  ;;  %v3747_v53 = vstv %s7226_s2  ;;  %v7763_v57 = vld [vmem:[%s8504_s8 + $0xf1] sm:$0xff]  ;;  %s10447_s2 = spop %7231 }
 0x513   : > { %v3880_v21 = vmul.f32 %v7763_v57, %v3747_v53  ;;  %v7769_v57 = vld [vmem:[%s8504_s8 + $0x111] sm:$0xff]  ;;  %v3756_v17 = vstv %s10447_s2 }
 0x514   : > { %v3707_v41 = vpop.permute.xlu1 %3706  ;;  %v3705_v10 = vpop.permute.xlu0 %3704 }
 0x515   : > { %7289 = vpush %v3705_v10 }
 0x516   : > { %4086 = vrot.lane.b32.xlu1 %v3877_v8, %s14631_s10  ;;  %4084 = vrot.lane.b32.xlu0 %v3876_v48, %s14631_s10  ;;  %7291 = vpush %v3707_v41  ;;  %v3881_v8 = vmul.f32 %v7764_v3, %v3747_v53  ;;  %v3750_v48 = vstv %s7228_s9  ;;  %v10425_v41 = vrot.slane %v7765_v34, 2  ;;  %v7768_v53 = vld [vmem:[%s8504_s8 + $0x109] sm:$0xff]  ;;  %s10470_s9 = spop %7233 }
 0x517   : > { %v3883_v3 = vmul.f32 %v7769_v57, %v3750_v48  ;;  %v7770_v34 = vld [vmem:[%s8310_s14 + $0xc] sm:$0x7]  ;;  %v3759_v59 = vstv %s10470_s9 }
 0x518   : > { %v3711_v40 = vpop.permute.xlu1 %3710  ;;  %v3709_v30 = vpop.permute.xlu0 %3708  ;;  %v10440_v11 = vrot.slane %v7770_v34, 2  ;;  %v7775_v34 = vld [vmem:[%s8504_s8 + $0x129] sm:$0xff]  ;;  %v3889_v24 = vmul.f32 %v7787_v33, %v3759_v59 }
 0x519   : > { %7293 = vpush %v3709_v30 }
 0x51a   : > { %4090 = vrot.lane.b32.xlu1 %v3879_v46, %s14631_s10  ;;  %4088 = vrot.lane.b32.xlu0 %v3878_v31, %s14631_s10  ;;  %7295 = vpush %v3711_v40  ;;  %v10430_v31 = vrot.slane %v7766_v22, 2  ;;  %v7767_v46 = vld [vmem:[%s8310_s14 + $0x8] sm:$0x7]  ;;  %v3882_v40 = vmul.f32 %v7768_v53, %v3750_v48  ;;  %v7771_v22 = vld [vmem:[%s8310_s14 + $0x10] sm:$0x7] }
 0x51b   : > { %v10433_v30 = vrot.slane %v7767_v46, 2  ;;  %v10445_v46 = vrot.slane %v7771_v22, 2  ;;  %v7773_v48 = vld [vmem:[%s8310_s14 + $0x18] sm:$0x7]  ;;  %v7774_v53 = vld [vmem:[%s8504_s8 + $0x121] sm:$0xff] }
 0x51c   : > { %v3715_v10 = vpop.permute.xlu1 %3714  ;;  %v3713_v1 = vpop.permute.xlu0 %3712 }
 0x51d   : > { %7297 = vpush %v3713_v1  ;;  %v3753_v1 = vstv %s10427_s0  ;;  %s10493_s0 = spop %7235 }
 0x51e   : > { %4094 = vrot.lane.b32.xlu1 %v3881_v8, %s14631_s10  ;;  %4092 = vrot.lane.b32.xlu0 %v3880_v21, %s14631_s10  ;;  %7299 = vpush %v3715_v10  ;;  %v7772_v8 = vld [vmem:[%s8310_s14 + $0x14] sm:$0x7]  ;;  %v10455_v10 = vrot.slane %v7773_v48, 2  ;;  %v3884_v57 = vmul.f32 %v7774_v53, %v3753_v1  ;;  %v3885_v22 = vmul.f32 %v7775_v34, %v3753_v1  ;;  %v7777_v48 = vld [vmem:[%s8310_s14 + $0x20] sm:$0x7]  ;;  %s10516_s2 = spop %7237 }
 0x51f   : > { %7301 = vpush %v10425_v41  ;;  %v10451_v21 = vrot.slane %v7772_v8, 2  ;;  %v7776_v8 = vld [vmem:[%s8310_s14 + $0x1c] sm:$0x7]  ;;  %v7779_v53 = vld [vmem:[%s8310_s14 + $0x28] sm:$0x7]  ;;  %v3762_v43 = vstv %s10493_s0  ;;  %v3765_v19 = vstv %s10516_s2  ;;  %s10539_s9 = spop %7239 }
 0x520   : > { %7303 = vpush %v10430_v31  ;;  %v10463_v38 = vrot.slane %v7776_v8, 2  ;;  %v10478_v34 = vrot.slane %v7779_v53, 2  ;;  %v7780_v8 = vld [vmem:[%s8504_s8 + $0x139] sm:$0xff]  ;;  %v7783_v53 = vld [vmem:[%s8310_s14 + $0x30] sm:$0x7]  ;;  %v3893_v52 = vmul.f32 %v7799_v20, %v3765_v19  ;;  %v3768_v63 = vstv %s10539_s9  ;;  %s10562_s0 = spop %7241 }
 0x521   : > { %7305 = vpush %v10433_v30  ;;  %v3886_v7 = vmul.f32 %v7780_v8, %v3756_v17  ;;  %v10491_v8 = vrot.slane %v7783_v53, 2  ;;  %v3771_v26 = vstv %s10562_s0  ;;  %s10585_s2 = spop %7243 }
 0x522   : > { %4098 = vrot.lane.b32.xlu1 %v3883_v3, %s14631_s10  ;;  %4096 = vrot.lane.b32.xlu0 %v3882_v40, %s14631_s10  ;;  %7307 = vpush %v10440_v11  ;;  %v10468_v3 = vrot.slane %v7777_v48, 2  ;;  %v7778_v40 = vld [vmem:[%s8310_s14 + $0x24] sm:$0x7]  ;;  %v3887_v48 = vmul.f32 %v7781_v60, %v3756_v17  ;;  %v7784_v60 = vld [vmem:[%s8310_s14 + $0x34] sm:$0x7]  ;;  %v3897_v16 = vmul.f32 %v7811_v12, %v3771_v26  ;;  %s7246_s9 = spop %7245 }
 0x523   : > { %7309 = vpush %v10445_v46  ;;  %v10474_v1 = vrot.slane %v7778_v40, 2  ;;  %v7782_v40 = vld [vmem:[%s8310_s14 + $0x2c] sm:$0x7]  ;;  %v10497_v17 = vrot.slane %v7784_v60, 2  ;;  %v7788_v60 = vld [vmem:[%s8310_s14 + $0x3c] sm:$0x7]  ;;  %v3774_v47 = vstv %s10585_s2  ;;  %s7248_s0 = spop %7247 }
 0x524   : > { %7311 = vpush %v10451_v21  ;;  %v10486_v14 = vrot.slane %v7782_v40, 2  ;;  %v7786_v40 = vld [vmem:[%s8504_s8 + $0x151] sm:$0xff]  ;;  %v10509_v28 = vrot.slane %v7788_v60, 2  ;;  %v7792_v60 = vld [vmem:[%s8504_s8 + $0x169] sm:$0xff]  ;;  %v3899_v51 = vmul.f32 %v7817_v58, %v3774_v47  ;;  %v7819_v58 = vld [vmem:[%s8504_s8 + $0x1e1] sm:$0xff]  ;;  %s7250_s2 = spop %7249 }
 0x525   : > { %7313 = vpush %v10455_v10  ;;  %v3888_v53 = vmul.f32 %v7786_v40, %v3759_v59  ;;  %v7791_v59 = vld [vmem:[%s8310_s14 + $0x48] sm:$0x7]  ;;  %v3890_v35 = vmul.f32 %v7792_v60, %v3762_v43 }
 0x526   : > { %4102 = vrot.lane.b32.xlu1 %v3885_v22, %s14631_s10  ;;  %4100 = vrot.lane.b32.xlu0 %v3884_v57, %s14631_s10  ;;  %7315 = vpush %v10463_v38  ;;  %v7785_v57 = vld [vmem:[%s8310_s14 + $0x38] sm:$0x7]  ;;  %v10524_v40 = vrot.slane %v7791_v59, 2  ;;  %v7795_v59 = vld [vmem:[%s8310_s14 + $0x50] sm:$0x7] }
 0x527   : > { %7317 = vpush %v10468_v3  ;;  %v10501_v22 = vrot.slane %v7785_v57, 2  ;;  %v7789_v57 = vld [vmem:[%s8310_s14 + $0x40] sm:$0x7]  ;;  %v10537_v60 = vrot.slane %v7795_v59, 2  ;;  %v7815_v12 = vld [vmem:[%s8310_s14 + $0x88] sm:$0x7] }
 0x528   : > { %7319 = vpush %v10474_v1 }
 0x529   : > { %7321 = vpush %v10478_v34 }
 0x52a   : > { %4106 = vrot.lane.b32.xlu1 %v3887_v48, %s14631_s10  ;;  %4104 = vrot.lane.b32.xlu0 %v3886_v7, %s14631_s10  ;;  %7323 = vpush %v10486_v14  ;;  %v10514_v48 = vrot.slane %v7789_v57, 2  ;;  %v7790_v7 = vld [vmem:[%s8310_s14 + $0x44] sm:$0x7]  ;;  %v3891_v57 = vmul.f32 %v7793_v36, %v3762_v43  ;;  %v7796_v36 = vld [vmem:[%s8310_s14 + $0x54] sm:$0x7] }
 0x52b   : > { %7325 = vpush %v10491_v8  ;;  %v10520_v33 = vrot.slane %v7790_v7, 2  ;;  %v7794_v7 = vld [vmem:[%s8310_s14 + $0x4c] sm:$0x7]  ;;  %v10543_v43 = vrot.slane %v7796_v36, 2  ;;  %v7800_v36 = vld [vmem:[%s8310_s14 + $0x5c] sm:$0x7] }
 0x52c   : > { %7327 = vpush %v10497_v17  ;;  %v10532_v45 = vrot.slane %v7794_v7, 2  ;;  %v7798_v7 = vld [vmem:[%s8504_s8 + $0x181] sm:$0xff]  ;;  %v10555_v2 = vrot.slane %v7800_v36, 2  ;;  %v7804_v36 = vld [vmem:[%s8504_s8 + $0x199] sm:$0xff] }
 0x52d   : > { %7329 = vpush %v10501_v22  ;;  %v3892_v59 = vmul.f32 %v7798_v7, %v3765_v19  ;;  %v7803_v19 = vld [vmem:[%s8310_s14 + $0x68] sm:$0x7]  ;;  %v3894_v27 = vmul.f32 %v7804_v36, %v3768_v63 }
 0x52e   : > { %4110 = vrot.lane.b32.xlu1 %v3889_v24, %s14631_s10  ;;  %4108 = vrot.lane.b32.xlu0 %v3888_v53, %s14631_s10  ;;  %7331 = vpush %v10509_v28  ;;  %v7797_v24 = vld [vmem:[%s8310_s14 + $0x58] sm:$0x7]  ;;  %v10570_v7 = vrot.slane %v7803_v19, 2  ;;  %v7807_v19 = vld [vmem:[%s8310_s14 + $0x70] sm:$0x7] }
 0x52f   : > { %7333 = vpush %v10514_v48  ;;  %v10547_v53 = vrot.slane %v7797_v24, 2  ;;  %v7801_v24 = vld [vmem:[%s8310_s14 + $0x60] sm:$0x7]  ;;  %v10583_v36 = vrot.slane %v7807_v19, 2 }
 0x530   : > { %7335 = vpush %v10520_v33 }
 0x531   : > { %7337 = vpush %v10524_v40 }
 0x532   : > { %4114 = vrot.lane.b32.xlu1 %v3891_v57, %s14631_s10  ;;  %4112 = vrot.lane.b32.xlu0 %v3890_v35, %s14631_s10  ;;  %7339 = vpush %v10532_v45  ;;  %v10560_v57 = vrot.slane %v7801_v24, 2  ;;  %v7802_v35 = vld [vmem:[%s8310_s14 + $0x64] sm:$0x7]  ;;  %v3895_v24 = vmul.f32 %v7805_v23, %v3768_v63  ;;  %v7808_v23 = vld [vmem:[%s8310_s14 + $0x74] sm:$0x7] }
 0x533   : > { %7341 = vpush %v10537_v60  ;;  %v10566_v20 = vrot.slane %v7802_v35, 2  ;;  %v7806_v35 = vld [vmem:[%s8310_s14 + $0x6c] sm:$0x7]  ;;  %v10589_v63 = vrot.slane %v7808_v23, 2  ;;  %v7812_v23 = vld [vmem:[%s8310_s14 + $0x7c] sm:$0x7] }
 0x534   : > { %7343 = vpush %v10543_v43  ;;  %v10578_v15 = vrot.slane %v7806_v35, 2  ;;  %v7810_v35 = vld [vmem:[%s8504_s8 + $0x1b1] sm:$0xff]  ;;  %v10601_v4 = vrot.slane %v7812_v23, 2 }
 0x535   : > { %7345 = vpush %v10547_v53  ;;  %v3896_v19 = vmul.f32 %v7810_v35, %v3771_v26  ;;  %v10614_v26 = vrot.slane %v7815_v12, 2  ;;  %v7816_v35 = vld [vmem:[%s8504_s8 + $0x1c9] sm:$0xff] }
 0x536   : > { %4118 = vrot.lane.b32.xlu1 %v3893_v52, %s14631_s10  ;;  %4116 = vrot.lane.b32.xlu0 %v3892_v59, %s14631_s10  ;;  %7347 = vpush %v10555_v2  ;;  %v7809_v52 = vld [vmem:[%s8310_s14 + $0x78] sm:$0x7]  ;;  %v3898_v23 = vmul.f32 %v7816_v35, %v3774_v47  ;;  %v3780_v35 = vstv %s7248_s0 }
 0x537   : > { %7349 = vpush %v10560_v57  ;;  %v10593_v59 = vrot.slane %v7809_v52, 2  ;;  %v7813_v52 = vld [vmem:[%s8310_s14 + $0x80] sm:$0x7] }
 0x538   : > { %7351 = vpush %v10566_v20  ;;  %v10606_v56 = vrot.slane %v7813_v52, 2  ;;  %v3777_v52 = vstv %s7246_s9  ;;  %s7252_s9 = spop %7251 }
 0x539   : > { %7353 = vpush %v10570_v7  ;;  %v3900_v47 = vmul.f32 %v7819_v58, %v3777_v52  ;;  %s7254_s0 = spop %7253 }
 0x53a   : > { %4122 = vrot.lane.b32.xlu1 %v3895_v24, %s14631_s10  ;;  %4120 = vrot.lane.b32.xlu0 %v3894_v27, %s14631_s10  ;;  %7355 = vpush %v10578_v15  ;;  %v7814_v27 = vld [vmem:[%s8310_s14 + $0x84] sm:$0x7] }
 0x53b   : > { %7357 = vpush %v10583_v36  ;;  %v10610_v24 = vrot.slane %v7814_v27, 2  ;;  %v7818_v27 = vld [vmem:[%s8310_s14 + $0x8c] sm:$0x7] }
 0x53c   : > { %7359 = vpush %v10589_v63  ;;  %v10625_v12 = vrot.slane %v7818_v27, 2  ;;  %v7822_v27 = vld [vmem:[%s8504_s8 + $0x1f9] sm:$0xff] }
 0x53d   : > { %7361 = vpush %v10593_v59  ;;  %v3902_v42 = vmul.f32 %v7822_v27, %v3780_v35 }
 0x53e   : > { %4126 = vrot.lane.b32.xlu1 %v3897_v16, %s14631_s10  ;;  %4124 = vrot.lane.b32.xlu0 %v3896_v19, %s14631_s10  ;;  %7363 = vpush %v10601_v4  ;;  %v7820_v16 = vld [vmem:[%s8504_s8 + $0x1e9] sm:$0xff] }
 0x53f   : > { %7365 = vpush %v10606_v56  ;;  %v3901_v19 = vmul.f32 %v7820_v16, %v3777_v52  ;;  %v7824_v52 = vld [vmem:[%s8310_s14 + $0x94] sm:$0x7]  ;;  %v7826_v16 = vld [vmem:[%s8504_s8 + $0x219] sm:$0xff] }
 0x540   : > { %7367 = vpush %v10610_v24  ;;  %v10641_v58 = vrot.slane %v7824_v52, 2  ;;  %v7828_v52 = vld [vmem:[%s8504_s8 + $0x229] sm:$0xff] }
 0x541   : > { %7369 = vpush %v10614_v26 }
 0x542   : > { %4130 = vrot.lane.b32.xlu1 %v3899_v51, %s14631_s10  ;;  %4128 = vrot.lane.b32.xlu0 %v3898_v23, %s14631_s10  ;;  %7371 = vpush %v10625_v12  ;;  %v3903_v51 = vmul.f32 %v7823_v32, %v3780_v35  ;;  %v3783_v23 = vstv %s7250_s2  ;;  %v3786_v35 = vstv %s7252_s9  ;;  %s7256_s2 = spop %7255 }
 0x543   : > { %7373 = vpush %v10633_v62  ;;  %v3904_v32 = vmul.f32 %v7825_v6, %v3783_v23  ;;  %v3906_v13 = vmul.f32 %v7828_v52, %v3786_v35  ;;  %s7258_s9 = spop %7257 }
 0x544   : > { %7375 = vpush %v10641_v58 }
 0x546   : > { %4134 = vrot.lane.b32.xlu1 %v3901_v19, %s14631_s10  ;;  %4132 = vrot.lane.b32.xlu0 %v3900_v47, %s14631_s10  ;;  %v3905_v19 = vmul.f32 %v7826_v16, %v3783_v23  ;;  %v7827_v47 = vld [vmem:[%s8310_s14 + $0x98] sm:$0x7]  ;;  %v7830_v23 = vld [vmem:[%s8310_s14 + $0x9c] sm:$0x7] }
 0x547   : > { %v10649_v27 = vrot.slane %v7827_v47, 2  ;;  %v10657_v6 = vrot.slane %v7830_v23, 2  ;;  %v7831_v16 = vld [vmem:[%s8504_s8 + $0x241] sm:$0xff]  ;;  %v3792_v47 = vstv %s7256_s2  ;;  %v7834_v23 = vld [vmem:[%s8504_s8 + $0x259] sm:$0xff] }
 0x548   : > { %v3910_v5 = vmul.f32 %v7834_v23, %v3792_v47 }
 0x549   : > { %7377 = vpush %v10649_v27 }
 0x54a   : > { %4138 = vrot.lane.b32.xlu1 %v3903_v51, %s14631_s10  ;;  %4136 = vrot.lane.b32.xlu0 %v3902_v42, %s14631_s10  ;;  %v3907_v51 = vmul.f32 %v7829_v54, %v3786_v35  ;;  %v3789_v42 = vstv %s7254_s0  ;;  %v7832_v35 = vld [vmem:[%s8504_s8 + $0x249] sm:$0xff]  ;;  %7379 = vpush %v10657_v6  ;;  %s7260_s0 = spop %7259 }
 0x54b   : > { %v3908_v54 = vmul.f32 %v7831_v16, %v3789_v42  ;;  %s7262_s2 = spop %7261 }
 0x54e   : > { %4142 = vrot.lane.b32.xlu1 %v3905_v19, %s14631_s10  ;;  %4140 = vrot.lane.b32.xlu0 %v3904_v32, %s14631_s10  ;;  %v3909_v19 = vmul.f32 %v7832_v35, %v3789_v42  ;;  %v7833_v32 = vld [vmem:[%s8310_s14 + $0xa0] sm:$0x7]  ;;  %v7836_v42 = vld [vmem:[%s8310_s14 + $0xa4] sm:$0x7] }
 0x54f   : > { %v10665_v52 = vrot.slane %v7833_v32, 2  ;;  %v10673_v16 = vrot.slane %v7836_v42, 2  ;;  %v7837_v35 = vld [vmem:[%s8504_s8 + $0x271] sm:$0xff]  ;;  %v3798_v32 = vstv %s7260_s0  ;;  %v7840_v42 = vld [vmem:[%s8504_s8 + $0x289] sm:$0xff] }
 0x550   : > { %v3914_v18 = vmul.f32 %v7840_v42, %v3798_v32 }
 0x551   : > { %7381 = vpush %v10665_v52 }
 0x552   : > { %4146 = vrot.lane.b32.xlu1 %v3907_v51, %s14631_s10  ;;  %4144 = vrot.lane.b32.xlu0 %v3906_v13, %s14631_s10  ;;  %v3911_v51 = vmul.f32 %v7835_v37, %v3792_v47  ;;  %v3795_v13 = vstv %s7258_s9  ;;  %v7838_v47 = vld [vmem:[%s8504_s8 + $0x279] sm:$0xff]  ;;  %7383 = vpush %v10673_v16  ;;  %s7264_s9 = spop %7263 }
 0x553   : > { %v3912_v37 = vmul.f32 %v7837_v35, %v3795_v13  ;;  %s7266_s0 = spop %7265 }
 0x556   : > { %4150 = vrot.lane.b32.xlu1 %v3909_v19, %s14631_s10  ;;  %4148 = vrot.lane.b32.xlu0 %v3908_v54, %s14631_s10  ;;  %v3913_v19 = vmul.f32 %v7838_v47, %v3795_v13  ;;  %v7839_v54 = vld [vmem:[%s8310_s14 + $0xa8] sm:$0x7]  ;;  %v7842_v13 = vld [vmem:[%s8310_s14 + $0xac] sm:$0x7] }
 0x557   : > { %v10681_v23 = vrot.slane %v7839_v54, 2  ;;  %v10689_v35 = vrot.slane %v7842_v13, 2  ;;  %v7843_v47 = vld [vmem:[%s8504_s8 + $0x2a1] sm:$0xff] }
 0x558   : > { %v7847_v13 = vld [vmem:[%s8504_s8 + $0x2c1] sm:$0xff] }
 0x559   : > { %7385 = vpush %v10681_v23 }
 0x55a   : > { %4154 = vrot.lane.b32.xlu1 %v3911_v51, %s14631_s10  ;;  %4152 = vrot.lane.b32.xlu0 %v3910_v5, %s14631_s10  ;;  %v3915_v51 = vmul.f32 %v7841_v9, %v3798_v32  ;;  %v3801_v5 = vstv %s7262_s2  ;;  %v7844_v32 = vld [vmem:[%s8504_s8 + $0x2a9] sm:$0xff]  ;;  %7387 = vpush %v10689_v35  ;;  %s7268_s2 = spop %7267 }
 0x55b   : > { %v3916_v9 = vmul.f32 %v7843_v47, %v3801_v5  ;;  %v3917_v54 = vmul.f32 %v7844_v32, %v3801_v5  ;;  %v7848_v47 = vld [vmem:[%s8504_s8 + $0x2d1] sm:$0xff] }
 0x55e   : > { %4158 = vrot.lane.b32.xlu1 %v3913_v19, %s14631_s10  ;;  %4156 = vrot.lane.b32.xlu0 %v3912_v37, %s14631_s10  ;;  %v3804_v19 = vstv %s7264_s9  ;;  %v7845_v37 = vld [vmem:[%s8310_s14 + $0xb0] sm:$0x7]  ;;  %s7270_s9 = spop %7269 }
 0x55f   : > { %v10697_v42 = vrot.slane %v7845_v37, 2  ;;  %v3918_v44 = vmul.f32 %v7846_v55, %v3804_v19  ;;  %v3919_v39 = vmul.f32 %v7847_v13, %v3804_v19  ;;  %v7849_v55 = vld [vmem:[%s8504_s8 + $0x2d9] sm:$0xff]  ;;  %v3810_v19 = vstv %s7268_s2 }
 0x561   : > { %7389 = vpush %v10697_v42 }
 0x562   : > { %4162 = vrot.lane.b32.xlu1 %v3915_v51, %s14631_s10  ;;  %4160 = vrot.lane.b32.xlu0 %v3914_v18, %s14631_s10  ;;  %v3807_v18 = vstv %s7266_s0  ;;  %s7272_s0 = spop %7271 }
 0x563   : > { %v3920_v32 = vmul.f32 %v7848_v47, %v3807_v18  ;;  %v3921_v37 = vmul.f32 %v7849_v55, %v3807_v18  ;;  %v7851_v47 = vld [vmem:[%s8504_s8 + $0x2e9] sm:$0xff]  ;;  %v7852_v55 = vld [vmem:[%s8504_s8 + $0x2f1] sm:$0xff]  ;;  %s7274_s2 = spop %7273 }
 0x564   : > { %v3922_v18 = vmul.f32 %v7851_v47, %v3810_v19  ;;  %v3923_v50 = vmul.f32 %v7852_v55, %v3810_v19 }
 0x566   : > { %4166 = vrot.lane.b32.xlu1 %v3917_v54, %s14631_s10  ;;  %4164 = vrot.lane.b32.xlu0 %v3916_v9, %s14631_s10  ;;  %v7850_v9 = vld [vmem:[%s8310_s14 + $0xb4] sm:$0x7]  ;;  %s7276_s14 = spop %7275 }
 0x567   : > { %v10713_v54 = vrot.slane %v7850_v9, 2 }
 0x568   : > { %v10704_v51 = vpop.permute.xlu1 %4054  ;;  %v10706_v5 = vpop.permute.xlu0 %4052 }
 0x569   : > { %14688 = vst [vmem:[#allocation368_spill] sm:$0xff] %v10704_v51  ;;  %14689 = vst [vmem:[#allocation369_spill] sm:$0xff] %v10706_v5  ;;  %v7860_v5 = vld [vmem:[%s8504_s8 + $0x339] sm:$0xff]  ;;  %v7862_v51 = vld [vmem:[%s8504_s8 + $0x351] sm:$0xff] }
 0x56a   : > { %4170 = vrot.lane.b32.xlu1 %v3919_v39, %s14631_s10  ;;  %4168 = vrot.lane.b32.xlu0 %v3918_v44, %s14631_s10  ;;  %7391 = vpush %v10713_v54  ;;  %v3813_v39 = vstv %s7270_s9  ;;  %s7278_s9 = spop %7277 }
 0x56b   : > { %7393 = vpush %v10729_v61 }
 0x56c   : > { %v10715_v13 = vpop.permute.xlu1 %4058  ;;  %v10717_v29 = vpop.permute.xlu0 %4056 }
 0x56d   : > { %14690 = vst [vmem:[#allocation370_spill] sm:$0xff] %v10715_v13  ;;  %14691 = vst [vmem:[#allocation371_spill] sm:$0xff] %v10717_v29  ;;  %v7854_v29 = vld [vmem:[%s8504_s8 + $0x301] sm:$0xff]  ;;  %v7855_v13 = vld [vmem:[%s8504_s8 + $0x309] sm:$0xff] }
 0x56e   : > { %4174 = vrot.lane.b32.xlu1 %v3921_v37, %s14631_s10  ;;  %4172 = vrot.lane.b32.xlu0 %v3920_v32, %s14631_s10  ;;  %v3924_v47 = vmul.f32 %v7854_v29, %v3813_v39  ;;  %v3925_v19 = vmul.f32 %v7855_v13, %v3813_v39  ;;  %v3816_v32 = vstv %s7272_s0  ;;  %v7857_v29 = vld [vmem:[%s8504_s8 + $0x319] sm:$0xff]  ;;  %s7280_s0 = spop %7279 }
 0x56f   : > { %v7858_v13 = vld [vmem:[%s8504_s8 + $0x321] sm:$0xff] }
 0x570   : > { %v10724_v44 = vpop.permute.xlu1 %4062  ;;  %v10726_v9 = vpop.permute.xlu0 %4060  ;;  %v3927_v39 = vmul.f32 %v7858_v13, %v3816_v32  ;;  %v7861_v13 = vld [vmem:[%s8504_s8 + $0x349] sm:$0xff] }
 0x571   : > { %14692 = vst [vmem:[#allocation372_spill] sm:$0xff] %v10724_v44  ;;  %14693 = vst [vmem:[#allocation373_spill] sm:$0xff] %v10726_v9  ;;  %v10741_v9 = vrot.slane %v7856_v0, 2  ;;  %v3926_v44 = vmul.f32 %v7857_v29, %v3816_v32  ;;  %v7859_v0 = vld [vmem:[%s8504_s8 + $0x331] sm:$0xff] }
 0x572   : > { %4178 = vrot.lane.b32.xlu1 %v3923_v50, %s14631_s10  ;;  %4176 = vrot.lane.b32.xlu0 %v3922_v18, %s14631_s10  ;;  %v3819_v50 = vstv %s7274_s2  ;;  %s7282_s2 = spop %7281 }
 0x573   : > { %7395 = vpush %v10741_v9  ;;  %v3929_v29 = vmul.f32 %v7860_v5, %v3819_v50  ;;  %v3825_v5 = vstv %s7278_s9 }
 0x574   : > { %v10736_v37 = vpop.permute.xlu1 %4066  ;;  %v10738_v55 = vpop.permute.xlu0 %4064 }
 0x575   : > { %14694 = vst [vmem:[#allocation374_spill] sm:$0xff] %v10736_v37  ;;  %14695 = vst [vmem:[#allocation375_spill] sm:$0xff] %v10738_v55  ;;  %v3928_v37 = vmul.f32 %v7859_v0, %v3819_v50  ;;  %v7863_v50 = vld [vmem:[%s8504_s8 + $0x361] sm:$0xff] }
 0x576   : > { %4182 = vrot.lane.b32.xlu1 %v3925_v19, %s14631_s10  ;;  %4180 = vrot.lane.b32.xlu0 %v3924_v47, %s14631_s10  ;;  %v3822_v47 = vstv %s7276_s14  ;;  %v3932_v0 = vmul.f32 %v7863_v50, %v3825_v5  ;;  %s7284_s14 = spop %7283 }
 0x577   : > { %s7286_s9 = spop %7285 }
 0x578   : > { %v10748_v18 = vpop.permute.xlu1 %4070  ;;  %v10750_v55 = vpop.permute.xlu0 %4068 }
 0x579   : > { %14696 = vst [vmem:[#allocation376_spill] sm:$0xff] %v10748_v18  ;;  %14697 = vst [vmem:[#allocation377_spill] sm:$0xff] %v10750_v55  ;;  %v3930_v18 = vmul.f32 %v7861_v13, %v3822_v47  ;;  %v3931_v55 = vmul.f32 %v7862_v51, %v3822_v47  ;;  %v3828_v51 = vstv %s7280_s0  ;;  %v7865_v47 = vld [vmem:[%s8504_s8 + $0x379] sm:$0xff]  ;;  %s7288_s0 = spop %7287 }
 0x57a   : > { %4186 = vrot.lane.b32.xlu1 %v3927_v39, %s14631_s10  ;;  %4184 = vrot.lane.b32.xlu0 %v3926_v44, %s14631_s10  ;;  %v3934_v13 = vmul.f32 %v7865_v47, %v3828_v51  ;;  %v7868_v47 = vld [vmem:[%s8504_s8 + $0x399] sm:$0xff] }
 0x57c   : > { %v10756_v19 = vpop.permute.xlu1 %4074  ;;  %v10758_v32 = vpop.permute.xlu0 %4072 }
 0x57d   : > { %14698 = vst [vmem:[#allocation378_spill] sm:$0xff] %v10756_v19  ;;  %14699 = vst [vmem:[#allocation379_spill] sm:$0xff] %v10758_v32  ;;  %v7864_v19 = vld [vmem:[%s8504_s8 + $0x369] sm:$0xff] }
 0x57e   : > { %4190 = vrot.lane.b32.xlu1 %v3929_v29, %s14631_s10  ;;  %4188 = vrot.lane.b32.xlu0 %v3928_v37, %s14631_s10  ;;  %v3933_v32 = vmul.f32 %v7864_v19, %v3825_v5  ;;  %v3831_v19 = vstv %s7282_s2  ;;  %v7867_v5 = vld [vmem:[%s8504_s8 + $0x391] sm:$0xff]  ;;  %s7290_s2 = spop %7289 }
 0x57f   : > { %v3936_v50 = vmul.f32 %v7867_v5, %v3831_v19 }
 0x580   : > { %v10764_v39 = vpop.permute.xlu1 %4078  ;;  %v10766_v44 = vpop.permute.xlu0 %4076 }
 0x581   : > { %14700 = vst [vmem:[#allocation380_spill] sm:$0xff] %v10764_v39  ;;  %14701 = vst [vmem:[#allocation381_spill] sm:$0xff] %v10766_v44  ;;  %v7866_v39 = vld [vmem:[%s8504_s8 + $0x381] sm:$0xff] }
 0x582   : > { %4194 = vrot.lane.b32.xlu1 %v3931_v55, %s14631_s10  ;;  %4192 = vrot.lane.b32.xlu0 %v3930_v18, %s14631_s10  ;;  %v3935_v44 = vmul.f32 %v7866_v39, %v3828_v51  ;;  %v3937_v39 = vmul.f32 %v7868_v47, %v3831_v19  ;;  %v3834_v51 = vstv %s7284_s14  ;;  %v3837_v47 = vstv %s7286_s9  ;;  %s7292_s14 = spop %7291 }
 0x583   : > { %s7294_s9 = spop %7293 }
 0x584   : > { %v10772_v29 = vpop.permute.xlu1 %4082  ;;  %v10774_v37 = vpop.permute.xlu0 %4080 }
 0x585   : > { %14702 = vst [vmem:[#allocation382_spill] sm:$0xff] %v10772_v29  ;;  %14703 = vst [vmem:[#allocation383_spill] sm:$0xff] %v10774_v37  ;;  %v7886_v37 = vld [vmem:[%s8504_s8 + $0x471] sm:$0xff] }
 0x586   : > { %4198 = vrot.lane.b32.xlu1 %v3933_v32, %s14631_s10  ;;  %4196 = vrot.lane.b32.xlu0 %v3932_v0, %s14631_s10 }
 0x588   : > { %v10780_v55 = vpop.permute.xlu1 %4086  ;;  %v10782_v18 = vpop.permute.xlu0 %4084 }
 0x589   : > { %14704 = vst [vmem:[#allocation384_spill] sm:$0xff] %v10780_v55  ;;  %14705 = vst [vmem:[#allocation385_spill] sm:$0xff] %v10782_v18  ;;  %v7869_v18 = vld [vmem:[%s8504_s8 + $0x3a9] sm:$0xff]  ;;  %v7870_v55 = vld [vmem:[%s8504_s8 + $0x3b1] sm:$0xff] }
 0x58a   : > { %4202 = vrot.lane.b32.xlu1 %v3935_v44, %s14631_s10  ;;  %4200 = vrot.lane.b32.xlu0 %v3934_v13, %s14631_s10  ;;  %v3938_v44 = vmul.f32 %v7869_v18, %v3834_v51  ;;  %v3939_v13 = vmul.f32 %v7870_v55, %v3834_v51  ;;  %v3840_v51 = vstv %s7288_s0  ;;  %s7296_s0 = spop %7295 }
 0x58c   : > { %v10788_v32 = vpop.permute.xlu1 %4090  ;;  %v10790_v0 = vpop.permute.xlu0 %4088 }
 0x58d   : > { %14706 = vst [vmem:[#allocation386_spill] sm:$0xff] %v10788_v32  ;;  %14707 = vst [vmem:[#allocation387_spill] sm:$0xff] %v10790_v0  ;;  %v7871_v0 = vld [vmem:[%s8504_s8 + $0x3c1] sm:$0xff]  ;;  %v7872_v32 = vld [vmem:[%s8504_s8 + $0x3c9] sm:$0xff] }
 0x58e   : > { %4206 = vrot.lane.b32.xlu1 %v3937_v39, %s14631_s10  ;;  %4204 = vrot.lane.b32.xlu0 %v3936_v50, %s14631_s10  ;;  %v3940_v39 = vmul.f32 %v7871_v0, %v3837_v47  ;;  %v3941_v50 = vmul.f32 %v7872_v32, %v3837_v47  ;;  %v3843_v47 = vstv %s7290_s2  ;;  %s7298_s2 = spop %7297 }
 0x590   : > { %v10796_v5 = vpop.permute.xlu1 %4094  ;;  %v10798_v19 = vpop.permute.xlu0 %4092 }
 0x591   : > { %14708 = vst [vmem:[#allocation388_spill] sm:$0xff] %v10796_v5  ;;  %14709 = vst [vmem:[#allocation389_spill] sm:$0xff] %v10798_v19  ;;  %v7873_v19 = vld [vmem:[%s8504_s8 + $0x3d9] sm:$0xff]  ;;  %v7874_v5 = vld [vmem:[%s8504_s8 + $0x3e1] sm:$0xff] }
 0x592   : > { %4210 = vrot.lane.b32.xlu1 %v3939_v13, %s14631_s10  ;;  %4208 = vrot.lane.b32.xlu0 %v3938_v44, %s14631_s10  ;;  %v3942_v13 = vmul.f32 %v7873_v19, %v3840_v51  ;;  %v3943_v44 = vmul.f32 %v7874_v5, %v3840_v51  ;;  %v3846_v51 = vstv %s7292_s14  ;;  %s7300_s14 = spop %7299 }
 0x594   : > { %v10804_v18 = vpop.permute.xlu1 %4098  ;;  %v10806_v55 = vpop.permute.xlu0 %4096 }
 0x595   : > { %14710 = vst [vmem:[#allocation390_spill] sm:$0xff] %v10804_v18  ;;  %14711 = vst [vmem:[#allocation391_spill] sm:$0xff] %v10806_v55  ;;  %v7875_v55 = vld [vmem:[%s8504_s8 + $0x3f1] sm:$0xff]  ;;  %v7876_v18 = vld [vmem:[%s8504_s8 + $0x3f9] sm:$0xff] }
 0x596   : > { %4214 = vrot.lane.b32.xlu1 %v3941_v50, %s14631_s10  ;;  %4212 = vrot.lane.b32.xlu0 %v3940_v39, %s14631_s10  ;;  %v3944_v50 = vmul.f32 %v7875_v55, %v3843_v47  ;;  %v3945_v39 = vmul.f32 %v7876_v18, %v3843_v47  ;;  %v3849_v47 = vstv %s7294_s9  ;;  %s11078_s9 = spop %7301 }
 0x597   : > { %14784 = sst [smem:[#allocation464_spill]] %s11078_s9 }
 0x598   : > { %v10812_v0 = vpop.permute.xlu1 %4102  ;;  %v10814_v32 = vpop.permute.xlu0 %4100 }
 0x599   : > { %14712 = vst [vmem:[#allocation392_spill] sm:$0xff] %v10812_v0  ;;  %14713 = vst [vmem:[#allocation393_spill] sm:$0xff] %v10814_v32  ;;  %v7877_v32 = vld [vmem:[%s8504_s8 + $0x409] sm:$0xff]  ;;  %v7878_v0 = vld [vmem:[%s8504_s8 + $0x411] sm:$0xff] }
 0x59a   : > { %4218 = vrot.lane.b32.xlu1 %v3943_v44, %s14631_s10  ;;  %4216 = vrot.lane.b32.xlu0 %v3942_v13, %s14631_s10  ;;  %v3946_v44 = vmul.f32 %v7877_v32, %v3846_v51  ;;  %v3947_v13 = vmul.f32 %v7878_v0, %v3846_v51  ;;  %v3852_v51 = vstv %s7296_s0  ;;  %s11080_s0 = spop %7303 }
 0x59b   : > { %14785 = sst [smem:[#allocation465_spill]] %s11080_s0 }
 0x59c   : > { %v10820_v19 = vpop.permute.xlu1 %4106  ;;  %v10822_v5 = vpop.permute.xlu0 %4104 }
 0x59d   : > { %14714 = vst [vmem:[#allocation394_spill] sm:$0xff] %v10820_v19  ;;  %14715 = vst [vmem:[#allocation395_spill] sm:$0xff] %v10822_v5  ;;  %v7879_v5 = vld [vmem:[%s8504_s8 + $0x421] sm:$0xff]  ;;  %v7880_v19 = vld [vmem:[%s8504_s8 + $0x429] sm:$0xff] }
 0x59e   : > { %4222 = vrot.lane.b32.xlu1 %v3945_v39, %s14631_s10  ;;  %4220 = vrot.lane.b32.xlu0 %v3944_v50, %s14631_s10  ;;  %v3948_v39 = vmul.f32 %v7879_v5, %v3849_v47  ;;  %v3949_v50 = vmul.f32 %v7880_v19, %v3849_v47  ;;  %v3855_v47 = vstv %s7298_s2  ;;  %s11082_s2 = spop %7305 }
 0x59f   : > { %14786 = sst [smem:[#allocation466_spill]] %s11082_s2 }
 0x5a0   : > { %v10828_v55 = vpop.permute.xlu1 %4110  ;;  %v10830_v18 = vpop.permute.xlu0 %4108 }
 0x5a1   : > { %14716 = vst [vmem:[#allocation396_spill] sm:$0xff] %v10828_v55  ;;  %14717 = vst [vmem:[#allocation397_spill] sm:$0xff] %v10830_v18  ;;  %v7881_v18 = vld [vmem:[%s8504_s8 + $0x439] sm:$0xff]  ;;  %v7882_v55 = vld [vmem:[%s8504_s8 + $0x441] sm:$0xff] }
 0x5a2   : > { %4226 = vrot.lane.b32.xlu1 %v3947_v13, %s14631_s10  ;;  %4224 = vrot.lane.b32.xlu0 %v3946_v44, %s14631_s10  ;;  %v3950_v13 = vmul.f32 %v7881_v18, %v3852_v51  ;;  %v3951_v44 = vmul.f32 %v7882_v55, %v3852_v51  ;;  %v3858_v51 = vstv %s7300_s14  ;;  %s11084_s14 = spop %7307 }
 0x5a3   : > { %14787 = sst [smem:[#allocation467_spill]] %s11084_s14  ;;  %s11086_s1 = spop %7309 }
 0x5a4   : > { %v10836_v32 = vpop.permute.xlu1 %4114  ;;  %v10838_v0 = vpop.permute.xlu0 %4112  ;;  %14788 = sst [smem:[#allocation468_spill]] %s11086_s1  ;;  %s11088_s11 = spop %7311 }
 0x5a5   : > { %14718 = vst [vmem:[#allocation398_spill] sm:$0xff] %v10836_v32  ;;  %14719 = vst [vmem:[#allocation399_spill] sm:$0xff] %v10838_v0  ;;  %v7883_v0 = vld [vmem:[%s8504_s8 + $0x451] sm:$0xff]  ;;  %v7884_v32 = vld [vmem:[%s8504_s8 + $0x459] sm:$0xff]  ;;  %14789 = sst [smem:[#allocation469_spill]] %s11088_s11  ;;  %s11090_s12 = spop %7313 }
 0x5a6   : > { %4230 = vrot.lane.b32.xlu1 %v3949_v50, %s14631_s10  ;;  %4228 = vrot.lane.b32.xlu0 %v3948_v39, %s14631_s10  ;;  %v3952_v50 = vmul.f32 %v7883_v0, %v3855_v47  ;;  %v3953_v39 = vmul.f32 %v7884_v32, %v3855_v47  ;;  %14790 = sst [smem:[#allocation470_spill]] %s11090_s12  ;;  %s11092_s9 = spop %7315 }
 0x5a7   : > { %14791 = sst [smem:[#allocation471_spill]] %s11092_s9  ;;  %s11094_s0 = spop %7317 }
 0x5a8   : > { %v10844_v5 = vpop.permute.xlu1 %4118  ;;  %v10846_v19 = vpop.permute.xlu0 %4116  ;;  %14792 = sst [smem:[#allocation472_spill]] %s11094_s0  ;;  %s11096_s2 = spop %7319 }
 0x5a9   : > { %14720 = vst [vmem:[#allocation400_spill] sm:$0xff] %v10844_v5  ;;  %14721 = vst [vmem:[#allocation401_spill] sm:$0xff] %v10846_v19  ;;  %v7885_v19 = vld [vmem:[%s8504_s8 + $0x469] sm:$0xff]  ;;  %14793 = sst [smem:[#allocation473_spill]] %s11096_s2  ;;  %s11098_s13 = spop %7321 }
 0x5aa   : > { %4234 = vrot.lane.b32.xlu1 %v3951_v44, %s14631_s10  ;;  %4232 = vrot.lane.b32.xlu0 %v3950_v13, %s14631_s10  ;;  %v3954_v5 = vmul.f32 %v7885_v19, %v3858_v51  ;;  %v3955_v44 = vmul.f32 %v7886_v37, %v3858_v51  ;;  %14794 = sst [smem:[#allocation474_spill]] %s11098_s13  ;;  %s11100_s1 = spop %7323 }
 0x5ab   : > { %14795 = sst [smem:[#allocation475_spill]] %s11100_s1  ;;  %s11102_s11 = spop %7325 }
 0x5ac   : > { %v10852_v18 = vpop.permute.xlu1 %4122  ;;  %v10854_v55 = vpop.permute.xlu0 %4120  ;;  %14796 = sst [smem:[#allocation476_spill]] %s11102_s11  ;;  %s11104_s12 = spop %7327 }
 0x5ad   : > { %14722 = vst [vmem:[#allocation402_spill] sm:$0xff] %v10852_v18  ;;  %14723 = vst [vmem:[#allocation403_spill] sm:$0xff] %v10854_v55  ;;  %14797 = sst [smem:[#allocation477_spill]] %s11104_s12  ;;  %s11106_s14 = spop %7329 }
 0x5ae   : > { %4238 = vrot.lane.b32.xlu1 %v3953_v39, %s14631_s10  ;;  %4236 = vrot.lane.b32.xlu0 %v3952_v50, %s14631_s10  ;;  %14798 = sst [smem:[#allocation478_spill]] %s11106_s14  ;;  %s11108_s0 = spop %7331 }
 0x5af   : > { %14799 = sst [smem:[#allocation479_spill]] %s11108_s0  ;;  %s11110_s2 = spop %7333 }
 0x5b0   : > { %v10860_v29 = vpop.permute.xlu1 %4126  ;;  %v10862_v13 = vpop.permute.xlu0 %4124  ;;  %14800 = sst [smem:[#allocation480_spill]] %s11110_s2  ;;  %s11112_s13 = spop %7335 }
 0x5b1   : > { %14724 = vst [vmem:[#allocation404_spill] sm:$0xff] %v10860_v29  ;;  %14725 = vst [vmem:[#allocation405_spill] sm:$0xff] %v10862_v13  ;;  %14801 = sst [smem:[#allocation481_spill]] %s11112_s13  ;;  %s11114_s9 = spop %7337  ;;  %v4439_v29 = vld [vmem:[%s8504_s8 + $0x22] sm:$0xff] }
 0x5b2   : > { %4242 = vrot.lane.b32.xlu1 %v3955_v44, %s14631_s10  ;;  %4240 = vrot.lane.b32.xlu0 %v3954_v5, %s14631_s10  ;;  %14802 = sst [smem:[#allocation482_spill]] %s11114_s9  ;;  %s11116_s11 = spop %7339 }
 0x5b3   : > { %14803 = sst [smem:[#allocation483_spill]] %s11116_s11  ;;  %s11118_s12 = spop %7341 }
 0x5b4   : > { %v10866_v32 = vpop.permute.xlu1 %4130  ;;  %v10868_v0 = vpop.permute.xlu0 %4128  ;;  %14804 = sst [smem:[#allocation484_spill]] %s11118_s12  ;;  %s11120_s14 = spop %7343 }
 0x5b5   : > { %14726 = vst [vmem:[#allocation406_spill] sm:$0xff] %v10866_v32  ;;  %14727 = vst [vmem:[#allocation407_spill] sm:$0xff] %v10868_v0  ;;  %14805 = sst [smem:[#allocation485_spill]] %s11120_s14  ;;  %s11122_s1 = spop %7345 }
 0x5b6   : > { %4916 = vrot.lane.b32.xlu0 %v10425_v41, %s14350_s15  ;;  %4918 = vrot.lane.b32.xlu1 %v10430_v31, %s14350_s15  ;;  %14806 = sst [smem:[#allocation486_spill]] %s11122_s1  ;;  %s11124_s2 = spop %7347 }
 0x5b7   : > { %14807 = sst [smem:[#allocation487_spill]] %s11124_s2  ;;  %s11126_s13 = spop %7349 }
 0x5b8   : > { %v10874_v19 = vpop.permute.xlu1 %4134  ;;  %v10876_v37 = vpop.permute.xlu0 %4132  ;;  %14808 = sst [smem:[#allocation488_spill]] %s11126_s13  ;;  %s11128_s9 = spop %7351 }
 0x5b9   : > { %14728 = vst [vmem:[#allocation408_spill] sm:$0xff] %v10874_v19  ;;  %14729 = vst [vmem:[#allocation409_spill] sm:$0xff] %v10876_v37  ;;  %14809 = sst [smem:[#allocation489_spill]] %s11128_s9  ;;  %s11130_s0 = spop %7353 }
 0x5ba   : > { %4920 = vrot.lane.b32.xlu0 %v10433_v30, %s14350_s15  ;;  %4922 = vrot.lane.b32.xlu1 %v10440_v11, %s14350_s15  ;;  %14810 = sst [smem:[#allocation490_spill]] %s11130_s0  ;;  %s11132_s12 = spop %7355 }
 0x5bb   : > { %14811 = sst [smem:[#allocation491_spill]] %s11132_s12  ;;  %s11134_s14 = spop %7357 }
 0x5bc   : > { %v10882_v5 = vpop.permute.xlu1 %4138  ;;  %v10884_v47 = vpop.permute.xlu0 %4136  ;;  %14812 = sst [smem:[#allocation492_spill]] %s11134_s14  ;;  %s11136_s1 = spop %7359 }
 0x5bd   : > { %14730 = vst [vmem:[#allocation410_spill] sm:$0xff] %v10882_v5  ;;  %14731 = vst [vmem:[#allocation411_spill] sm:$0xff] %v10884_v47  ;;  %14813 = sst [smem:[#allocation493_spill]] %s11136_s1  ;;  %s11138_s11 = spop %7361 }
 0x5be   : > { %4924 = vrot.lane.b32.xlu0 %v10445_v46, %s14350_s15  ;;  %4926 = vrot.lane.b32.xlu1 %v10451_v21, %s14350_s15  ;;  %14814 = sst [smem:[#allocation494_spill]] %s11138_s11  ;;  %s11140_s13 = spop %7363 }
 0x5bf   : > { %s11142_s9 = spop %7365 }
 0x5c0   : > { %v10890_v50 = vpop.permute.xlu1 %4142  ;;  %v10892_v39 = vpop.permute.xlu0 %4140  ;;  %14815 = sst [smem:[#allocation495_spill]] %s11142_s9  ;;  %s11144_s0 = spop %7367 }
 0x5c1   : > { %14732 = vst [vmem:[#allocation412_spill] sm:$0xff] %v10890_v50  ;;  %14733 = vst [vmem:[#allocation413_spill] sm:$0xff] %v10892_v39  ;;  %14816 = sst [smem:[#allocation496_spill]] %s11144_s0  ;;  %s11146_s2 = spop %7369 }
 0x5c2   : > { %4928 = vrot.lane.b32.xlu0 %v10455_v10, %s14350_s15  ;;  %4930 = vrot.lane.b32.xlu1 %v10463_v38, %s14350_s15  ;;  %14817 = sst [smem:[#allocation497_spill]] %s11146_s2  ;;  %s11148_s14 = spop %7371 }
 0x5c3   : > { %14818 = sst [smem:[#allocation498_spill]] %s11148_s14  ;;  %s11150_s1 = spop %7373 }
 0x5c4   : > { %v10898_v51 = vpop.permute.xlu1 %4146  ;;  %v10900_v44 = vpop.permute.xlu0 %4144  ;;  %14819 = sst [smem:[#allocation499_spill]] %s11150_s1  ;;  %s11152_s11 = spop %7375 }
 0x5c5   : > { %14734 = vst [vmem:[#allocation414_spill] sm:$0xff] %v10898_v51  ;;  %14735 = vst [vmem:[#allocation415_spill] sm:$0xff] %v10900_v44  ;;  %14820 = sst [smem:[#allocation500_spill]] %s11152_s11  ;;  %s11154_s12 = spop %7377 }
 0x5c6   : > { %4932 = vrot.lane.b32.xlu0 %v10468_v3, %s14350_s15  ;;  %4934 = vrot.lane.b32.xlu1 %v10474_v1, %s14350_s15  ;;  %14821 = sst [smem:[#allocation501_spill]] %s11154_s12  ;;  %s11156_s9 = spop %7379 }
 0x5c7   : > { %14822 = sst [smem:[#allocation502_spill]] %s11156_s9  ;;  %s11158_s0 = spop %7381 }
 0x5c8   : > { %v10906_v47 = vpop.permute.xlu1 %4150  ;;  %v10908_v50 = vpop.permute.xlu0 %4148  ;;  %s11160_s2 = spop %7383 }
 0x5c9   : > { %14736 = vst [vmem:[#allocation416_spill] sm:$0xff] %v10906_v47  ;;  %14737 = vst [vmem:[#allocation417_spill] sm:$0xff] %v10908_v50  ;;  %14823 = sst [smem:[#allocation503_spill]] %s11160_s2  ;;  %s11162_s14 = spop %7385 }
 0x5ca   : > { %4936 = vrot.lane.b32.xlu0 %v10478_v34, %s14350_s15  ;;  %4938 = vrot.lane.b32.xlu1 %v10486_v14, %s14350_s15  ;;  %14824 = sst [smem:[#allocation504_spill]] %s11162_s14  ;;  %s11164_s1 = spop %7387 }
 0x5cb   : > { %14825 = sst [smem:[#allocation505_spill]] %s11164_s1  ;;  %s11166_s12 = spop %7389 }
 0x5cc   : > { %v10914_v39 = vpop.permute.xlu1 %4154  ;;  %v10916_v51 = vpop.permute.xlu0 %4152  ;;  %s11168_s11 = spop %7391 }
 0x5cd   : > { %14738 = vst [vmem:[#allocation418_spill] sm:$0xff] %v10914_v39  ;;  %14739 = vst [vmem:[#allocation419_spill] sm:$0xff] %v10916_v51  ;;  %s11170_s9 = spop %7393 }
 0x5ce   : > { %4940 = vrot.lane.b32.xlu0 %v10491_v8, %s14350_s15  ;;  %4942 = vrot.lane.b32.xlu1 %v10497_v17, %s14350_s15  ;;  %s11172_s2 = spop %7395 }
 0x5cf   : > { %14826 = sst [smem:[#allocation506_spill]] %s11172_s2 }
 0x5d0   : > { %v10922_v44 = vpop.permute.xlu1 %4158  ;;  %v10924_v47 = vpop.permute.xlu0 %4156 }
 0x5d1   : > { %14740 = vst [vmem:[#allocation420_spill] sm:$0xff] %v10922_v44  ;;  %14741 = vst [vmem:[#allocation421_spill] sm:$0xff] %v10924_v47 }
 0x5d2   : > { %4944 = vrot.lane.b32.xlu0 %v10501_v22, %s14350_s15  ;;  %4946 = vrot.lane.b32.xlu1 %v10509_v28, %s14350_s15 }
 0x5d4   : > { %v10930_v50 = vpop.permute.xlu1 %4162  ;;  %v10932_v39 = vpop.permute.xlu0 %4160 }
 0x5d5   : > { %14742 = vst [vmem:[#allocation422_spill] sm:$0xff] %v10930_v50  ;;  %14743 = vst [vmem:[#allocation423_spill] sm:$0xff] %v10932_v39 }
 0x5d6   : > { %4948 = vrot.lane.b32.xlu0 %v10514_v48, %s14350_s15  ;;  %4950 = vrot.lane.b32.xlu1 %v10520_v33, %s14350_s15 }
 0x5d8   : > { %v10938_v51 = vpop.permute.xlu1 %4166  ;;  %v10940_v44 = vpop.permute.xlu0 %4164 }
 0x5d9   : > { %14744 = vst [vmem:[#allocation424_spill] sm:$0xff] %v10938_v51  ;;  %14745 = vst [vmem:[#allocation425_spill] sm:$0xff] %v10940_v44 }
 0x5da   : > { %4952 = vrot.lane.b32.xlu0 %v10524_v40, %s14350_s15  ;;  %4954 = vrot.lane.b32.xlu1 %v10532_v45, %s14350_s15 }
 0x5dc   : > { %v10946_v47 = vpop.permute.xlu1 %4170  ;;  %v10948_v50 = vpop.permute.xlu0 %4168 }
 0x5dd   : > { %14746 = vst [vmem:[#allocation426_spill] sm:$0xff] %v10946_v47  ;;  %14747 = vst [vmem:[#allocation427_spill] sm:$0xff] %v10948_v50 }
 0x5de   : > { %4956 = vrot.lane.b32.xlu0 %v10537_v60, %s14350_s15  ;;  %4958 = vrot.lane.b32.xlu1 %v10543_v43, %s14350_s15 }
 0x5e0   : > { %v10954_v39 = vpop.permute.xlu1 %4174  ;;  %v10956_v51 = vpop.permute.xlu0 %4172 }
 0x5e1   : > { %14748 = vst [vmem:[#allocation428_spill] sm:$0xff] %v10954_v39  ;;  %14749 = vst [vmem:[#allocation429_spill] sm:$0xff] %v10956_v51 }
 0x5e2   : > { %4960 = vrot.lane.b32.xlu0 %v10547_v53, %s14350_s15  ;;  %4962 = vrot.lane.b32.xlu1 %v10555_v2, %s14350_s15 }
 0x5e4   : > { %v10962_v44 = vpop.permute.xlu1 %4178  ;;  %v10964_v47 = vpop.permute.xlu0 %4176 }
 0x5e5   : > { %14750 = vst [vmem:[#allocation430_spill] sm:$0xff] %v10962_v44  ;;  %14751 = vst [vmem:[#allocation431_spill] sm:$0xff] %v10964_v47 }
 0x5e6   : > { %4964 = vrot.lane.b32.xlu0 %v10560_v57, %s14350_s15  ;;  %4966 = vrot.lane.b32.xlu1 %v10566_v20, %s14350_s15 }
 0x5e8   : > { %v10970_v50 = vpop.permute.xlu1 %4182  ;;  %v10972_v39 = vpop.permute.xlu0 %4180 }
 0x5e9   : > { %14752 = vst [vmem:[#allocation432_spill] sm:$0xff] %v10970_v50  ;;  %14753 = vst [vmem:[#allocation433_spill] sm:$0xff] %v10972_v39 }
 0x5ea   : > { %4968 = vrot.lane.b32.xlu0 %v10570_v7, %s14350_s15  ;;  %4970 = vrot.lane.b32.xlu1 %v10578_v15, %s14350_s15 }
 0x5ec   : > { %v10978_v51 = vpop.permute.xlu1 %4186  ;;  %v10980_v44 = vpop.permute.xlu0 %4184 }
 0x5ed   : > { %14754 = vst [vmem:[#allocation434_spill] sm:$0xff] %v10978_v51  ;;  %14755 = vst [vmem:[#allocation435_spill] sm:$0xff] %v10980_v44 }
 0x5ee   : > { %4972 = vrot.lane.b32.xlu0 %v10583_v36, %s14350_s15  ;;  %4974 = vrot.lane.b32.xlu1 %v10589_v63, %s14350_s15 }
 0x5f0   : > { %v10986_v47 = vpop.permute.xlu1 %4190  ;;  %v10988_v50 = vpop.permute.xlu0 %4188 }
 0x5f1   : > { %14756 = vst [vmem:[#allocation436_spill] sm:$0xff] %v10986_v47  ;;  %14757 = vst [vmem:[#allocation437_spill] sm:$0xff] %v10988_v50 }
 0x5f2   : > { %4976 = vrot.lane.b32.xlu0 %v10593_v59, %s14350_s15  ;;  %4978 = vrot.lane.b32.xlu1 %v10601_v4, %s14350_s15 }
 0x5f4   : > { %v10994_v39 = vpop.permute.xlu1 %4194  ;;  %v10996_v51 = vpop.permute.xlu0 %4192 }
 0x5f5   : > { %14758 = vst [vmem:[#allocation438_spill] sm:$0xff] %v10994_v39  ;;  %14759 = vst [vmem:[#allocation439_spill] sm:$0xff] %v10996_v51 }
 0x5f6   : > { %4980 = vrot.lane.b32.xlu0 %v10606_v56, %s14350_s15  ;;  %4982 = vrot.lane.b32.xlu1 %v10610_v24, %s14350_s15 }
 0x5f8   : > { %v11002_v44 = vpop.permute.xlu1 %4198  ;;  %v11004_v47 = vpop.permute.xlu0 %4196 }
 0x5f9   : > { %14760 = vst [vmem:[#allocation440_spill] sm:$0xff] %v11002_v44  ;;  %14761 = vst [vmem:[#allocation441_spill] sm:$0xff] %v11004_v47 }
 0x5fa   : > { %4984 = vrot.lane.b32.xlu0 %v10614_v26, %s14350_s15  ;;  %4986 = vrot.lane.b32.xlu1 %v10625_v12, %s14350_s15 }
 0x5fc   : > { %v11010_v50 = vpop.permute.xlu1 %4202  ;;  %v11012_v39 = vpop.permute.xlu0 %4200 }
 0x5fd   : > { %14762 = vst [vmem:[#allocation442_spill] sm:$0xff] %v11010_v50  ;;  %14763 = vst [vmem:[#allocation443_spill] sm:$0xff] %v11012_v39 }
 0x5fe   : > { %4990 = vrot.lane.b32.xlu1 %v10641_v58, %s14350_s15  ;;  %4988 = vrot.lane.b32.xlu0 %v10633_v62, %s14350_s15 }
 0x600   : > { %v11018_v51 = vpop.permute.xlu1 %4206  ;;  %v11020_v44 = vpop.permute.xlu0 %4204 }
 0x601   : > { %14764 = vst [vmem:[#allocation444_spill] sm:$0xff] %v11018_v51  ;;  %14765 = vst [vmem:[#allocation445_spill] sm:$0xff] %v11020_v44 }
 0x602   : > { %4994 = vrot.lane.b32.xlu1 %v10657_v6, %s14350_s15  ;;  %4992 = vrot.lane.b32.xlu0 %v10649_v27, %s14350_s15 }
 0x604   : > { %v11026_v47 = vpop.permute.xlu1 %4210  ;;  %v11028_v50 = vpop.permute.xlu0 %4208 }
 0x605   : > { %14766 = vst [vmem:[#allocation446_spill] sm:$0xff] %v11026_v47  ;;  %14767 = vst [vmem:[#allocation447_spill] sm:$0xff] %v11028_v50 }
 0x606   : > { %4998 = vrot.lane.b32.xlu1 %v10673_v16, %s14350_s15  ;;  %4996 = vrot.lane.b32.xlu0 %v10665_v52, %s14350_s15 }
 0x608   : > { %v11034_v39 = vpop.permute.xlu1 %4214  ;;  %v11036_v51 = vpop.permute.xlu0 %4212 }
 0x609   : > { %14768 = vst [vmem:[#allocation448_spill] sm:$0xff] %v11034_v39  ;;  %14769 = vst [vmem:[#allocation449_spill] sm:$0xff] %v11036_v51 }
 0x60a   : > { %5002 = vrot.lane.b32.xlu1 %v10689_v35, %s14350_s15  ;;  %5000 = vrot.lane.b32.xlu0 %v10681_v23, %s14350_s15 }
 0x60c   : > { %v11042_v44 = vpop.permute.xlu1 %4218  ;;  %v11044_v47 = vpop.permute.xlu0 %4216 }
 0x60d   : > { %14770 = vst [vmem:[#allocation450_spill] sm:$0xff] %v11042_v44  ;;  %14771 = vst [vmem:[#allocation451_spill] sm:$0xff] %v11044_v47 }
 0x60e   : > { %5006 = vrot.lane.b32.xlu1 %v10713_v54, %s14350_s15  ;;  %5004 = vrot.lane.b32.xlu0 %v10697_v42, %s14350_s15 }
 0x610   : > { %v11050_v50 = vpop.permute.xlu1 %4222  ;;  %v11052_v39 = vpop.permute.xlu0 %4220 }
 0x611   : > { %14772 = vst [vmem:[#allocation452_spill] sm:$0xff] %v11050_v50  ;;  %14773 = vst [vmem:[#allocation453_spill] sm:$0xff] %v11052_v39 }
 0x612   : > { %5010 = vrot.lane.b32.xlu1 %v10741_v9, %s14350_s15  ;;  %5008 = vrot.lane.b32.xlu0 %v10729_v61, %s14350_s15 }
 0x614   : > { %v11058_v51 = vpop.permute.xlu1 %4226  ;;  %v11060_v44 = vpop.permute.xlu0 %4224 }
 0x615   : > { %14774 = vst [vmem:[#allocation454_spill] sm:$0xff] %v11058_v51  ;;  %14775 = vst [vmem:[#allocation455_spill] sm:$0xff] %v11060_v44  ;;  %v4438_v44 = vld [vmem:[%s8504_s8 + $0x1a] sm:$0xff] }
 0x618   : > { %v11062_v47 = vpop.permute.xlu1 %4230  ;;  %v11064_v5 = vpop.permute.xlu0 %4228 }
 0x619   : > { %14776 = vst [vmem:[#allocation456_spill] sm:$0xff] %v11062_v47  ;;  %14777 = vst [vmem:[#allocation457_spill] sm:$0xff] %v11064_v5 }
 0x61c   : > { %v11066_v37 = vpop.permute.xlu1 %4234  ;;  %v11068_v19 = vpop.permute.xlu0 %4232 }
 0x61d   : > { %14778 = vst [vmem:[#allocation458_spill] sm:$0xff] %v11066_v37  ;;  %14779 = vst [vmem:[#allocation459_spill] sm:$0xff] %v11068_v19 }
 0x620   : > { %v11070_v50 = vpop.permute.xlu1 %4238  ;;  %v11072_v39 = vpop.permute.xlu0 %4236 }
 0x621   : > { %14780 = vst [vmem:[#allocation460_spill] sm:$0xff] %v11070_v50  ;;  %14781 = vst [vmem:[#allocation461_spill] sm:$0xff] %v11072_v39 }
 0x624   : > { %v11074_v0 = vpop.permute.xlu1 %4242  ;;  %v11076_v32 = vpop.permute.xlu0 %4240 }
 0x625   : > { %14782 = vst [vmem:[#allocation462_spill] sm:$0xff] %v11074_v0  ;;  %14783 = vst [vmem:[#allocation463_spill] sm:$0xff] %v11076_v32  ;;  %v4437_v0 = vld [vmem:[%s8504_s8 + $0xa] sm:$0xff] }
 0x628   : > { %v4917_v13 = vpop.permute.xlu0 %4916  ;;  %v4919_v51 = vpop.permute.xlu1 %4918 }
 0x629   : > { %7397 = vpush %v4917_v13 }
 0x62a   : > { %7399 = vpush %v4919_v51 }
 0x62c   : > { %v4921_v37 = vpop.permute.xlu0 %4920  ;;  %v4923_v19 = vpop.permute.xlu1 %4922 }
 0x62d   : > { %7401 = vpush %v4921_v37 }
 0x62e   : > { %7403 = vpush %v4923_v19 }
 0x630   : > { %v4925_v13 = vpop.permute.xlu0 %4924  ;;  %v4927_v32 = vpop.permute.xlu1 %4926 }
 0x631   : > { %7405 = vpush %v4925_v13 }
 0x632   : > { %7407 = vpush %v4927_v32 }
 0x634   : > { %v4929_v37 = vpop.permute.xlu0 %4928  ;;  %v4931_v51 = vpop.permute.xlu1 %4930 }
 0x635   : > { %7409 = vpush %v4929_v37 }
 0x636   : > { %7411 = vpush %v4931_v51 }
 0x638   : > { %v4933_v19 = vpop.permute.xlu0 %4932  ;;  %v4935_v13 = vpop.permute.xlu1 %4934 }
 0x639   : > { %7413 = vpush %v4933_v19 }
 0x63a   : > { %7415 = vpush %v4935_v13 }
 0x63c   : > { %v4937_v32 = vpop.permute.xlu0 %4936  ;;  %v4939_v37 = vpop.permute.xlu1 %4938 }
 0x63d   : > { %7417 = vpush %v4937_v32 }
 0x63e   : > { %7419 = vpush %v4939_v37 }
 0x640   : > { %v4941_v51 = vpop.permute.xlu0 %4940  ;;  %v4943_v19 = vpop.permute.xlu1 %4942 }
 0x641   : > { %7421 = vpush %v4941_v51 }
 0x642   : > { %7423 = vpush %v4943_v19 }
 0x644   : > { %v4945_v13 = vpop.permute.xlu0 %4944  ;;  %v4947_v32 = vpop.permute.xlu1 %4946 }
 0x645   : > { %7425 = vpush %v4945_v13 }
 0x646   : > { %7427 = vpush %v4947_v32 }
 0x648   : > { %v4949_v37 = vpop.permute.xlu0 %4948  ;;  %v4951_v51 = vpop.permute.xlu1 %4950 }
 0x649   : > { %7429 = vpush %v4949_v37 }
 0x64a   : > { %7431 = vpush %v4951_v51 }
 0x64c   : > { %v4953_v19 = vpop.permute.xlu0 %4952  ;;  %v4955_v13 = vpop.permute.xlu1 %4954 }
 0x64d   : > { %7433 = vpush %v4953_v19 }
 0x64e   : > { %7435 = vpush %v4955_v13 }
 0x650   : > { %v4957_v32 = vpop.permute.xlu0 %4956  ;;  %v4959_v37 = vpop.permute.xlu1 %4958 }
 0x651   : > { %7437 = vpush %v4957_v32 }
 0x652   : > { %7439 = vpush %v4959_v37  ;;  %v4436_v37 = vld [vmem:[%s8504_s8 + $0x2] sm:$0xff] }
 0x654   : > { %v4961_v51 = vpop.permute.xlu0 %4960  ;;  %v4963_v19 = vpop.permute.xlu1 %4962 }
 0x655   : > { %7441 = vpush %v4961_v51 }
 0x656   : > { %7443 = vpush %v4963_v19 }
 0x658   : > { %v4965_v13 = vpop.permute.xlu0 %4964  ;;  %v4967_v32 = vpop.permute.xlu1 %4966 }
 0x659   : > { %7445 = vpush %v4965_v13 }
 0x65a   : > { %s7398_s14 = spop %7397  ;;  %7447 = vpush %v4967_v32  ;;  %v4440_v32 = vld [vmem:[%s8504_s8 + $0x32] sm:$0xff] }
 0x65b   : > { %v5013_v39 = vstv %s7398_s14  ;;  %s7400_s1 = spop %7399 }
 0x65c   : > { %v5156_v51 = vmul.f32 %v5013_v39, %v4436_v37  ;;  %v5157_v50 = vmul.f32 %v5013_v39, %v4437_v0  ;;  %v5016_v19 = vstv %s7400_s1  ;;  %v4969_v5 = vpop.permute.xlu0 %4968  ;;  %v4971_v47 = vpop.permute.xlu1 %4970  ;;  %v4441_v37 = vld [vmem:[%s8504_s8 + $0x3a] sm:$0xff] }
 0x65d   : > { %7449 = vpush %v4969_v5  ;;  %v5158_v55 = vmul.f32 %v5016_v19, %v4438_v44  ;;  %v5159_v18 = vmul.f32 %v5016_v19, %v4439_v29  ;;  %v4443_v19 = vld [vmem:[%s8504_s8 + $0x52] sm:$0xff] }
 0x65e   : > { %5350 = vrot.lane.b32.xlu1 %v5157_v50, %s14350_s15  ;;  %5348 = vrot.lane.b32.xlu0 %v5156_v51, %s14350_s15  ;;  %s7402_s2 = spop %7401  ;;  %7451 = vpush %v4971_v47  ;;  %v4442_v51 = vld [vmem:[%s8504_s8 + $0x4a] sm:$0xff] }
 0x65f   : > { %v5019_v13 = vstv %s7402_s2  ;;  %s7404_s14 = spop %7403 }
 0x660   : > { %v4973_v0 = vpop.permute.xlu0 %4972  ;;  %v4975_v39 = vpop.permute.xlu1 %4974  ;;  %v5160_v29 = vmul.f32 %v5019_v13, %v4440_v32  ;;  %v5161_v5 = vmul.f32 %v5019_v13, %v4441_v37  ;;  %v5022_v50 = vstv %s7404_s14 }
 0x661   : > { %7453 = vpush %v4973_v0  ;;  %v5162_v49 = vmul.f32 %v5022_v50, %v4442_v51  ;;  %v5163_v25 = vmul.f32 %v5022_v50, %v4443_v19  ;;  %v4444_v0 = vld [vmem:[%s8504_s8 + $0x62] sm:$0xff] }
 0x662   : > { %5354 = vrot.lane.b32.xlu1 %v5159_v18, %s14350_s15  ;;  %5352 = vrot.lane.b32.xlu0 %v5158_v55, %s14350_s15  ;;  %7455 = vpush %v4975_v39  ;;  %s7406_s1 = spop %7405  ;;  %v4445_v39 = vld [vmem:[%s8504_s8 + $0x6a] sm:$0xff] }
 0x663   : > { %v5025_v18 = vstv %s7406_s1  ;;  %s7408_s2 = spop %7407 }
 0x664   : > { %v4977_v47 = vpop.permute.xlu0 %4976  ;;  %v4979_v44 = vpop.permute.xlu1 %4978  ;;  %v5164_v32 = vmul.f32 %v5025_v18, %v4444_v0  ;;  %v5165_v37 = vmul.f32 %v5025_v18, %v4445_v39 }
 0x665   : > { %7457 = vpush %v4977_v47  ;;  %v4446_v47 = vld [vmem:[%s8504_s8 + $0x7a] sm:$0xff] }
 0x666   : > { %5358 = vrot.lane.b32.xlu1 %v5161_v5, %s14350_s15  ;;  %5356 = vrot.lane.b32.xlu0 %v5160_v29, %s14350_s15  ;;  %7459 = vpush %v4979_v44  ;;  %v5028_v5 = vstv %s7408_s2  ;;  %s7410_s14 = spop %7409  ;;  %v4447_v44 = vld [vmem:[%s8504_s8 + $0x82] sm:$0xff] }
 0x667   : > { %v5166_v51 = vmul.f32 %v5028_v5, %v4446_v47  ;;  %v5167_v19 = vmul.f32 %v5028_v5, %v4447_v44  ;;  %s7412_s1 = spop %7411 }
 0x668   : > { %v4981_v55 = vpop.permute.xlu0 %4980  ;;  %v4983_v13 = vpop.permute.xlu1 %4982 }
 0x669   : > { %7461 = vpush %v4981_v55  ;;  %v4448_v55 = vld [vmem:[%s8504_s8 + $0x92] sm:$0xff] }
 0x66a   : > { %5362 = vrot.lane.b32.xlu1 %v5163_v25, %s14350_s15  ;;  %5360 = vrot.lane.b32.xlu0 %v5162_v49, %s14350_s15  ;;  %7463 = vpush %v4983_v13  ;;  %v5031_v25 = vstv %s7410_s14  ;;  %v4449_v13 = vld [vmem:[%s8504_s8 + $0x9a] sm:$0xff]  ;;  %s7414_s2 = spop %7413 }
 0x66b   : > { %v5168_v0 = vmul.f32 %v5031_v25, %v4448_v55  ;;  %v5169_v39 = vmul.f32 %v5031_v25, %v4449_v13  ;;  %s7416_s14 = spop %7415 }
 0x66c   : > { %v4985_v29 = vpop.permute.xlu0 %4984  ;;  %v4987_v50 = vpop.permute.xlu1 %4986 }
 0x66d   : > { %7465 = vpush %v4985_v29  ;;  %v4450_v29 = vld [vmem:[%s8504_s8 + $0xaa] sm:$0xff] }
 0x66e   : > { %5366 = vrot.lane.b32.xlu1 %v5165_v37, %s14350_s15  ;;  %5364 = vrot.lane.b32.xlu0 %v5164_v32, %s14350_s15  ;;  %7467 = vpush %v4987_v50  ;;  %v5034_v37 = vstv %s7412_s1  ;;  %v4451_v50 = vld [vmem:[%s8504_s8 + $0xb2] sm:$0xff]  ;;  %s7418_s1 = spop %7417 }
 0x66f   : > { %v5170_v47 = vmul.f32 %v5034_v37, %v4450_v29  ;;  %v5171_v44 = vmul.f32 %v5034_v37, %v4451_v50 }
 0x670   : > { %v4991_v49 = vpop.permute.xlu1 %4990  ;;  %v4989_v18 = vpop.permute.xlu0 %4988 }
 0x671   : > { %7469 = vpush %v4989_v18  ;;  %v4453_v18 = vld [vmem:[%s8504_s8 + $0xca] sm:$0xff] }
 0x672   : > { %5370 = vrot.lane.b32.xlu1 %v5167_v19, %s14350_s15  ;;  %5368 = vrot.lane.b32.xlu0 %v5166_v51, %s14350_s15  ;;  %7471 = vpush %v4991_v49  ;;  %v5037_v51 = vstv %s7414_s2  ;;  %v4452_v49 = vld [vmem:[%s8504_s8 + $0xc2] sm:$0xff]  ;;  %s7420_s2 = spop %7419 }
 0x673   : > { %v5172_v55 = vmul.f32 %v5037_v51, %v4452_v49  ;;  %v5173_v13 = vmul.f32 %v5037_v51, %v4453_v18 }
 0x674   : > { %v4995_v32 = vpop.permute.xlu1 %4994  ;;  %v4993_v5 = vpop.permute.xlu0 %4992 }
 0x675   : > { %7473 = vpush %v4993_v5  ;;  %v4455_v5 = vld [vmem:[%s8504_s8 + $0xe2] sm:$0xff] }
 0x676   : > { %5374 = vrot.lane.b32.xlu1 %v5169_v39, %s14350_s15  ;;  %5372 = vrot.lane.b32.xlu0 %v5168_v0, %s14350_s15  ;;  %7475 = vpush %v4995_v32  ;;  %v5040_v39 = vstv %s7416_s14  ;;  %v4454_v32 = vld [vmem:[%s8504_s8 + $0xda] sm:$0xff]  ;;  %s7422_s14 = spop %7421 }
 0x677   : > { %v5174_v29 = vmul.f32 %v5040_v39, %v4454_v32  ;;  %v5175_v50 = vmul.f32 %v5040_v39, %v4455_v5  ;;  %v4458_v39 = vld [vmem:[%s8504_s8 + $0x10a] sm:$0xff] }
 0x678   : > { %v4999_v19 = vpop.permute.xlu1 %4998  ;;  %v4997_v25 = vpop.permute.xlu0 %4996 }
 0x679   : > { %7477 = vpush %v4997_v25  ;;  %v4457_v25 = vld [vmem:[%s8504_s8 + $0xfa] sm:$0xff] }
 0x67a   : > { %5378 = vrot.lane.b32.xlu1 %v5171_v44, %s14350_s15  ;;  %5376 = vrot.lane.b32.xlu0 %v5170_v47, %s14350_s15  ;;  %7479 = vpush %v4999_v19  ;;  %v5043_v47 = vstv %s7418_s1  ;;  %v4456_v19 = vld [vmem:[%s8504_s8 + $0xf2] sm:$0xff]  ;;  %s7424_s1 = spop %7423 }
 0x67b   : > { %v5176_v49 = vmul.f32 %v5043_v47, %v4456_v19  ;;  %v5177_v18 = vmul.f32 %v5043_v47, %v4457_v25  ;;  %v4461_v47 = vld [vmem:[%s8504_s8 + $0x12a] sm:$0xff]  ;;  %v5052_v19 = vstv %s7424_s1  ;;  %v4462_v25 = vld [vmem:[%s8504_s8 + $0x13a] sm:$0xff] }
 0x67c   : > { %v5003_v0 = vpop.permute.xlu1 %5002  ;;  %v5001_v37 = vpop.permute.xlu0 %5000 }
 0x67d   : > { %7481 = vpush %v5001_v37 }
 0x67e   : > { %5382 = vrot.lane.b32.xlu1 %v5173_v13, %s14350_s15  ;;  %5380 = vrot.lane.b32.xlu0 %v5172_v55, %s14350_s15  ;;  %7483 = vpush %v5003_v0  ;;  %v5046_v55 = vstv %s7420_s2  ;;  %v4459_v0 = vld [vmem:[%s8504_s8 + $0x112] sm:$0xff]  ;;  %s7426_s2 = spop %7425 }
 0x67f   : > { %v5178_v32 = vmul.f32 %v5046_v55, %v4458_v39  ;;  %v5179_v5 = vmul.f32 %v5046_v55, %v4459_v0  ;;  %v4464_v39 = vld [vmem:[%s8504_s8 + $0x152] sm:$0xff]  ;;  %v4465_v0 = vld [vmem:[%s8504_s8 + $0x15a] sm:$0xff] }
 0x680   : > { %v5007_v44 = vpop.permute.xlu1 %5006  ;;  %v5005_v51 = vpop.permute.xlu0 %5004 }
 0x681   : > { %7485 = vpush %v5005_v51 }
 0x682   : > { %5386 = vrot.lane.b32.xlu1 %v5175_v50, %s14350_s15  ;;  %5384 = vrot.lane.b32.xlu0 %v5174_v29, %s14350_s15  ;;  %7487 = vpush %v5007_v44  ;;  %v5049_v29 = vstv %s7422_s14  ;;  %v4460_v50 = vld [vmem:[%s8504_s8 + $0x122] sm:$0xff]  ;;  %s7428_s14 = spop %7427 }
 0x683   : > { %v5180_v44 = vmul.f32 %v5049_v29, %v4460_v50  ;;  %v5181_v51 = vmul.f32 %v5049_v29, %v4461_v47  ;;  %s7430_s1 = spop %7429  ;;  %v4466_v29 = vld [vmem:[%s8504_s8 + $0x16a] sm:$0xff]  ;;  %v4467_v50 = vld [vmem:[%s8504_s8 + $0x172] sm:$0xff] }
 0x684   : > { %v5009_v13 = vpop.permute.xlu0 %5008  ;;  %v5011_v37 = vpop.permute.xlu1 %5010 }
 0x685   : > { %7489 = vpush %v5009_v13  ;;  %v5055_v13 = vstv %s7426_s2  ;;  %s7432_s2 = spop %7431 }
 0x686   : > { %5390 = vrot.lane.b32.xlu1 %v5177_v18, %s14350_s15  ;;  %5388 = vrot.lane.b32.xlu0 %v5176_v49, %s14350_s15  ;;  %7491 = vpush %v5011_v37  ;;  %v4463_v18 = vld [vmem:[%s8504_s8 + $0x142] sm:$0xff]  ;;  %v5182_v49 = vmul.f32 %v5052_v19, %v4462_v25  ;;  %v5184_v37 = vmul.f32 %v5055_v13, %v4464_v39  ;;  %v4469_v25 = vld [vmem:[%s8504_s8 + $0x18a] sm:$0xff] }
 0x687   : > { %v5183_v55 = vmul.f32 %v5052_v19, %v4463_v18  ;;  %v4468_v19 = vld [vmem:[%s8504_s8 + $0x182] sm:$0xff] }
 0x688   : > { %v4471_v39 = vld [vmem:[%s8504_s8 + $0x1a2] sm:$0xff] }
 0x68a   : > { %5394 = vrot.lane.b32.xlu1 %v5179_v5, %s14350_s15  ;;  %5392 = vrot.lane.b32.xlu0 %v5178_v32, %s14350_s15  ;;  %v5185_v32 = vmul.f32 %v5055_v13, %v4465_v0  ;;  %v5058_v5 = vstv %s7428_s14  ;;  %s7434_s14 = spop %7433  ;;  %v4470_v13 = vld [vmem:[%s8504_s8 + $0x19a] sm:$0xff] }
 0x68b   : > { %v5186_v47 = vmul.f32 %v5058_v5, %v4466_v29  ;;  %v4473_v29 = vld [vmem:[%s8504_s8 + $0x1ba] sm:$0xff] }
 0x68e   : > { %5398 = vrot.lane.b32.xlu1 %v5181_v51, %s14350_s15  ;;  %5396 = vrot.lane.b32.xlu0 %v5180_v44, %s14350_s15  ;;  %v5187_v44 = vmul.f32 %v5058_v5, %v4467_v50  ;;  %v5061_v51 = vstv %s7430_s1  ;;  %s7436_s1 = spop %7435  ;;  %v4472_v5 = vld [vmem:[%s8504_s8 + $0x1b2] sm:$0xff] }
 0x68f   : > { %v5188_v18 = vmul.f32 %v5061_v51, %v4468_v19  ;;  %v4475_v19 = vld [vmem:[%s8504_s8 + $0x1d2] sm:$0xff] }
 0x692   : > { %5402 = vrot.lane.b32.xlu1 %v5183_v55, %s14350_s15  ;;  %5400 = vrot.lane.b32.xlu0 %v5182_v49, %s14350_s15  ;;  %v5189_v49 = vmul.f32 %v5061_v51, %v4469_v25  ;;  %v5064_v55 = vstv %s7432_s2  ;;  %s7438_s2 = spop %7437  ;;  %v4474_v51 = vld [vmem:[%s8504_s8 + $0x1ca] sm:$0xff] }
 0x693   : > { %v5190_v0 = vmul.f32 %v5064_v55, %v4470_v13  ;;  %v4477_v13 = vld [vmem:[%s8504_s8 + $0x1ea] sm:$0xff] }
 0x696   : > { %5406 = vrot.lane.b32.xlu1 %v5185_v32, %s14350_s15  ;;  %5404 = vrot.lane.b32.xlu0 %v5184_v37, %s14350_s15  ;;  %v5191_v37 = vmul.f32 %v5064_v55, %v4471_v39  ;;  %v5067_v32 = vstv %s7434_s14  ;;  %s7440_s14 = spop %7439  ;;  %v4476_v55 = vld [vmem:[%s8504_s8 + $0x1e2] sm:$0xff] }
 0x697   : > { %v5192_v50 = vmul.f32 %v5067_v32, %v4472_v5  ;;  %v4479_v5 = vld [vmem:[%s8504_s8 + $0x202] sm:$0xff] }
 0x69a   : > { %5410 = vrot.lane.b32.xlu1 %v5187_v44, %s14350_s15  ;;  %5408 = vrot.lane.b32.xlu0 %v5186_v47, %s14350_s15  ;;  %v5193_v47 = vmul.f32 %v5067_v32, %v4473_v29  ;;  %v5070_v44 = vstv %s7436_s1  ;;  %s7442_s1 = spop %7441  ;;  %v4478_v32 = vld [vmem:[%s8504_s8 + $0x1fa] sm:$0xff] }
 0x69b   : > { %v5194_v25 = vmul.f32 %v5070_v44, %v4474_v51  ;;  %v4481_v51 = vld [vmem:[%s8504_s8 + $0x21a] sm:$0xff] }
 0x69e   : > { %5414 = vrot.lane.b32.xlu1 %v5189_v49, %s14350_s15  ;;  %5412 = vrot.lane.b32.xlu0 %v5188_v18, %s14350_s15  ;;  %v5195_v18 = vmul.f32 %v5070_v44, %v4475_v19  ;;  %v5073_v49 = vstv %s7438_s2  ;;  %s7444_s2 = spop %7443  ;;  %v4480_v44 = vld [vmem:[%s8504_s8 + $0x212] sm:$0xff] }
 0x69f   : > { %v5196_v39 = vmul.f32 %v5073_v49, %v4476_v55  ;;  %v4483_v55 = vld [vmem:[%s8504_s8 + $0x232] sm:$0xff] }
 0x6a2   : > { %5418 = vrot.lane.b32.xlu1 %v5191_v37, %s14350_s15  ;;  %5416 = vrot.lane.b32.xlu0 %v5190_v0, %s14350_s15  ;;  %v5197_v0 = vmul.f32 %v5073_v49, %v4477_v13  ;;  %v5076_v37 = vstv %s7440_s14  ;;  %s7446_s14 = spop %7445  ;;  %v4482_v49 = vld [vmem:[%s8504_s8 + $0x22a] sm:$0xff] }
 0x6a3   : > { %v5198_v29 = vmul.f32 %v5076_v37, %v4478_v32  ;;  %v4485_v32 = vld [vmem:[%s8504_s8 + $0x24a] sm:$0xff] }
 0x6a6   : > { %5422 = vrot.lane.b32.xlu1 %v5193_v47, %s14350_s15  ;;  %5420 = vrot.lane.b32.xlu0 %v5192_v50, %s14350_s15  ;;  %v5199_v50 = vmul.f32 %v5076_v37, %v4479_v5  ;;  %v5079_v47 = vstv %s7442_s1  ;;  %s7448_s1 = spop %7447  ;;  %v4484_v37 = vld [vmem:[%s8504_s8 + $0x242] sm:$0xff] }
 0x6a7   : > { %v5200_v19 = vmul.f32 %v5079_v47, %v4480_v44  ;;  %v4487_v44 = vld [vmem:[%s8504_s8 + $0x262] sm:$0xff] }
 0x6aa   : > { %5426 = vrot.lane.b32.xlu1 %v5195_v18, %s14350_s15  ;;  %5424 = vrot.lane.b32.xlu0 %v5194_v25, %s14350_s15  ;;  %v5201_v25 = vmul.f32 %v5079_v47, %v4481_v51  ;;  %v5082_v18 = vstv %s7444_s2  ;;  %s7450_s2 = spop %7449  ;;  %v4486_v47 = vld [vmem:[%s8504_s8 + $0x25a] sm:$0xff] }
 0x6ab   : > { %v5202_v13 = vmul.f32 %v5082_v18, %v4482_v49  ;;  %v4489_v49 = vld [vmem:[%s8504_s8 + $0x27a] sm:$0xff] }
 0x6ae   : > { %5430 = vrot.lane.b32.xlu1 %v5197_v0, %s14350_s15  ;;  %5428 = vrot.lane.b32.xlu0 %v5196_v39, %s14350_s15  ;;  %v5203_v39 = vmul.f32 %v5082_v18, %v4483_v55  ;;  %v5085_v0 = vstv %s7446_s14  ;;  %s7452_s14 = spop %7451  ;;  %v4488_v18 = vld [vmem:[%s8504_s8 + $0x272] sm:$0xff] }
 0x6af   : > { %v5204_v5 = vmul.f32 %v5085_v0, %v4484_v37  ;;  %v4491_v37 = vld [vmem:[%s8504_s8 + $0x292] sm:$0xff] }
 0x6b2   : > { %5434 = vrot.lane.b32.xlu1 %v5199_v50, %s14350_s15  ;;  %5432 = vrot.lane.b32.xlu0 %v5198_v29, %s14350_s15  ;;  %v5205_v29 = vmul.f32 %v5085_v0, %v4485_v32  ;;  %v5088_v50 = vstv %s7448_s1  ;;  %s7454_s1 = spop %7453  ;;  %v4490_v0 = vld [vmem:[%s8504_s8 + $0x28a] sm:$0xff] }
 0x6b3   : > { %v5206_v51 = vmul.f32 %v5088_v50, %v4486_v47  ;;  %v4493_v47 = vld [vmem:[%s8504_s8 + $0x2aa] sm:$0xff] }
 0x6b6   : > { %5438 = vrot.lane.b32.xlu1 %v5201_v25, %s14350_s15  ;;  %5436 = vrot.lane.b32.xlu0 %v5200_v19, %s14350_s15  ;;  %v5207_v19 = vmul.f32 %v5088_v50, %v4487_v44  ;;  %v5091_v25 = vstv %s7450_s2  ;;  %s7456_s2 = spop %7455  ;;  %v4492_v50 = vld [vmem:[%s8504_s8 + $0x2a2] sm:$0xff] }
 0x6b7   : > { %v5208_v55 = vmul.f32 %v5091_v25, %v4488_v18  ;;  %v4495_v18 = vld [vmem:[%s8504_s8 + $0x2c2] sm:$0xff] }
 0x6ba   : > { %5442 = vrot.lane.b32.xlu1 %v5203_v39, %s14350_s15  ;;  %5440 = vrot.lane.b32.xlu0 %v5202_v13, %s14350_s15  ;;  %v5209_v13 = vmul.f32 %v5091_v25, %v4489_v49  ;;  %v5094_v39 = vstv %s7452_s14  ;;  %s7458_s14 = spop %7457  ;;  %v4494_v25 = vld [vmem:[%s8504_s8 + $0x2ba] sm:$0xff] }
 0x6bb   : > { %v5210_v32 = vmul.f32 %v5094_v39, %v4490_v0 }
 0x6be   : > { %5446 = vrot.lane.b32.xlu1 %v5205_v29, %s14350_s15  ;;  %5444 = vrot.lane.b32.xlu0 %v5204_v5, %s14350_s15  ;;  %v5211_v5 = vmul.f32 %v5094_v39, %v4491_v37  ;;  %v5097_v29 = vstv %s7454_s1  ;;  %s7460_s1 = spop %7459  ;;  %v4496_v37 = vld [vmem:[%s8504_s8 + $0x2d2] sm:$0xff] }
 0x6bf   : > { %v5212_v44 = vmul.f32 %v5097_v29, %v4492_v50  ;;  %v5106_v50 = vstv %s7460_s1 }
 0x6c2   : > { %5450 = vrot.lane.b32.xlu1 %v5207_v19, %s14350_s15  ;;  %5448 = vrot.lane.b32.xlu0 %v5206_v51, %s14350_s15  ;;  %v5213_v51 = vmul.f32 %v5097_v29, %v4493_v47  ;;  %v5100_v19 = vstv %s7456_s2  ;;  %s7462_s2 = spop %7461 }
 0x6c3   : > { %v5214_v49 = vmul.f32 %v5100_v19, %v4494_v25 }
 0x6c6   : > { %5454 = vrot.lane.b32.xlu1 %v5209_v13, %s14350_s15  ;;  %5452 = vrot.lane.b32.xlu0 %v5208_v55, %s14350_s15  ;;  %v5215_v13 = vmul.f32 %v5100_v19, %v4495_v18  ;;  %v5103_v55 = vstv %s7458_s14  ;;  %v4499_v19 = vld [vmem:[%s8504_s8 + $0x2f2] sm:$0xff]  ;;  %s7464_s14 = spop %7463 }
 0x6c7   : > { %v5219_v18 = vmul.f32 %v5106_v50, %v4499_v19  ;;  %s7466_s1 = spop %7465 }
 0x6ca   : > { %5458 = vrot.lane.b32.xlu1 %v5211_v5, %s14350_s15  ;;  %5456 = vrot.lane.b32.xlu0 %v5210_v32, %s14350_s15  ;;  %v4497_v32 = vld [vmem:[%s8504_s8 + $0x2da] sm:$0xff]  ;;  %v5216_v5 = vmul.f32 %v5103_v55, %v4496_v37  ;;  %v4500_v37 = vld [vmem:[%s8504_s8 + $0x302] sm:$0xff] }
 0x6cb   : > { %v5217_v29 = vmul.f32 %v5103_v55, %v4497_v32  ;;  %v4501_v32 = vld [vmem:[%s8504_s8 + $0x30a] sm:$0xff] }
 0x6ce   : > { %5462 = vrot.lane.b32.xlu1 %v5213_v51, %s14350_s15  ;;  %5460 = vrot.lane.b32.xlu0 %v5212_v44, %s14350_s15  ;;  %v4498_v51 = vld [vmem:[%s8504_s8 + $0x2ea] sm:$0xff] }
 0x6cf   : > { %v5218_v25 = vmul.f32 %v5106_v50, %v4498_v51 }
 0x6d0   : > { %v11292_v39 = vpop.permute.xlu1 %5350  ;;  %v11294_v0 = vpop.permute.xlu0 %5348 }
 0x6d1   : > { %14827 = vst [vmem:[#allocation507_spill] sm:$0xff] %v11292_v39  ;;  %14828 = vst [vmem:[#allocation508_spill] sm:$0xff] %v11294_v0  ;;  %v7938_v0 = vld [vmem:[%s8504_s8 + $0x260] sm:$0xff] }
 0x6d2   : > { %5466 = vrot.lane.b32.xlu1 %v5215_v13, %s14350_s15  ;;  %5464 = vrot.lane.b32.xlu0 %v5214_v49, %s14350_s15  ;;  %v5109_v49 = vstv %s7462_s2  ;;  %s7468_s2 = spop %7467 }
 0x6d3   : > { %v5220_v51 = vmul.f32 %v5109_v49, %v4500_v37  ;;  %v5221_v50 = vmul.f32 %v5109_v49, %v4501_v32  ;;  %v4504_v37 = vld [vmem:[%s8504_s8 + $0x332] sm:$0xff]  ;;  %v4505_v32 = vld [vmem:[%s8504_s8 + $0x33a] sm:$0xff] }
 0x6d4   : > { %v11300_v47 = vpop.permute.xlu1 %5354  ;;  %v11302_v44 = vpop.permute.xlu0 %5352 }
 0x6d5   : > { %14829 = vst [vmem:[#allocation509_spill] sm:$0xff] %v11300_v47  ;;  %14830 = vst [vmem:[#allocation510_spill] sm:$0xff] %v11302_v44  ;;  %v4503_v44 = vld [vmem:[%s8504_s8 + $0x322] sm:$0xff] }
 0x6d6   : > { %5470 = vrot.lane.b32.xlu1 %v5217_v29, %s14350_s15  ;;  %5468 = vrot.lane.b32.xlu0 %v5216_v5, %s14350_s15  ;;  %v5112_v29 = vstv %s7464_s14  ;;  %s7470_s14 = spop %7469 }
 0x6d7   : > { %v5223_v47 = vmul.f32 %v5112_v29, %v4503_v44 }
 0x6d8   : > { %v11308_v13 = vpop.permute.xlu1 %5358  ;;  %v11310_v55 = vpop.permute.xlu0 %5356 }
 0x6d9   : > { %14831 = vst [vmem:[#allocation511_spill] sm:$0xff] %v11308_v13  ;;  %14832 = vst [vmem:[#allocation512_spill] sm:$0xff] %v11310_v55  ;;  %v4502_v13 = vld [vmem:[%s8504_s8 + $0x31a] sm:$0xff] }
 0x6da   : > { %5474 = vrot.lane.b32.xlu1 %v5219_v18, %s14350_s15  ;;  %5472 = vrot.lane.b32.xlu0 %v5218_v25, %s14350_s15  ;;  %v5222_v55 = vmul.f32 %v5112_v29, %v4502_v13  ;;  %v5115_v25 = vstv %s7466_s1  ;;  %s7472_s1 = spop %7471 }
 0x6db   : > { %v5224_v13 = vmul.f32 %v5115_v25, %v4504_v37  ;;  %v5225_v44 = vmul.f32 %v5115_v25, %v4505_v32  ;;  %v4508_v37 = vld [vmem:[%s8504_s8 + $0x362] sm:$0xff]  ;;  %v4509_v32 = vld [vmem:[%s8504_s8 + $0x36a] sm:$0xff] }
 0x6dc   : > { %v11316_v19 = vpop.permute.xlu1 %5362  ;;  %v11318_v5 = vpop.permute.xlu0 %5360 }
 0x6dd   : > { %14833 = vst [vmem:[#allocation513_spill] sm:$0xff] %v11316_v19  ;;  %14834 = vst [vmem:[#allocation514_spill] sm:$0xff] %v11318_v5  ;;  %v4507_v5 = vld [vmem:[%s8504_s8 + $0x352] sm:$0xff] }
 0x6de   : > { %5478 = vrot.lane.b32.xlu1 %v5221_v50, %s14350_s15  ;;  %5476 = vrot.lane.b32.xlu0 %v5220_v51, %s14350_s15  ;;  %v5118_v50 = vstv %s7468_s2  ;;  %s7474_s2 = spop %7473 }
 0x6df   : > { %v5227_v19 = vmul.f32 %v5118_v50, %v4507_v5 }
 0x6e0   : > { %v11324_v18 = vpop.permute.xlu1 %5366  ;;  %v11326_v49 = vpop.permute.xlu0 %5364 }
 0x6e1   : > { %14835 = vst [vmem:[#allocation515_spill] sm:$0xff] %v11324_v18  ;;  %14836 = vst [vmem:[#allocation516_spill] sm:$0xff] %v11326_v49  ;;  %v4506_v18 = vld [vmem:[%s8504_s8 + $0x34a] sm:$0xff] }
 0x6e2   : > { %5482 = vrot.lane.b32.xlu1 %v5223_v47, %s14350_s15  ;;  %5480 = vrot.lane.b32.xlu0 %v5222_v55, %s14350_s15  ;;  %v5226_v49 = vmul.f32 %v5118_v50, %v4506_v18  ;;  %v5121_v47 = vstv %s7470_s14  ;;  %v5124_v50 = vstv %s7472_s1  ;;  %s7476_s14 = spop %7475 }
 0x6e3   : > { %v5228_v18 = vmul.f32 %v5121_v47, %v4508_v37  ;;  %v5229_v5 = vmul.f32 %v5121_v47, %v4509_v32  ;;  %v5127_v47 = vstv %s7474_s2  ;;  %v4512_v37 = vld [vmem:[%s8504_s8 + $0x392] sm:$0xff]  ;;  %s7478_s1 = spop %7477 }
 0x6e4   : > { %v11332_v29 = vpop.permute.xlu1 %5370  ;;  %v11334_v51 = vpop.permute.xlu0 %5368  ;;  %s7480_s2 = spop %7479 }
 0x6e5   : > { %14837 = vst [vmem:[#allocation517_spill] sm:$0xff] %v11332_v29  ;;  %14838 = vst [vmem:[#allocation518_spill] sm:$0xff] %v11334_v51  ;;  %v4510_v51 = vld [vmem:[%s8504_s8 + $0x37a] sm:$0xff] }
 0x6e6   : > { %5486 = vrot.lane.b32.xlu1 %v5225_v44, %s14350_s15  ;;  %5484 = vrot.lane.b32.xlu0 %v5224_v13, %s14350_s15  ;;  %v5230_v29 = vmul.f32 %v5124_v50, %v4510_v51  ;;  %v4513_v51 = vld [vmem:[%s8504_s8 + $0x39a] sm:$0xff] }
 0x6e7   : > { %v5233_v32 = vmul.f32 %v5127_v47, %v4513_v51  ;;  %v4516_v51 = vld [vmem:[%s8504_s8 + $0x3c2] sm:$0xff] }
 0x6e8   : > { %v11340_v55 = vpop.permute.xlu1 %5374  ;;  %v11342_v25 = vpop.permute.xlu0 %5372 }
 0x6e9   : > { %14839 = vst [vmem:[#allocation519_spill] sm:$0xff] %v11340_v55  ;;  %14840 = vst [vmem:[#allocation520_spill] sm:$0xff] %v11342_v25  ;;  %v4511_v55 = vld [vmem:[%s8504_s8 + $0x382] sm:$0xff] }
 0x6ea   : > { %5490 = vrot.lane.b32.xlu1 %v5227_v19, %s14350_s15  ;;  %5488 = vrot.lane.b32.xlu0 %v5226_v49, %s14350_s15  ;;  %v5231_v25 = vmul.f32 %v5124_v50, %v4511_v55  ;;  %v5232_v55 = vmul.f32 %v5127_v47, %v4512_v37  ;;  %v5130_v50 = vstv %s7476_s14  ;;  %v5133_v37 = vstv %s7478_s1  ;;  %s7482_s14 = spop %7481 }
 0x6eb   : > { %s7484_s1 = spop %7483 }
 0x6ec   : > { %v11348_v44 = vpop.permute.xlu1 %5378  ;;  %v11350_v13 = vpop.permute.xlu0 %5376 }
 0x6ed   : > { %14841 = vst [vmem:[#allocation521_spill] sm:$0xff] %v11348_v44  ;;  %14842 = vst [vmem:[#allocation522_spill] sm:$0xff] %v11350_v13 }
 0x6ee   : > { %5494 = vrot.lane.b32.xlu1 %v5229_v5, %s14350_s15  ;;  %5492 = vrot.lane.b32.xlu0 %v5228_v18, %s14350_s15 }
 0x6f0   : > { %v11356_v19 = vpop.permute.xlu1 %5382  ;;  %v11358_v49 = vpop.permute.xlu0 %5380 }
 0x6f1   : > { %14843 = vst [vmem:[#allocation523_spill] sm:$0xff] %v11356_v19  ;;  %14844 = vst [vmem:[#allocation524_spill] sm:$0xff] %v11358_v49  ;;  %v4515_v49 = vld [vmem:[%s8504_s8 + $0x3b2] sm:$0xff] }
 0x6f2   : > { %5498 = vrot.lane.b32.xlu1 %v5231_v25, %s14350_s15  ;;  %5496 = vrot.lane.b32.xlu0 %v5230_v29, %s14350_s15  ;;  %v4514_v25 = vld [vmem:[%s8504_s8 + $0x3aa] sm:$0xff]  ;;  %v5235_v19 = vmul.f32 %v5130_v50, %v4515_v49 }
 0x6f3   : > { %v5234_v29 = vmul.f32 %v5130_v50, %v4514_v25  ;;  %v5136_v50 = vstv %s7480_s2  ;;  %v4518_v25 = vld [vmem:[%s8504_s8 + $0x3da] sm:$0xff]  ;;  %s7486_s2 = spop %7485 }
 0x6f4   : > { %v11364_v5 = vpop.permute.xlu1 %5386  ;;  %v11366_v18 = vpop.permute.xlu0 %5384 }
 0x6f5   : > { %14845 = vst [vmem:[#allocation525_spill] sm:$0xff] %v11364_v5  ;;  %14846 = vst [vmem:[#allocation526_spill] sm:$0xff] %v11366_v18  ;;  %v5236_v18 = vmul.f32 %v5133_v37, %v4516_v51  ;;  %v5139_v51 = vstv %s7482_s14  ;;  %s7488_s14 = spop %7487 }
 0x6f6   : > { %5502 = vrot.lane.b32.xlu1 %v5233_v32, %s14350_s15  ;;  %5500 = vrot.lane.b32.xlu0 %v5232_v55, %s14350_s15  ;;  %v4517_v32 = vld [vmem:[%s8504_s8 + $0x3ca] sm:$0xff] }
 0x6f7   : > { %v5237_v55 = vmul.f32 %v5133_v37, %v4517_v32  ;;  %v4520_v32 = vld [vmem:[%s8504_s8 + $0x3f2] sm:$0xff] }
 0x6f8   : > { %v11372_v13 = vpop.permute.xlu1 %5390  ;;  %v11374_v47 = vpop.permute.xlu0 %5388 }
 0x6f9   : > { %14847 = vst [vmem:[#allocation527_spill] sm:$0xff] %v11372_v13  ;;  %14848 = vst [vmem:[#allocation528_spill] sm:$0xff] %v11374_v47  ;;  %v5238_v47 = vmul.f32 %v5136_v50, %v4518_v25  ;;  %v5142_v25 = vstv %s7484_s1  ;;  %s7490_s1 = spop %7489 }
 0x6fa   : > { %5506 = vrot.lane.b32.xlu1 %v5235_v19, %s14350_s15  ;;  %5504 = vrot.lane.b32.xlu0 %v5234_v29, %s14350_s15  ;;  %v4519_v19 = vld [vmem:[%s8504_s8 + $0x3e2] sm:$0xff] }
 0x6fb   : > { %v5239_v29 = vmul.f32 %v5136_v50, %v4519_v19  ;;  %v4522_v19 = vld [vmem:[%s8504_s8 + $0x40a] sm:$0xff] }
 0x6fc   : > { %v11380_v5 = vpop.permute.xlu1 %5394  ;;  %v11382_v49 = vpop.permute.xlu0 %5392 }
 0x6fd   : > { %14849 = vst [vmem:[#allocation529_spill] sm:$0xff] %v11380_v5  ;;  %14850 = vst [vmem:[#allocation530_spill] sm:$0xff] %v11382_v49  ;;  %v5240_v49 = vmul.f32 %v5139_v51, %v4520_v32  ;;  %v5145_v32 = vstv %s7486_s2  ;;  %s7492_s2 = spop %7491 }
 0x6fe   : > { %5510 = vrot.lane.b32.xlu1 %v5237_v55, %s14350_s15  ;;  %5508 = vrot.lane.b32.xlu0 %v5236_v18, %s14350_s15  ;;  %v4521_v55 = vld [vmem:[%s8504_s8 + $0x3fa] sm:$0xff] }
 0x6ff   : > { %v5241_v18 = vmul.f32 %v5139_v51, %v4521_v55  ;;  %v4524_v55 = vld [vmem:[%s8504_s8 + $0x422] sm:$0xff] }
 0x700   : > { %v11388_v13 = vpop.permute.xlu1 %5398  ;;  %v11390_v37 = vpop.permute.xlu0 %5396 }
 0x701   : > { %14851 = vst [vmem:[#allocation531_spill] sm:$0xff] %v11388_v13  ;;  %14852 = vst [vmem:[#allocation532_spill] sm:$0xff] %v11390_v37  ;;  %v5242_v37 = vmul.f32 %v5142_v25, %v4522_v19  ;;  %v5148_v19 = vstv %s7488_s14  ;;  %s14971_s14 = sld [smem:[#allocation25_spill]] }
 0x702   : > { %5514 = vrot.lane.b32.xlu1 %v5239_v29, %s14350_s15  ;;  %5512 = vrot.lane.b32.xlu0 %v5238_v47, %s14350_s15  ;;  %v4523_v29 = vld [vmem:[%s8504_s8 + $0x412] sm:$0xff] }
 0x703   : > { %v5243_v47 = vmul.f32 %v5142_v25, %v4523_v29  ;;  %v4526_v29 = vld [vmem:[%s8504_s8 + $0x43a] sm:$0xff] }
 0x704   : > { %v11396_v5 = vpop.permute.xlu1 %5402  ;;  %v11398_v50 = vpop.permute.xlu0 %5400 }
 0x705   : > { %14853 = vst [vmem:[#allocation533_spill] sm:$0xff] %v11396_v5  ;;  %14854 = vst [vmem:[#allocation534_spill] sm:$0xff] %v11398_v50  ;;  %v5244_v50 = vmul.f32 %v5145_v32, %v4524_v55  ;;  %v5151_v55 = vstv %s7490_s1  ;;  %s14975_s1 = sld [smem:[#allocation26_spill]] }
 0x706   : > { %5518 = vrot.lane.b32.xlu1 %v5241_v18, %s14350_s15  ;;  %5516 = vrot.lane.b32.xlu0 %v5240_v49, %s14350_s15  ;;  %v4525_v18 = vld [vmem:[%s8504_s8 + $0x42a] sm:$0xff] }
 0x707   : > { %v5245_v49 = vmul.f32 %v5145_v32, %v4525_v18  ;;  %v4528_v18 = vld [vmem:[%s8504_s8 + $0x452] sm:$0xff] }
 0x708   : > { %v11404_v13 = vpop.permute.xlu1 %5406  ;;  %v11406_v51 = vpop.permute.xlu0 %5404 }
 0x709   : > { %14855 = vst [vmem:[#allocation535_spill] sm:$0xff] %v11404_v13  ;;  %14856 = vst [vmem:[#allocation536_spill] sm:$0xff] %v11406_v51  ;;  %v5246_v51 = vmul.f32 %v5148_v19, %v4526_v29 }
 0x70a   : > { %5522 = vrot.lane.b32.xlu1 %v5243_v47, %s14350_s15  ;;  %5520 = vrot.lane.b32.xlu0 %v5242_v37, %s14350_s15  ;;  %v4527_v47 = vld [vmem:[%s8504_s8 + $0x442] sm:$0xff] }
 0x70b   : > { %v5247_v37 = vmul.f32 %v5148_v19, %v4527_v47  ;;  %v5154_v19 = vstv %s7492_s2  ;;  %v4530_v47 = vld [vmem:[%s8504_s8 + $0x46a] sm:$0xff]  ;;  %s14976_s2 = sld [smem:[#allocation27_spill]] }
 0x70c   : > { %v11412_v5 = vpop.permute.xlu1 %5410  ;;  %v11414_v25 = vpop.permute.xlu0 %5408 }
 0x70d   : > { %14857 = vst [vmem:[#allocation537_spill] sm:$0xff] %v11412_v5  ;;  %14858 = vst [vmem:[#allocation538_spill] sm:$0xff] %v11414_v25  ;;  %v5248_v25 = vmul.f32 %v5151_v55, %v4528_v18 }
 0x70e   : > { %5526 = vrot.lane.b32.xlu1 %v5245_v49, %s14350_s15  ;;  %5524 = vrot.lane.b32.xlu0 %v5244_v50, %s14350_s15  ;;  %v4529_v49 = vld [vmem:[%s8504_s8 + $0x45a] sm:$0xff] }
 0x70f   : > { %v5249_v50 = vmul.f32 %v5151_v55, %v4529_v49 }
 0x710   : > { %v11420_v13 = vpop.permute.xlu1 %5414  ;;  %v11422_v32 = vpop.permute.xlu0 %5412 }
 0x711   : > { %14859 = vst [vmem:[#allocation539_spill] sm:$0xff] %v11420_v13  ;;  %14860 = vst [vmem:[#allocation540_spill] sm:$0xff] %v11422_v32  ;;  %v4531_v32 = vld [vmem:[%s8504_s8 + $0x472] sm:$0xff]  ;;  %v5250_v13 = vmul.f32 %v5154_v19, %v4530_v47 }
 0x712   : > { %5530 = vrot.lane.b32.xlu1 %v5247_v37, %s14350_s15  ;;  %5528 = vrot.lane.b32.xlu0 %v5246_v51, %s14350_s15  ;;  %v5251_v44 = vmul.f32 %v5154_v19, %v4531_v32 }
 0x714   : > { %v11428_v5 = vpop.permute.xlu1 %5418  ;;  %v11430_v29 = vpop.permute.xlu0 %5416 }
 0x715   : > { %14861 = vst [vmem:[#allocation541_spill] sm:$0xff] %v11428_v5  ;;  %14862 = vst [vmem:[#allocation542_spill] sm:$0xff] %v11430_v29 }
 0x716   : > { %5534 = vrot.lane.b32.xlu1 %v5249_v50, %s14350_s15  ;;  %5532 = vrot.lane.b32.xlu0 %v5248_v25, %s14350_s15 }
 0x718   : > { %v11436_v37 = vpop.permute.xlu1 %5422  ;;  %v11438_v51 = vpop.permute.xlu0 %5420 }
 0x719   : > { %14863 = vst [vmem:[#allocation543_spill] sm:$0xff] %v11436_v37  ;;  %14864 = vst [vmem:[#allocation544_spill] sm:$0xff] %v11438_v51  ;;  %v7935_v37 = vld [vmem:[%s8504_s8 + $0x240] sm:$0xff] }
 0x71a   : > { %5538 = vrot.lane.b32.xlu1 %v5251_v44, %s14350_s15  ;;  %5536 = vrot.lane.b32.xlu0 %v5250_v13, %s14350_s15  ;;  %s14967_s15 = sld [smem:[#allocation24_spill]] }
 0x71c   : > { %v11442_v55 = vpop.permute.xlu1 %5426  ;;  %v11444_v18 = vpop.permute.xlu0 %5424 }
 0x71d   : > { %14865 = vst [vmem:[#allocation545_spill] sm:$0xff] %v11442_v55  ;;  %14866 = vst [vmem:[#allocation546_spill] sm:$0xff] %v11444_v18  ;;  %v7933_v55 = vld [vmem:[%s8504_s8 + $0x228] sm:$0xff] }
 0x71e   : > { %5732 = vrot.lane.b32.xlu0 %v10425_v41, %s14631_s10  ;;  %5734 = vrot.lane.b32.xlu1 %v10430_v31, %s14631_s10 }
 0x720   : > { %v11450_v25 = vpop.permute.xlu1 %5430  ;;  %v11452_v32 = vpop.permute.xlu0 %5428 }
 0x721   : > { %14867 = vst [vmem:[#allocation547_spill] sm:$0xff] %v11450_v25  ;;  %14868 = vst [vmem:[#allocation548_spill] sm:$0xff] %v11452_v32 }
 0x722   : > { %5736 = vrot.lane.b32.xlu0 %v10433_v30, %s14631_s10  ;;  %5738 = vrot.lane.b32.xlu1 %v10440_v11, %s14631_s10 }
 0x724   : > { %v11458_v44 = vpop.permute.xlu1 %5434  ;;  %v11460_v13 = vpop.permute.xlu0 %5432 }
 0x725   : > { %14869 = vst [vmem:[#allocation549_spill] sm:$0xff] %v11458_v44  ;;  %14870 = vst [vmem:[#allocation550_spill] sm:$0xff] %v11460_v13 }
 0x726   : > { %5740 = vrot.lane.b32.xlu0 %v10445_v46, %s14631_s10  ;;  %5742 = vrot.lane.b32.xlu1 %v10451_v21, %s14631_s10 }
 0x728   : > { %v11466_v41 = vpop.permute.xlu1 %5438  ;;  %v11468_v31 = vpop.permute.xlu0 %5436 }
 0x729   : > { %14871 = vst [vmem:[#allocation551_spill] sm:$0xff] %v11466_v41  ;;  %14872 = vst [vmem:[#allocation552_spill] sm:$0xff] %v11468_v31  ;;  %v7927_v41 = vld [vmem:[%s8504_s8 + $0x1e0] sm:$0xff] }
 0x72a   : > { %5744 = vrot.lane.b32.xlu0 %v10455_v10, %s14631_s10  ;;  %5746 = vrot.lane.b32.xlu1 %v10463_v38, %s14631_s10 }
 0x72c   : > { %v11474_v11 = vpop.permute.xlu1 %5442  ;;  %v11476_v30 = vpop.permute.xlu0 %5440 }
 0x72d   : > { %14873 = vst [vmem:[#allocation553_spill] sm:$0xff] %v11474_v11  ;;  %14874 = vst [vmem:[#allocation554_spill] sm:$0xff] %v11476_v30  ;;  %v7923_v30 = vld [vmem:[%s8504_s8 + $0x1b0] sm:$0xff] }
 0x72e   : > { %5748 = vrot.lane.b32.xlu0 %v10468_v3, %s14631_s10  ;;  %5750 = vrot.lane.b32.xlu1 %v10474_v1, %s14631_s10 }
 0x730   : > { %v11482_v46 = vpop.permute.xlu1 %5446  ;;  %v11484_v21 = vpop.permute.xlu0 %5444 }
 0x731   : > { %14875 = vst [vmem:[#allocation555_spill] sm:$0xff] %v11482_v46  ;;  %14876 = vst [vmem:[#allocation556_spill] sm:$0xff] %v11484_v21  ;;  %v7922_v46 = vld [vmem:[%s8504_s8 + $0x1a0] sm:$0xff] }
 0x732   : > { %5752 = vrot.lane.b32.xlu0 %v10478_v34, %s14631_s10  ;;  %5754 = vrot.lane.b32.xlu1 %v10486_v14, %s14631_s10 }
 0x734   : > { %v11490_v38 = vpop.permute.xlu1 %5450  ;;  %v11492_v10 = vpop.permute.xlu0 %5448 }
 0x735   : > { %14877 = vst [vmem:[#allocation557_spill] sm:$0xff] %v11490_v38  ;;  %14878 = vst [vmem:[#allocation558_spill] sm:$0xff] %v11492_v10  ;;  %v7921_v38 = vld [vmem:[%s8504_s8 + $0x198] sm:$0xff] }
 0x736   : > { %5756 = vrot.lane.b32.xlu0 %v10491_v8, %s14631_s10  ;;  %5758 = vrot.lane.b32.xlu1 %v10497_v17, %s14631_s10 }
 0x738   : > { %v11498_v3 = vpop.permute.xlu1 %5454  ;;  %v11500_v1 = vpop.permute.xlu0 %5452 }
 0x739   : > { %14879 = vst [vmem:[#allocation559_spill] sm:$0xff] %v11498_v3  ;;  %14880 = vst [vmem:[#allocation560_spill] sm:$0xff] %v11500_v1  ;;  %v7918_v1 = vld [vmem:[%s8504_s8 + $0x170] sm:$0xff]  ;;  %v7919_v3 = vld [vmem:[%s8504_s8 + $0x180] sm:$0xff] }
 0x73a   : > { %5760 = vrot.lane.b32.xlu0 %v10501_v22, %s14631_s10  ;;  %5762 = vrot.lane.b32.xlu1 %v10509_v28, %s14631_s10 }
 0x73c   : > { %v11506_v14 = vpop.permute.xlu1 %5458  ;;  %v11508_v34 = vpop.permute.xlu0 %5456 }
 0x73d   : > { %14881 = vst [vmem:[#allocation561_spill] sm:$0xff] %v11506_v14  ;;  %14882 = vst [vmem:[#allocation562_spill] sm:$0xff] %v11508_v34  ;;  %v7916_v34 = vld [vmem:[%s8504_s8 + $0x158] sm:$0xff]  ;;  %v386_v14 = vstv %s8446_s7  ;;  %s14964_s7 = sld [smem:[#allocation23_spill]] }
 0x73e   : > { %5764 = vrot.lane.b32.xlu0 %v10514_v48, %s14631_s10  ;;  %5766 = vrot.lane.b32.xlu1 %v10520_v33, %s14631_s10 }
 0x740   : > { %v11514_v8 = vpop.permute.xlu1 %5462  ;;  %v11516_v17 = vpop.permute.xlu0 %5460 }
 0x741   : > { %14883 = vst [vmem:[#allocation563_spill] sm:$0xff] %v11514_v8  ;;  %14884 = vst [vmem:[#allocation564_spill] sm:$0xff] %v11516_v17 }
 0x742   : > { %5768 = vrot.lane.b32.xlu0 %v10524_v40, %s14631_s10  ;;  %5770 = vrot.lane.b32.xlu1 %v10532_v45, %s14631_s10 }
 0x744   : > { %v11522_v28 = vpop.permute.xlu1 %5466  ;;  %v11524_v22 = vpop.permute.xlu0 %5464 }
 0x745   : > { %14885 = vst [vmem:[#allocation565_spill] sm:$0xff] %v11522_v28  ;;  %14886 = vst [vmem:[#allocation566_spill] sm:$0xff] %v11524_v22  ;;  %v7911_v22 = vld [vmem:[%s8504_s8 + $0x120] sm:$0xff] }
 0x746   : > { %5772 = vrot.lane.b32.xlu0 %v10537_v60, %s14631_s10  ;;  %5774 = vrot.lane.b32.xlu1 %v10543_v43, %s14631_s10 }
 0x748   : > { %v11530_v48 = vpop.permute.xlu1 %5470  ;;  %v11532_v33 = vpop.permute.xlu0 %5468 }
 0x749   : > { %14887 = vst [vmem:[#allocation567_spill] sm:$0xff] %v11530_v48  ;;  %14888 = vst [vmem:[#allocation568_spill] sm:$0xff] %v11532_v33 }
 0x74a   : > { %5776 = vrot.lane.b32.xlu0 %v10547_v53, %s14631_s10  ;;  %5778 = vrot.lane.b32.xlu1 %v10555_v2, %s14631_s10 }
 0x74c   : > { %v11538_v45 = vpop.permute.xlu1 %5474  ;;  %v11540_v40 = vpop.permute.xlu0 %5472 }
 0x74d   : > { %14889 = vst [vmem:[#allocation569_spill] sm:$0xff] %v11538_v45  ;;  %14890 = vst [vmem:[#allocation570_spill] sm:$0xff] %v11540_v40  ;;  %v7907_v40 = vld [vmem:[%s8504_s8 + $0xf0] sm:$0xff] }
 0x74e   : > { %5780 = vrot.lane.b32.xlu0 %v10560_v57, %s14631_s10  ;;  %5782 = vrot.lane.b32.xlu1 %v10566_v20, %s14631_s10 }
 0x750   : > { %v11546_v60 = vpop.permute.xlu1 %5478  ;;  %v11548_v43 = vpop.permute.xlu0 %5476 }
 0x751   : > { %14891 = vst [vmem:[#allocation571_spill] sm:$0xff] %v11546_v60  ;;  %14892 = vst [vmem:[#allocation572_spill] sm:$0xff] %v11548_v43  ;;  %v7906_v43 = vld [vmem:[%s8504_s8 + $0xe0] sm:$0xff] }
 0x752   : > { %5784 = vrot.lane.b32.xlu0 %v10570_v7, %s14631_s10  ;;  %5786 = vrot.lane.b32.xlu1 %v10578_v15, %s14631_s10 }
 0x754   : > { %v11554_v2 = vpop.permute.xlu1 %5482  ;;  %v11556_v53 = vpop.permute.xlu0 %5480 }
 0x755   : > { %14893 = vst [vmem:[#allocation573_spill] sm:$0xff] %v11554_v2  ;;  %14894 = vst [vmem:[#allocation574_spill] sm:$0xff] %v11556_v53 }
 0x756   : > { %5788 = vrot.lane.b32.xlu0 %v10583_v36, %s14631_s10  ;;  %5790 = vrot.lane.b32.xlu1 %v10589_v63, %s14631_s10 }
 0x758   : > { %v11562_v57 = vpop.permute.xlu1 %5486  ;;  %v11564_v20 = vpop.permute.xlu0 %5484 }
 0x759   : > { %14895 = vst [vmem:[#allocation575_spill] sm:$0xff] %v11562_v57  ;;  %14896 = vst [vmem:[#allocation576_spill] sm:$0xff] %v11564_v20  ;;  %v350_v20 = vstv %s8426_s26  ;;  %v7903_v57 = vld [vmem:[%s8504_s8 + $0xc0] sm:$0xff]  ;;  %s14936_s26 = sld [smem:[#allocation14_spill]] }
 0x75a   : > { %5792 = vrot.lane.b32.xlu0 %v10593_v59, %s14631_s10  ;;  %5794 = vrot.lane.b32.xlu1 %v10601_v4, %s14631_s10 }
 0x75c   : > { %v11570_v15 = vpop.permute.xlu1 %5490  ;;  %v11572_v7 = vpop.permute.xlu0 %5488 }
 0x75d   : > { %14897 = vst [vmem:[#allocation577_spill] sm:$0xff] %v11570_v15  ;;  %14898 = vst [vmem:[#allocation578_spill] sm:$0xff] %v11572_v7  ;;  %v7901_v15 = vld [vmem:[%s8504_s8 + $0xa8] sm:$0xff] }
 0x75e   : > { %5796 = vrot.lane.b32.xlu0 %v10606_v56, %s14631_s10  ;;  %5798 = vrot.lane.b32.xlu1 %v10610_v24, %s14631_s10 }
 0x760   : > { %v11578_v36 = vpop.permute.xlu1 %5494  ;;  %v11580_v63 = vpop.permute.xlu0 %5492 }
 0x761   : > { %14899 = vst [vmem:[#allocation579_spill] sm:$0xff] %v11578_v36  ;;  %14900 = vst [vmem:[#allocation580_spill] sm:$0xff] %v11580_v63 }
 0x762   : > { %5800 = vrot.lane.b32.xlu0 %v10614_v26, %s14631_s10  ;;  %5802 = vrot.lane.b32.xlu1 %v10625_v12, %s14631_s10 }
 0x764   : > { %v11586_v4 = vpop.permute.xlu1 %5498  ;;  %v11588_v59 = vpop.permute.xlu0 %5496 }
 0x765   : > { %14901 = vst [vmem:[#allocation581_spill] sm:$0xff] %v11586_v4  ;;  %14902 = vst [vmem:[#allocation582_spill] sm:$0xff] %v11588_v59 }
 0x766   : > { %5806 = vrot.lane.b32.xlu1 %v10641_v58, %s14631_s10  ;;  %5804 = vrot.lane.b32.xlu0 %v10633_v62, %s14631_s10 }
 0x768   : > { %v11594_v56 = vpop.permute.xlu1 %5502  ;;  %v11596_v24 = vpop.permute.xlu0 %5500 }
 0x769   : > { %14903 = vst [vmem:[#allocation583_spill] sm:$0xff] %v11594_v56  ;;  %14904 = vst [vmem:[#allocation584_spill] sm:$0xff] %v11596_v24  ;;  %v338_v24 = vstv %s8416_s23  ;;  %v7895_v56 = vld [vmem:[%s8504_s8 + $0x60] sm:$0xff]  ;;  %s14930_s23 = sld [smem:[#allocation11_spill]] }
 0x76a   : > { %5810 = vrot.lane.b32.xlu1 %v10657_v6, %s14631_s10  ;;  %5808 = vrot.lane.b32.xlu0 %v10649_v27, %s14631_s10 }
 0x76c   : > { %v11602_v26 = vpop.permute.xlu1 %5506  ;;  %v11604_v12 = vpop.permute.xlu0 %5504 }
 0x76d   : > { %14905 = vst [vmem:[#allocation585_spill] sm:$0xff] %v11602_v26  ;;  %14906 = vst [vmem:[#allocation586_spill] sm:$0xff] %v11604_v12  ;;  %v7891_v12 = vld [vmem:[%s8504_s8 + $0x30] sm:$0xff] }
 0x76e   : > { %5814 = vrot.lane.b32.xlu1 %v10673_v16, %s14631_s10  ;;  %5812 = vrot.lane.b32.xlu0 %v10665_v52, %s14631_s10 }
 0x770   : > { %v11610_v62 = vpop.permute.xlu1 %5510  ;;  %v11612_v58 = vpop.permute.xlu0 %5508 }
 0x771   : > { %14907 = vst [vmem:[#allocation587_spill] sm:$0xff] %v11610_v62  ;;  %14908 = vst [vmem:[#allocation588_spill] sm:$0xff] %v11612_v58  ;;  %v330_v62 = vstv %s8410_s21  ;;  %s14928_s21 = sld [smem:[#allocation9_spill]] }
 0x772   : > { %5818 = vrot.lane.b32.xlu1 %v10689_v35, %s14631_s10  ;;  %5816 = vrot.lane.b32.xlu0 %v10681_v23, %s14631_s10 }
 0x774   : > { %v11618_v27 = vpop.permute.xlu1 %5514  ;;  %v11620_v6 = vpop.permute.xlu0 %5512 }
 0x775   : > { %14909 = vst [vmem:[#allocation589_spill] sm:$0xff] %v11618_v27  ;;  %14910 = vst [vmem:[#allocation590_spill] sm:$0xff] %v11620_v6  ;;  %v7890_v27 = vld [vmem:[%s8504_s8 + $0x20] sm:$0xff] }
 0x776   : > { %5822 = vrot.lane.b32.xlu1 %v10713_v54, %s14631_s10  ;;  %5820 = vrot.lane.b32.xlu0 %v10697_v42, %s14631_s10 }
 0x778   : > { %v11626_v52 = vpop.permute.xlu1 %5518  ;;  %v11628_v16 = vpop.permute.xlu0 %5516 }
 0x779   : > { %14911 = vst [vmem:[#allocation591_spill] sm:$0xff] %v11626_v52  ;;  %14912 = vst [vmem:[#allocation592_spill] sm:$0xff] %v11628_v16 }
 0x77a   : > { %5826 = vrot.lane.b32.xlu1 %v10741_v9, %s14631_s10  ;;  %5824 = vrot.lane.b32.xlu0 %v10729_v61, %s14631_s10 }
 0x77c   : > { %v11634_v23 = vpop.permute.xlu1 %5522  ;;  %v11636_v35 = vpop.permute.xlu0 %5520 }
 0x77d   : > { %14913 = vst [vmem:[#allocation593_spill] sm:$0xff] %v11634_v23  ;;  %14914 = vst [vmem:[#allocation594_spill] sm:$0xff] %v11636_v35 }
 0x780   : > { %v11638_v54 = vpop.permute.xlu1 %5526  ;;  %v11640_v42 = vpop.permute.xlu0 %5524 }
 0x781   : > { %14915 = vst [vmem:[#allocation595_spill] sm:$0xff] %v11638_v54  ;;  %14916 = vst [vmem:[#allocation596_spill] sm:$0xff] %v11640_v42  ;;  %v310_v42 = vstv %s8396_s16  ;;  %s14923_s16 = sld [smem:[#allocation4_spill]] }
 0x784   : > { %v11642_v49 = vpop.permute.xlu1 %5530  ;;  %v11644_v50 = vpop.permute.xlu0 %5528 }
 0x785   : > { %14917 = vst [vmem:[#allocation597_spill] sm:$0xff] %v11642_v49  ;;  %14918 = vst [vmem:[#allocation598_spill] sm:$0xff] %v11644_v50  ;;  %v314_v49 = vstv %s8398_s17  ;;  %v318_v50 = vstv %s8402_s18  ;;  %s14924_s17 = sld [smem:[#allocation5_spill]] }
 0x786   : > { %v11669_v58 = vmul.f32 %v7890_v27, %v314_v49  ;;  %v7894_v27 = vld [vmem:[%s8504_s8 + $0x50] sm:$0xff]  ;;  %s14925_s18 = sld [smem:[#allocation6_spill]] }
 0x788   : > { %v11646_v9 = vpop.permute.xlu1 %5534  ;;  %v11648_v61 = vpop.permute.xlu0 %5532 }
 0x789   : > { %14919 = vst [vmem:[#allocation599_spill] sm:$0xff] %v11646_v9  ;;  %14920 = vst [vmem:[#allocation600_spill] sm:$0xff] %v11648_v61  ;;  %v322_v9 = vstv %s8404_s19  ;;  %s14926_s19 = sld [smem:[#allocation7_spill]] }
 0x78c   : > { %v11650_v19 = vpop.permute.xlu1 %5538  ;;  %v11652_v47 = vpop.permute.xlu0 %5536 }
 0x78d   : > { %14921 = vst [vmem:[#allocation601_spill] sm:$0xff] %v11650_v19  ;;  %14922 = vst [vmem:[#allocation602_spill] sm:$0xff] %v11652_v47  ;;  %v7887_v19 = vld [vmem:[%s8504_s8] sm:$0xff]  ;;  %v7888_v47 = vld [vmem:[%s8504_s8 + $0x8] sm:$0xff] }
 0x78e   : > { %v11659_v16 = vmul.f32 %v7887_v19, %v310_v42  ;;  %v11662_v52 = vmul.f32 %v7888_v47, %v310_v42  ;;  %v334_v19 = vstv %s8414_s22  ;;  %v11674_v42 = vmul.f32 %v7891_v12, %v318_v50  ;;  %v7892_v47 = vld [vmem:[%s8504_s8 + $0x38] sm:$0xff]  ;;  %v7896_v12 = vld [vmem:[%s8504_s8 + $0x68] sm:$0xff]  ;;  %s14929_s22 = sld [smem:[#allocation10_spill]] }
 0x78f   : > { %v11677_v26 = vmul.f32 %v7892_v47, %v318_v50  ;;  %v342_v50 = vstv %s8420_s24  ;;  %v402_v31 = vstv %s14926_s19  ;;  %s14932_s24 = sld [smem:[#allocation12_spill]] }
 0x790   : > { %v5733_v35 = vpop.permute.xlu0 %5732  ;;  %v5735_v54 = vpop.permute.xlu1 %5734  ;;  %v11715_v53 = vmul.f32 %v7903_v57, %v342_v50  ;;  %s14984_s19 = sld [smem:[#allocation31_spill]] }
 0x791   : > { %7493 = vpush %v5733_v35  ;;  %v326_v35 = vstv %s8408_s20  ;;  %s14927_s20 = sld [smem:[#allocation8_spill]] }
 0x792   : > { %7495 = vpush %v5735_v54  ;;  %v7889_v54 = vld [vmem:[%s8504_s8 + $0x18] sm:$0xff]  ;;  %v11690_v59 = vmul.f32 %v7896_v12, %v326_v35 }
 0x793   : > { %v11666_v6 = vmul.f32 %v7889_v54, %v314_v49  ;;  %v11684_v49 = vmul.f32 %v7894_v27, %v322_v9  ;;  %v7900_v12 = vld [vmem:[%s8504_s8 + $0x98] sm:$0xff] }
 0x794   : > { %v5737_v23 = vpop.permute.xlu0 %5736  ;;  %v5739_v61 = vpop.permute.xlu1 %5738  ;;  %v11704_v7 = vmul.f32 %v7900_v12, %v334_v19  ;;  %v358_v12 = vstv %s8432_s28  ;;  %v414_v51 = vstv %s14929_s22  ;;  %s14943_s28 = sld [smem:[#allocation16_spill]] }
 0x795   : > { %7497 = vpush %v5737_v23  ;;  %v7893_v23 = vld [vmem:[%s8504_s8 + $0x48] sm:$0xff]  ;;  %v11743_v28 = vmul.f32 %v7911_v22, %v358_v12  ;;  %v378_v22 = vstv %s8442_s5  ;;  %s14959_s5 = sld [smem:[#allocation21_spill]] }
 0x796   : > { %7499 = vpush %v5739_v61  ;;  %v11680_v54 = vmul.f32 %v7893_v23, %v322_v9  ;;  %v11687_v61 = vmul.f32 %v7895_v56, %v326_v35  ;;  %v7897_v23 = vld [vmem:[%s8504_s8 + $0x78] sm:$0xff]  ;;  %v7898_v9 = vld [vmem:[%s8504_s8 + $0x80] sm:$0xff]  ;;  %v7899_v56 = vld [vmem:[%s8504_s8 + $0x90] sm:$0xff]  ;;  %v346_v35 = vstv %s8422_s25  ;;  %v11778_v21 = vmul.f32 %v7921_v38, %v378_v22  ;;  %s14934_s25 = sld [smem:[#allocation13_spill]] }
 0x797   : > { %v11694_v63 = vmul.f32 %v7897_v23, %v330_v62  ;;  %v11697_v27 = vmul.f32 %v7898_v9, %v330_v62  ;;  %v11700_v36 = vmul.f32 %v7899_v56, %v334_v19  ;;  %v11707_v23 = vmul.f32 %v7901_v15, %v338_v24  ;;  %v7902_v9 = vld [vmem:[%s8504_s8 + $0xb0] sm:$0xff]  ;;  %v7905_v15 = vld [vmem:[%s8504_s8 + $0xd8] sm:$0xff] }
 0x798   : > { %v5741_v47 = vpop.permute.xlu0 %5740  ;;  %v5743_v4 = vpop.permute.xlu1 %5742  ;;  %v354_v62 = vstv %s8428_s27  ;;  %v11712_v56 = vmul.f32 %v7902_v9, %v338_v24  ;;  %v11722_v2 = vmul.f32 %v7905_v15, %v346_v35  ;;  %v362_v24 = vstv %s8434_s29  ;;  %v7909_v15 = vld [vmem:[%s8504_s8 + $0x108] sm:$0xff]  ;;  %s14940_s27 = sld [smem:[#allocation15_spill]] }
 0x799   : > { %7501 = vpush %v5741_v47  ;;  %v7904_v47 = vld [vmem:[%s8504_s8 + $0xc8] sm:$0xff]  ;;  %v366_v9 = vstv %s8436_s30  ;;  %v11736_v33 = vmul.f32 %v7909_v15, %v354_v62  ;;  %v7913_v15 = vld [vmem:[%s8504_s8 + $0x138] sm:$0xff]  ;;  %s14947_s29 = sld [smem:[#allocation17_spill]] }
 0x79a   : > { %7503 = vpush %v5743_v4  ;;  %v11718_v19 = vmul.f32 %v7904_v47, %v342_v50  ;;  %v11725_v4 = vmul.f32 %v7906_v43, %v346_v35  ;;  %v11730_v50 = vmul.f32 %v7907_v40, %v350_v20  ;;  %v7908_v47 = vld [vmem:[%s8504_s8 + $0xf8] sm:$0xff]  ;;  %v370_v43 = vstv %s8438_s3  ;;  %v7910_v35 = vld [vmem:[%s8504_s8 + $0x110] sm:$0xff]  ;;  %v7912_v40 = vld [vmem:[%s8504_s8 + $0x128] sm:$0xff]  ;;  %s14950_s30 = sld [smem:[#allocation18_spill]] }
 0x79b   : > { %v11733_v45 = vmul.f32 %v7908_v47, %v350_v20  ;;  %v11740_v48 = vmul.f32 %v7910_v35, %v354_v62  ;;  %v11746_v20 = vmul.f32 %v7912_v40, %v358_v12  ;;  %v374_v47 = vstv %s8440_s4  ;;  %v7915_v62 = vld [vmem:[%s8504_s8 + $0x150] sm:$0xff]  ;;  %v7917_v40 = vld [vmem:[%s8504_s8 + $0x168] sm:$0xff]  ;;  %s14951_s3 = sld [smem:[#allocation19_spill]] }
 0x79c   : > { %v5745_v60 = vpop.permute.xlu0 %5744  ;;  %v5747_v57 = vpop.permute.xlu1 %5746  ;;  %v11750_v17 = vmul.f32 %v7913_v15, %v362_v24  ;;  %v11756_v35 = vmul.f32 %v7915_v62, %v366_v9  ;;  %v11760_v12 = vmul.f32 %v7916_v34, %v366_v9  ;;  %v382_v15 = vstv %s8444_s6  ;;  %v7920_v34 = vld [vmem:[%s8504_s8 + $0x188] sm:$0xff]  ;;  %s14956_s4 = sld [smem:[#allocation20_spill]] }
 0x79d   : > { %7505 = vpush %v5745_v60  ;;  %v7914_v60 = vld [vmem:[%s8504_s8 + $0x140] sm:$0xff]  ;;  %v11768_v62 = vmul.f32 %v7918_v1, %v370_v43  ;;  %v11771_v10 = vmul.f32 %v7919_v3, %v374_v47  ;;  %v11774_v9 = vmul.f32 %v7920_v34, %v374_v47  ;;  %v11781_v1 = vmul.f32 %v7922_v46, %v378_v22  ;;  %v7924_v34 = vld [vmem:[%s8504_s8 + $0x1b8] sm:$0xff]  ;;  %v7926_v46 = vld [vmem:[%s8504_s8 + $0x1d0] sm:$0xff]  ;;  %s14960_s6 = sld [smem:[#allocation22_spill]] }
 0x79e   : > { %7507 = vpush %v5747_v57  ;;  %v11753_v8 = vmul.f32 %v7914_v60, %v362_v24  ;;  %v11763_v57 = vmul.f32 %v7917_v40, %v370_v43  ;;  %v390_v40 = vstv %s14923_s16  ;;  %v394_v43 = vstv %s14924_s17  ;;  %s14979_s16 = sld [smem:[#allocation28_spill]] }
 0x79f   : > { %v398_v3 = vstv %s14925_s18  ;;  %v11786_v47 = vmul.f32 %v7923_v30, %v382_v15  ;;  %v11789_v11 = vmul.f32 %v7924_v34, %v382_v15  ;;  %v11796_v22 = vmul.f32 %v7926_v46, %v386_v14  ;;  %v7928_v30 = vld [vmem:[%s8504_s8 + $0x1e8] sm:$0xff]  ;;  %s14980_s17 = sld [smem:[#allocation29_spill]] }
 0x7a0   : > { %v5749_v24 = vpop.permute.xlu0 %5748  ;;  %v5751_v60 = vpop.permute.xlu1 %5750  ;;  %v11802_v13 = vmul.f32 %v7928_v30, %v390_v40  ;;  %v406_v15 = vstv %s14927_s20  ;;  %v7932_v30 = vld [vmem:[%s8504_s8 + $0x218] sm:$0xff]  ;;  %s14983_s18 = sld [smem:[#allocation30_spill]] }
 0x7a1   : > { %7509 = vpush %v5749_v24  ;;  %v7925_v24 = vld [vmem:[%s8504_s8 + $0x1c8] sm:$0xff]  ;;  %v11816_v18 = vmul.f32 %v7932_v30, %v398_v3  ;;  %v11827_v29 = vmul.f32 %v7935_v37, %v406_v15  ;;  %v422_v30 = vstv %s14932_s24 }
 0x7a2   : > { %7511 = vpush %v5751_v60  ;;  %v11792_v38 = vmul.f32 %v7925_v24, %v386_v14  ;;  %v11799_v60 = vmul.f32 %v7927_v41, %v390_v40  ;;  %v7929_v24 = vld [vmem:[%s8504_s8 + $0x1f8] sm:$0xff]  ;;  %v7930_v14 = vld [vmem:[%s8504_s8 + $0x200] sm:$0xff]  ;;  %v7931_v41 = vld [vmem:[%s8504_s8 + $0x210] sm:$0xff]  ;;  %v410_v40 = vstv %s14928_s21 }
 0x7a3   : > { %v11806_v32 = vmul.f32 %v7929_v24, %v394_v43  ;;  %v11809_v46 = vmul.f32 %v7930_v14, %v394_v43  ;;  %v11812_v25 = vmul.f32 %v7931_v41, %v398_v3  ;;  %14933 = vst [vmem:[#allocation604_spill] sm:$0xff] %v11816_v18  ;;  %v11819_v24 = vmul.f32 %v7933_v55, %v402_v31  ;;  %v7934_v14 = vld [vmem:[%s8504_s8 + $0x230] sm:$0xff]  ;;  %v7937_v55 = vld [vmem:[%s8504_s8 + $0x258] sm:$0xff] }
 0x7a4   : > { %v5753_v34 = vpop.permute.xlu0 %5752  ;;  %v5755_v44 = vpop.permute.xlu1 %5754  ;;  %v418_v43 = vstv %s14930_s23  ;;  %v11824_v41 = vmul.f32 %v7934_v14, %v402_v31  ;;  %14938 = vst [vmem:[#allocation607_spill] sm:$0xff] %v11827_v29  ;;  %v11834_v5 = vmul.f32 %v7937_v55, %v410_v40  ;;  %v426_v31 = vstv %s14934_s25  ;;  %v7939_v29 = vld [vmem:[%s8504_s8 + $0x270] sm:$0xff]  ;;  %v7941_v55 = vld [vmem:[%s8504_s8 + $0x288] sm:$0xff] }
 0x7a5   : > { %14931 = vst [vmem:[#allocation603_spill] sm:$0xff] %v11812_v25  ;;  %7513 = vpush %v5753_v34  ;;  %v7936_v34 = vld [vmem:[%s8504_s8 + $0x248] sm:$0xff]  ;;  %v430_v14 = vstv %s14936_s26  ;;  %s15186_s26 = sld [smem:[#allocation224_spill]] }
 0x7a6   : > { %14935 = vst [vmem:[#allocation605_spill] sm:$0xff] %v11819_v24  ;;  %7515 = vpush %v5755_v44  ;;  %v11830_v3 = vmul.f32 %v7936_v34, %v406_v15  ;;  %v11837_v44 = vmul.f32 %v7938_v0, %v410_v40  ;;  %v11842_v15 = vmul.f32 %v7939_v29, %v414_v51  ;;  %v7940_v34 = vld [vmem:[%s8504_s8 + $0x278] sm:$0xff]  ;;  %v434_v0 = vstv %s14940_s27  ;;  %v7942_v40 = vld [vmem:[%s8504_s8 + $0x290] sm:$0xff]  ;;  %s15189_s27 = sld [smem:[#allocation225_spill]] }
 0x7a7   : > { %14937 = vst [vmem:[#allocation606_spill] sm:$0xff] %v11824_v41  ;;  %14941 = vst [vmem:[#allocation609_spill] sm:$0xff] %v11834_v5  ;;  %v11848_v5 = vmul.f32 %v7941_v55, %v418_v43  ;;  %v7943_v24 = vld [vmem:[%s8504_s8 + $0x2a0] sm:$0xff]  ;;  %v7944_v29 = vld [vmem:[%s8504_s8 + $0x2a8] sm:$0xff] }
 0x7a8   : > { %14939 = vst [vmem:[#allocation608_spill] sm:$0xff] %v11830_v3  ;;  %14942 = vst [vmem:[#allocation610_spill] sm:$0xff] %v11837_v44  ;;  %v5757_v39 = vpop.permute.xlu0 %5756  ;;  %v5759_v37 = vpop.permute.xlu1 %5758  ;;  %v11845_v3 = vmul.f32 %v7940_v34, %v414_v51  ;;  %v11852_v44 = vmul.f32 %v7942_v40, %v418_v43  ;;  %v11855_v41 = vmul.f32 %v7943_v24, %v422_v30  ;;  %v438_v34 = vstv %s14943_s28  ;;  %v7945_v55 = vld [vmem:[%s8504_s8 + $0x2b8] sm:$0xff]  ;;  %v7947_v43 = vld [vmem:[%s8504_s8 + $0x2d0] sm:$0xff]  ;;  %s15191_s28 = sld [smem:[#allocation226_spill]] }
 0x7a9   : > { %14944 = vst [vmem:[#allocation611_spill] sm:$0xff] %v11842_v15  ;;  %14946 = vst [vmem:[#allocation613_spill] sm:$0xff] %v11848_v5  ;;  %v11858_v51 = vmul.f32 %v7944_v29, %v422_v30  ;;  %v11862_v5 = vmul.f32 %v7945_v55, %v426_v31  ;;  %v11868_v40 = vmul.f32 %v7947_v43, %v430_v14  ;;  %v442_v24 = vstv %s14947_s29  ;;  %v7949_v29 = vld [vmem:[%s8504_s8 + $0x2e8] sm:$0xff]  ;;  %s15196_s29 = sld [smem:[#allocation227_spill]] }
 0x7aa   : > { %14945 = vst [vmem:[#allocation612_spill] sm:$0xff] %v11845_v3  ;;  %7517 = vpush %v5757_v39  ;;  %v7946_v39 = vld [vmem:[%s8504_s8 + $0x2c0] sm:$0xff]  ;;  %v446_v55 = vstv %s14950_s30 }
 0x7ab   : > { %14948 = vst [vmem:[#allocation614_spill] sm:$0xff] %v11852_v44  ;;  %14949 = vst [vmem:[#allocation615_spill] sm:$0xff] %v11855_v41  ;;  %v11865_v15 = vmul.f32 %v7946_v39, %v426_v31  ;;  %v7948_v41 = vld [vmem:[%s8504_s8 + $0x2d8] sm:$0xff]  ;;  %v7954_v44 = vld [vmem:[%s8504_s8 + $0x320] sm:$0xff] }
 0x7ac   : > { %14952 = vst [vmem:[#allocation616_spill] sm:$0xff] %v11858_v51  ;;  %7519 = vpush %v5759_v37  ;;  %v11872_v30 = vmul.f32 %v7948_v41, %v430_v14  ;;  %v11875_v37 = vmul.f32 %v7949_v29, %v434_v0  ;;  %v5761_v31 = vpop.permute.xlu0 %5760  ;;  %v5763_v39 = vpop.permute.xlu1 %5762  ;;  %v7952_v41 = vld [vmem:[%s8504_s8 + $0x308] sm:$0xff]  ;;  %v454_v29 = vstv %s14956_s4  ;;  %s15211_s4 = sld [smem:[#allocation229_spill]] }
 0x7ad   : > { %14953 = vst [vmem:[#allocation617_spill] sm:$0xff] %v11862_v5  ;;  %14954 = vst [vmem:[#allocation618_spill] sm:$0xff] %v11865_v15  ;;  %v450_v5 = vstv %s14951_s3  ;;  %v7950_v15 = vld [vmem:[%s8504_s8 + $0x2f0] sm:$0xff]  ;;  %v11886_v14 = vmul.f32 %v7952_v41, %v438_v34  ;;  %v7956_v41 = vld [vmem:[%s8504_s8 + $0x338] sm:$0xff]  ;;  %s15210_s3 = sld [smem:[#allocation228_spill]] }
 0x7ae   : > { %14955 = vst [vmem:[#allocation619_spill] sm:$0xff] %v11868_v40  ;;  %14957 = vst [vmem:[#allocation620_spill] sm:$0xff] %v11872_v30  ;;  %v11880_v43 = vmul.f32 %v7950_v15, %v434_v0  ;;  %v7951_v40 = vld [vmem:[%s8504_s8 + $0x300] sm:$0xff]  ;;  %v11893_v15 = vmul.f32 %v7954_v44, %v442_v24  ;;  %v458_v0 = vstv %s14959_s5  ;;  %v7958_v44 = vld [vmem:[%s8504_s8 + $0x350] sm:$0xff]  ;;  %s15212_s5 = sld [smem:[#allocation230_spill]] }
 0x7af   : > { %14958 = vst [vmem:[#allocation621_spill] sm:$0xff] %v11875_v37  ;;  %v11883_v51 = vmul.f32 %v7951_v40, %v438_v34  ;;  %14963 = vst [vmem:[#allocation624_spill] sm:$0xff] %v11886_v14  ;;  %v7953_v37 = vld [vmem:[%s8504_s8 + $0x318] sm:$0xff]  ;;  %v462_v40 = vstv %s14960_s6  ;;  %v11901_v14 = vmul.f32 %v7956_v41, %v446_v55  ;;  %s15213_s6 = sld [smem:[#allocation231_spill]] }
 0x7b0   : > { %14961 = vst [vmem:[#allocation622_spill] sm:$0xff] %v11880_v43  ;;  %7521 = vpush %v5761_v31  ;;  %v11890_v30 = vmul.f32 %v7953_v37, %v442_v24  ;;  %v7957_v31 = vld [vmem:[%s8504_s8 + $0x348] sm:$0xff]  ;;  %v11908_v24 = vmul.f32 %v7958_v44, %v450_v5  ;;  %v5765_v41 = vpop.permute.xlu0 %5764  ;;  %v498_v43 = vstv %s14984_s19  ;;  %s15221_s19 = sld [smem:[#allocation238_spill]] }
 0x7b1   : > { %14962 = vst [vmem:[#allocation623_spill] sm:$0xff] %v11883_v51  ;;  %14966 = vst [vmem:[#allocation626_spill] sm:$0xff] %v11893_v15  ;;  %v7955_v51 = vld [vmem:[%s8504_s8 + $0x330] sm:$0xff]  ;;  %v11904_v37 = vmul.f32 %v7957_v31, %v450_v5  ;;  %v7959_v15 = vld [vmem:[%s8504_s8 + $0x360] sm:$0xff] }
 0x7b2   : > { %14965 = vst [vmem:[#allocation625_spill] sm:$0xff] %v11890_v30  ;;  %7523 = vpush %v5763_v39  ;;  %v11898_v34 = vmul.f32 %v7955_v51, %v446_v55  ;;  %v466_v30 = vstv %s14964_s7  ;;  %v11911_v39 = vmul.f32 %v7959_v15, %v454_v29  ;;  %v7960_v51 = vld [vmem:[%s8504_s8 + $0x368] sm:$0xff]  ;;  %v470_v55 = vstv %s14967_s15  ;;  %v7961_v31 = vld [vmem:[%s8504_s8 + $0x378] sm:$0xff]  ;;  %s15214_s15 = sld [smem:[#allocation232_spill]] }
 0x7b3   : > { %14969 = vst [vmem:[#allocation628_spill] sm:$0xff] %v11901_v14  ;;  %14970 = vst [vmem:[#allocation629_spill] sm:$0xff] %v11904_v37  ;;  %v5767_v14 = vpop.permute.xlu1 %5766  ;;  %v11918_v37 = vmul.f32 %v7961_v31, %v458_v0  ;;  %v7962_v5 = vld [vmem:[%s8504_s8 + $0x380] sm:$0xff]  ;;  %v7963_v15 = vld [vmem:[%s8504_s8 + $0x390] sm:$0xff] }
 0x7b4   : > { %14968 = vst [vmem:[#allocation627_spill] sm:$0xff] %v11898_v34  ;;  %14972 = vst [vmem:[#allocation630_spill] sm:$0xff] %v11908_v24  ;;  %v11914_v34 = vmul.f32 %v7960_v51, %v454_v29  ;;  %v11921_v44 = vmul.f32 %v7962_v5, %v458_v0  ;;  %v474_v29 = vstv %s14971_s14  ;;  %v7964_v51 = vld [vmem:[%s8504_s8 + $0x398] sm:$0xff]  ;;  %v7965_v24 = vld [vmem:[%s8504_s8 + $0x3a8] sm:$0xff]  ;;  %v482_v0 = vstv %s14976_s2  ;;  %s15215_s14 = sld [smem:[#allocation233_spill]] }
 0x7b5   : > { %14973 = vst [vmem:[#allocation631_spill] sm:$0xff] %v11911_v39  ;;  %14977 = vst [vmem:[#allocation633_spill] sm:$0xff] %v11918_v37  ;;  %v11924_v39 = vmul.f32 %v7963_v15, %v462_v40  ;;  %v11931_v31 = vmul.f32 %v7965_v24, %v466_v30  ;;  %v478_v37 = vstv %s14975_s1  ;;  %v7966_v5 = vld [vmem:[%s8504_s8 + $0x3b0] sm:$0xff]  ;;  %v7969_v24 = vld [vmem:[%s8504_s8 + $0x3d8] sm:$0xff]  ;;  %s15216_s1 = sld [smem:[#allocation234_spill]] }
 0x7b6   : > { %14974 = vst [vmem:[#allocation632_spill] sm:$0xff] %v11914_v34  ;;  %14978 = vst [vmem:[#allocation634_spill] sm:$0xff] %v11921_v44  ;;  %v11928_v34 = vmul.f32 %v7964_v51, %v462_v40  ;;  %v11936_v15 = vmul.f32 %v7966_v5, %v466_v30  ;;  %v486_v44 = vstv %s14979_s16  ;;  %v490_v40 = vstv %s14980_s17  ;;  %v7968_v51 = vld [vmem:[%s8504_s8 + $0x3c8] sm:$0xff]  ;;  %v5769_v30 = vpop.permute.xlu0 %5768  ;;  %s15217_s2 = sld [smem:[#allocation235_spill]] }
 0x7b7   : > { %14981 = vst [vmem:[#allocation635_spill] sm:$0xff] %v11924_v39  ;;  %7525 = vpush %v5765_v41  ;;  %v7967_v39 = vld [vmem:[%s8504_s8 + $0x3c0] sm:$0xff]  ;;  %v5771_v5 = vpop.permute.xlu1 %5770  ;;  %s15218_s17 = sld [smem:[#allocation236_spill]] }
 0x7b8   : > { %14982 = vst [vmem:[#allocation636_spill] sm:$0xff] %v11928_v34  ;;  %14985 = vst [vmem:[#allocation637_spill] sm:$0xff] %v11931_v31  ;;  %v11939_v41 = vmul.f32 %v7967_v39, %v470_v55  ;;  %v11944_v34 = vmul.f32 %v7968_v51, %v470_v55  ;;  %v11947_v31 = vmul.f32 %v7969_v24, %v474_v29  ;;  %v7972_v55 = vld [vmem:[%s8504_s8 + $0x3f8] sm:$0xff]  ;;  %v7973_v24 = vld [vmem:[%s8504_s8 + $0x408] sm:$0xff] }
 0x7b9   : > { %7527 = vpush %v5767_v14  ;;  %14986 = vst [vmem:[#allocation638_spill] sm:$0xff] %v11936_v15  ;;  %v494_v14 = vstv %s14983_s18  ;;  %v7970_v15 = vld [vmem:[%s8504_s8 + $0x3e0] sm:$0xff]  ;;  %v11958_v51 = vmul.f32 %v7972_v55, %v478_v37  ;;  %s15219_s18 = sld [smem:[#allocation237_spill]] }
 0x7ba   : > { %14987 = vst [vmem:[#allocation639_spill] sm:$0xff] %v11939_v41  ;;  %14988 = vst [vmem:[#allocation640_spill] sm:$0xff] %v11944_v34  ;;  %v11952_v39 = vmul.f32 %v7970_v15, %v474_v29  ;;  %v7971_v41 = vld [vmem:[%s8504_s8 + $0x3f0] sm:$0xff]  ;;  %v7975_v29 = vld [vmem:[%s8504_s8 + $0x420] sm:$0xff] }
 0x7bb   : > { %14989 = vst [vmem:[#allocation641_spill] sm:$0xff] %v11947_v31  ;;  %v11955_v3 = vmul.f32 %v7971_v41, %v478_v37  ;;  %v11961_v31 = vmul.f32 %v7973_v24, %v482_v0  ;;  %7529 = vpush %v5769_v30  ;;  %v7974_v34 = vld [vmem:[%s8504_s8 + $0x410] sm:$0xff]  ;;  %v11967_v15 = vmul.f32 %v7975_v29, %v486_v44  ;;  %v7978_v37 = vld [vmem:[%s8504_s8 + $0x440] sm:$0xff] }
 0x7bc   : > { %14990 = vst [vmem:[#allocation642_spill] sm:$0xff] %v11952_v39  ;;  %v11964_v25 = vmul.f32 %v7974_v34, %v482_v0  ;;  %v7976_v39 = vld [vmem:[%s8504_s8 + $0x428] sm:$0xff]  ;;  %7531 = vpush %v5771_v5  ;;  %v11976_v55 = vmul.f32 %v7978_v37, %v490_v40  ;;  %v7979_v24 = vld [vmem:[%s8504_s8 + $0x450] sm:$0xff] }
 0x7bd   : > { %14991 = vst [vmem:[#allocation643_spill] sm:$0xff] %v11955_v3  ;;  %14992 = vst [vmem:[#allocation644_spill] sm:$0xff] %v11961_v31  ;;  %v11970_v41 = vmul.f32 %v7976_v39, %v486_v44  ;;  %v7977_v3 = vld [vmem:[%s8504_s8 + $0x438] sm:$0xff]  ;;  %v11979_v30 = vmul.f32 %v7979_v24, %v494_v14  ;;  %v7981_v0 = vld [vmem:[%s8504_s8 + $0x468] sm:$0xff] }
 0x7be   : > { %14993 = vst [vmem:[#allocation645_spill] sm:$0xff] %v11964_v25  ;;  %14994 = vst [vmem:[#allocation646_spill] sm:$0xff] %v11967_v15  ;;  %v11973_v18 = vmul.f32 %v7977_v3, %v490_v40  ;;  %v7980_v31 = vld [vmem:[%s8504_s8 + $0x458] sm:$0xff]  ;;  %v11985_v25 = vmul.f32 %v7981_v0, %v498_v43  ;;  %v7982_v29 = vld [vmem:[%s8504_s8 + $0x470] sm:$0xff] }
 0x7bf   : > { %v11982_v34 = vmul.f32 %v7980_v31, %v494_v14  ;;  %v11988_v15 = vmul.f32 %v7982_v29, %v498_v43  ;;  %v14995_v44 = vld [vmem:[#allocation32_spill] sm:$0xff]  ;;  %v14996_v5 = vld [vmem:[#allocation33_spill] sm:$0xff]  ;;  %v14997_v39 = vld [vmem:[#allocation34_spill] sm:$0xff]  ;;  %v5773_v31 = vpop.permute.xlu0 %5772  ;;  %v5775_v14 = vpop.permute.xlu1 %5774 }
 0x7c0   : > { %v11992_v3 = vadd.f32 %v14995_v44, %v11662_v52  ;;  %v11996_v40 = vadd.f32 %v14996_v5, %v11659_v16  ;;  %v12000_v37 = vadd.f32 %v14997_v39, %v11669_v58  ;;  %v14998_v24 = vld [vmem:[#allocation35_spill] sm:$0xff]  ;;  %v14999_v43 = vld [vmem:[#allocation36_spill] sm:$0xff]  ;;  %v15000_v52 = vld [vmem:[#allocation37_spill] sm:$0xff]  ;;  %7533 = vpush %v5773_v31 }
 0x7c1   : > { %v12004_v0 = vadd.f32 %v14998_v24, %v11666_v6  ;;  %v12008_v29 = vadd.f32 %v14999_v43, %v11677_v26  ;;  %v12012_v44 = vadd.f32 %v15000_v52, %v11674_v42  ;;  %v15001_v16 = vld [vmem:[#allocation38_spill] sm:$0xff]  ;;  %v15002_v58 = vld [vmem:[#allocation39_spill] sm:$0xff]  ;;  %v15003_v6 = vld [vmem:[#allocation40_spill] sm:$0xff]  ;;  %7535 = vpush %v5775_v14 }
 0x7c2   : > { %v12016_v5 = vadd.f32 %v15001_v16, %v11684_v49  ;;  %v12020_v39 = vadd.f32 %v15002_v58, %v11680_v54  ;;  %v12024_v24 = vadd.f32 %v15003_v6, %v11690_v59  ;;  %v15004_v26 = vld [vmem:[#allocation41_spill] sm:$0xff]  ;;  %v15005_v42 = vld [vmem:[#allocation42_spill] sm:$0xff]  ;;  %v15006_v49 = vld [vmem:[#allocation43_spill] sm:$0xff]  ;;  %s7494_s20 = spop %7493 }
 0x7c3   : > { %v12028_v43 = vadd.f32 %v15004_v26, %v11687_v61  ;;  %v12032_v52 = vadd.f32 %v15005_v42, %v11697_v27  ;;  %v12036_v31 = vadd.f32 %v15006_v49, %v11694_v63  ;;  %v15007_v54 = vld [vmem:[#allocation44_spill] sm:$0xff]  ;;  %v15008_v59 = vld [vmem:[#allocation45_spill] sm:$0xff]  ;;  %v15009_v61 = vld [vmem:[#allocation46_spill] sm:$0xff]  ;;  %s7496_s21 = spop %7495 }
 0x7c4   : > { %v12040_v16 = vadd.f32 %v15007_v54, %v11704_v7  ;;  %v12044_v58 = vadd.f32 %v15008_v59, %v11700_v36  ;;  %v12048_v6 = vadd.f32 %v15009_v61, %v11712_v56  ;;  %v15010_v27 = vld [vmem:[#allocation47_spill] sm:$0xff]  ;;  %v15011_v14 = vld [vmem:[#allocation48_spill] sm:$0xff]  ;;  %v15012_v42 = vld [vmem:[#allocation49_spill] sm:$0xff]  ;;  %v5777_v54 = vpop.permute.xlu0 %5776  ;;  %v5779_v59 = vpop.permute.xlu1 %5778 }
 0x7c5   : > { %v12052_v26 = vadd.f32 %v15010_v27, %v11707_v23  ;;  %v12056_v63 = vadd.f32 %v15011_v14, %v11718_v19  ;;  %v12060_v7 = vadd.f32 %v15012_v42, %v11715_v53  ;;  %v15013_v49 = vld [vmem:[#allocation50_spill] sm:$0xff]  ;;  %v15014_v56 = vld [vmem:[#allocation51_spill] sm:$0xff]  ;;  %v15015_v23 = vld [vmem:[#allocation52_spill] sm:$0xff]  ;;  %7537 = vpush %v5777_v54 }
 0x7c6   : > { %v12064_v36 = vadd.f32 %v15013_v49, %v11725_v4  ;;  %v12068_v61 = vadd.f32 %v15014_v56, %v11722_v2  ;;  %v12072_v27 = vadd.f32 %v15015_v23, %v11733_v45  ;;  %v15016_v19 = vld [vmem:[#allocation53_spill] sm:$0xff]  ;;  %v15017_v53 = vld [vmem:[#allocation54_spill] sm:$0xff]  ;;  %v15018_v4 = vld [vmem:[#allocation55_spill] sm:$0xff]  ;;  %7539 = vpush %v5779_v59  ;;  %s7498_s22 = spop %7497 }
 0x7c7   : > { %v12076_v14 = vadd.f32 %v15016_v19, %v11730_v50  ;;  %v12080_v42 = vadd.f32 %v15017_v53, %v11740_v48  ;;  %v12084_v49 = vadd.f32 %v15018_v4, %v11736_v33  ;;  %v15019_v2 = vld [vmem:[#allocation56_spill] sm:$0xff]  ;;  %v15020_v45 = vld [vmem:[#allocation57_spill] sm:$0xff]  ;;  %v15022_v50 = vld [vmem:[#allocation58_spill] sm:$0xff]  ;;  %s12232_s23 = spop %7499 }
 0x7c8   : > { %v12088_v56 = vadd.f32 %v15019_v2, %v11746_v20  ;;  %v12092_v23 = vadd.f32 %v15020_v45, %v11743_v28  ;;  %v12096_v19 = vadd.f32 %v15022_v50, %v11753_v8  ;;  %v15024_v48 = vld [vmem:[#allocation59_spill] sm:$0xff]  ;;  %v15026_v33 = vld [vmem:[#allocation60_spill] sm:$0xff]  ;;  %v15028_v20 = vld [vmem:[#allocation61_spill] sm:$0xff] }
 0x7c9   : > { %v12100_v54 = vadd.f32 %v15024_v48, %v11750_v17  ;;  %v12104_v53 = vadd.f32 %v15026_v33, %v11760_v12  ;;  %v12108_v4 = vadd.f32 %v15028_v20, %v11756_v35  ;;  %v15030_v28 = vld [vmem:[#allocation62_spill] sm:$0xff]  ;;  %v15032_v8 = vld [vmem:[#allocation63_spill] sm:$0xff]  ;;  %v15034_v59 = vld [vmem:[#allocation64_spill] sm:$0xff]  ;;  %v5781_v33 = vpop.permute.xlu0 %5780  ;;  %v5783_v20 = vpop.permute.xlu1 %5782 }
 0x7ca   : > { %15021 = vst [vmem:[#allocation32_spill] sm:$0xff] %v12092_v23  ;;  %15023 = vst [vmem:[#allocation33_spill] sm:$0xff] %v12096_v19  ;;  %v12112_v2 = vadd.f32 %v15030_v28, %v11768_v62  ;;  %v12116_v45 = vadd.f32 %v15032_v8, %v11763_v57  ;;  %v12120_v17 = vadd.f32 %v15034_v59, %v11774_v9  ;;  %v15036_v50 = vld [vmem:[#allocation65_spill] sm:$0xff]  ;;  %v15038_v48 = vld [vmem:[#allocation66_spill] sm:$0xff]  ;;  %s12287_s24 = spop %7501 }
 0x7cb   : > { %15025 = vst [vmem:[#allocation34_spill] sm:$0xff] %v12100_v54  ;;  %15027 = vst [vmem:[#allocation35_spill] sm:$0xff] %v12104_v53  ;;  %v12124_v12 = vadd.f32 %v15036_v50, %v11771_v10  ;;  %v12128_v35 = vadd.f32 %v15038_v48, %v11781_v1  ;;  %v15040_v62 = vld [vmem:[#allocation67_spill] sm:$0xff]  ;;  %v15042_v57 = vld [vmem:[#allocation68_spill] sm:$0xff]  ;;  %s12342_s25 = spop %7503  ;;  %v2511_v54 = vstv %s15221_s19  ;;  %s15277_s19 = sld [smem:[#allocation257_spill]] }
 0x7cc   : > { %15029 = vst [vmem:[#allocation36_spill] sm:$0xff] %v12108_v4  ;;  %15031 = vst [vmem:[#allocation37_spill] sm:$0xff] %v12112_v2  ;;  %v12132_v28 = vadd.f32 %v15040_v62, %v11778_v21  ;;  %v12136_v8 = vadd.f32 %v15042_v57, %v11789_v11  ;;  %v15044_v9 = vld [vmem:[#allocation69_spill] sm:$0xff]  ;;  %v15046_v10 = vld [vmem:[#allocation70_spill] sm:$0xff] }
 0x7cd   : > { %15033 = vst [vmem:[#allocation38_spill] sm:$0xff] %v12116_v45  ;;  %15035 = vst [vmem:[#allocation39_spill] sm:$0xff] %v12120_v17  ;;  %v12140_v59 = vadd.f32 %v15044_v9, %v11786_v47  ;;  %v12144_v50 = vadd.f32 %v15046_v10, %v11796_v22  ;;  %v15048_v1 = vld [vmem:[#allocation71_spill] sm:$0xff]  ;;  %v15050_v21 = vld [vmem:[#allocation72_spill] sm:$0xff] }
 0x7ce   : > { %15037 = vst [vmem:[#allocation40_spill] sm:$0xff] %v12124_v12  ;;  %15039 = vst [vmem:[#allocation41_spill] sm:$0xff] %v12128_v35  ;;  %v12148_v48 = vadd.f32 %v15048_v1, %v11792_v38  ;;  %v12152_v62 = vadd.f32 %v15050_v21, %v11802_v13  ;;  %v15052_v11 = vld [vmem:[#allocation73_spill] sm:$0xff]  ;;  %v15054_v47 = vld [vmem:[#allocation74_spill] sm:$0xff]  ;;  %s12391_s30 = spop %7505  ;;  %v2502_v35 = vstv %s15217_s2 }
 0x7cf   : > { %15041 = vst [vmem:[#allocation42_spill] sm:$0xff] %v12132_v28  ;;  %15043 = vst [vmem:[#allocation43_spill] sm:$0xff] %v12136_v8  ;;  %v12156_v57 = vadd.f32 %v15052_v11, %v11799_v60  ;;  %v12160_v9 = vadd.f32 %v15054_v47, %v11809_v46  ;;  %v15056_v22 = vld [vmem:[#allocation75_spill] sm:$0xff]  ;;  %v15058_v38 = vld [vmem:[#allocation604_spill] sm:$0xff]  ;;  %v5829_v60 = vstv %s7494_s20  ;;  %s12429_s7 = spop %7507  ;;  %s15222_s20 = sld [smem:[#allocation239_spill]] }
 0x7d0   : > { %15045 = vst [vmem:[#allocation44_spill] sm:$0xff] %v12140_v59  ;;  %15047 = vst [vmem:[#allocation45_spill] sm:$0xff] %v12144_v50  ;;  %v15059_v10 = vld [vmem:[#allocation76_spill] sm:$0xff]  ;;  %v15062_v21 = vld [vmem:[#allocation77_spill] sm:$0xff] }
 0x7d1   : > { %7541 = vpush %v5781_v33  ;;  %15049 = vst [vmem:[#allocation46_spill] sm:$0xff] %v12148_v48  ;;  %v12164_v33 = vadd.f32 %v15056_v22, %v11806_v32  ;;  %v12168_v1 = vadd.f32 %v15059_v10, %v15058_v38  ;;  %v15061_v13 = vld [vmem:[#allocation603_spill] sm:$0xff]  ;;  %v15064_v11 = vld [vmem:[#allocation606_spill] sm:$0xff]  ;;  %v5787_v38 = vpop.permute.xlu1 %5786 }
 0x7d2   : > { %15051 = vst [vmem:[#allocation47_spill] sm:$0xff] %v12152_v62  ;;  %15053 = vst [vmem:[#allocation48_spill] sm:$0xff] %v12156_v57  ;;  %v12172_v62 = vadd.f32 %v15062_v21, %v15061_v13  ;;  %v15065_v46 = vld [vmem:[#allocation78_spill] sm:$0xff]  ;;  %v5785_v57 = vpop.permute.xlu0 %5784  ;;  %v15070_v13 = vld [vmem:[#allocation608_spill] sm:$0xff]  ;;  %s12464_s16 = spop %7509 }
 0x7d3   : > { %15055 = vst [vmem:[#allocation49_spill] sm:$0xff] %v12160_v9  ;;  %7543 = vpush %v5783_v20  ;;  %v12176_v47 = vadd.f32 %v15065_v46, %v15064_v11  ;;  %v7983_v20 = vld [vmem:[%s8504_s8 + $0x2] sm:$0xff]  ;;  %v7984_v32 = vld [vmem:[%s8504_s8 + $0xa] sm:$0xff]  ;;  %v5853_v2 = vstv %s12464_s16  ;;  %s15272_s16 = sld [smem:[#allocation254_spill]] }
 0x7d4   : > { %15057 = vst [vmem:[#allocation50_spill] sm:$0xff] %v12164_v33  ;;  %15060 = vst [vmem:[#allocation51_spill] sm:$0xff] %v12168_v1  ;;  %v5972_v9 = vmul.f32 %v7983_v20, %v5829_v60  ;;  %v5973_v22 = vmul.f32 %v7984_v32, %v5829_v60  ;;  %v5832_v33 = vstv %s7496_s21  ;;  %v15067_v10 = vld [vmem:[#allocation605_spill] sm:$0xff]  ;;  %v15068_v1 = vld [vmem:[#allocation79_spill] sm:$0xff]  ;;  %s12499_s21 = spop %7511 }
 0x7d5   : > { %15063 = vst [vmem:[#allocation52_spill] sm:$0xff] %v12172_v62  ;;  %15066 = vst [vmem:[#allocation53_spill] sm:$0xff] %v12176_v47  ;;  %v12182_v48 = vadd.f32 %v15068_v1, %v15067_v10  ;;  %v15071_v21 = vld [vmem:[#allocation80_spill] sm:$0xff]  ;;  %v15074_v59 = vld [vmem:[#allocation81_spill] sm:$0xff]  ;;  %v2514_v19 = vstv %s15222_s20 }
 0x7d6   : > { %v12186_v62 = vadd.f32 %v15071_v21, %v15070_v13  ;;  %v15073_v50 = vld [vmem:[#allocation607_spill] sm:$0xff]  ;;  %v15076_v46 = vld [vmem:[#allocation610_spill] sm:$0xff]  ;;  %v15077_v47 = vld [vmem:[#allocation82_spill] sm:$0xff]  ;;  %7545 = vpush %v5785_v57  ;;  %6166 = vrot.lane.b32.xlu1 %v5973_v22, %s14631_s10  ;;  %6164 = vrot.lane.b32.xlu0 %v5972_v9, %s14631_s10 }
 0x7d7   : > { %15069 = vst [vmem:[#allocation54_spill] sm:$0xff] %v12182_v48  ;;  %v12190_v11 = vadd.f32 %v15074_v59, %v15073_v50  ;;  %v12194_v20 = vadd.f32 %v15077_v47, %v15076_v46  ;;  %v15079_v60 = vld [vmem:[#allocation609_spill] sm:$0xff]  ;;  %v15080_v32 = vld [vmem:[#allocation83_spill] sm:$0xff]  ;;  %v7986_v10 = vld [vmem:[%s8504_s8 + $0x22] sm:$0xff] }
 0x7d8   : > { %15072 = vst [vmem:[#allocation55_spill] sm:$0xff] %v12186_v62  ;;  %v12198_v8 = vadd.f32 %v15080_v32, %v15079_v60  ;;  %v7985_v28 = vld [vmem:[%s8504_s8 + $0x1a] sm:$0xff]  ;;  %v5975_v48 = vmul.f32 %v7986_v10, %v5832_v33  ;;  %7547 = vpush %v5787_v38  ;;  %v15082_v59 = vld [vmem:[#allocation612_spill] sm:$0xff] }
 0x7d9   : > { %15075 = vst [vmem:[#allocation56_spill] sm:$0xff] %v12190_v11  ;;  %15078 = vst [vmem:[#allocation57_spill] sm:$0xff] %v12194_v20  ;;  %v5974_v1 = vmul.f32 %v7985_v28, %v5832_v33  ;;  %v15083_v50 = vld [vmem:[#allocation84_spill] sm:$0xff]  ;;  %v15086_v57 = vld [vmem:[#allocation85_spill] sm:$0xff]  ;;  %v5835_v28 = vstv %s7498_s22  ;;  %s15227_s22 = sld [smem:[#allocation240_spill]] }
 0x7da   : > { %15081 = vst [vmem:[#allocation58_spill] sm:$0xff] %v12198_v8  ;;  %v12206_v13 = vadd.f32 %v15083_v50, %v15082_v59  ;;  %v15085_v47 = vld [vmem:[#allocation611_spill] sm:$0xff]  ;;  %v15088_v46 = vld [vmem:[#allocation614_spill] sm:$0xff]  ;;  %v15089_v60 = vld [vmem:[#allocation86_spill] sm:$0xff]  ;;  %6170 = vrot.lane.b32.xlu1 %v5975_v48, %s14631_s10  ;;  %v5838_v48 = vstv %s12232_s23  ;;  %s15228_s23 = sld [smem:[#allocation241_spill]] }
 0x7db   : > { %v12210_v21 = vadd.f32 %v15086_v57, %v15085_v47  ;;  %v12214_v32 = vadd.f32 %v15089_v60, %v15088_v46  ;;  %v15091_v33 = vld [vmem:[#allocation613_spill] sm:$0xff]  ;;  %v15092_v10 = vld [vmem:[#allocation87_spill] sm:$0xff]  ;;  %v15094_v9 = vld [vmem:[#allocation616_spill] sm:$0xff]  ;;  %v5789_v46 = vpop.permute.xlu0 %5788  ;;  %v5791_v60 = vpop.permute.xlu1 %5790  ;;  %6168 = vrot.lane.b32.xlu0 %v5974_v1, %s14631_s10 }
 0x7dc   : > { %15084 = vst [vmem:[#allocation59_spill] sm:$0xff] %v12206_v13  ;;  %v12218_v22 = vadd.f32 %v15092_v10, %v15091_v33  ;;  %v15095_v38 = vld [vmem:[#allocation88_spill] sm:$0xff]  ;;  %v15098_v50 = vld [vmem:[#allocation89_spill] sm:$0xff]  ;;  %v15100_v47 = vld [vmem:[#allocation618_spill] sm:$0xff] }
 0x7dd   : > { %15087 = vst [vmem:[#allocation60_spill] sm:$0xff] %v12210_v21  ;;  %15090 = vst [vmem:[#allocation61_spill] sm:$0xff] %v12214_v32  ;;  %v12222_v8 = vadd.f32 %v15095_v38, %v15094_v9  ;;  %v15097_v59 = vld [vmem:[#allocation615_spill] sm:$0xff]  ;;  %v15101_v57 = vld [vmem:[#allocation90_spill] sm:$0xff] }
 0x7de   : > { %15093 = vst [vmem:[#allocation62_spill] sm:$0xff] %v12218_v22  ;;  %v12226_v13 = vadd.f32 %v15098_v50, %v15097_v59  ;;  %v12230_v21 = vadd.f32 %v15101_v57, %v15100_v47  ;;  %v15103_v32 = vld [vmem:[#allocation617_spill] sm:$0xff]  ;;  %v15104_v33 = vld [vmem:[#allocation91_spill] sm:$0xff]  ;;  %v15106_v22 = vld [vmem:[#allocation620_spill] sm:$0xff] }
 0x7df   : > { %15096 = vst [vmem:[#allocation63_spill] sm:$0xff] %v12222_v8  ;;  %v12236_v10 = vadd.f32 %v15104_v33, %v15103_v32  ;;  %v15107_v9 = vld [vmem:[#allocation92_spill] sm:$0xff]  ;;  %v15110_v59 = vld [vmem:[#allocation93_spill] sm:$0xff]  ;;  %v15113_v47 = vld [vmem:[#allocation94_spill] sm:$0xff] }
 0x7e0   : > { %15099 = vst [vmem:[#allocation64_spill] sm:$0xff] %v12226_v13  ;;  %15102 = vst [vmem:[#allocation65_spill] sm:$0xff] %v12230_v21  ;;  %v12240_v38 = vadd.f32 %v15107_v9, %v15106_v22  ;;  %v15109_v8 = vld [vmem:[#allocation619_spill] sm:$0xff]  ;;  %v15112_v13 = vld [vmem:[#allocation622_spill] sm:$0xff] }
 0x7e1   : > { %15105 = vst [vmem:[#allocation66_spill] sm:$0xff] %v12236_v10  ;;  %v12244_v50 = vadd.f32 %v15110_v59, %v15109_v8  ;;  %v12248_v57 = vadd.f32 %v15113_v47, %v15112_v13  ;;  %7549 = vpush %v5789_v46  ;;  %v15115_v21 = vld [vmem:[#allocation621_spill] sm:$0xff]  ;;  %v15116_v20 = vld [vmem:[#allocation95_spill] sm:$0xff] }
 0x7e2   : > { %15108 = vst [vmem:[#allocation67_spill] sm:$0xff] %v12240_v38  ;;  %v12252_v11 = vadd.f32 %v15116_v20, %v15115_v21  ;;  %v7987_v32 = vld [vmem:[%s8504_s8 + $0x32] sm:$0xff]  ;;  %v7988_v33 = vld [vmem:[%s8504_s8 + $0x3a] sm:$0xff]  ;;  %7551 = vpush %v5791_v60 }
 0x7e3   : > { %15111 = vst [vmem:[#allocation68_spill] sm:$0xff] %v12244_v50  ;;  %15114 = vst [vmem:[#allocation69_spill] sm:$0xff] %v12248_v57  ;;  %v5976_v22 = vmul.f32 %v7987_v32, %v5835_v28  ;;  %v5977_v9 = vmul.f32 %v7988_v33, %v5835_v28  ;;  %v15118_v8 = vld [vmem:[#allocation624_spill] sm:$0xff]  ;;  %v15119_v59 = vld [vmem:[#allocation96_spill] sm:$0xff] }
 0x7e4   : > { %15117 = vst [vmem:[#allocation70_spill] sm:$0xff] %v12252_v11  ;;  %v12260_v50 = vadd.f32 %v15119_v59, %v15118_v8  ;;  %v15121_v13 = vld [vmem:[#allocation623_spill] sm:$0xff]  ;;  %v15122_v47 = vld [vmem:[#allocation97_spill] sm:$0xff]  ;;  %v15124_v57 = vld [vmem:[#allocation626_spill] sm:$0xff] }
 0x7e5   : > { %v12264_v46 = vadd.f32 %v15122_v47, %v15121_v13  ;;  %v15125_v20 = vld [vmem:[#allocation98_spill] sm:$0xff]  ;;  %v15128_v11 = vld [vmem:[#allocation99_spill] sm:$0xff]  ;;  %v15130_v28 = vld [vmem:[#allocation628_spill] sm:$0xff]  ;;  %6174 = vrot.lane.b32.xlu1 %v5977_v9, %s14631_s10  ;;  %6172 = vrot.lane.b32.xlu0 %v5976_v22, %s14631_s10 }
 0x7e6   : > { %15120 = vst [vmem:[#allocation71_spill] sm:$0xff] %v12260_v50  ;;  %v12268_v21 = vadd.f32 %v15125_v20, %v15124_v57  ;;  %v15127_v1 = vld [vmem:[#allocation625_spill] sm:$0xff]  ;;  %v15131_v60 = vld [vmem:[#allocation100_spill] sm:$0xff]  ;;  %v15134_v59 = vld [vmem:[#allocation101_spill] sm:$0xff]  ;;  %v5793_v57 = vpop.permute.xlu0 %5792  ;;  %v5795_v20 = vpop.permute.xlu1 %5794 }
 0x7e7   : > { %15123 = vst [vmem:[#allocation72_spill] sm:$0xff] %v12264_v46  ;;  %v12273_v32 = vadd.f32 %v15128_v11, %v15127_v1  ;;  %v12277_v33 = vadd.f32 %v15131_v60, %v15130_v28  ;;  %v15133_v8 = vld [vmem:[#allocation627_spill] sm:$0xff]  ;;  %v15136_v13 = vld [vmem:[#allocation630_spill] sm:$0xff]  ;;  %v15137_v47 = vld [vmem:[#allocation102_spill] sm:$0xff] }
 0x7e8   : > { %15126 = vst [vmem:[#allocation73_spill] sm:$0xff] %v12268_v21  ;;  %v12281_v50 = vadd.f32 %v15134_v59, %v15133_v8  ;;  %v12285_v46 = vadd.f32 %v15137_v47, %v15136_v13  ;;  %v15139_v21 = vld [vmem:[#allocation629_spill] sm:$0xff]  ;;  %v15140_v38 = vld [vmem:[#allocation103_spill] sm:$0xff]  ;;  %v15142_v1 = vld [vmem:[#allocation632_spill] sm:$0xff] }
 0x7e9   : > { %15129 = vst [vmem:[#allocation74_spill] sm:$0xff] %v12273_v32  ;;  %15132 = vst [vmem:[#allocation75_spill] sm:$0xff] %v12277_v33  ;;  %v12291_v11 = vadd.f32 %v15140_v38, %v15139_v21  ;;  %v15143_v32 = vld [vmem:[#allocation104_spill] sm:$0xff]  ;;  %v15146_v8 = vld [vmem:[#allocation105_spill] sm:$0xff] }
 0x7ea   : > { %15135 = vst [vmem:[#allocation604_spill] sm:$0xff] %v12281_v50  ;;  %15138 = vst [vmem:[#allocation76_spill] sm:$0xff] %v12285_v46  ;;  %v12295_v28 = vadd.f32 %v15143_v32, %v15142_v1  ;;  %v15145_v60 = vld [vmem:[#allocation631_spill] sm:$0xff]  ;;  %v15148_v50 = vld [vmem:[#allocation634_spill] sm:$0xff] }
 0x7eb   : > { %15141 = vst [vmem:[#allocation603_spill] sm:$0xff] %v12291_v11  ;;  %v12299_v59 = vadd.f32 %v15146_v8, %v15145_v60  ;;  %v15149_v13 = vld [vmem:[#allocation106_spill] sm:$0xff]  ;;  %7553 = vpush %v5793_v57  ;;  %v15152_v33 = vld [vmem:[#allocation107_spill] sm:$0xff] }
 0x7ec   : > { %15144 = vst [vmem:[#allocation77_spill] sm:$0xff] %v12295_v28  ;;  %v12303_v47 = vadd.f32 %v15149_v13, %v15148_v50  ;;  %v15151_v46 = vld [vmem:[#allocation633_spill] sm:$0xff]  ;;  %7555 = vpush %v5795_v20  ;;  %v15154_v32 = vld [vmem:[#allocation636_spill] sm:$0xff] }
 0x7ed   : > { %15147 = vst [vmem:[#allocation606_spill] sm:$0xff] %v12299_v59  ;;  %v12307_v10 = vadd.f32 %v15152_v33, %v15151_v46  ;;  %v7989_v38 = vld [vmem:[%s8504_s8 + $0x4a] sm:$0xff]  ;;  %v7990_v11 = vld [vmem:[%s8504_s8 + $0x52] sm:$0xff]  ;;  %v15155_v1 = vld [vmem:[#allocation108_spill] sm:$0xff] }
 0x7ee   : > { %15150 = vst [vmem:[#allocation78_spill] sm:$0xff] %v12303_v47  ;;  %v5978_v21 = vmul.f32 %v7989_v38, %v5838_v48  ;;  %v5979_v62 = vmul.f32 %v7990_v11, %v5838_v48  ;;  %v12315_v60 = vadd.f32 %v15155_v1, %v15154_v32  ;;  %v15157_v50 = vld [vmem:[#allocation635_spill] sm:$0xff]  ;;  %v15158_v8 = vld [vmem:[#allocation109_spill] sm:$0xff]  ;;  %v15160_v13 = vld [vmem:[#allocation638_spill] sm:$0xff]  ;;  %v5841_v38 = vstv %s12287_s24  ;;  %s15232_s24 = sld [smem:[#allocation242_spill]] }
 0x7ef   : > { %15153 = vst [vmem:[#allocation605_spill] sm:$0xff] %v12307_v10  ;;  %v12319_v57 = vadd.f32 %v15158_v8, %v15157_v50  ;;  %v15161_v46 = vld [vmem:[#allocation110_spill] sm:$0xff]  ;;  %v15164_v48 = vld [vmem:[#allocation111_spill] sm:$0xff]  ;;  %v15166_v22 = vld [vmem:[#allocation640_spill] sm:$0xff] }
 0x7f0   : > { %15156 = vst [vmem:[#allocation79_spill] sm:$0xff] %v12315_v60  ;;  %v12323_v33 = vadd.f32 %v15161_v46, %v15160_v13  ;;  %v15163_v10 = vld [vmem:[#allocation637_spill] sm:$0xff]  ;;  %v15167_v20 = vld [vmem:[#allocation112_spill] sm:$0xff]  ;;  %v15170_v1 = vld [vmem:[#allocation113_spill] sm:$0xff]  ;;  %v5797_v13 = vpop.permute.xlu0 %5796  ;;  %v5799_v46 = vpop.permute.xlu1 %5798  ;;  %6178 = vrot.lane.b32.xlu1 %v5979_v62, %s14631_s10  ;;  %6176 = vrot.lane.b32.xlu0 %v5978_v21, %s14631_s10  ;;  %v5844_v21 = vstv %s12342_s25  ;;  %s15234_s25 = sld [smem:[#allocation243_spill]] }
 0x7f1   : > { %15159 = vst [vmem:[#allocation608_spill] sm:$0xff] %v12319_v57  ;;  %v12328_v9 = vadd.f32 %v15164_v48, %v15163_v10  ;;  %v12332_v11 = vadd.f32 %v15167_v20, %v15166_v22  ;;  %v15169_v32 = vld [vmem:[#allocation639_spill] sm:$0xff]  ;;  %v15172_v50 = vld [vmem:[#allocation642_spill] sm:$0xff]  ;;  %v15173_v8 = vld [vmem:[#allocation114_spill] sm:$0xff] }
 0x7f2   : > { %15162 = vst [vmem:[#allocation80_spill] sm:$0xff] %v12323_v33  ;;  %v12336_v60 = vadd.f32 %v15170_v1, %v15169_v32  ;;  %v12340_v57 = vadd.f32 %v15173_v8, %v15172_v50  ;;  %v15175_v33 = vld [vmem:[#allocation641_spill] sm:$0xff]  ;;  %v15176_v10 = vld [vmem:[#allocation115_spill] sm:$0xff]  ;;  %v15178_v22 = vld [vmem:[#allocation116_spill] sm:$0xff] }
 0x7f3   : > { %15165 = vst [vmem:[#allocation607_spill] sm:$0xff] %v12328_v9  ;;  %15168 = vst [vmem:[#allocation81_spill] sm:$0xff] %v12332_v11  ;;  %v12346_v48 = vadd.f32 %v15176_v10, %v15175_v33  ;;  %v12350_v20 = vadd.f32 %v15178_v22, %v11958_v51  ;;  %v15180_v11 = vld [vmem:[#allocation643_spill] sm:$0xff]  ;;  %v15181_v32 = vld [vmem:[#allocation117_spill] sm:$0xff] }
 0x7f4   : > { %15171 = vst [vmem:[#allocation610_spill] sm:$0xff] %v12336_v60  ;;  %15174 = vst [vmem:[#allocation82_spill] sm:$0xff] %v12340_v57  ;;  %v12354_v1 = vadd.f32 %v15181_v32, %v15180_v11  ;;  %v15183_v60 = vld [vmem:[#allocation645_spill] sm:$0xff]  ;;  %v15187_v57 = vld [vmem:[#allocation644_spill] sm:$0xff] }
 0x7f5   : > { %15177 = vst [vmem:[#allocation609_spill] sm:$0xff] %v12346_v48  ;;  %15179 = vst [vmem:[#allocation83_spill] sm:$0xff] %v12350_v20  ;;  %v15184_v50 = vld [vmem:[#allocation118_spill] sm:$0xff]  ;;  %v15188_v9 = vld [vmem:[#allocation119_spill] sm:$0xff] }
 0x7f6   : > { %15182 = vst [vmem:[#allocation612_spill] sm:$0xff] %v12354_v1  ;;  %v12358_v8 = vadd.f32 %v15184_v50, %v15183_v60  ;;  %7557 = vpush %v5797_v13  ;;  %v12362_v33 = vadd.f32 %v15188_v9, %v15187_v57  ;;  %v7991_v51 = vld [vmem:[%s8504_s8 + $0x62] sm:$0xff]  ;;  %v7992_v22 = vld [vmem:[%s8504_s8 + $0x6a] sm:$0xff] }
 0x7f7   : > { %v5980_v10 = vmul.f32 %v7991_v51, %v5841_v38  ;;  %v5981_v11 = vmul.f32 %v7992_v22, %v5841_v38  ;;  %7559 = vpush %v5799_v46  ;;  %v15192_v60 = vld [vmem:[#allocation120_spill] sm:$0xff]  ;;  %v15194_v13 = vld [vmem:[#allocation646_spill] sm:$0xff]  ;;  %v15195_v50 = vld [vmem:[#allocation121_spill] sm:$0xff]  ;;  %v2469_v51 = vstv %s15186_s26  ;;  %v2472_v22 = vstv %s15189_s27  ;;  %s15235_s26 = sld [smem:[#allocation244_spill]]  ;;  %s12534_s27 = spop %7513 }
 0x7f8   : > { %15185 = vst [vmem:[#allocation84_spill] sm:$0xff] %v12358_v8  ;;  %15190 = vst [vmem:[#allocation611_spill] sm:$0xff] %v12362_v33  ;;  %v12370_v32 = vadd.f32 %v15192_v60, %v11970_v41  ;;  %v12374_v8 = vadd.f32 %v15195_v50, %v15194_v13  ;;  %v15198_v57 = vld [vmem:[#allocation122_spill] sm:$0xff]  ;;  %v15200_v9 = vld [vmem:[#allocation123_spill] sm:$0xff]  ;;  %v5801_v60 = vpop.permute.xlu0 %5800  ;;  %v5803_v13 = vpop.permute.xlu1 %5802 }
 0x7f9   : > { %v12378_v62 = vadd.f32 %v15198_v57, %v11976_v55  ;;  %v12383_v38 = vadd.f32 %v15200_v9, %v11973_v18  ;;  %v15202_v46 = vld [vmem:[#allocation124_spill] sm:$0xff]  ;;  %v15204_v55 = vld [vmem:[#allocation125_spill] sm:$0xff]  ;;  %v15206_v57 = vld [vmem:[#allocation126_spill] sm:$0xff]  ;;  %7561 = vpush %v5801_v60  ;;  %6182 = vrot.lane.b32.xlu1 %v5981_v11, %s14631_s10  ;;  %6180 = vrot.lane.b32.xlu0 %v5980_v10, %s14631_s10 }
 0x7fa   : > { %15193 = vst [vmem:[#allocation85_spill] sm:$0xff] %v12370_v32  ;;  %15197 = vst [vmem:[#allocation614_spill] sm:$0xff] %v12374_v8  ;;  %v12387_v41 = vadd.f32 %v15202_v46, %v11982_v34  ;;  %v12395_v50 = vadd.f32 %v15204_v55, %v11979_v30  ;;  %v12399_v18 = vadd.f32 %v15206_v57, %v11988_v15  ;;  %v15208_v9 = vld [vmem:[#allocation127_spill] sm:$0xff]  ;;  %v2475_v46 = vstv %s15191_s28  ;;  %v7994_v8 = vld [vmem:[%s8504_s8 + $0x82] sm:$0xff]  ;;  %s15240_s28 = sld [smem:[#allocation245_spill]] }
 0x7fb   : > { %15199 = vst [vmem:[#allocation86_spill] sm:$0xff] %v12378_v62  ;;  %15201 = vst [vmem:[#allocation613_spill] sm:$0xff] %v12383_v38  ;;  %v12403_v34 = vadd.f32 %v15208_v9, %v11985_v25  ;;  %v7993_v38 = vld [vmem:[%s8504_s8 + $0x7a] sm:$0xff]  ;;  %v5983_v30 = vmul.f32 %v7994_v8, %v5844_v21  ;;  %v7996_v55 = vld [vmem:[%s8504_s8 + $0x9] sm:$0xff]  ;;  %v5847_v9 = vstv %s12391_s30  ;;  %v2490_v32 = vstv %s15213_s6  ;;  %s15246_s30 = sld [smem:[#allocation247_spill]] }
 0x7fc   : > { %15203 = vst [vmem:[#allocation87_spill] sm:$0xff] %v12387_v41  ;;  %15205 = vst [vmem:[#allocation616_spill] sm:$0xff] %v12395_v50  ;;  %v2478_v41 = vstv %s15196_s29  ;;  %v5982_v62 = vmul.f32 %v7993_v38, %v5844_v21  ;;  %v7995_v15 = vld [vmem:[%s8504_s8 + $0x1] sm:$0xff]  ;;  %v12415_v60 = vmul.f32 %v7996_v55, %v2469_v51  ;;  %v7997_v57 = vld [vmem:[%s8504_s8 + $0x19] sm:$0xff]  ;;  %v5805_v55 = vpop.permute.xlu0 %5804  ;;  %v2487_v50 = vstv %s15212_s5  ;;  %s15244_s29 = sld [smem:[#allocation246_spill]] }
 0x7fd   : > { %15207 = vst [vmem:[#allocation88_spill] sm:$0xff] %v12399_v18  ;;  %15209 = vst [vmem:[#allocation615_spill] sm:$0xff] %v12403_v34  ;;  %v12412_v25 = vmul.f32 %v7995_v15, %v2469_v51  ;;  %v12418_v38 = vmul.f32 %v7997_v57, %v2472_v22  ;;  %v7998_v8 = vld [vmem:[%s8504_s8 + $0x21] sm:$0xff]  ;;  %v7999_v10 = vld [vmem:[%s8504_s8 + $0x31] sm:$0xff]  ;;  %v2484_v15 = vstv %s15211_s4  ;;  %v5807_v51 = vpop.permute.xlu1 %5806  ;;  %6186 = vrot.lane.b32.xlu1 %v5983_v30, %s14631_s10  ;;  %s15252_s4 = sld [smem:[#allocation248_spill]] }
 0x7fe   : > { %7563 = vpush %v5803_v13  ;;  %v12422_v21 = vmul.f32 %v7998_v8, %v2472_v22  ;;  %v12425_v11 = vmul.f32 %v7999_v10, %v2475_v46  ;;  %v2481_v13 = vstv %s15210_s3  ;;  %v8000_v34 = vld [vmem:[%s8504_s8 + $0x39] sm:$0xff]  ;;  %v8001_v18 = vld [vmem:[%s8504_s8 + $0x49] sm:$0xff]  ;;  %v8002_v8 = vld [vmem:[%s8504_s8 + $0x51] sm:$0xff]  ;;  %s12572_s3 = spop %7515  ;;  %s15253_s5 = sld [smem:[#allocation249_spill]] }
 0x7ff   : > { %v12432_v57 = vmul.f32 %v8000_v34, %v2475_v46  ;;  %v12435_v22 = vmul.f32 %v8001_v18, %v2478_v41  ;;  %v12438_v10 = vmul.f32 %v8002_v8, %v2478_v41  ;;  %7565 = vpush %v5805_v55  ;;  %6184 = vrot.lane.b32.xlu0 %v5982_v62, %s14631_s10  ;;  %v8003_v34 = vld [vmem:[%s8504_s8 + $0x92] sm:$0xff]  ;;  %v8004_v18 = vld [vmem:[%s8504_s8 + $0x9a] sm:$0xff]  ;;  %v8006_v8 = vld [vmem:[%s8504_s8 + $0x69] sm:$0xff]  ;;  %s15258_s6 = sld [smem:[#allocation250_spill]] }
 0x800   : > { %v5984_v46 = vmul.f32 %v8003_v34, %v5847_v9  ;;  %v5985_v33 = vmul.f32 %v8004_v18, %v5847_v9  ;;  %7567 = vpush %v5807_v51  ;;  %v8005_v1 = vld [vmem:[%s8504_s8 + $0x61] sm:$0xff]  ;;  %v12450_v55 = vmul.f32 %v8006_v8, %v2481_v13  ;;  %v8007_v20 = vld [vmem:[%s8504_s8 + $0x79] sm:$0xff]  ;;  %v5850_v62 = vstv %s12429_s7  ;;  %v8009_v9 = vld [vmem:[%s8504_s8 + $0x91] sm:$0xff]  ;;  %v5809_v8 = vpop.permute.xlu0 %5808  ;;  %s12606_s7 = spop %7517 }
 0x801   : > { %v12447_v41 = vmul.f32 %v8005_v1, %v2481_v13  ;;  %v12453_v30 = vmul.f32 %v8007_v20, %v2484_v15  ;;  %v8008_v48 = vld [vmem:[%s8504_s8 + $0x81] sm:$0xff]  ;;  %v12460_v51 = vmul.f32 %v8009_v9, %v2487_v50  ;;  %v2493_v1 = vstv %s15214_s15  ;;  %v5811_v13 = vpop.permute.xlu1 %5810  ;;  %v8010_v47 = vld [vmem:[%s8504_s8 + $0x99] sm:$0xff]  ;;  %v8011_v59 = vld [vmem:[%s8504_s8 + $0xa9] sm:$0xff]  ;;  %7569 = vpush %v5809_v8  ;;  %s15261_s15 = sld [smem:[#allocation251_spill]]  ;;  %s12642_s2 = spop %7519 }
 0x802   : > { %v12457_v34 = vmul.f32 %v8008_v48, %v2484_v15  ;;  %v2496_v18 = vstv %s15215_s14  ;;  %v12467_v20 = vmul.f32 %v8010_v47, %v2487_v50  ;;  %v12470_v48 = vmul.f32 %v8011_v59, %v2490_v32  ;;  %v8012_v15 = vld [vmem:[%s8504_s8 + $0xb1] sm:$0xff]  ;;  %6190 = vrot.lane.b32.xlu1 %v5985_v33, %s14631_s10  ;;  %7571 = vpush %v5811_v13  ;;  %v8015_v59 = vld [vmem:[%s8504_s8 + $0xc1] sm:$0xff]  ;;  %s15262_s14 = sld [smem:[#allocation252_spill]]  ;;  %s12679_s20 = spop %7521 }
 0x803   : > { %v12473_v28 = vmul.f32 %v8012_v15, %v2490_v32  ;;  %v2499_v9 = vstv %s15216_s1  ;;  %v8013_v12 = vld [vmem:[%s8504_s8 + $0xaa] sm:$0xff]  ;;  %v8014_v45 = vld [vmem:[%s8504_s8 + $0xb2] sm:$0xff]  ;;  %6188 = vrot.lane.b32.xlu0 %v5984_v46, %s14631_s10  ;;  %v12482_v32 = vmul.f32 %v8015_v59, %v2493_v1  ;;  %s15264_s1 = sld [smem:[#allocation253_spill]] }
 0x804   : > { %v5986_v17 = vmul.f32 %v8013_v12, %v5850_v62  ;;  %v5987_v47 = vmul.f32 %v8014_v45, %v5850_v62  ;;  %v8016_v50 = vld [vmem:[%s8504_s8 + $0xc9] sm:$0xff]  ;;  %v8017_v15 = vld [vmem:[%s8504_s8 + $0xd9] sm:$0xff]  ;;  %v8018_v45 = vld [vmem:[%s8504_s8 + $0xe1] sm:$0xff]  ;;  %v2505_v13 = vstv %s15218_s17  ;;  %s15273_s17 = sld [smem:[#allocation255_spill]] }
 0x805   : > { %v12485_v8 = vmul.f32 %v8016_v50, %v2493_v1  ;;  %v12488_v12 = vmul.f32 %v8017_v15, %v2496_v18  ;;  %v12492_v62 = vmul.f32 %v8018_v45, %v2496_v18  ;;  %v8019_v33 = vld [vmem:[%s8504_s8 + $0xf1] sm:$0xff]  ;;  %v2508_v59 = vstv %s15219_s18  ;;  %v5815_v1 = vpop.permute.xlu1 %5814  ;;  %v5813_v50 = vpop.permute.xlu0 %5812  ;;  %v8020_v4 = vld [vmem:[%s8504_s8 + $0xf9] sm:$0xff]  ;;  %v8021_v53 = vld [vmem:[%s8504_s8 + $0x109] sm:$0xff]  ;;  %s15275_s18 = sld [smem:[#allocation256_spill]] }
 0x806   : > { %v12495_v46 = vmul.f32 %v8019_v33, %v2499_v9  ;;  %v12502_v15 = vmul.f32 %v8020_v4, %v2499_v9  ;;  %v12505_v18 = vmul.f32 %v8021_v53, %v2502_v35  ;;  %v8022_v45 = vld [vmem:[%s8504_s8 + $0x111] sm:$0xff]  ;;  %7573 = vpush %v5813_v50  ;;  %6194 = vrot.lane.b32.xlu1 %v5987_v47, %s14631_s10  ;;  %v8023_v4 = vld [vmem:[%s8504_s8 + $0xc2] sm:$0xff] }
 0x807   : > { %15220 = vst [vmem:[#allocation89_spill] sm:$0xff] %v12488_v12  ;;  %v12508_v33 = vmul.f32 %v8022_v45, %v2502_v35  ;;  %6192 = vrot.lane.b32.xlu0 %v5986_v17, %s14631_s10  ;;  %v5988_v9 = vmul.f32 %v8023_v4, %v5853_v2  ;;  %v8024_v53 = vld [vmem:[%s8504_s8 + $0xca] sm:$0xff]  ;;  %7575 = vpush %v5815_v1  ;;  %v5856_v17 = vstv %s12499_s21  ;;  %v8033_v12 = vld [vmem:[%s8504_s8 + $0xda] sm:$0xff]  ;;  %s15284_s21 = sld [smem:[#allocation258_spill]] }
 0x808   : > { %15223 = vst [vmem:[#allocation618_spill] sm:$0xff] %v12495_v46  ;;  %15224 = vst [vmem:[#allocation90_spill] sm:$0xff] %v12502_v15  ;;  %v8025_v46 = vld [vmem:[%s8504_s8 + $0x121] sm:$0xff]  ;;  %v8026_v45 = vld [vmem:[%s8504_s8 + $0x129] sm:$0xff]  ;;  %v5990_v23 = vmul.f32 %v8033_v12, %v5856_v17  ;;  %v5859_v12 = vstv %s12534_s27  ;;  %s15304_s27 = sld [smem:[#allocation262_spill]] }
 0x809   : > { %15225 = vst [vmem:[#allocation617_spill] sm:$0xff] %v12505_v18  ;;  %15226 = vst [vmem:[#allocation91_spill] sm:$0xff] %v12508_v33  ;;  %v5989_v18 = vmul.f32 %v8024_v53, %v5853_v2  ;;  %v12517_v35 = vmul.f32 %v8025_v46, %v2505_v13  ;;  %v12520_v50 = vmul.f32 %v8026_v45, %v2505_v13  ;;  %v8027_v33 = vld [vmem:[%s8504_s8 + $0x139] sm:$0xff]  ;;  %v8028_v15 = vld [vmem:[%s8504_s8 + $0x141] sm:$0xff]  ;;  %v2517_v46 = vstv %s15227_s22  ;;  %v5819_v13 = vpop.permute.xlu1 %5818  ;;  %v5817_v45 = vpop.permute.xlu0 %5816  ;;  %s15287_s22 = sld [smem:[#allocation259_spill]] }
 0x80a   : > { %v12523_v47 = vmul.f32 %v8027_v33, %v2508_v59  ;;  %v12527_v4 = vmul.f32 %v8028_v15, %v2508_v59  ;;  %v8029_v2 = vld [vmem:[%s8504_s8 + $0x151] sm:$0xff]  ;;  %v2520_v53 = vstv %s15228_s23  ;;  %v8030_v33 = vld [vmem:[%s8504_s8 + $0x159] sm:$0xff]  ;;  %7577 = vpush %v5817_v45  ;;  %v8036_v45 = vld [vmem:[%s8504_s8 + $0x189] sm:$0xff]  ;;  %s12717_s23 = spop %7523 }
 0x80b   : > { %15229 = vst [vmem:[#allocation620_spill] sm:$0xff] %v12517_v35  ;;  %15230 = vst [vmem:[#allocation92_spill] sm:$0xff] %v12520_v50  ;;  %v12530_v1 = vmul.f32 %v8029_v2, %v2511_v54  ;;  %v8031_v35 = vld [vmem:[%s8504_s8 + $0x169] sm:$0xff]  ;;  %v8032_v15 = vld [vmem:[%s8504_s8 + $0x171] sm:$0xff]  ;;  %v2523_v2 = vstv %s15232_s24  ;;  %v2529_v50 = vstv %s15235_s26  ;;  %s15295_s24 = sld [smem:[#allocation260_spill]]  ;;  %s12756_s26 = spop %7525 }
 0x80c   : > { %15231 = vst [vmem:[#allocation619_spill] sm:$0xff] %v12523_v47  ;;  %15233 = vst [vmem:[#allocation93_spill] sm:$0xff] %v12527_v4  ;;  %v12537_v47 = vmul.f32 %v8030_v33, %v2511_v54  ;;  %v12540_v59 = vmul.f32 %v8031_v35, %v2514_v19  ;;  %v12543_v4 = vmul.f32 %v8032_v15, %v2514_v19  ;;  %v8034_v54 = vld [vmem:[%s8504_s8 + $0xe2] sm:$0xff]  ;;  %6198 = vrot.lane.b32.xlu1 %v5989_v18, %s14631_s10 }
 0x80d   : > { %15236 = vst [vmem:[#allocation622_spill] sm:$0xff] %v12530_v1  ;;  %v2526_v1 = vstv %s15234_s25  ;;  %v5991_v33 = vmul.f32 %v8034_v54, %v5856_v17  ;;  %6196 = vrot.lane.b32.xlu0 %v5988_v9, %s14631_s10  ;;  %7579 = vpush %v5819_v13  ;;  %v8035_v19 = vld [vmem:[%s8504_s8 + $0x181] sm:$0xff]  ;;  %v12556_v15 = vmul.f32 %v8036_v45, %v2517_v46  ;;  %v8039_v54 = vld [vmem:[%s8504_s8 + $0x1b1] sm:$0xff]  ;;  %v5821_v45 = vpop.permute.xlu0 %5820  ;;  %s15297_s25 = sld [smem:[#allocation261_spill]] }
 0x80e   : > { %15237 = vst [vmem:[#allocation94_spill] sm:$0xff] %v12537_v47  ;;  %15238 = vst [vmem:[#allocation621_spill] sm:$0xff] %v12540_v59  ;;  %v12553_v35 = vmul.f32 %v8035_v19, %v2517_v46  ;;  %v8037_v59 = vld [vmem:[%s8504_s8 + $0x199] sm:$0xff]  ;;  %v8038_v17 = vld [vmem:[%s8504_s8 + $0x1a1] sm:$0xff]  ;;  %v12566_v9 = vmul.f32 %v8039_v54, %v2523_v2  ;;  %v2532_v46 = vstv %s15240_s28  ;;  %s12793_s28 = spop %7527 }
 0x80f   : > { %15239 = vst [vmem:[#allocation95_spill] sm:$0xff] %v12543_v4  ;;  %15242 = vst [vmem:[#allocation96_spill] sm:$0xff] %v12556_v15  ;;  %v12559_v4 = vmul.f32 %v8037_v59, %v2520_v53  ;;  %v12563_v18 = vmul.f32 %v8038_v17, %v2520_v53  ;;  %v8040_v13 = vld [vmem:[%s8504_s8 + $0x1b9] sm:$0xff]  ;;  %v5823_v59 = vpop.permute.xlu1 %5822  ;;  %v8042_v53 = vld [vmem:[%s8504_s8 + $0x1d1] sm:$0xff] }
 0x810   : > { %15241 = vst [vmem:[#allocation624_spill] sm:$0xff] %v12553_v35  ;;  %15247 = vst [vmem:[#allocation626_spill] sm:$0xff] %v12566_v9  ;;  %v12569_v19 = vmul.f32 %v8040_v13, %v2523_v2  ;;  %v12578_v17 = vmul.f32 %v8042_v53, %v2526_v1  ;;  %v8043_v54 = vld [vmem:[%s8504_s8 + $0x1e1] sm:$0xff]  ;;  %v2535_v2 = vstv %s15244_s29  ;;  %v2538_v13 = vstv %s15246_s30  ;;  %6202 = vrot.lane.b32.xlu1 %v5991_v33, %s14631_s10  ;;  %s15313_s29 = sld [smem:[#allocation263_spill]] }
 0x811   : > { %15243 = vst [vmem:[#allocation623_spill] sm:$0xff] %v12559_v4  ;;  %15245 = vst [vmem:[#allocation97_spill] sm:$0xff] %v12563_v18  ;;  %v8041_v4 = vld [vmem:[%s8504_s8 + $0x1c9] sm:$0xff]  ;;  %v12581_v9 = vmul.f32 %v8043_v54, %v2529_v50  ;;  %6200 = vrot.lane.b32.xlu0 %v5990_v23, %s14631_s10  ;;  %v5862_v23 = vstv %s12572_s3  ;;  %v15257_v18 = vld [vmem:[#allocation128_spill] sm:$0xff]  ;;  %s15314_s30 = sld [smem:[#allocation264_spill]]  ;;  %s12830_s3 = spop %7529 }
 0x812   : > { %15248 = vst [vmem:[#allocation98_spill] sm:$0xff] %v12569_v19  ;;  %v12575_v35 = vmul.f32 %v8041_v4, %v2526_v1  ;;  %15250 = vst [vmem:[#allocation99_spill] sm:$0xff] %v12578_v17  ;;  %v8044_v4 = vld [vmem:[%s8504_s8 + $0xf2] sm:$0xff]  ;;  %v8045_v19 = vld [vmem:[%s8504_s8 + $0xfa] sm:$0xff]  ;;  %v2229_v15 = vadd.f32 %v15257_v18, %v11992_v3 }
 0x813   : > { %15251 = vst [vmem:[#allocation628_spill] sm:$0xff] %v12581_v9  ;;  %7581 = vpush %v5821_v45  ;;  %v5993_v1 = vmul.f32 %v8045_v19, %v5859_v12  ;;  %v8046_v53 = vld [vmem:[%s8504_s8 + $0x1e9] sm:$0xff]  ;;  %v8047_v9 = vld [vmem:[%s8504_s8 + $0x1f9] sm:$0xff]  ;;  %v2541_v19 = vstv %s15252_s4  ;;  %s15320_s4 = sld [smem:[#allocation265_spill]] }
 0x814   : > { %15249 = vst [vmem:[#allocation625_spill] sm:$0xff] %v12575_v35  ;;  %v5992_v35 = vmul.f32 %v8044_v4, %v5859_v12  ;;  %7583 = vpush %v5823_v59  ;;  %v12590_v54 = vmul.f32 %v8046_v53, %v2529_v50  ;;  %v12593_v45 = vmul.f32 %v8047_v9, %v2532_v46  ;;  %v8048_v17 = vld [vmem:[%s8504_s8 + $0x201] sm:$0xff]  ;;  %v8049_v4 = vld [vmem:[%s8504_s8 + $0x211] sm:$0xff]  ;;  %v2544_v50 = vstv %s15253_s5  ;;  %v5827_v9 = vpop.permute.xlu1 %5826  ;;  %v5825_v59 = vpop.permute.xlu0 %5824  ;;  %s15324_s5 = sld [smem:[#allocation266_spill]] }
 0x815   : > { %v12596_v33 = vmul.f32 %v8048_v17, %v2532_v46  ;;  %v12602_v12 = vmul.f32 %v8049_v4, %v2535_v2  ;;  %v15260_v53 = vld [vmem:[#allocation129_spill] sm:$0xff]  ;;  %v8050_v17 = vld [vmem:[%s8504_s8 + $0x219] sm:$0xff]  ;;  %v8052_v4 = vld [vmem:[%s8504_s8 + $0x231] sm:$0xff]  ;;  %7585 = vpush %v5825_v59  ;;  %6206 = vrot.lane.b32.xlu1 %v5993_v1, %s14631_s10  ;;  %v2553_v1 = vstv %s15262_s14 }
 0x816   : > { %15254 = vst [vmem:[#allocation100_spill] sm:$0xff] %v12590_v54  ;;  %15255 = vst [vmem:[#allocation627_spill] sm:$0xff] %v12593_v45  ;;  %v2228_v46 = vadd.f32 %v15260_v53, %v11996_v40  ;;  %v12611_v45 = vmul.f32 %v8050_v17, %v2535_v2  ;;  %v8051_v3 = vld [vmem:[%s8504_s8 + $0x229] sm:$0xff]  ;;  %v8054_v40 = vld [vmem:[%s8504_s8 + $0x112] sm:$0xff]  ;;  %6204 = vrot.lane.b32.xlu0 %v5992_v35, %s14631_s10  ;;  %v2550_v35 = vstv %s15261_s15  ;;  %s15333_s15 = sld [smem:[#allocation268_spill]] }
 0x817   : > { %15256 = vst [vmem:[#allocation101_spill] sm:$0xff] %v12596_v33  ;;  %15259 = vst [vmem:[#allocation630_spill] sm:$0xff] %v12602_v12  ;;  %v12614_v18 = vmul.f32 %v8051_v3, %v2538_v13  ;;  %v12617_v12 = vmul.f32 %v8052_v4, %v2538_v13  ;;  %v2547_v33 = vstv %s15258_s6  ;;  %v8053_v54 = vld [vmem:[%s8504_s8 + $0x10a] sm:$0xff]  ;;  %v5995_v53 = vmul.f32 %v8054_v40, %v5862_v23  ;;  %v8055_v2 = vld [vmem:[%s8504_s8 + $0x241] sm:$0xff]  ;;  %s12866_s6 = spop %7531 }
 0x818   : > { %v5994_v47 = vmul.f32 %v8053_v54, %v5862_v23  ;;  %7587 = vpush %v5827_v9  ;;  %v12625_v17 = vmul.f32 %v8055_v2, %v2541_v19  ;;  %v8056_v13 = vld [vmem:[%s8504_s8 + $0x249] sm:$0xff]  ;;  %v8057_v3 = vld [vmem:[%s8504_s8 + $0x259] sm:$0xff]  ;;  %v5865_v54 = vstv %s12606_s7  ;;  %v8058_v23 = vld [vmem:[%s8504_s8 + $0x261] sm:$0xff]  ;;  %v12640_v9 = vadd.f32 %v12415_v60, %v2229_v15  ;;  %s15329_s7 = sld [smem:[#allocation267_spill]]  ;;  %s12903_s14 = spop %7533 }
 0x819   : > { %v12628_v59 = vmul.f32 %v8056_v13, %v2541_v19  ;;  %v12631_v4 = vmul.f32 %v8057_v3, %v2544_v50  ;;  %v12635_v40 = vmul.f32 %v8058_v23, %v2544_v50  ;;  %v15268_v19 = vld [vmem:[#allocation130_spill] sm:$0xff]  ;;  %v15269_v13 = vld [vmem:[#allocation131_spill] sm:$0xff]  ;;  %6210 = vrot.lane.b32.xlu1 %v5995_v53, %s14631_s10 }
 0x81a   : > { %15263 = vst [vmem:[#allocation102_spill] sm:$0xff] %v12625_v17  ;;  %15267 = vst [vmem:[#allocation632_spill] sm:$0xff] %v12640_v9  ;;  %v2231_v2 = vadd.f32 %v15268_v19, %v12000_v37  ;;  %v12648_v3 = vadd.f32 %v15269_v13, %v12004_v0  ;;  %v8059_v50 = vld [vmem:[%s8504_s8 + $0x271] sm:$0xff]  ;;  %6208 = vrot.lane.b32.xlu0 %v5994_v47, %s14631_s10  ;;  %v8061_v37 = vld [vmem:[%s8504_s8 + $0x122] sm:$0xff]  ;;  %v5868_v47 = vstv %s12642_s2  ;;  %s12943_s2 = spop %7535 }
 0x81b   : > { %15265 = vst [vmem:[#allocation629_spill] sm:$0xff] %v12631_v4  ;;  %15266 = vst [vmem:[#allocation103_spill] sm:$0xff] %v12635_v40  ;;  %v12651_v23 = vmul.f32 %v8059_v50, %v2547_v33  ;;  %v2556_v4 = vstv %s15264_s1  ;;  %v8060_v40 = vld [vmem:[%s8504_s8 + $0x279] sm:$0xff]  ;;  %v5996_v0 = vmul.f32 %v8061_v37, %v5865_v54  ;;  %v8062_v15 = vld [vmem:[%s8504_s8 + $0x12a] sm:$0xff]  ;;  %s15342_s1 = sld [smem:[#allocation269_spill]] }
 0x81c   : > { %v12655_v60 = vmul.f32 %v8060_v40, %v2547_v33  ;;  %v5997_v19 = vmul.f32 %v8062_v15, %v5865_v54  ;;  %v8063_v13 = vld [vmem:[%s8504_s8 + $0x289] sm:$0xff]  ;;  %v8064_v9 = vld [vmem:[%s8504_s8 + $0x291] sm:$0xff]  ;;  %v8065_v33 = vld [vmem:[%s8504_s8 + $0x2a1] sm:$0xff]  ;;  %v2559_v15 = vstv %s15272_s16  ;;  %s15356_s16 = sld [smem:[#allocation270_spill]] }
 0x81d   : > { %15270 = vst [vmem:[#allocation104_spill] sm:$0xff] %v12651_v23  ;;  %v12662_v50 = vmul.f32 %v8063_v13, %v2550_v35  ;;  %v12665_v23 = vmul.f32 %v8064_v9, %v2550_v35  ;;  %v12668_v40 = vmul.f32 %v8065_v33, %v2553_v1  ;;  %v8066_v53 = vld [vmem:[%s8504_s8 + $0x2a9] sm:$0xff]  ;;  %v8067_v37 = vld [vmem:[%s8504_s8 + $0x2b9] sm:$0xff]  ;;  %v2562_v13 = vstv %s15273_s17  ;;  %v8068_v33 = vld [vmem:[%s8504_s8 + $0x2c1] sm:$0xff]  ;;  %s15357_s17 = sld [smem:[#allocation271_spill]] }
 0x81e   : > { %15271 = vst [vmem:[#allocation631_spill] sm:$0xff] %v12655_v60  ;;  %v12672_v60 = vmul.f32 %v8066_v53, %v2553_v1  ;;  %v12675_v54 = vmul.f32 %v8067_v37, %v2556_v4  ;;  %v15281_v35 = vld [vmem:[#allocation132_spill] sm:$0xff]  ;;  %v12688_v1 = vadd.f32 %v12412_v25, %v2228_v46  ;;  %v15283_v53 = vld [vmem:[#allocation133_spill] sm:$0xff]  ;;  %6214 = vrot.lane.b32.xlu1 %v5997_v19, %s14631_s10 }
 0x81f   : > { %15274 = vst [vmem:[#allocation105_spill] sm:$0xff] %v12662_v50  ;;  %15276 = vst [vmem:[#allocation634_spill] sm:$0xff] %v12665_v23  ;;  %v2233_v9 = vadd.f32 %v15281_v35, %v12008_v29  ;;  %v2565_v50 = vstv %s15275_s18  ;;  %v2232_v37 = vadd.f32 %v15283_v53, %v12012_v44  ;;  %v8070_v17 = vld [vmem:[%s8504_s8 + $0x142] sm:$0xff]  ;;  %6212 = vrot.lane.b32.xlu0 %v5996_v0, %s14631_s10  ;;  %v8072_v46 = vld [vmem:[%s8504_s8 + $0x2d9] sm:$0xff]  ;;  %s12978_s18 = spop %7537 }
 0x820   : > { %15278 = vst [vmem:[#allocation106_spill] sm:$0xff] %v12668_v40  ;;  %15279 = vst [vmem:[#allocation633_spill] sm:$0xff] %v12672_v60  ;;  %v12684_v40 = vmul.f32 %v8068_v33, %v2556_v4  ;;  %v8069_v60 = vld [vmem:[%s8504_s8 + $0x13a] sm:$0xff]  ;;  %v5999_v29 = vmul.f32 %v8070_v17, %v5868_v47  ;;  %v8071_v4 = vld [vmem:[%s8504_s8 + $0x2d1] sm:$0xff]  ;;  %v12701_v35 = vmul.f32 %v8072_v46, %v2559_v15 }
 0x821   : > { %15280 = vst [vmem:[#allocation107_spill] sm:$0xff] %v12675_v54  ;;  %v2568_v54 = vstv %s15277_s19  ;;  %v5998_v23 = vmul.f32 %v8069_v60, %v5868_v47  ;;  %v12698_v25 = vmul.f32 %v8071_v4, %v2559_v15  ;;  %v8073_v44 = vld [vmem:[%s8504_s8 + $0x2e9] sm:$0xff]  ;;  %v5871_v60 = vstv %s12679_s20  ;;  %v8074_v53 = vld [vmem:[%s8504_s8 + $0x2f1] sm:$0xff]  ;;  %s7540_s19 = spop %7539 }
 0x822   : > { %15282 = vst [vmem:[#allocation636_spill] sm:$0xff] %v12684_v40  ;;  %15286 = vst [vmem:[#allocation635_spill] sm:$0xff] %v12701_v35  ;;  %v12704_v33 = vmul.f32 %v8073_v44, %v2562_v13  ;;  %v12708_v17 = vmul.f32 %v8074_v53, %v2562_v13  ;;  %v8075_v19 = vld [vmem:[%s8504_s8 + $0x301] sm:$0xff]  ;;  %v8076_v0 = vld [vmem:[%s8504_s8 + $0x309] sm:$0xff]  ;;  %v2574_v13 = vstv %s15287_s22  ;;  %v12727_v53 = vadd.f32 %v12422_v21, %v2231_v2  ;;  %s13049_s20 = spop %7541 }
 0x823   : > { %15285 = vst [vmem:[#allocation108_spill] sm:$0xff] %v12698_v25  ;;  %v12711_v47 = vmul.f32 %v8075_v19, %v2565_v50  ;;  %v12714_v4 = vmul.f32 %v8076_v0, %v2565_v50  ;;  %v2571_v25 = vstv %s15284_s21  ;;  %v8077_v15 = vld [vmem:[%s8504_s8 + $0x319] sm:$0xff]  ;;  %v8078_v44 = vld [vmem:[%s8504_s8 + $0x321] sm:$0xff]  ;;  %v15294_v19 = vld [vmem:[#allocation134_spill] sm:$0xff]  ;;  %6218 = vrot.lane.b32.xlu1 %v5999_v29, %s14631_s10  ;;  %s7544_s21 = spop %7543 }
 0x824   : > { %15288 = vst [vmem:[#allocation109_spill] sm:$0xff] %v12704_v33  ;;  %15289 = vst [vmem:[#allocation638_spill] sm:$0xff] %v12708_v17  ;;  %v12720_v46 = vmul.f32 %v8077_v15, %v2568_v54  ;;  %v12723_v33 = vmul.f32 %v8078_v44, %v2568_v54  ;;  %v2235_v50 = vadd.f32 %v15294_v19, %v12016_v5  ;;  %6216 = vrot.lane.b32.xlu0 %v5998_v23, %s14631_s10  ;;  %v8079_v0 = vld [vmem:[%s8504_s8 + $0x152] sm:$0xff]  ;;  %v15299_v23 = vld [vmem:[#allocation136_spill] sm:$0xff]  ;;  %s13120_s22 = spop %7545 }
 0x825   : > { %15290 = vst [vmem:[#allocation110_spill] sm:$0xff] %v12711_v47  ;;  %15291 = vst [vmem:[#allocation637_spill] sm:$0xff] %v12714_v4  ;;  %v6000_v15 = vmul.f32 %v8079_v0, %v5871_v60  ;;  %v15296_v44 = vld [vmem:[#allocation135_spill] sm:$0xff]  ;;  %v12742_v5 = vadd.f32 %v12418_v38, %v12648_v3  ;;  %v5874_v2 = vstv %s12717_s23  ;;  %v2237_v29 = vadd.f32 %v15299_v23, %v12024_v24  ;;  %v15303_v38 = vld [vmem:[#allocation137_spill] sm:$0xff]  ;;  %s7548_s23 = spop %7547 }
 0x826   : > { %15292 = vst [vmem:[#allocation111_spill] sm:$0xff] %v12720_v46  ;;  %15293 = vst [vmem:[#allocation640_spill] sm:$0xff] %v12723_v33  ;;  %v8080_v46 = vld [vmem:[%s8504_s8 + $0x15a] sm:$0xff]  ;;  %v2234_v33 = vadd.f32 %v15296_v44, %v12020_v39  ;;  %v8081_v47 = vld [vmem:[%s8504_s8 + $0x331] sm:$0xff]  ;;  %v2236_v3 = vadd.f32 %v15303_v38, %v12028_v43  ;;  %v12762_v24 = vadd.f32 %v12432_v57, %v2233_v9  ;;  %v2580_v23 = vstv %s15297_s25  ;;  %s13199_s25 = spop %7549 }
 0x827   : > { %v6001_v54 = vmul.f32 %v8080_v46, %v5871_v60  ;;  %v12738_v21 = vmul.f32 %v8081_v47, %v2571_v25  ;;  %v8082_v19 = vld [vmem:[%s8504_s8 + $0x339] sm:$0xff]  ;;  %v8083_v60 = vld [vmem:[%s8504_s8 + $0x349] sm:$0xff]  ;;  %v8084_v39 = vld [vmem:[%s8504_s8 + $0x351] sm:$0xff]  ;;  %v2577_v47 = vstv %s15295_s24  ;;  %s15474_s24 = sld [smem:[#allocation464_spill]] }
 0x828   : > { %v12748_v0 = vmul.f32 %v8082_v19, %v2571_v25  ;;  %v12751_v46 = vmul.f32 %v8083_v60, %v2574_v13  ;;  %v12754_v44 = vmul.f32 %v8084_v39, %v2574_v13  ;;  %v12765_v25 = vadd.f32 %v12425_v11, %v2232_v37  ;;  %v8085_v19 = vld [vmem:[%s8504_s8 + $0x16a] sm:$0xff]  ;;  %v8086_v39 = vld [vmem:[%s8504_s8 + $0x172] sm:$0xff]  ;;  %6220 = vrot.lane.b32.xlu0 %v6000_v15, %s14631_s10  ;;  %v15410_v40 = vld [vmem:[#allocation52_spill] sm:$0xff] }
 0x829   : > { %15298 = vst [vmem:[#allocation112_spill] sm:$0xff] %v12738_v21  ;;  %v12769_v13 = vadd.f32 %v12438_v10, %v2235_v50  ;;  %v6002_v60 = vmul.f32 %v8085_v19, %v5874_v2  ;;  %6222 = vrot.lane.b32.xlu1 %v6001_v54, %s14631_s10  ;;  %v15305_v43 = vld [vmem:[#allocation138_spill] sm:$0xff]  ;;  %v15306_v11 = vld [vmem:[#allocation139_spill] sm:$0xff]  ;;  %v12780_v37 = vadd.f32 %v12435_v22, %v2234_v33  ;;  %v5877_v10 = vstv %s12756_s26  ;;  %v8087_v50 = vld [vmem:[%s8504_s8 + $0x361] sm:$0xff]  ;;  %s15486_s26 = sld [smem:[#allocation465_spill]] }
 0x82a   : > { %15300 = vst [vmem:[#allocation639_spill] sm:$0xff] %v12748_v0  ;;  %15301 = vst [vmem:[#allocation113_spill] sm:$0xff] %v12751_v46  ;;  %v6003_v46 = vmul.f32 %v8086_v39, %v5874_v2  ;;  %v2239_v57 = vadd.f32 %v15305_v43, %v12032_v52  ;;  %v2238_v9 = vadd.f32 %v15306_v11, %v12036_v31  ;;  %v8088_v2 = vld [vmem:[%s8504_s8 + $0x369] sm:$0xff]  ;;  %v2583_v19 = vstv %s15304_s27  ;;  %v15309_v52 = vld [vmem:[#allocation140_spill] sm:$0xff]  ;;  %s15493_s27 = sld [smem:[#allocation466_spill]] }
 0x82b   : > { %15302 = vst [vmem:[#allocation642_spill] sm:$0xff] %v12754_v44  ;;  %v12784_v38 = vmul.f32 %v8087_v50, %v2577_v47  ;;  %v12787_v54 = vmul.f32 %v8088_v2, %v2577_v47  ;;  %v12791_v15 = vadd.f32 %v12450_v55, %v2237_v29  ;;  %v2241_v31 = vadd.f32 %v15309_v52, %v12040_v16  ;;  %v8089_v22 = vld [vmem:[%s8504_s8 + $0x379] sm:$0xff]  ;;  %v8090_v39 = vld [vmem:[%s8504_s8 + $0x381] sm:$0xff]  ;;  %v8092_v50 = vld [vmem:[%s8504_s8 + $0x18a] sm:$0xff] }
 0x82c   : > { %v12798_v33 = vmul.f32 %v8089_v22, %v2580_v23  ;;  %v12801_v43 = vmul.f32 %v8090_v39, %v2580_v23  ;;  %v12804_v47 = vadd.f32 %v12447_v41, %v2236_v3  ;;  %v15312_v11 = vld [vmem:[#allocation141_spill] sm:$0xff]  ;;  %6224 = vrot.lane.b32.xlu0 %v6002_v60, %s14631_s10  ;;  %v6005_v2 = vmul.f32 %v8092_v50, %v5877_v10  ;;  %v8093_v52 = vld [vmem:[%s8504_s8 + $0x391] sm:$0xff]  ;;  %v8095_v50 = vld [vmem:[%s8504_s8 + $0x19a] sm:$0xff] }
 0x82d   : > { %15307 = vst [vmem:[#allocation114_spill] sm:$0xff] %v12784_v38  ;;  %15308 = vst [vmem:[#allocation641_spill] sm:$0xff] %v12787_v54  ;;  %v2240_v55 = vadd.f32 %v15312_v11, %v12044_v58  ;;  %6226 = vrot.lane.b32.xlu1 %v6003_v46, %s14631_s10  ;;  %v8091_v16 = vld [vmem:[%s8504_s8 + $0x182] sm:$0xff]  ;;  %v12813_v23 = vmul.f32 %v8093_v52, %v2583_v19  ;;  %v12816_v41 = vadd.f32 %v12457_v34, %v2239_v57  ;;  %v15316_v46 = vld [vmem:[#allocation142_spill] sm:$0xff] }
 0x82e   : > { %15310 = vst [vmem:[#allocation115_spill] sm:$0xff] %v12798_v33  ;;  %15311 = vst [vmem:[#allocation116_spill] sm:$0xff] %v12801_v43  ;;  %v6004_v29 = vmul.f32 %v8091_v16, %v5877_v10  ;;  %v12819_v58 = vadd.f32 %v12453_v30, %v2238_v9  ;;  %v5880_v3 = vstv %s12793_s28  ;;  %v2243_v60 = vadd.f32 %v15316_v46, %v12048_v6  ;;  %v15317_v22 = vld [vmem:[#allocation143_spill] sm:$0xff]  ;;  %v15319_v34 = vld [vmem:[#allocation144_spill] sm:$0xff]  ;;  %s13248_s28 = spop %7551 }
 0x82f   : > { %15315 = vst [vmem:[#allocation643_spill] sm:$0xff] %v12813_v23  ;;  %v2242_v39 = vadd.f32 %v15317_v22, %v12052_v26  ;;  %v8094_v10 = vld [vmem:[%s8504_s8 + $0x399] sm:$0xff]  ;;  %v2586_v16 = vstv %s15313_s29  ;;  %v2245_v30 = vadd.f32 %v15319_v34, %v12056_v63  ;;  %v15321_v57 = vld [vmem:[#allocation145_spill] sm:$0xff]  ;;  %v2589_v6 = vstv %s15314_s30  ;;  %s15494_s29 = sld [smem:[#allocation3_spill]] }
 0x830   : > { %v12827_v11 = vmul.f32 %v8094_v10, %v2583_v19  ;;  %v2244_v9 = vadd.f32 %v15321_v57, %v12060_v7  ;;  %v12838_v26 = vadd.f32 %v12467_v20, %v2241_v31  ;;  %v12841_v19 = vadd.f32 %v12460_v51, %v2240_v55  ;;  %v8096_v46 = vld [vmem:[%s8504_s8 + $0x1a2] sm:$0xff]  ;;  %6228 = vrot.lane.b32.xlu0 %v6004_v29, %s14631_s10  ;;  %v8098_v7 = vld [vmem:[%s8504_s8 + $0x3b1] sm:$0xff] }
 0x831   : > { %v6006_v52 = vmul.f32 %v8095_v50, %v5880_v3  ;;  %v6007_v22 = vmul.f32 %v8096_v46, %v5880_v3  ;;  %6230 = vrot.lane.b32.xlu1 %v6005_v2, %s14631_s10  ;;  %v8097_v63 = vld [vmem:[%s8504_s8 + $0x3a9] sm:$0xff]  ;;  %v12851_v34 = vmul.f32 %v8098_v7, %v2586_v16  ;;  %v2592_v20 = vstv %s15320_s4  ;;  %v8099_v3 = vld [vmem:[%s8504_s8 + $0x3c1] sm:$0xff]  ;;  %v15399_v44 = vld [vmem:[#allocation167_spill] sm:$0xff]  ;;  %s15504_s4 = sld [smem:[#allocation467_spill]] }
 0x832   : > { %15318 = vst [vmem:[#allocation117_spill] sm:$0xff] %v12827_v11  ;;  %v12848_v10 = vmul.f32 %v8097_v63, %v2586_v16  ;;  %v5883_v51 = vstv %s12830_s3  ;;  %v15325_v31 = vld [vmem:[#allocation146_spill] sm:$0xff]  ;;  %v12858_v57 = vmul.f32 %v8099_v3, %v2589_v6  ;;  %v12861_v29 = vadd.f32 %v12473_v28, %v2243_v60  ;;  %v15327_v16 = vld [vmem:[#allocation147_spill] sm:$0xff]  ;;  %v8104_v3 = vld [vmem:[%s8504_s8 + $0x3e1] sm:$0xff]  ;;  %s13283_s3 = spop %7553 }
 0x833   : > { %15323 = vst [vmem:[#allocation118_spill] sm:$0xff] %v12851_v34  ;;  %v2247_v55 = vadd.f32 %v15325_v31, %v12064_v36  ;;  %v12864_v2 = vadd.f32 %v12470_v48, %v2242_v39  ;;  %v2246_v50 = vadd.f32 %v15327_v16, %v12068_v61  ;;  %v8100_v46 = vld [vmem:[%s8504_s8 + $0x3c9] sm:$0xff]  ;;  %v12874_v36 = vadd.f32 %v12485_v8, %v2245_v30  ;;  %v8101_v28 = vld [vmem:[%s8504_s8 + $0x3d9] sm:$0xff] }
 0x834   : > { %15322 = vst [vmem:[#allocation645_spill] sm:$0xff] %v12848_v10  ;;  %15326 = vst [vmem:[#allocation644_spill] sm:$0xff] %v12858_v57  ;;  %v12871_v63 = vmul.f32 %v8100_v46, %v2589_v6  ;;  %v12877_v7 = vadd.f32 %v12482_v32, %v2244_v9  ;;  %v12880_v48 = vmul.f32 %v8101_v28, %v2592_v20  ;;  %v2595_v60 = vstv %s15324_s5  ;;  %v8102_v61 = vld [vmem:[%s8504_s8 + $0x1b2] sm:$0xff]  ;;  %v8103_v6 = vld [vmem:[%s8504_s8 + $0x1ba] sm:$0xff]  ;;  %s15571_s5 = sld [smem:[#allocation478_spill]] }
 0x835   : > { %6234 = vrot.lane.b32.xlu1 %v6007_v22, %s14631_s10  ;;  %6232 = vrot.lane.b32.xlu0 %v6006_v52, %s14631_s10  ;;  %v6008_v39 = vmul.f32 %v8102_v61, %v5883_v51  ;;  %v6009_v31 = vmul.f32 %v8103_v6, %v5883_v51  ;;  %v15331_v8 = vld [vmem:[#allocation148_spill] sm:$0xff]  ;;  %v15332_v32 = vld [vmem:[#allocation149_spill] sm:$0xff]  ;;  %v12892_v16 = vmul.f32 %v8104_v3, %v2592_v20  ;;  %v5886_v22 = vstv %s12866_s6  ;;  %v15335_v52 = vld [vmem:[#allocation150_spill] sm:$0xff]  ;;  %s6724_s30 = smul.u32 768, %s15494_s29  ;;  %s15558_s29 = sld [smem:[#allocation476_spill]] }
 0x836   : > { %15328 = vst [vmem:[#allocation119_spill] sm:$0xff] %v12871_v63  ;;  %15330 = vst [vmem:[#allocation120_spill] sm:$0xff] %v12880_v48  ;;  %v2249_v30 = vadd.f32 %v15331_v8, %v12072_v27  ;;  %v2248_v9 = vadd.f32 %v15332_v32, %v12076_v14  ;;  %v2251_v46 = vadd.f32 %v15335_v52, %v12080_v42  ;;  %v15336_v28 = vld [vmem:[#allocation151_spill] sm:$0xff]  ;;  %v2598_v61 = vstv %s15329_s7  ;;  %v15337_v27 = vld [vmem:[#allocation152_spill] sm:$0xff]  ;;  %s15507_s7 = sld [smem:[#allocation649_spill]] }
 0x837   : > { %15334 = vst [vmem:[#allocation646_spill] sm:$0xff] %v12892_v16  ;;  %v2250_v51 = vadd.f32 %v15336_v28, %v12084_v49  ;;  %v12901_v6 = vadd.f32 %v12492_v62, %v2247_v55  ;;  %v2253_v14 = vadd.f32 %v15337_v27, %v12088_v56  ;;  %v15338_v20 = vld [vmem:[#allocation32_spill] sm:$0xff]  ;;  %v15339_v8 = vld [vmem:[#allocation153_spill] sm:$0xff]  ;;  %v8105_v3 = vld [vmem:[%s8504_s8 + $0x3f1] sm:$0xff]  ;;  %v2601_v55 = vstv %s15333_s15 }
 0x838   : > { %v2252_v32 = vadd.f32 %v15339_v8, %v15338_v20  ;;  %v12910_v48 = vmul.f32 %v8105_v3, %v2595_v60  ;;  %v15341_v42 = vld [vmem:[#allocation89_spill] sm:$0xff]  ;;  %v8106_v52 = vld [vmem:[%s8504_s8 + $0x3f9] sm:$0xff] }
 0x839   : > { %v12913_v49 = vadd.f32 %v15341_v42, %v2246_v50  ;;  %v12916_v62 = vmul.f32 %v8106_v52, %v2595_v60  ;;  %v8107_v28 = vld [vmem:[%s8504_s8 + $0x1ca] sm:$0xff]  ;;  %v8108_v56 = vld [vmem:[%s8504_s8 + $0x1d2] sm:$0xff]  ;;  %6238 = vrot.lane.b32.xlu1 %v6009_v31, %s14631_s10  ;;  %6236 = vrot.lane.b32.xlu0 %v6008_v39, %s14631_s10  ;;  %v15401_v0 = vld [vmem:[#allocation168_spill] sm:$0xff] }
 0x83a   : > { %15340 = vst [vmem:[#allocation121_spill] sm:$0xff] %v12910_v48  ;;  %v6010_v16 = vmul.f32 %v8107_v28, %v5886_v22  ;;  %v6011_v27 = vmul.f32 %v8108_v56, %v5886_v22  ;;  %v8109_v20 = vld [vmem:[%s8504_s8 + $0x409] sm:$0xff]  ;;  %v15346_v42 = vld [vmem:[#allocation618_spill] sm:$0xff]  ;;  %v5889_v52 = vstv %s12903_s14  ;;  %v2604_v22 = vstv %s15342_s1  ;;  %s13304_s14 = spop %7555  ;;  %s15511_s1 = sld [smem:[#allocation468_spill]] }
 0x83b   : > { %15343 = vst [vmem:[#allocation122_spill] sm:$0xff] %v12916_v62  ;;  %v12924_v8 = vmul.f32 %v8109_v20, %v2598_v61  ;;  %v15345_v50 = vld [vmem:[#allocation90_spill] sm:$0xff]  ;;  %v12930_v60 = vadd.f32 %v15346_v42, %v2248_v9  ;;  %v15348_v56 = vld [vmem:[#allocation91_spill] sm:$0xff]  ;;  %v15365_v63 = vld [vmem:[#allocation157_spill] sm:$0xff] }
 0x83c   : > { %v12927_v3 = vadd.f32 %v15345_v50, %v2249_v30  ;;  %v8110_v28 = vld [vmem:[%s8504_s8 + $0x411] sm:$0xff]  ;;  %v12938_v31 = vadd.f32 %v15348_v56, %v2251_v46  ;;  %v8111_v30 = vld [vmem:[%s8504_s8 + $0x421] sm:$0xff]  ;;  %v8112_v20 = vld [vmem:[%s8504_s8 + $0x429] sm:$0xff]  ;;  %s13299_s15 = scalar_lea.vmem %s15507_s7, %s6724_s30  ;;  %s15577_s7 = sld [smem:[#allocation479_spill]] }
 0x83d   : > { %15344 = vst [vmem:[#allocation123_spill] sm:$0xff] %v12924_v8  ;;  %v12934_v48 = vmul.f32 %v8110_v28, %v2598_v61  ;;  %v15349_v39 = vld [vmem:[#allocation617_spill] sm:$0xff]  ;;  %v12946_v9 = vmul.f32 %v8111_v30, %v2601_v55  ;;  %v12949_v50 = vmul.f32 %v8112_v20, %v2601_v55  ;;  %v15352_v61 = vld [vmem:[#allocation92_spill] sm:$0xff]  ;;  %v15353_v28 = vld [vmem:[#allocation620_spill] sm:$0xff]  ;;  %6242 = vrot.lane.b32.xlu1 %v6011_v27, %s14631_s10 }
 0x83e   : > { %v12941_v62 = vadd.f32 %v15349_v39, %v2250_v51  ;;  %v12952_v42 = vadd.f32 %v15352_v61, %v2253_v14  ;;  %v12955_v46 = vadd.f32 %v15353_v28, %v2252_v32  ;;  %v15354_v56 = vld [vmem:[#allocation33_spill] sm:$0xff]  ;;  %v15355_v51 = vld [vmem:[#allocation154_spill] sm:$0xff]  ;;  %6240 = vrot.lane.b32.xlu0 %v6010_v16, %s14631_s10  ;;  %v8115_v61 = vld [vmem:[%s8504_s8 + $0x439] sm:$0xff] }
 0x83f   : > { %15347 = vst [vmem:[#allocation124_spill] sm:$0xff] %v12934_v48  ;;  %15350 = vst [vmem:[#allocation125_spill] sm:$0xff] %v12946_v9  ;;  %v2255_v39 = vadd.f32 %v15355_v51, %v15354_v56  ;;  %v8113_v30 = vld [vmem:[%s8504_s8 + $0x1e2] sm:$0xff]  ;;  %v8114_v8 = vld [vmem:[%s8504_s8 + $0x1ea] sm:$0xff]  ;;  %v12966_v32 = vmul.f32 %v8115_v61, %v2604_v22  ;;  %v5892_v56 = vstv %s12943_s2  ;;  %s13328_s2 = spop %7557 }
 0x840   : > { %15351 = vst [vmem:[#allocation126_spill] sm:$0xff] %v12949_v50  ;;  %v6012_v9 = vmul.f32 %v8113_v30, %v5889_v52  ;;  %v6013_v55 = vmul.f32 %v8114_v8, %v5889_v52  ;;  %v15358_v20 = vld [vmem:[#allocation34_spill] sm:$0xff]  ;;  %v15359_v50 = vld [vmem:[#allocation155_spill] sm:$0xff]  ;;  %v8116_v28 = vld [vmem:[%s8504_s8 + $0x441] sm:$0xff]  ;;  %v2607_v8 = vstv %s15356_s16  ;;  %v2610_v52 = vstv %s15357_s17  ;;  %s15517_s16 = sld [smem:[#allocation469_spill]]  ;;  %s13354_s17 = spop %7559 }
 0x841   : > { %v2254_v14 = vadd.f32 %v15359_v50, %v15358_v20  ;;  %15360 = vst [vmem:[#allocation127_spill] sm:$0xff] %v12966_v32  ;;  %v12969_v48 = vmul.f32 %v8116_v28, %v2604_v22  ;;  %v15362_v51 = vld [vmem:[#allocation35_spill] sm:$0xff]  ;;  %v15363_v27 = vld [vmem:[#allocation156_spill] sm:$0xff]  ;;  %v15366_v50 = vld [vmem:[#allocation37_spill] sm:$0xff] }
 0x842   : > { %v2257_v57 = vadd.f32 %v15363_v27, %v15362_v51  ;;  %v15364_v16 = vld [vmem:[#allocation36_spill] sm:$0xff]  ;;  %v15367_v20 = vld [vmem:[#allocation158_spill] sm:$0xff]  ;;  %v15369_v10 = vld [vmem:[#allocation159_spill] sm:$0xff]  ;;  %6246 = vrot.lane.b32.xlu1 %v6013_v55, %s14631_s10  ;;  %6244 = vrot.lane.b32.xlu0 %v6012_v9, %s14631_s10 }
 0x843   : > { %15361 = vst [vmem:[#allocation128_spill] sm:$0xff] %v12969_v48  ;;  %v2256_v30 = vadd.f32 %v15365_v63, %v15364_v16  ;;  %v2259_v61 = vadd.f32 %v15367_v20, %v15366_v50  ;;  %v15368_v32 = vld [vmem:[#allocation38_spill] sm:$0xff]  ;;  %v15370_v28 = vld [vmem:[#allocation39_spill] sm:$0xff]  ;;  %v15371_v48 = vld [vmem:[#allocation160_spill] sm:$0xff] }
 0x844   : > { %v2258_v22 = vadd.f32 %v15369_v10, %v15368_v32  ;;  %v2261_v51 = vadd.f32 %v15371_v48, %v15370_v28  ;;  %v15372_v27 = vld [vmem:[#allocation40_spill] sm:$0xff]  ;;  %v15373_v34 = vld [vmem:[#allocation161_spill] sm:$0xff]  ;;  %v8119_v10 = vld [vmem:[%s8504_s8 + $0x451] sm:$0xff] }
 0x845   : > { %v2260_v23 = vadd.f32 %v15373_v34, %v15372_v27  ;;  %v15374_v63 = vld [vmem:[#allocation93_spill] sm:$0xff]  ;;  %v8117_v11 = vld [vmem:[%s8504_s8 + $0x1fa] sm:$0xff]  ;;  %v12996_v32 = vmul.f32 %v8119_v10, %v2607_v8  ;;  %v15380_v55 = vld [vmem:[#allocation94_spill] sm:$0xff] }
 0x846   : > { %v12989_v16 = vadd.f32 %v15374_v63, %v2255_v39  ;;  %v6014_v33 = vmul.f32 %v8117_v11, %v5892_v56  ;;  %v8118_v43 = vld [vmem:[%s8504_s8 + $0x202] sm:$0xff]  ;;  %v8120_v50 = vld [vmem:[%s8504_s8 + $0x459] sm:$0xff]  ;;  %v5895_v39 = vstv %s12978_s18  ;;  %v13012_v9 = vadd.f32 %v15380_v55, %v2257_v57  ;;  %s15523_s18 = sld [smem:[#allocation470_spill]] }
 0x847   : > { %v6015_v38 = vmul.f32 %v8118_v43, %v5892_v56  ;;  %15375 = vst [vmem:[#allocation129_spill] sm:$0xff] %v12996_v32  ;;  %v12999_v48 = vmul.f32 %v8120_v50, %v2607_v8  ;;  %v15377_v20 = vld [vmem:[#allocation619_spill] sm:$0xff]  ;;  %v8121_v28 = vld [vmem:[%s8504_s8 + $0x469] sm:$0xff]  ;;  %v8122_v43 = vld [vmem:[%s8504_s8 + $0x471] sm:$0xff] }
 0x848   : > { %v13002_v34 = vadd.f32 %v15377_v20, %v2254_v14  ;;  %v13006_v11 = vmul.f32 %v8121_v28, %v2610_v52  ;;  %v13009_v56 = vmul.f32 %v8122_v43, %v2610_v52  ;;  %v15381_v27 = vld [vmem:[#allocation622_spill] sm:$0xff]  ;;  %v15383_v14 = vld [vmem:[#allocation621_spill] sm:$0xff]  ;;  %v15384_v20 = vld [vmem:[#allocation96_spill] sm:$0xff]  ;;  %6248 = vrot.lane.b32.xlu0 %v6014_v33, %s14631_s10 }
 0x849   : > { %15376 = vst [vmem:[#allocation130_spill] sm:$0xff] %v12999_v48  ;;  %v13015_v63 = vadd.f32 %v15381_v27, %v2256_v30  ;;  %v15382_v8 = vld [vmem:[#allocation95_spill] sm:$0xff]  ;;  %v13021_v50 = vadd.f32 %v15383_v14, %v2258_v22  ;;  %v13024_v32 = vadd.f32 %v15384_v20, %v2261_v51  ;;  %v15386_v28 = vld [vmem:[#allocation624_spill] sm:$0xff]  ;;  %v15389_v43 = vld [vmem:[#allocation162_spill] sm:$0xff]  ;;  %6250 = vrot.lane.b32.xlu1 %v6015_v38, %s14631_s10 }
 0x84a   : > { %15378 = vst [vmem:[#allocation131_spill] sm:$0xff] %v13006_v11  ;;  %15379 = vst [vmem:[#allocation132_spill] sm:$0xff] %v13009_v56  ;;  %v13018_v10 = vadd.f32 %v15382_v8, %v2259_v61  ;;  %v13027_v11 = vadd.f32 %v15386_v28, %v2260_v23  ;;  %v15388_v52 = vld [vmem:[#allocation41_spill] sm:$0xff]  ;;  %v8123_v30 = vld [vmem:[%s8504_s8 + $0x212] sm:$0xff] }
 0x84b   : > { %15385 = vst [vmem:[#allocation133_spill] sm:$0xff] %v13024_v32  ;;  %v2263_v57 = vadd.f32 %v15389_v43, %v15388_v52  ;;  %v6016_v55 = vmul.f32 %v8123_v30, %v5895_v39  ;;  %v8124_v61 = vld [vmem:[%s8504_s8 + $0x21a] sm:$0xff]  ;;  %v15390_v22 = vld [vmem:[#allocation42_spill] sm:$0xff]  ;;  %v15395_v56 = vld [vmem:[#allocation165_spill] sm:$0xff]  ;;  %v5898_v52 = vstv %s7540_s19  ;;  %s13374_s19 = spop %7561 }
 0x84c   : > { %15387 = vst [vmem:[#allocation134_spill] sm:$0xff] %v13027_v11  ;;  %v6017_v27 = vmul.f32 %v8124_v61, %v5895_v39  ;;  %v15391_v8 = vld [vmem:[#allocation163_spill] sm:$0xff]  ;;  %v15393_v20 = vld [vmem:[#allocation164_spill] sm:$0xff]  ;;  %v15396_v43 = vld [vmem:[#allocation45_spill] sm:$0xff] }
 0x84d   : > { %v2262_v14 = vadd.f32 %v15391_v8, %v15390_v22  ;;  %v15392_v51 = vld [vmem:[#allocation43_spill] sm:$0xff]  ;;  %v15394_v28 = vld [vmem:[#allocation44_spill] sm:$0xff]  ;;  %v15397_v38 = vld [vmem:[#allocation166_spill] sm:$0xff]  ;;  %6252 = vrot.lane.b32.xlu0 %v6016_v55, %s14631_s10 }
 0x84e   : > { %v2265_v23 = vadd.f32 %v15393_v20, %v15392_v51  ;;  %v2264_v48 = vadd.f32 %v15395_v56, %v15394_v28  ;;  %v2267_v54 = vadd.f32 %v15397_v38, %v15396_v43  ;;  %v15398_v33 = vld [vmem:[#allocation46_spill] sm:$0xff]  ;;  %v15400_v21 = vld [vmem:[#allocation47_spill] sm:$0xff]  ;;  %v15402_v61 = vld [vmem:[#allocation48_spill] sm:$0xff]  ;;  %6254 = vrot.lane.b32.xlu1 %v6017_v27, %s14631_s10 }
 0x84f   : > { %v2266_v30 = vadd.f32 %v15399_v44, %v15398_v33  ;;  %v2269_v39 = vadd.f32 %v15401_v0, %v15400_v21  ;;  %v15403_v4 = vld [vmem:[#allocation169_spill] sm:$0xff]  ;;  %v15405_v51 = vld [vmem:[#allocation170_spill] sm:$0xff]  ;;  %v15407_v28 = vld [vmem:[#allocation171_spill] sm:$0xff] }
 0x850   : > { %v2268_v22 = vadd.f32 %v15403_v4, %v15402_v61  ;;  %v15404_v8 = vld [vmem:[#allocation49_spill] sm:$0xff]  ;;  %v15406_v56 = vld [vmem:[#allocation50_spill] sm:$0xff]  ;;  %v15408_v35 = vld [vmem:[#allocation51_spill] sm:$0xff] }
 0x851   : > { %v2271_v20 = vadd.f32 %v15405_v51, %v15404_v8  ;;  %v2270_v17 = vadd.f32 %v15407_v28, %v15406_v56  ;;  %v15409_v43 = vld [vmem:[#allocation172_spill] sm:$0xff]  ;;  %v15411_v44 = vld [vmem:[#allocation173_spill] sm:$0xff]  ;;  %v8126_v61 = vld [vmem:[%s8504_s8 + $0x232] sm:$0xff] }
 0x852   : > { %v2273_v38 = vadd.f32 %v15409_v43, %v15408_v35  ;;  %v2272_v33 = vadd.f32 %v15411_v44, %v15410_v40  ;;  %v15412_v11 = vld [vmem:[#allocation97_spill] sm:$0xff]  ;;  %v6019_v32 = vmul.f32 %v8126_v61, %v5898_v52  ;;  %v15413_v8 = vld [vmem:[#allocation623_spill] sm:$0xff]  ;;  %v15414_v56 = vld [vmem:[#allocation98_spill] sm:$0xff] }
 0x853   : > { %v13060_v21 = vadd.f32 %v15412_v11, %v2263_v57  ;;  %v8125_v0 = vld [vmem:[%s8504_s8 + $0x22a] sm:$0xff]  ;;  %v13067_v51 = vadd.f32 %v15413_v8, %v2262_v14  ;;  %v13070_v35 = vadd.f32 %v15414_v56, %v2265_v23  ;;  %v15416_v28 = vld [vmem:[#allocation626_spill] sm:$0xff]  ;;  %v5901_v11 = vstv %s13049_s20  ;;  %v15422_v27 = vld [vmem:[#allocation100_spill] sm:$0xff]  ;;  %s15529_s20 = sld [smem:[#allocation471_spill]] }
 0x854   : > { %v6018_v4 = vmul.f32 %v8125_v0, %v5898_v52  ;;  %v13073_v40 = vadd.f32 %v15416_v28, %v2264_v48  ;;  %v15418_v57 = vld [vmem:[#allocation99_spill] sm:$0xff]  ;;  %v15420_v52 = vld [vmem:[#allocation625_spill] sm:$0xff]  ;;  %v13083_v55 = vadd.f32 %v15422_v27, %v2269_v39  ;;  %v15424_v14 = vld [vmem:[#allocation628_spill] sm:$0xff]  ;;  %v13095_v56 = vadd.f32 %v12611_v45, %v2273_v38  ;;  %6258 = vrot.lane.b32.xlu1 %v6019_v32, %s14631_s10 }
 0x855   : > { %15415 = vst [vmem:[#allocation135_spill] sm:$0xff] %v13070_v35  ;;  %v13077_v43 = vadd.f32 %v15418_v57, %v2267_v54  ;;  %v13080_v44 = vadd.f32 %v15420_v52, %v2266_v30  ;;  %v13086_v0 = vadd.f32 %v15424_v14, %v2268_v22  ;;  %v15426_v23 = vld [vmem:[#allocation101_spill] sm:$0xff]  ;;  %v15428_v48 = vld [vmem:[#allocation627_spill] sm:$0xff]  ;;  %v15431_v54 = vld [vmem:[#allocation630_spill] sm:$0xff] }
 0x856   : > { %15417 = vst [vmem:[#allocation136_spill] sm:$0xff] %v13073_v40  ;;  %15423 = vst [vmem:[#allocation139_spill] sm:$0xff] %v13083_v55  ;;  %v13089_v61 = vadd.f32 %v15426_v23, %v2271_v20  ;;  %v13092_v8 = vadd.f32 %v15428_v48, %v2270_v17  ;;  %v13098_v28 = vadd.f32 %v15431_v54, %v2272_v33  ;;  %v15433_v30 = vld [vmem:[#allocation53_spill] sm:$0xff]  ;;  %v15434_v57 = vld [vmem:[#allocation174_spill] sm:$0xff]  ;;  %6256 = vrot.lane.b32.xlu0 %v6018_v4, %s14631_s10 }
 0x857   : > { %15419 = vst [vmem:[#allocation137_spill] sm:$0xff] %v13077_v43  ;;  %15421 = vst [vmem:[#allocation138_spill] sm:$0xff] %v13080_v44  ;;  %v2275_v39 = vadd.f32 %v15434_v57, %v15433_v30  ;;  %v8127_v22 = vld [vmem:[%s8504_s8 + $0x242] sm:$0xff]  ;;  %v8128_v20 = vld [vmem:[%s8504_s8 + $0x24a] sm:$0xff]  ;;  %v5904_v30 = vstv %s7544_s21  ;;  %s13402_s21 = spop %7563 }
 0x858   : > { %15425 = vst [vmem:[#allocation140_spill] sm:$0xff] %v13086_v0  ;;  %15427 = vst [vmem:[#allocation141_spill] sm:$0xff] %v13089_v61  ;;  %v6020_v52 = vmul.f32 %v8127_v22, %v5901_v11  ;;  %v6021_v27 = vmul.f32 %v8128_v20, %v5901_v11  ;;  %v15435_v17 = vld [vmem:[#allocation54_spill] sm:$0xff]  ;;  %v15436_v14 = vld [vmem:[#allocation175_spill] sm:$0xff] }
 0x859   : > { %15429 = vst [vmem:[#allocation142_spill] sm:$0xff] %v13092_v8  ;;  %15430 = vst [vmem:[#allocation143_spill] sm:$0xff] %v13095_v56  ;;  %v2274_v23 = vadd.f32 %v15436_v14, %v15435_v17  ;;  %v15437_v45 = vld [vmem:[#allocation55_spill] sm:$0xff]  ;;  %v15438_v38 = vld [vmem:[#allocation176_spill] sm:$0xff] }
 0x85a   : > { %15432 = vst [vmem:[#allocation144_spill] sm:$0xff] %v13098_v28  ;;  %v2277_v33 = vadd.f32 %v15438_v38, %v15437_v45  ;;  %v15439_v48 = vld [vmem:[#allocation56_spill] sm:$0xff]  ;;  %v15440_v54 = vld [vmem:[#allocation177_spill] sm:$0xff]  ;;  %v15442_v32 = vld [vmem:[#allocation178_spill] sm:$0xff]  ;;  %6262 = vrot.lane.b32.xlu1 %v6021_v27, %s14631_s10  ;;  %6260 = vrot.lane.b32.xlu0 %v6020_v52, %s14631_s10 }
 0x85b   : > { %v2276_v28 = vadd.f32 %v15440_v54, %v15439_v48  ;;  %v15441_v57 = vld [vmem:[#allocation57_spill] sm:$0xff]  ;;  %v15443_v4 = vld [vmem:[#allocation58_spill] sm:$0xff]  ;;  %v15444_v8 = vld [vmem:[#allocation179_spill] sm:$0xff] }
 0x85c   : > { %v2279_v56 = vadd.f32 %v15442_v32, %v15441_v57  ;;  %v2278_v22 = vadd.f32 %v15444_v8, %v15443_v4  ;;  %v15445_v61 = vld [vmem:[#allocation59_spill] sm:$0xff]  ;;  %v15446_v0 = vld [vmem:[#allocation180_spill] sm:$0xff]  ;;  %v15448_v55 = vld [vmem:[#allocation181_spill] sm:$0xff] }
 0x85d   : > { %v2281_v11 = vadd.f32 %v15446_v0, %v15445_v61  ;;  %v15447_v20 = vld [vmem:[#allocation60_spill] sm:$0xff]  ;;  %v15449_v14 = vld [vmem:[#allocation61_spill] sm:$0xff]  ;;  %v15450_v45 = vld [vmem:[#allocation182_spill] sm:$0xff]  ;;  %v13131_v0 = vadd.f32 %v12617_v12, %v2275_v39  ;;  %v5907_v12 = vstv %s13120_s22  ;;  %s15535_s22 = sld [smem:[#allocation472_spill]] }
 0x85e   : > { %v2280_v17 = vadd.f32 %v15448_v55, %v15447_v20  ;;  %v2283_v38 = vadd.f32 %v15450_v45, %v15449_v14  ;;  %v15451_v48 = vld [vmem:[#allocation62_spill] sm:$0xff]  ;;  %v15452_v54 = vld [vmem:[#allocation183_spill] sm:$0xff]  ;;  %v15454_v57 = vld [vmem:[#allocation184_spill] sm:$0xff]  ;;  %v13138_v14 = vadd.f32 %v12614_v18, %v2274_v23 }
 0x85f   : > { %v2282_v44 = vadd.f32 %v15452_v54, %v15451_v48  ;;  %v15453_v43 = vld [vmem:[#allocation63_spill] sm:$0xff]  ;;  %v15455_v40 = vld [vmem:[#allocation64_spill] sm:$0xff]  ;;  %v15456_v8 = vld [vmem:[#allocation185_spill] sm:$0xff] }
 0x860   : > { %v2285_v32 = vadd.f32 %v15454_v57, %v15453_v43  ;;  %v2284_v4 = vadd.f32 %v15456_v8, %v15455_v40  ;;  %v8129_v61 = vld [vmem:[%s8504_s8 + $0x25a] sm:$0xff]  ;;  %v8130_v20 = vld [vmem:[%s8504_s8 + $0x262] sm:$0xff]  ;;  %v13141_v43 = vadd.f32 %v12628_v59, %v2277_v33  ;;  %v15457_v45 = vld [vmem:[#allocation102_spill] sm:$0xff] }
 0x861   : > { %v6022_v55 = vmul.f32 %v8129_v61, %v5904_v30  ;;  %v6023_v35 = vmul.f32 %v8130_v20, %v5904_v30  ;;  %v13144_v40 = vadd.f32 %v15457_v45, %v2276_v28  ;;  %v15458_v39 = vld [vmem:[#allocation103_spill] sm:$0xff]  ;;  %v15459_v30 = vld [vmem:[#allocation629_spill] sm:$0xff]  ;;  %v15460_v27 = vld [vmem:[#allocation631_spill] sm:$0xff] }
 0x862   : > { %v13148_v48 = vadd.f32 %v15458_v39, %v2279_v56  ;;  %v13151_v54 = vadd.f32 %v15459_v30, %v2278_v22  ;;  %v13154_v52 = vadd.f32 %v15460_v27, %v2281_v11  ;;  %v15462_v18 = vld [vmem:[#allocation104_spill] sm:$0xff]  ;;  %v15464_v59 = vld [vmem:[#allocation634_spill] sm:$0xff]  ;;  %v15466_v28 = vld [vmem:[#allocation105_spill] sm:$0xff] }
 0x863   : > { %v13157_v23 = vadd.f32 %v15462_v18, %v2280_v17  ;;  %v13160_v33 = vadd.f32 %v15464_v59, %v2283_v38  ;;  %v13163_v57 = vadd.f32 %v15466_v28, %v2282_v44  ;;  %v15468_v8 = vld [vmem:[#allocation633_spill] sm:$0xff]  ;;  %v15472_v22 = vld [vmem:[#allocation632_spill] sm:$0xff]  ;;  %v15473_v45 = vld [vmem:[#allocation272_spill] sm:$0xff]  ;;  %6266 = vrot.lane.b32.xlu1 %v6023_v35, %s14631_s10  ;;  %6264 = vrot.lane.b32.xlu0 %v6022_v55, %s14631_s10  ;;  %v5910_v28 = vstv %s7548_s23  ;;  %s13422_s23 = spop %7565 }
 0x864   : > { %15461 = vst [vmem:[#allocation145_spill] sm:$0xff] %v13154_v52  ;;  %v13166_v61 = vadd.f32 %v15468_v8, %v2285_v32  ;;  %v15470_v56 = vld [vmem:[#allocation106_spill] sm:$0xff]  ;;  %v3525_v11 = vadd.f32 %v15473_v45, %v15472_v22  ;;  %v8132_v39 = vld [vmem:[%s8504_s8 + $0x27a] sm:$0xff]  ;;  %v15475_v30 = vld [vmem:[#allocation273_spill] sm:$0xff] }
 0x865   : > { %15463 = vst [vmem:[#allocation146_spill] sm:$0xff] %v13157_v23  ;;  %15465 = vst [vmem:[#allocation147_spill] sm:$0xff] %v13160_v33  ;;  %v13169_v20 = vadd.f32 %v15470_v56, %v2284_v4  ;;  %v8131_v17 = vld [vmem:[%s8504_s8 + $0x272] sm:$0xff]  ;;  %v6025_v44 = vmul.f32 %v8132_v39, %v5907_v12  ;;  %v3524_v32 = vadd.f32 %v15475_v30, %v12688_v1  ;;  %v15478_v35 = vld [vmem:[#allocation276_spill] sm:$0xff] }
 0x866   : > { %15467 = vst [vmem:[#allocation148_spill] sm:$0xff] %v13163_v57  ;;  %15469 = vst [vmem:[#allocation149_spill] sm:$0xff] %v13166_v61  ;;  %v6024_v38 = vmul.f32 %v8131_v17, %v5907_v12  ;;  %v15476_v27 = vld [vmem:[#allocation274_spill] sm:$0xff]  ;;  %v15477_v18 = vld [vmem:[#allocation275_spill] sm:$0xff]  ;;  %v13185_v55 = vadd.f32 %v15478_v35, %v12762_v24 }
 0x867   : > { %15471 = vst [vmem:[#allocation150_spill] sm:$0xff] %v13169_v20  ;;  %v3527_v4 = vadd.f32 %v15476_v27, %v12727_v53  ;;  %v3526_v59 = vadd.f32 %v15477_v18, %v12742_v5  ;;  %v15479_v8 = vld [vmem:[#allocation277_spill] sm:$0xff]  ;;  %v15480_v12 = vld [vmem:[#allocation278_spill] sm:$0xff]  ;;  %v15481_v1 = vld [vmem:[#allocation279_spill] sm:$0xff]  ;;  %6270 = vrot.lane.b32.xlu1 %v6025_v44, %s14631_s10 }
 0x868   : > { %v13189_v56 = vadd.f32 %v15479_v8, %v12765_v25  ;;  %v13193_v22 = vadd.f32 %v15480_v12, %v12769_v13  ;;  %v13197_v45 = vadd.f32 %v15481_v1, %v12780_v37  ;;  %v15482_v53 = vld [vmem:[#allocation280_spill] sm:$0xff]  ;;  %v15483_v24 = vld [vmem:[#allocation281_spill] sm:$0xff]  ;;  %v15484_v25 = vld [vmem:[#allocation282_spill] sm:$0xff]  ;;  %v4581_v13 = vstv %s15474_s24  ;;  %6268 = vrot.lane.b32.xlu0 %v6024_v38, %s14631_s10  ;;  %s15541_s24 = sld [smem:[#allocation473_spill]] }
 0x869   : > { %v13203_v5 = vadd.f32 %v15482_v53, %v12791_v15  ;;  %v13207_v17 = vadd.f32 %v15483_v24, %v12804_v47  ;;  %v13211_v39 = vadd.f32 %v15484_v25, %v12816_v41  ;;  %v15485_v37 = vld [vmem:[#allocation283_spill] sm:$0xff]  ;;  %v8133_v27 = vld [vmem:[%s8504_s8 + $0x28a] sm:$0xff]  ;;  %v15487_v47 = vld [vmem:[#allocation284_spill] sm:$0xff]  ;;  %v5913_v53 = vstv %s13199_s25  ;;  %s15546_s25 = sld [smem:[#allocation474_spill]] }
 0x86a   : > { %v13216_v30 = vadd.f32 %v15485_v37, %v12819_v58  ;;  %v6026_v18 = vmul.f32 %v8133_v27, %v5910_v28  ;;  %v8134_v35 = vld [vmem:[%s8504_s8 + $0x292] sm:$0xff]  ;;  %v13224_v41 = vadd.f32 %v15487_v47, %v12838_v26  ;;  %v15488_v8 = vld [vmem:[#allocation285_spill] sm:$0xff]  ;;  %v15491_v38 = vld [vmem:[#allocation288_spill] sm:$0xff] }
 0x86b   : > { %v6027_v15 = vmul.f32 %v8134_v35, %v5910_v28  ;;  %v13228_v12 = vadd.f32 %v15488_v8, %v12841_v19  ;;  %v15489_v58 = vld [vmem:[#allocation286_spill] sm:$0xff]  ;;  %v15490_v28 = vld [vmem:[#allocation287_spill] sm:$0xff]  ;;  %v13241_v24 = vadd.f32 %v15491_v38, %v12874_v36  ;;  %v15492_v26 = vld [vmem:[#allocation289_spill] sm:$0xff]  ;;  %v4584_v36 = vstv %s15486_s26  ;;  %s13458_s26 = spop %7567 }
 0x86c   : > { %v13232_v1 = vadd.f32 %v15489_v58, %v12861_v29  ;;  %v13237_v44 = vadd.f32 %v15490_v28, %v12864_v2  ;;  %v13245_v25 = vadd.f32 %v15492_v26, %v12877_v7  ;;  %v8135_v19 = vld [vmem:[%s8504_s8 + $0x2] sm:$0xff]  ;;  %v8136_v29 = vld [vmem:[%s8504_s8 + $0xa] sm:$0xff]  ;;  %6272 = vrot.lane.b32.xlu0 %v6026_v18, %s14631_s10  ;;  %v8142_v33 = vld [vmem:[%s8504_s8 + $0x2ba] sm:$0xff] }
 0x86d   : > { %v4724_v37 = vmul.f32 %v8135_v19, %v4581_v13  ;;  %v4725_v27 = vmul.f32 %v8136_v29, %v4581_v13  ;;  %v15495_v2 = vld [vmem:[#allocation368_spill] sm:$0xff]  ;;  %v15496_v47 = vld [vmem:[#allocation369_spill] sm:$0xff]  ;;  %v15497_v58 = vld [vmem:[#allocation290_spill] sm:$0xff]  ;;  %6274 = vrot.lane.b32.xlu1 %v6027_v15, %s14631_s10 }
 0x86e   : > { %v4341_v35 = vadd.f32 %v15495_v2, %v3525_v11  ;;  %v4340_v8 = vadd.f32 %v15496_v47, %v3524_v32  ;;  %v13256_v28 = vadd.f32 %v15497_v58, %v12901_v6  ;;  %v8137_v7 = vld [vmem:[%s8504_s8 + $0x2a2] sm:$0xff]  ;;  %v8138_v26 = vld [vmem:[%s8504_s8 + $0x2aa] sm:$0xff]  ;;  %v15498_v13 = vld [vmem:[#allocation291_spill] sm:$0xff]  ;;  %v4587_v6 = vstv %s15493_s27  ;;  %s15551_s27 = sld [smem:[#allocation475_spill]] }
 0x86f   : > { %v6028_v38 = vmul.f32 %v8137_v7, %v5913_v53  ;;  %v6029_v19 = vmul.f32 %v8138_v26, %v5913_v53  ;;  %v13264_v11 = vadd.f32 %v15498_v13, %v12913_v49  ;;  %v15499_v32 = vld [vmem:[#allocation292_spill] sm:$0xff]  ;;  %v5916_v2 = vstv %s13248_s28  ;;  %v15500_v18 = vld [vmem:[#allocation293_spill] sm:$0xff]  ;;  %v15501_v53 = vld [vmem:[#allocation294_spill] sm:$0xff]  ;;  %s13482_s28 = spop %7569 }
 0x870   : > { %v13268_v29 = vadd.f32 %v15499_v32, %v12927_v3  ;;  %v13275_v15 = vadd.f32 %v15500_v18, %v12930_v60  ;;  %v13279_v47 = vadd.f32 %v15501_v53, %v12938_v31  ;;  %v8139_v49 = vld [vmem:[%s8504_s8 + $0x22] sm:$0xff]  ;;  %v15502_v7 = vld [vmem:[#allocation370_spill] sm:$0xff]  ;;  %v8140_v3 = vld [vmem:[%s8504_s8 + $0x1a] sm:$0xff]  ;;  %v4821_v61 = vadd.f32 %v4725_v27, %v4341_v35  ;;  %s13504_s30 = spop %7571 }
 0x871   : > { %v4727_v58 = vmul.f32 %v8139_v49, %v4584_v36  ;;  %v4343_v26 = vadd.f32 %v15502_v7, %v3527_v4  ;;  %v4726_v13 = vmul.f32 %v8140_v3, %v4584_v36  ;;  %v15503_v32 = vld [vmem:[#allocation371_spill] sm:$0xff]  ;;  %v4820_v57 = vadd.f32 %v4724_v37, %v4340_v8  ;;  %v8143_v53 = vld [vmem:[%s8504_s8 + $0x2c2] sm:$0xff]  ;;  %6278 = vrot.lane.b32.xlu1 %v6029_v19, %s14631_s10  ;;  %v6167_v8 = vpop.permute.xlu1 %6166 }
 0x872   : > { %v4342_v20 = vadd.f32 %v15503_v32, %v3526_v59  ;;  %v8141_v60 = vld [vmem:[%s8504_s8 + $0x32] sm:$0xff]  ;;  %v6030_v31 = vmul.f32 %v8142_v33, %v5916_v2  ;;  %v6031_v23 = vmul.f32 %v8143_v53, %v5916_v2  ;;  %6276 = vrot.lane.b32.xlu0 %v6028_v38, %s14631_s10  ;;  %v8144_v4 = vld [vmem:[%s8504_s8 + $0x3a] sm:$0xff]  ;;  %v15506_v3 = vld [vmem:[#allocation508_spill] sm:$0xff]  ;;  %v5919_v59 = vstv %s13283_s3  ;;  %v6165_v38 = vpop.permute.xlu0 %6164  ;;  %s15563_s3 = sld [smem:[#allocation477_spill]] }
 0x873   : > { %v4728_v18 = vmul.f32 %v8141_v60, %v4587_v6  ;;  %v4729_v49 = vmul.f32 %v8144_v4, %v4587_v6  ;;  %v15505_v7 = vld [vmem:[#allocation507_spill] sm:$0xff]  ;;  %v5636_v52 = vadd.f32 %v15506_v3, %v4820_v57  ;;  %v4590_v27 = vstv %s15504_s4  ;;  %v15509_v57 = vld [vmem:[#allocation373_spill] sm:$0xff]  ;;  %s13528_s4 = spop %7573 }
 0x874   : > { %v5637_v36 = vadd.f32 %v15505_v7, %v4821_v61  ;;  %v15508_v33 = vld [vmem:[#allocation372_spill] sm:$0xff]  ;;  %v4823_v35 = vadd.f32 %v4727_v58, %v4343_v26  ;;  %v4344_v61 = vadd.f32 %v15509_v57, %v13189_v56  ;;  %v4822_v19 = vadd.f32 %v4726_v13, %v4342_v20  ;;  %v8145_v58 = vld [vmem:[%s8504_s8 + $0x2d2] sm:$0xff]  ;;  %v8147_v56 = vld [vmem:[%s8504_s8 + $0x4a] sm:$0xff]  ;;  %s13552_s6 = spop %7575 }
 0x875   : > { %v4345_v37 = vadd.f32 %v15508_v33, %v13185_v55  ;;  %v6452_v2 = vadd.f32 %v6165_v38, %v5636_v52  ;;  %v15510_v55 = vld [vmem:[#allocation295_spill] sm:$0xff]  ;;  %6282 = vrot.lane.b32.xlu1 %v6031_v23, %s14631_s10  ;;  %v6032_v26 = vmul.f32 %v8145_v58, %v5919_v59  ;;  %v4730_v4 = vmul.f32 %v8147_v56, %v4590_v27  ;;  %v15512_v20 = vld [vmem:[#allocation509_spill] sm:$0xff]  ;;  %v15519_v56 = vld [vmem:[#allocation512_spill] sm:$0xff] }
 0x876   : > { %v6453_v6 = vadd.f32 %v6167_v8, %v5637_v36  ;;  %v13310_v32 = vadd.f32 %v15510_v55, %v12941_v62  ;;  %6280 = vrot.lane.b32.xlu0 %v6030_v31, %s14631_s10  ;;  %v8146_v60 = vld [vmem:[%s8504_s8 + $0x2da] sm:$0xff]  ;;  %v5639_v13 = vadd.f32 %v15512_v20, %v4823_v35  ;;  %v5922_v62 = vstv %s13304_s14  ;;  %v8148_v52 = vld [vmem:[%s8504_s8 + $0x52] sm:$0xff]  ;;  %v6171_v8 = vpop.permute.xlu1 %6170  ;;  %v6169_v38 = vpop.permute.xlu0 %6168  ;;  %s13576_s14 = spop %7577 }
 0x877   : > { %v6033_v53 = vmul.f32 %v8146_v60, %v5919_v59  ;;  %v15513_v7 = vld [vmem:[#allocation510_spill] sm:$0xff]  ;;  %6549 = vst.msk [vmem:[%s13299_s15] sm:$0xff] %vm6548_vm0, %v6452_v2  ;;  %v4731_v23 = vmul.f32 %v8148_v52, %v4590_v27  ;;  %v15514_v31 = vld [vmem:[#allocation374_spill] sm:$0xff]  ;;  %v4593_v33 = vstv %s15511_s1  ;;  %v4825_v59 = vadd.f32 %v4729_v49, %v4345_v37  ;;  %v15516_v2 = vld [vmem:[#allocation296_spill] sm:$0xff]  ;;  %s15584_s1 = sld [smem:[#allocation480_spill]] }
 0x878   : > { %v5638_v36 = vadd.f32 %v15513_v7, %v4822_v19  ;;  %6550 = vst.msk [vmem:[%s13299_s15 + $0x8] sm:$0xff] %vm6548_vm0, %v6453_v6  ;;  %v4347_v3 = vadd.f32 %v15514_v31, %v13193_v22  ;;  %v15515_v35 = vld [vmem:[#allocation375_spill] sm:$0xff]  ;;  %v4824_v19 = vadd.f32 %v4728_v18, %v4344_v61  ;;  %v6455_v6 = vadd.f32 %v6171_v8, %v5639_v13  ;;  %v8149_v55 = vld [vmem:[%s8504_s8 + $0x2ea] sm:$0xff]  ;;  %v15518_v18 = vld [vmem:[#allocation511_spill] sm:$0xff] }
 0x879   : > { %v4346_v57 = vadd.f32 %v15515_v35, %v13197_v45  ;;  %v13334_v22 = vadd.f32 %v15516_v2, %v12952_v42  ;;  %v6034_v49 = vmul.f32 %v8149_v55, %v5922_v62  ;;  %v8150_v37 = vld [vmem:[%s8504_s8 + $0x2f2] sm:$0xff]  ;;  %6286 = vrot.lane.b32.xlu1 %v6033_v53, %s14631_s10  ;;  %v8151_v45 = vld [vmem:[%s8504_s8 + $0x62] sm:$0xff]  ;;  %v5641_v61 = vadd.f32 %v15518_v18, %v4825_v59  ;;  %v8152_v13 = vld [vmem:[%s8504_s8 + $0x6a] sm:$0xff] }
 0x87a   : > { %v6454_v27 = vadd.f32 %v6169_v38, %v5638_v36  ;;  %v6035_v58 = vmul.f32 %v8150_v37, %v5922_v62  ;;  %6284 = vrot.lane.b32.xlu0 %v6032_v26, %s14631_s10  ;;  %v4732_v60 = vmul.f32 %v8151_v45, %v4593_v33  ;;  %v5640_v20 = vadd.f32 %v15519_v56, %v4824_v19  ;;  %v15520_v36 = vld [vmem:[#allocation376_spill] sm:$0xff]  ;;  %v15521_v26 = vld [vmem:[#allocation377_spill] sm:$0xff]  ;;  %v6175_v31 = vpop.permute.xlu1 %6174  ;;  %v6173_v59 = vpop.permute.xlu0 %6172  ;;  %v15525_v55 = vld [vmem:[#allocation514_spill] sm:$0xff] }
 0x87b   : > { %6552 = vst.msk [vmem:[%s13299_s15 + $0x18] sm:$0xff] %vm6548_vm0, %v6455_v6  ;;  %v5925_v42 = vstv %s13328_s2  ;;  %v4733_v7 = vmul.f32 %v8152_v13, %v4593_v33  ;;  %v4349_v53 = vadd.f32 %v15520_v36, %v13203_v5  ;;  %v4348_v62 = vadd.f32 %v15521_v26, %v13207_v17  ;;  %v15522_v19 = vld [vmem:[#allocation297_spill] sm:$0xff]  ;;  %v15527_v36 = vld [vmem:[#allocation379_spill] sm:$0xff]  ;;  %s13600_s2 = spop %7579 }
 0x87c   : > { %6551 = vst.msk [vmem:[%s13299_s15 + $0x10] sm:$0xff] %vm6548_vm0, %v6454_v27  ;;  %v4596_v52 = vstv %s15517_s16  ;;  %v4827_v8 = vadd.f32 %v4731_v23, %v4347_v3  ;;  %v4826_v38 = vadd.f32 %v4730_v4, %v4346_v57  ;;  %v6457_v35 = vadd.f32 %v6175_v31, %v5641_v61  ;;  %v8153_v17 = vld [vmem:[%s8504_s8 + $0x302] sm:$0xff]  ;;  %v8154_v27 = vld [vmem:[%s8504_s8 + $0x30a] sm:$0xff]  ;;  %s15589_s16 = sld [smem:[#allocation481_spill]] }
 0x87d   : > { %v6456_v33 = vadd.f32 %v6173_v59, %v5640_v20  ;;  %v13358_v5 = vadd.f32 %v15522_v19, %v12955_v46  ;;  %6290 = vrot.lane.b32.xlu1 %v6035_v58, %s14631_s10  ;;  %v6036_v6 = vmul.f32 %v8153_v17, %v5925_v42  ;;  %v6037_v2 = vmul.f32 %v8154_v27, %v5925_v42  ;;  %v8155_v23 = vld [vmem:[%s8504_s8 + $0x7a] sm:$0xff]  ;;  %v15524_v4 = vld [vmem:[#allocation513_spill] sm:$0xff]  ;;  %v8156_v58 = vld [vmem:[%s8504_s8 + $0x82] sm:$0xff] }
 0x87e   : > { %6288 = vrot.lane.b32.xlu0 %v6034_v49, %s14631_s10  ;;  %v4734_v3 = vmul.f32 %v8155_v23, %v4596_v52  ;;  %v5643_v57 = vadd.f32 %v15524_v4, %v4827_v8  ;;  %v5642_v37 = vadd.f32 %v15525_v55, %v4826_v38  ;;  %6554 = vst.msk [vmem:[%s13299_s15 + $0x28] sm:$0xff] %vm6548_vm0, %v6457_v35  ;;  %v5928_v46 = vstv %s13354_s17  ;;  %v6179_v56 = vpop.permute.xlu1 %6178  ;;  %v6177_v20 = vpop.permute.xlu0 %6176  ;;  %v15526_v42 = vld [vmem:[#allocation378_spill] sm:$0xff]  ;;  %v8158_v59 = vld [vmem:[%s8504_s8 + $0x322] sm:$0xff]  ;;  %s13622_s17 = spop %7581 }
 0x87f   : > { %6553 = vst.msk [vmem:[%s13299_s15 + $0x20] sm:$0xff] %vm6548_vm0, %v6456_v33  ;;  %v4735_v45 = vmul.f32 %v8156_v58, %v4596_v52  ;;  %v4599_v49 = vstv %s15523_s18  ;;  %v4829_v18 = vadd.f32 %v4733_v7, %v4349_v53  ;;  %v4828_v61 = vadd.f32 %v4732_v60, %v4348_v62  ;;  %v15528_v7 = vld [vmem:[#allocation298_spill] sm:$0xff]  ;;  %v8157_v60 = vld [vmem:[%s8504_s8 + $0x31a] sm:$0xff]  ;;  %v15531_v33 = vld [vmem:[#allocation516_spill] sm:$0xff]  ;;  %s15597_s18 = sld [smem:[#allocation482_spill]] }
 0x880   : > { %v4351_v13 = vadd.f32 %v15526_v42, %v13211_v39  ;;  %v4350_v26 = vadd.f32 %v15527_v36, %v13216_v30  ;;  %v6459_v31 = vadd.f32 %v6179_v56, %v5643_v57  ;;  %v6458_v52 = vadd.f32 %v6177_v20, %v5642_v37  ;;  %v8159_v39 = vld [vmem:[%s8504_s8 + $0x92] sm:$0xff]  ;;  %v15530_v30 = vld [vmem:[#allocation515_spill] sm:$0xff] }
 0x881   : > { %v13382_v53 = vadd.f32 %v15528_v7, %v12989_v16  ;;  %v6038_v62 = vmul.f32 %v8157_v60, %v5928_v46  ;;  %v6039_v8 = vmul.f32 %v8158_v59, %v5928_v46  ;;  %6294 = vrot.lane.b32.xlu1 %v6037_v2, %s14631_s10  ;;  %v4736_v38 = vmul.f32 %v8159_v39, %v4599_v49  ;;  %v8160_v17 = vld [vmem:[%s8504_s8 + $0x9a] sm:$0xff] }
 0x882   : > { %6292 = vrot.lane.b32.xlu0 %v6036_v6, %s14631_s10  ;;  %v5645_v35 = vadd.f32 %v15530_v30, %v4829_v18  ;;  %v5644_v19 = vadd.f32 %v15531_v33, %v4828_v61  ;;  %6556 = vst.msk [vmem:[%s13299_s15 + $0x38] sm:$0xff] %vm6548_vm0, %v6459_v31  ;;  %6555 = vst.msk [vmem:[%s13299_s15 + $0x30] sm:$0xff] %vm6548_vm0, %v6458_v52  ;;  %v5931_v16 = vstv %s13374_s19  ;;  %v15532_v23 = vld [vmem:[#allocation380_spill] sm:$0xff]  ;;  %v15533_v6 = vld [vmem:[#allocation381_spill] sm:$0xff]  ;;  %v6183_v55 = vpop.permute.xlu1 %6182  ;;  %v6181_v37 = vpop.permute.xlu0 %6180  ;;  %s13644_s19 = spop %7583 }
 0x883   : > { %v4737_v27 = vmul.f32 %v8160_v17, %v4599_v49  ;;  %v4353_v2 = vadd.f32 %v15532_v23, %v13224_v41  ;;  %v4352_v4 = vadd.f32 %v15533_v6, %v13228_v12  ;;  %v4602_v57 = vstv %s15529_s20  ;;  %v15534_v61 = vld [vmem:[#allocation299_spill] sm:$0xff]  ;;  %v15538_v30 = vld [vmem:[#allocation382_spill] sm:$0xff]  ;;  %s15603_s20 = sld [smem:[#allocation483_spill]] }
 0x884   : > { %v4831_v46 = vadd.f32 %v4735_v45, %v4351_v13  ;;  %v4830_v58 = vadd.f32 %v4734_v3, %v4350_v26  ;;  %v6461_v18 = vadd.f32 %v6183_v55, %v5645_v35  ;;  %v6460_v49 = vadd.f32 %v6181_v37, %v5644_v19  ;;  %v8161_v12 = vld [vmem:[%s8504_s8 + $0x332] sm:$0xff]  ;;  %v8162_v20 = vld [vmem:[%s8504_s8 + $0x33a] sm:$0xff]  ;;  %v8163_v45 = vld [vmem:[%s8504_s8 + $0xaa] sm:$0xff] }
 0x885   : > { %v13406_v41 = vadd.f32 %v15534_v61, %v13002_v34  ;;  %6298 = vrot.lane.b32.xlu1 %v6039_v8, %s14631_s10  ;;  %v6040_v56 = vmul.f32 %v8161_v12, %v5931_v16  ;;  %v6041_v42 = vmul.f32 %v8162_v20, %v5931_v16  ;;  %v4738_v13 = vmul.f32 %v8163_v45, %v4602_v57  ;;  %v15536_v3 = vld [vmem:[#allocation517_spill] sm:$0xff]  ;;  %v15537_v26 = vld [vmem:[#allocation518_spill] sm:$0xff]  ;;  %v15543_v37 = vld [vmem:[#allocation520_spill] sm:$0xff] }
 0x886   : > { %6296 = vrot.lane.b32.xlu0 %v6038_v62, %s14631_s10  ;;  %v5647_v36 = vadd.f32 %v15536_v3, %v4831_v46  ;;  %v5646_v31 = vadd.f32 %v15537_v26, %v4830_v58  ;;  %6558 = vst.msk [vmem:[%s13299_s15 + $0x48] sm:$0xff] %vm6548_vm0, %v6461_v18  ;;  %6557 = vst.msk [vmem:[%s13299_s15 + $0x40] sm:$0xff] %vm6548_vm0, %v6460_v49  ;;  %v5934_v34 = vstv %s13402_s21  ;;  %v6187_v8 = vpop.permute.xlu1 %6186  ;;  %v6185_v39 = vpop.permute.xlu0 %6184  ;;  %v15539_v33 = vld [vmem:[#allocation383_spill] sm:$0xff]  ;;  %v15544_v49 = vld [vmem:[#allocation384_spill] sm:$0xff]  ;;  %s13666_s21 = spop %7585 }
 0x887   : > { %v8164_v52 = vld [vmem:[%s8504_s8 + $0xb2] sm:$0xff]  ;;  %v4605_v60 = vstv %s15535_s22  ;;  %v4833_v62 = vadd.f32 %v4737_v27, %v4353_v2  ;;  %v4832_v59 = vadd.f32 %v4736_v38, %v4352_v4  ;;  %v4355_v35 = vadd.f32 %v15538_v30, %v13232_v1  ;;  %v15540_v27 = vld [vmem:[#allocation300_spill] sm:$0xff]  ;;  %v8165_v38 = vld [vmem:[%s8504_s8 + $0x34a] sm:$0xff]  ;;  %s15611_s22 = sld [smem:[#allocation484_spill]] }
 0x888   : > { %v4739_v7 = vmul.f32 %v8164_v52, %v4602_v57  ;;  %v4354_v19 = vadd.f32 %v15539_v33, %v13237_v44  ;;  %v6463_v16 = vadd.f32 %v6187_v8, %v5647_v36  ;;  %v6462_v17 = vadd.f32 %v6185_v39, %v5646_v31  ;;  %v8166_v6 = vld [vmem:[%s8504_s8 + $0x352] sm:$0xff]  ;;  %v8167_v1 = vld [vmem:[%s8504_s8 + $0xc2] sm:$0xff]  ;;  %v8168_v58 = vld [vmem:[%s8504_s8 + $0xca] sm:$0xff] }
 0x889   : > { %v13430_v23 = vadd.f32 %v15540_v27, %v13012_v9  ;;  %v6042_v2 = vmul.f32 %v8165_v38, %v5934_v34  ;;  %v6043_v4 = vmul.f32 %v8166_v6, %v5934_v34  ;;  %6302 = vrot.lane.b32.xlu1 %v6041_v42, %s14631_s10  ;;  %v4740_v57 = vmul.f32 %v8167_v1, %v4605_v60  ;;  %v15542_v44 = vld [vmem:[#allocation519_spill] sm:$0xff]  ;;  %v15545_v12 = vld [vmem:[#allocation385_spill] sm:$0xff]  ;;  %v15548_v8 = vld [vmem:[#allocation521_spill] sm:$0xff] }
 0x88a   : > { %6300 = vrot.lane.b32.xlu0 %v6040_v56, %s14631_s10  ;;  %v5649_v55 = vadd.f32 %v15542_v44, %v4833_v62  ;;  %v5648_v46 = vadd.f32 %v15543_v37, %v4832_v59  ;;  %6560 = vst.msk [vmem:[%s13299_s15 + $0x58] sm:$0xff] %vm6548_vm0, %v6463_v16  ;;  %6559 = vst.msk [vmem:[%s13299_s15 + $0x50] sm:$0xff] %vm6548_vm0, %v6462_v17  ;;  %v5937_v9 = vstv %s13422_s23  ;;  %v6191_v42 = vpop.permute.xlu1 %6190  ;;  %v6189_v45 = vpop.permute.xlu0 %6188  ;;  %v15547_v34 = vld [vmem:[#allocation301_spill] sm:$0xff]  ;;  %v15549_v30 = vld [vmem:[#allocation522_spill] sm:$0xff]  ;;  %s13686_s23 = spop %7587 }
 0x88b   : > { %v4741_v18 = vmul.f32 %v8168_v58, %v4605_v60  ;;  %v4357_v61 = vadd.f32 %v15544_v49, %v13241_v24  ;;  %v4356_v56 = vadd.f32 %v15545_v12, %v13245_v25  ;;  %v4608_v20 = vstv %s15541_s24  ;;  %v8169_v24 = vld [vmem:[%s8504_s8 + $0x362] sm:$0xff]  ;;  %v8170_v60 = vld [vmem:[%s8504_s8 + $0x36a] sm:$0xff]  ;;  %v15552_v6 = vld [vmem:[#allocation387_spill] sm:$0xff]  ;;  %s15617_s24 = sld [smem:[#allocation485_spill]] }
 0x88c   : > { %v4835_v3 = vadd.f32 %v4739_v7, %v4355_v35  ;;  %v4834_v36 = vadd.f32 %v4738_v13, %v4354_v19  ;;  %v6465_v26 = vadd.f32 %v6191_v42, %v5649_v55  ;;  %v6464_v31 = vadd.f32 %v6189_v45, %v5648_v46  ;;  %v8171_v13 = vld [vmem:[%s8504_s8 + $0xda] sm:$0xff]  ;;  %v8172_v35 = vld [vmem:[%s8504_s8 + $0xe2] sm:$0xff]  ;;  %v15550_v19 = vld [vmem:[#allocation386_spill] sm:$0xff] }
 0x88d   : > { %v13452_v52 = vadd.f32 %v15547_v34, %v13015_v63  ;;  %6306 = vrot.lane.b32.xlu1 %v6043_v4, %s14631_s10  ;;  %v6044_v25 = vmul.f32 %v8169_v24, %v5937_v9  ;;  %v6045_v62 = vmul.f32 %v8170_v60, %v5937_v9  ;;  %v4742_v7 = vmul.f32 %v8171_v13, %v4608_v20  ;;  %v15553_v37 = vld [vmem:[#allocation302_spill] sm:$0xff]  ;;  %v15556_v12 = vld [vmem:[#allocation524_spill] sm:$0xff]  ;;  %v15559_v13 = vld [vmem:[#allocation303_spill] sm:$0xff] }
 0x88e   : > { %6304 = vrot.lane.b32.xlu0 %v6042_v2, %s14631_s10  ;;  %v4611_v59 = vstv %s15546_s25  ;;  %v5651_v39 = vadd.f32 %v15548_v8, %v4835_v3  ;;  %v5650_v63 = vadd.f32 %v15549_v30, %v4834_v36  ;;  %6562 = vst.msk [vmem:[%s13299_s15 + $0x68] sm:$0xff] %vm6548_vm0, %v6465_v26  ;;  %6561 = vst.msk [vmem:[%s13299_s15 + $0x60] sm:$0xff] %vm6548_vm0, %v6464_v31  ;;  %v6195_v38 = vpop.permute.xlu1 %6194  ;;  %v6193_v2 = vpop.permute.xlu0 %6192  ;;  %s15627_s25 = sld [smem:[#allocation486_spill]] }
 0x88f   : > { %v4743_v33 = vmul.f32 %v8172_v35, %v4608_v20  ;;  %v4359_v16 = vadd.f32 %v15550_v19, %v13256_v28  ;;  %v4837_v17 = vadd.f32 %v4741_v18, %v4357_v61  ;;  %v4836_v27 = vadd.f32 %v4740_v57, %v4356_v56  ;;  %v8173_v9 = vld [vmem:[%s8504_s8 + $0xf2] sm:$0xff]  ;;  %v8174_v57 = vld [vmem:[%s8504_s8 + $0xfa] sm:$0xff]  ;;  %v15557_v20 = vld [vmem:[#allocation389_spill] sm:$0xff] }
 0x890   : > { %v4358_v4 = vadd.f32 %v15552_v6, %v13264_v11  ;;  %v5940_v1 = vstv %s13458_s26  ;;  %v6467_v44 = vadd.f32 %v6195_v38, %v5651_v39  ;;  %v6466_v55 = vadd.f32 %v6193_v2, %v5650_v63  ;;  %v15554_v11 = vld [vmem:[#allocation388_spill] sm:$0xff]  ;;  %v8178_v39 = vld [vmem:[%s8504_s8 + $0x112] sm:$0xff]  ;;  %s15653_s26 = sld [smem:[#allocation488_spill]] }
 0x891   : > { %v13476_v46 = vadd.f32 %v15553_v37, %v13018_v10  ;;  %v4744_v28 = vmul.f32 %v8173_v9, %v4611_v59  ;;  %v4745_v58 = vmul.f32 %v8174_v57, %v4611_v59  ;;  %6310 = vrot.lane.b32.xlu1 %v6045_v62, %s14631_s10  ;;  %v4361_v18 = vadd.f32 %v15554_v11, %v13268_v29  ;;  %v15555_v61 = vld [vmem:[#allocation523_spill] sm:$0xff]  ;;  %v15560_v63 = vld [vmem:[#allocation525_spill] sm:$0xff]  ;;  %v15565_v11 = vld [vmem:[#allocation133_spill] sm:$0xff] }
 0x892   : > { %6308 = vrot.lane.b32.xlu0 %v6044_v25, %s14631_s10  ;;  %v4614_v49 = vstv %s15551_s27  ;;  %v5653_v10 = vadd.f32 %v15555_v61, %v4837_v17  ;;  %v5652_v56 = vadd.f32 %v15556_v12, %v4836_v27  ;;  %6564 = vst.msk [vmem:[%s13299_s15 + $0x78] sm:$0xff] %vm6548_vm0, %v6467_v44  ;;  %6563 = vst.msk [vmem:[%s13299_s15 + $0x70] sm:$0xff] %vm6548_vm0, %v6466_v55  ;;  %v6199_v31 = vpop.permute.xlu1 %6198  ;;  %v6197_v34 = vpop.permute.xlu0 %6196  ;;  %v15564_v55 = vld [vmem:[#allocation391_spill] sm:$0xff]  ;;  %s15663_s27 = sld [smem:[#allocation489_spill]] }
 0x893   : > { %v4360_v42 = vadd.f32 %v15557_v20, %v13275_v15  ;;  %v4839_v45 = vadd.f32 %v4743_v33, %v4359_v16  ;;  %v8175_v3 = vld [vmem:[%s8504_s8 + $0x37a] sm:$0xff]  ;;  %v8176_v26 = vld [vmem:[%s8504_s8 + $0x382] sm:$0xff]  ;;  %v4838_v24 = vadd.f32 %v4742_v7, %v4358_v4  ;;  %v5943_v25 = vstv %s13482_s28  ;;  %v8177_v15 = vld [vmem:[%s8504_s8 + $0x10a] sm:$0xff]  ;;  %s15676_s28 = sld [smem:[#allocation490_spill]] }
 0x894   : > { %v6046_v36 = vmul.f32 %v8175_v3, %v5940_v1  ;;  %v6047_v29 = vmul.f32 %v8176_v26, %v5940_v1  ;;  %v6469_v60 = vadd.f32 %v6199_v31, %v5653_v10  ;;  %v6468_v62 = vadd.f32 %v6197_v34, %v5652_v56  ;;  %v15561_v33 = vld [vmem:[#allocation526_spill] sm:$0xff]  ;;  %v15562_v16 = vld [vmem:[#allocation390_spill] sm:$0xff]  ;;  %v15568_v20 = vld [vmem:[#allocation527_spill] sm:$0xff] }
 0x895   : > { %v13500_v59 = vadd.f32 %v15559_v13, %v13021_v50  ;;  %v4746_v8 = vmul.f32 %v8177_v15, %v4614_v49  ;;  %v4747_v30 = vmul.f32 %v8178_v39, %v4614_v49  ;;  %v4617_v7 = vstv %s15558_s29  ;;  %v8179_v38 = vld [vmem:[%s8504_s8 + $0x392] sm:$0xff]  ;;  %v8180_v6 = vld [vmem:[%s8504_s8 + $0x39a] sm:$0xff]  ;;  %v8182_v61 = vld [vmem:[%s8504_s8 + $0x12a] sm:$0xff]  ;;  %s15686_s29 = sld [smem:[#allocation491_spill]] }
 0x896   : > { %6314 = vrot.lane.b32.xlu1 %v6047_v29, %s14631_s10  ;;  %6312 = vrot.lane.b32.xlu0 %v6046_v36, %s14631_s10  ;;  %v5655_v35 = vadd.f32 %v15560_v63, %v4839_v45  ;;  %v5654_v19 = vadd.f32 %v15561_v33, %v4838_v24  ;;  %v4841_v50 = vadd.f32 %v4745_v58, %v4361_v18  ;;  %v6203_v1 = vpop.permute.xlu1 %6202  ;;  %v6201_v44 = vpop.permute.xlu0 %6200  ;;  %v5946_v9 = vstv %s13504_s30  ;;  %v15566_v18 = vld [vmem:[#allocation304_spill] sm:$0xff]  ;;  %v15569_v45 = vld [vmem:[#allocation528_spill] sm:$0xff]  ;;  %v8184_v24 = vld [vmem:[%s8504_s8 + $0x3b2] sm:$0xff]  ;;  %s15701_s30 = sld [smem:[#allocation492_spill]] }
 0x897   : > { %6566 = vst.msk [vmem:[%s13299_s15 + $0x88] sm:$0xff] %vm6548_vm0, %v6469_v60  ;;  %6565 = vst.msk [vmem:[%s13299_s15 + $0x80] sm:$0xff] %vm6548_vm0, %v6468_v62  ;;  %v4363_v17 = vadd.f32 %v15562_v16, %v13279_v47  ;;  %v4840_v27 = vadd.f32 %v4744_v28, %v4360_v42  ;;  %v6048_v2 = vmul.f32 %v8179_v38, %v5943_v25  ;;  %v8181_v47 = vld [vmem:[%s8504_s8 + $0x122] sm:$0xff]  ;;  %v4620_v56 = vstv %s15563_s3  ;;  %s15713_s3 = sld [smem:[#allocation493_spill]] }
 0x898   : > { %v6049_v4 = vmul.f32 %v8180_v6, %v5943_v25  ;;  %v4362_v37 = vadd.f32 %v15564_v55, %v13310_v32  ;;  %v6471_v57 = vadd.f32 %v6203_v1, %v5655_v35  ;;  %v6470_v58 = vadd.f32 %v6201_v44, %v5654_v19  ;;  %v15567_v32 = vld [vmem:[#allocation392_spill] sm:$0xff]  ;;  %v15570_v36 = vld [vmem:[#allocation393_spill] sm:$0xff] }
 0x899   : > { %v13524_v49 = vadd.f32 %v15566_v18, %v15565_v11  ;;  %v4748_v28 = vmul.f32 %v8181_v47, %v4617_v7  ;;  %v4749_v10 = vmul.f32 %v8182_v61, %v4617_v7  ;;  %v4365_v12 = vadd.f32 %v15567_v32, %v13334_v22  ;;  %v8183_v31 = vld [vmem:[%s8504_s8 + $0x3aa] sm:$0xff]  ;;  %v8186_v33 = vld [vmem:[%s8504_s8 + $0x142] sm:$0xff] }
 0x89a   : > { %6318 = vrot.lane.b32.xlu1 %v6049_v4, %s14631_s10  ;;  %6316 = vrot.lane.b32.xlu0 %v6048_v2, %s14631_s10  ;;  %v5657_v42 = vadd.f32 %v15568_v20, %v4841_v50  ;;  %v5656_v3 = vadd.f32 %v15569_v45, %v4840_v27  ;;  %6568 = vst.msk [vmem:[%s13299_s15 + $0x98] sm:$0xff] %vm6548_vm0, %v6471_v57  ;;  %6567 = vst.msk [vmem:[%s13299_s15 + $0x90] sm:$0xff] %vm6548_vm0, %v6470_v58  ;;  %v6207_v25 = vpop.permute.xlu1 %6206  ;;  %v6205_v60 = vpop.permute.xlu0 %6204  ;;  %v15572_v7 = vld [vmem:[#allocation134_spill] sm:$0xff]  ;;  %v15573_v63 = vld [vmem:[#allocation305_spill] sm:$0xff] }
 0x89b   : > { %v4364_v26 = vadd.f32 %v15570_v36, %v13358_v5  ;;  %v4843_v29 = vadd.f32 %v4747_v30, %v4363_v17  ;;  %v6050_v34 = vmul.f32 %v8183_v31, %v5946_v9  ;;  %v6051_v22 = vmul.f32 %v8184_v24, %v5946_v9  ;;  %v8185_v5 = vld [vmem:[%s8504_s8 + $0x13a] sm:$0xff]  ;;  %v15574_v50 = vld [vmem:[#allocation529_spill] sm:$0xff]  ;;  %v8187_v1 = vld [vmem:[%s8504_s8 + $0x3c2] sm:$0xff] }
 0x89c   : > { %v4842_v62 = vadd.f32 %v4746_v8, %v4362_v37  ;;  %v5949_v13 = vstv %s13528_s4  ;;  %v6473_v15 = vadd.f32 %v6207_v25, %v5657_v42  ;;  %v6472_v39 = vadd.f32 %v6205_v60, %v5656_v3  ;;  %v15575_v17 = vld [vmem:[#allocation530_spill] sm:$0xff]  ;;  %v15576_v2 = vld [vmem:[#allocation394_spill] sm:$0xff]  ;;  %v15581_v45 = vld [vmem:[#allocation531_spill] sm:$0xff]  ;;  %s15728_s4 = sld [smem:[#allocation494_spill]] }
 0x89d   : > { %v13548_v35 = vadd.f32 %v15573_v63, %v15572_v7  ;;  %v4750_v30 = vmul.f32 %v8185_v5, %v4620_v56  ;;  %v4751_v19 = vmul.f32 %v8186_v33, %v4620_v56  ;;  %v4623_v8 = vstv %s15571_s5  ;;  %v8188_v55 = vld [vmem:[%s8504_s8 + $0x3ca] sm:$0xff]  ;;  %v15578_v58 = vld [vmem:[#allocation395_spill] sm:$0xff]  ;;  %s15760_s5 = sld [smem:[#allocation496_spill]] }
 0x89e   : > { %6322 = vrot.lane.b32.xlu1 %v6051_v22, %s14631_s10  ;;  %6320 = vrot.lane.b32.xlu0 %v6050_v34, %s14631_s10  ;;  %v5659_v16 = vadd.f32 %v15574_v50, %v4843_v29  ;;  %v5658_v27 = vadd.f32 %v15575_v17, %v4842_v62  ;;  %v4845_v38 = vadd.f32 %v4749_v10, %v4365_v12  ;;  %v6211_v9 = vpop.permute.xlu1 %6210  ;;  %v6209_v57 = vpop.permute.xlu0 %6208  ;;  %v5952_v18 = vstv %s13552_s6  ;;  %v15579_v10 = vld [vmem:[#allocation306_spill] sm:$0xff]  ;;  %v8190_v12 = vld [vmem:[%s8504_s8 + $0x15a] sm:$0xff]  ;;  %v15582_v3 = vld [vmem:[#allocation532_spill] sm:$0xff]  ;;  %s15773_s6 = sld [smem:[#allocation497_spill]] }
 0x89f   : > { %6570 = vst.msk [vmem:[%s13299_s15 + $0xa8] sm:$0xff] %vm6548_vm0, %v6473_v15  ;;  %6569 = vst.msk [vmem:[%s13299_s15 + $0xa0] sm:$0xff] %vm6548_vm0, %v6472_v39  ;;  %v4367_v6 = vadd.f32 %v15576_v2, %v13382_v53  ;;  %v4844_v4 = vadd.f32 %v4748_v28, %v4364_v26  ;;  %v6052_v44 = vmul.f32 %v8187_v1, %v5949_v13  ;;  %v8189_v53 = vld [vmem:[%s8504_s8 + $0x152] sm:$0xff]  ;;  %v4626_v42 = vstv %s15577_s7  ;;  %v15583_v26 = vld [vmem:[#allocation397_spill] sm:$0xff]  ;;  %s15787_s7 = sld [smem:[#allocation498_spill]] }
 0x8a0   : > { %v6053_v37 = vmul.f32 %v8188_v55, %v5949_v13  ;;  %v4366_v11 = vadd.f32 %v15578_v58, %v13406_v41  ;;  %v6475_v47 = vadd.f32 %v6211_v9, %v5659_v16  ;;  %v6474_v61 = vadd.f32 %v6209_v57, %v5658_v27  ;;  %v15580_v41 = vld [vmem:[#allocation396_spill] sm:$0xff]  ;;  %v15585_v7 = vld [vmem:[#allocation307_spill] sm:$0xff]  ;;  %v15588_v27 = vld [vmem:[#allocation398_spill] sm:$0xff] }
 0x8a1   : > { %v13572_v32 = vadd.f32 %v15579_v10, %v13060_v21  ;;  %v4752_v28 = vmul.f32 %v8189_v53, %v4623_v8  ;;  %v4753_v56 = vmul.f32 %v8190_v12, %v4623_v8  ;;  %v4369_v20 = vadd.f32 %v15580_v41, %v13430_v23  ;;  %v8191_v34 = vld [vmem:[%s8504_s8 + $0x3da] sm:$0xff]  ;;  %v8192_v22 = vld [vmem:[%s8504_s8 + $0x3e2] sm:$0xff]  ;;  %v8194_v33 = vld [vmem:[%s8504_s8 + $0x172] sm:$0xff] }
 0x8a2   : > { %6326 = vrot.lane.b32.xlu1 %v6053_v37, %s14631_s10  ;;  %6324 = vrot.lane.b32.xlu0 %v6052_v44, %s14631_s10  ;;  %v5661_v21 = vadd.f32 %v15581_v45, %v4845_v38  ;;  %v5660_v36 = vadd.f32 %v15582_v3, %v4844_v4  ;;  %6572 = vst.msk [vmem:[%s13299_s15 + $0xb8] sm:$0xff] %vm6548_vm0, %v6475_v47  ;;  %6571 = vst.msk [vmem:[%s13299_s15 + $0xb0] sm:$0xff] %vm6548_vm0, %v6474_v61  ;;  %v6215_v25 = vpop.permute.xlu1 %6214  ;;  %v6213_v60 = vpop.permute.xlu0 %6212  ;;  %v15586_v8 = vld [vmem:[#allocation533_spill] sm:$0xff]  ;;  %v15587_v16 = vld [vmem:[#allocation534_spill] sm:$0xff] }
 0x8a3   : > { %v4368_v29 = vadd.f32 %v15583_v26, %v13452_v52  ;;  %v4847_v31 = vadd.f32 %v4751_v19, %v4367_v6  ;;  %v6054_v24 = vmul.f32 %v8191_v34, %v5952_v18  ;;  %v6055_v23 = vmul.f32 %v8192_v22, %v5952_v18  ;;  %v8193_v52 = vld [vmem:[%s8504_s8 + $0x16a] sm:$0xff]  ;;  %v8195_v6 = vld [vmem:[%s8504_s8 + $0x3f2] sm:$0xff]  ;;  %v8196_v1 = vld [vmem:[%s8504_s8 + $0x3fa] sm:$0xff] }
 0x8a4   : > { %v4846_v62 = vadd.f32 %v4750_v30, %v4366_v11  ;;  %v5955_v13 = vstv %s13576_s14  ;;  %v6477_v15 = vadd.f32 %v6215_v25, %v5661_v21  ;;  %v6476_v39 = vadd.f32 %v6213_v60, %v5660_v36  ;;  %v15590_v9 = vld [vmem:[#allocation399_spill] sm:$0xff]  ;;  %v15592_v61 = vld [vmem:[#allocation308_spill] sm:$0xff]  ;;  %v15595_v45 = vld [vmem:[#allocation536_spill] sm:$0xff]  ;;  %s15796_s14 = sld [smem:[#allocation499_spill]] }
 0x8a5   : > { %v13596_v63 = vadd.f32 %v15585_v7, %v13067_v51  ;;  %v4754_v5 = vmul.f32 %v8193_v52, %v4626_v42  ;;  %v4755_v19 = vmul.f32 %v8194_v33, %v4626_v42  ;;  %v4629_v30 = vstv %s15584_s1  ;;  %v15591_v47 = vld [vmem:[#allocation135_spill] sm:$0xff]  ;;  %v15596_v3 = vld [vmem:[#allocation401_spill] sm:$0xff]  ;;  %s15810_s1 = sld [smem:[#allocation500_spill]] }
 0x8a6   : > { %6330 = vrot.lane.b32.xlu1 %v6055_v23, %s14631_s10  ;;  %6328 = vrot.lane.b32.xlu0 %v6054_v24, %s14631_s10  ;;  %v5663_v50 = vadd.f32 %v15586_v8, %v4847_v31  ;;  %v5662_v17 = vadd.f32 %v15587_v16, %v4846_v62  ;;  %v4849_v51 = vadd.f32 %v4753_v56, %v4369_v20  ;;  %v6219_v55 = vpop.permute.xlu1 %6218  ;;  %v6217_v37 = vpop.permute.xlu0 %6216  ;;  %v5958_v58 = vstv %s13600_s2  ;;  %v15594_v20 = vld [vmem:[#allocation535_spill] sm:$0xff]  ;;  %v8200_v34 = vld [vmem:[%s8504_s8 + $0x412] sm:$0xff]  ;;  %s15819_s2 = sld [smem:[#allocation501_spill]] }
 0x8a7   : > { %6574 = vst.msk [vmem:[%s13299_s15 + $0xc8] sm:$0xff] %vm6548_vm0, %v6477_v15  ;;  %6573 = vst.msk [vmem:[%s13299_s15 + $0xc0] sm:$0xff] %vm6548_vm0, %v6476_v39  ;;  %v4371_v38 = vadd.f32 %v15588_v27, %v13476_v46  ;;  %v4848_v2 = vadd.f32 %v4752_v28, %v4368_v29  ;;  %v6056_v4 = vmul.f32 %v8195_v6, %v5955_v13  ;;  %v8197_v46 = vld [vmem:[%s8504_s8 + $0x182] sm:$0xff]  ;;  %v8198_v28 = vld [vmem:[%s8504_s8 + $0x18a] sm:$0xff] }
 0x8a8   : > { %v6057_v44 = vmul.f32 %v8196_v1, %v5955_v13  ;;  %v4370_v57 = vadd.f32 %v15590_v9, %v13500_v59  ;;  %v6479_v11 = vadd.f32 %v6219_v55, %v5663_v50  ;;  %v6478_v18 = vadd.f32 %v6217_v37, %v5662_v17  ;;  %v15593_v59 = vld [vmem:[#allocation400_spill] sm:$0xff]  ;;  %v8199_v29 = vld [vmem:[%s8504_s8 + $0x40a] sm:$0xff]  ;;  %v15601_v8 = vld [vmem:[#allocation538_spill] sm:$0xff] }
 0x8a9   : > { %v3561_v10 = vadd.f32 %v15592_v61, %v15591_v47  ;;  %v4756_v53 = vmul.f32 %v8197_v46, %v4629_v30  ;;  %v4757_v12 = vmul.f32 %v8198_v28, %v4629_v30  ;;  %v4373_v56 = vadd.f32 %v15593_v59, %v13524_v49  ;;  %v15598_v13 = vld [vmem:[#allocation136_spill] sm:$0xff]  ;;  %v15599_v15 = vld [vmem:[#allocation309_spill] sm:$0xff]  ;;  %v15602_v17 = vld [vmem:[#allocation402_spill] sm:$0xff] }
 0x8aa   : > { %6334 = vrot.lane.b32.xlu1 %v6057_v44, %s14631_s10  ;;  %6332 = vrot.lane.b32.xlu0 %v6056_v4, %s14631_s10  ;;  %v4632_v41 = vstv %s15589_s16  ;;  %v5665_v42 = vadd.f32 %v15594_v20, %v4849_v51  ;;  %v5664_v21 = vadd.f32 %v15595_v45, %v4848_v2  ;;  %6576 = vst.msk [vmem:[%s13299_s15 + $0xd8] sm:$0xff] %vm6548_vm0, %v6479_v11  ;;  %v6223_v24 = vpop.permute.xlu1 %6222  ;;  %v6221_v22 = vpop.permute.xlu0 %6220  ;;  %v15604_v55 = vld [vmem:[#allocation403_spill] sm:$0xff]  ;;  %v15605_v11 = vld [vmem:[#allocation137_spill] sm:$0xff]  ;;  %v15608_v59 = vld [vmem:[#allocation539_spill] sm:$0xff]  ;;  %s15833_s16 = sld [smem:[#allocation502_spill]] }
 0x8ab   : > { %6575 = vst.msk [vmem:[%s13299_s15 + $0xd0] sm:$0xff] %vm6548_vm0, %v6478_v18  ;;  %v4372_v36 = vadd.f32 %v15596_v3, %v13548_v35  ;;  %v4851_v26 = vadd.f32 %v4755_v19, %v4371_v38  ;;  %v6058_v31 = vmul.f32 %v8199_v29, %v5958_v58  ;;  %v6059_v49 = vmul.f32 %v8200_v34, %v5958_v58  ;;  %v8201_v7 = vld [vmem:[%s8504_s8 + $0x19a] sm:$0xff]  ;;  %v8202_v52 = vld [vmem:[%s8504_s8 + $0x1a2] sm:$0xff]  ;;  %v15600_v19 = vld [vmem:[#allocation537_spill] sm:$0xff] }
 0x8ac   : > { %v4850_v23 = vadd.f32 %v4754_v5, %v4370_v57  ;;  %v5961_v25 = vstv %s13622_s17  ;;  %v6481_v60 = vadd.f32 %v6223_v24, %v5665_v42  ;;  %v6480_v62 = vadd.f32 %v6221_v22, %v5664_v21  ;;  %v8203_v38 = vld [vmem:[%s8504_s8 + $0x422] sm:$0xff]  ;;  %v8204_v6 = vld [vmem:[%s8504_s8 + $0x42a] sm:$0xff]  ;;  %v8206_v46 = vld [vmem:[%s8504_s8 + $0x1ba] sm:$0xff]  ;;  %s15855_s17 = sld [smem:[#allocation503_spill]] }
 0x8ad   : > { %v3560_v39 = vadd.f32 %v15599_v15, %v15598_v13  ;;  %v4758_v35 = vmul.f32 %v8201_v7, %v4632_v41  ;;  %v4759_v33 = vmul.f32 %v8202_v52, %v4632_v41  ;;  %v4635_v5 = vstv %s15597_s18  ;;  %v15606_v18 = vld [vmem:[#allocation310_spill] sm:$0xff]  ;;  %v15609_v41 = vld [vmem:[#allocation540_spill] sm:$0xff]  ;;  %v8207_v3 = vld [vmem:[%s8504_s8 + $0x43a] sm:$0xff]  ;;  %s15878_s18 = sld [smem:[#allocation505_spill]] }
 0x8ae   : > { %6338 = vrot.lane.b32.xlu1 %v6059_v49, %s14631_s10  ;;  %6336 = vrot.lane.b32.xlu0 %v6058_v31, %s14631_s10  ;;  %v5667_v30 = vadd.f32 %v15600_v19, %v4851_v26  ;;  %v5666_v50 = vadd.f32 %v15601_v8, %v4850_v23  ;;  %v4853_v16 = vadd.f32 %v4757_v12, %v4373_v56  ;;  %v6227_v1 = vpop.permute.xlu1 %6226  ;;  %v6225_v44 = vpop.permute.xlu0 %6224  ;;  %v5964_v9 = vstv %s13644_s19  ;;  %v15610_v42 = vld [vmem:[#allocation405_spill] sm:$0xff]  ;;  %v15612_v23 = vld [vmem:[#allocation138_spill] sm:$0xff] }
 0x8af   : > { %6578 = vst.msk [vmem:[%s13299_s15 + $0xe8] sm:$0xff] %vm6548_vm0, %v6481_v60  ;;  %6577 = vst.msk [vmem:[%s13299_s15 + $0xe0] sm:$0xff] %vm6548_vm0, %v6480_v62  ;;  %v4375_v51 = vadd.f32 %v15602_v17, %v13572_v32  ;;  %v4852_v27 = vadd.f32 %v4756_v53, %v4372_v36  ;;  %v6060_v2 = vmul.f32 %v8203_v38, %v5961_v25  ;;  %v8205_v32 = vld [vmem:[%s8504_s8 + $0x1b2] sm:$0xff]  ;;  %v4638_v12 = vstv %s15603_s20 }
 0x8b0   : > { %v6061_v4 = vmul.f32 %v8204_v6, %v5961_v25  ;;  %v4374_v37 = vadd.f32 %v15604_v55, %v13596_v63  ;;  %v6483_v57 = vadd.f32 %v6227_v1, %v5667_v30  ;;  %v6482_v58 = vadd.f32 %v6225_v44, %v5666_v50  ;;  %v15607_v63 = vld [vmem:[#allocation404_spill] sm:$0xff]  ;;  %v15613_v25 = vld [vmem:[#allocation311_spill] sm:$0xff]  ;;  %v8209_v62 = vld [vmem:[%s8504_s8 + $0x1ca] sm:$0xff] }
 0x8b1   : > { %v3563_v47 = vadd.f32 %v15606_v18, %v15605_v11  ;;  %v4760_v61 = vmul.f32 %v8205_v32, %v4635_v5  ;;  %v4761_v53 = vmul.f32 %v8206_v46, %v4635_v5  ;;  %v4377_v28 = vadd.f32 %v15607_v63, %v3561_v10  ;;  %v8208_v26 = vld [vmem:[%s8504_s8 + $0x442] sm:$0xff]  ;;  %v8210_v15 = vld [vmem:[%s8504_s8 + $0x1d2] sm:$0xff] }
 0x8b2   : > { %6342 = vrot.lane.b32.xlu1 %v6061_v4, %s14631_s10  ;;  %6340 = vrot.lane.b32.xlu0 %v6060_v2, %s14631_s10  ;;  %v5669_v56 = vadd.f32 %v15608_v59, %v4853_v16  ;;  %v5668_v20 = vadd.f32 %v15609_v41, %v4852_v27  ;;  %6580 = vst.msk [vmem:[%s13299_s15 + $0xf8] sm:$0xff] %vm6548_vm0, %v6483_v57  ;;  %6579 = vst.msk [vmem:[%s13299_s15 + $0xf0] sm:$0xff] %vm6548_vm0, %v6482_v58  ;;  %v6231_v10 = vpop.permute.xlu1 %6230  ;;  %v6229_v31 = vpop.permute.xlu0 %6228  ;;  %v15616_v30 = vld [vmem:[#allocation406_spill] sm:$0xff]  ;;  %v15618_v6 = vld [vmem:[#allocation407_spill] sm:$0xff] }
 0x8b3   : > { %v4376_v45 = vadd.f32 %v15610_v42, %v3560_v39  ;;  %v4855_v21 = vadd.f32 %v4759_v33, %v4375_v51  ;;  %v6062_v36 = vmul.f32 %v8207_v3, %v5964_v9  ;;  %v6063_v29 = vmul.f32 %v8208_v26, %v5964_v9  ;;  %v15615_v33 = vld [vmem:[#allocation542_spill] sm:$0xff]  ;;  %v15620_v9 = vld [vmem:[#allocation312_spill] sm:$0xff]  ;;  %v15622_v11 = vld [vmem:[#allocation313_spill] sm:$0xff] }
 0x8b4   : > { %v4854_v34 = vadd.f32 %v4758_v35, %v4374_v37  ;;  %v5967_v49 = vstv %s13666_s21  ;;  %v6485_v24 = vadd.f32 %v6231_v10, %v5669_v56  ;;  %v6484_v22 = vadd.f32 %v6229_v31, %v5668_v20  ;;  %v15614_v35 = vld [vmem:[#allocation541_spill] sm:$0xff]  ;;  %v8212_v51 = vld [vmem:[%s8504_s8 + $0x45a] sm:$0xff]  ;;  %v15626_v20 = vld [vmem:[#allocation409_spill] sm:$0xff] }
 0x8b5   : > { %v3562_v60 = vadd.f32 %v15613_v25, %v15612_v23  ;;  %v4762_v13 = vmul.f32 %v8209_v62, %v4638_v12  ;;  %v4763_v39 = vmul.f32 %v8210_v15, %v4638_v12  ;;  %v4641_v7 = vstv %s15611_s22  ;;  %v8211_v16 = vld [vmem:[%s8504_s8 + $0x452] sm:$0xff]  ;;  %v15621_v58 = vld [vmem:[#allocation140_spill] sm:$0xff]  ;;  %v15624_v12 = vld [vmem:[#allocation544_spill] sm:$0xff] }
 0x8b6   : > { %6346 = vrot.lane.b32.xlu1 %v6063_v29, %s14631_s10  ;;  %6344 = vrot.lane.b32.xlu0 %v6062_v36, %s14631_s10  ;;  %v5671_v52 = vadd.f32 %v15614_v35, %v4855_v21  ;;  %v5670_v5 = vadd.f32 %v15615_v33, %v4854_v34  ;;  %v4857_v19 = vadd.f32 %v4761_v53, %v4377_v28  ;;  %v6235_v38 = vpop.permute.xlu1 %6234  ;;  %v6233_v2 = vpop.permute.xlu0 %6232  ;;  %v5970_v1 = vstv %s13686_s23  ;;  %v15619_v37 = vld [vmem:[#allocation139_spill] sm:$0xff]  ;;  %v15623_v63 = vld [vmem:[#allocation543_spill] sm:$0xff]  ;;  %v15630_v25 = vld [vmem:[#allocation66_spill] sm:$0xff] }
 0x8b7   : > { %6582 = vst.msk [vmem:[%s13299_s15 + $0x108] sm:$0xff] %vm6548_vm0, %v6485_v24  ;;  %6581 = vst.msk [vmem:[%s13299_s15 + $0x100] sm:$0xff] %vm6548_vm0, %v6484_v22  ;;  %v4379_v8 = vadd.f32 %v15616_v30, %v3563_v47  ;;  %v4856_v50 = vadd.f32 %v4760_v61, %v4376_v45  ;;  %v6064_v17 = vmul.f32 %v8211_v16, %v5967_v49  ;;  %v8213_v47 = vld [vmem:[%s8504_s8 + $0x1e2] sm:$0xff]  ;;  %v8214_v61 = vld [vmem:[%s8504_s8 + $0x1ea] sm:$0xff] }
 0x8b8   : > { %v6065_v27 = vmul.f32 %v8212_v51, %v5967_v49  ;;  %v4378_v4 = vadd.f32 %v15618_v6, %v3562_v60  ;;  %v6487_v44 = vadd.f32 %v6235_v38, %v5671_v52  ;;  %v6486_v55 = vadd.f32 %v6233_v2, %v5670_v5  ;;  %v15625_v56 = vld [vmem:[#allocation408_spill] sm:$0xff]  ;;  %v8215_v45 = vld [vmem:[%s8504_s8 + $0x46a] sm:$0xff]  ;;  %v8216_v3 = vld [vmem:[%s8504_s8 + $0x472] sm:$0xff] }
 0x8b9   : > { %v3565_v57 = vadd.f32 %v15620_v9, %v15619_v37  ;;  %v3564_v18 = vadd.f32 %v15622_v11, %v15621_v58  ;;  %v4764_v32 = vmul.f32 %v8213_v47, %v4641_v7  ;;  %v4765_v46 = vmul.f32 %v8214_v61, %v4641_v7  ;;  %v15628_v24 = vld [vmem:[#allocation65_spill] sm:$0xff]  ;;  %v15629_v22 = vld [vmem:[#allocation186_spill] sm:$0xff]  ;;  %v15631_v60 = vld [vmem:[#allocation187_spill] sm:$0xff] }
 0x8ba   : > { %6350 = vrot.lane.b32.xlu1 %v6065_v27, %s14631_s10  ;;  %6348 = vrot.lane.b32.xlu0 %v6064_v17, %s14631_s10  ;;  %v4644_v53 = vstv %s15617_s24  ;;  %v5673_v28 = vadd.f32 %v15623_v63, %v4857_v19  ;;  %v5672_v59 = vadd.f32 %v15624_v12, %v4856_v50  ;;  %6584 = vst.msk [vmem:[%s13299_s15 + $0x118] sm:$0xff] %vm6548_vm0, %v6487_v44  ;;  %v6239_v26 = vpop.permute.xlu1 %6238  ;;  %v6237_v29 = vpop.permute.xlu0 %6236  ;;  %v15632_v15 = vld [vmem:[#allocation141_spill] sm:$0xff]  ;;  %v15633_v7 = vld [vmem:[#allocation314_spill] sm:$0xff]  ;;  %v15639_v44 = vld [vmem:[#allocation411_spill] sm:$0xff] }
 0x8bb   : > { %6583 = vst.msk [vmem:[%s13299_s15 + $0x110] sm:$0xff] %vm6548_vm0, %v6486_v55  ;;  %v4381_v41 = vadd.f32 %v15625_v56, %v3565_v57  ;;  %v4380_v42 = vadd.f32 %v15626_v20, %v3564_v18  ;;  %v6066_v21 = vmul.f32 %v8215_v45, %v5970_v1  ;;  %v6067_v36 = vmul.f32 %v8216_v3, %v5970_v1  ;;  %v15634_v52 = vld [vmem:[#allocation142_spill] sm:$0xff]  ;;  %v8218_v16 = vld [vmem:[%s8504_s8 + $0x202] sm:$0xff]  ;;  %v15640_v57 = vld [vmem:[#allocation67_spill] sm:$0xff] }
 0x8bc   : > { %v4859_v10 = vadd.f32 %v4763_v39, %v4379_v8  ;;  %v4858_v31 = vadd.f32 %v4762_v13, %v4378_v4  ;;  %v6489_v34 = vadd.f32 %v6239_v26, %v5673_v28  ;;  %v6488_v49 = vadd.f32 %v6237_v29, %v5672_v59  ;;  %v15635_v39 = vld [vmem:[#allocation315_spill] sm:$0xff]  ;;  %v15636_v19 = vld [vmem:[#allocation545_spill] sm:$0xff]  ;;  %v15641_v58 = vld [vmem:[#allocation188_spill] sm:$0xff] }
 0x8bd   : > { %v2287_v23 = vadd.f32 %v15629_v22, %v15628_v24  ;;  %v2286_v62 = vadd.f32 %v15631_v60, %v15630_v25  ;;  %v3567_v35 = vadd.f32 %v15633_v7, %v15632_v15  ;;  %v3566_v33 = vadd.f32 %v15635_v39, %v15634_v52  ;;  %v8217_v13 = vld [vmem:[%s8504_s8 + $0x1fa] sm:$0xff]  ;;  %v15638_v4 = vld [vmem:[#allocation410_spill] sm:$0xff]  ;;  %v15647_v63 = vld [vmem:[#allocation636_spill] sm:$0xff] }
 0x8be   : > { %6354 = vrot.lane.b32.xlu1 %v6067_v36, %s14631_s10  ;;  %6352 = vrot.lane.b32.xlu0 %v6066_v21, %s14631_s10  ;;  %v4766_v5 = vmul.f32 %v8217_v13, %v4644_v53  ;;  %v5675_v30 = vadd.f32 %v15636_v19, %v4859_v10  ;;  %v15637_v8 = vld [vmem:[#allocation546_spill] sm:$0xff]  ;;  %6586 = vst.msk [vmem:[%s13299_s15 + $0x128] sm:$0xff] %vm6548_vm0, %v6489_v34  ;;  %6585 = vst.msk [vmem:[%s13299_s15 + $0x120] sm:$0xff] %vm6548_vm0, %v6488_v49  ;;  %v6243_v2 = vpop.permute.xlu1 %6242  ;;  %v6241_v6 = vpop.permute.xlu0 %6240  ;;  %s15642_s10 = sld [smem:[#allocation487_spill]]  ;;  %v15644_v47 = vld [vmem:[#allocation316_spill] sm:$0xff] }
 0x8bf   : > { %v5674_v50 = vadd.f32 %v15637_v8, %v4858_v31  ;;  %v4767_v17 = vmul.f32 %v8218_v16, %v4644_v53  ;;  %v4647_v51 = vstv %s15627_s25  ;;  %v4861_v27 = vadd.f32 %v4765_v46, %v4381_v41  ;;  %v15643_v18 = vld [vmem:[#allocation143_spill] sm:$0xff]  ;;  %v15645_v46 = vld [vmem:[#allocation144_spill] sm:$0xff]  ;;  %v15650_v45 = vld [vmem:[#allocation548_spill] sm:$0xff] }
 0x8c0   : > { %v4860_v38 = vadd.f32 %v4764_v32, %v4380_v42  ;;  %v4383_v1 = vadd.f32 %v15638_v4, %v3567_v35  ;;  %v4382_v55 = vadd.f32 %v15639_v44, %v3566_v33  ;;  %v6491_v37 = vadd.f32 %v6243_v2, %v5675_v30  ;;  %v15646_v32 = vld [vmem:[#allocation317_spill] sm:$0xff]  ;;  %v15648_v12 = vld [vmem:[#allocation107_spill] sm:$0xff]  ;;  %v15649_v20 = vld [vmem:[#allocation547_spill] sm:$0xff] }
 0x8c1   : > { %v6490_v9 = vadd.f32 %v6241_v6, %v5674_v50  ;;  %v2289_v11 = vadd.f32 %v15641_v58, %v15640_v57  ;;  %v3569_v61 = vadd.f32 %v15644_v47, %v15643_v18  ;;  %v3568_v53 = vadd.f32 %v15646_v32, %v15645_v46  ;;  %v8219_v56 = vld [vmem:[%s8504_s8 + $0x212] sm:$0xff]  ;;  %v8220_v3 = vld [vmem:[%s8504_s8 + $0x21a] sm:$0xff]  ;;  %v15652_v10 = vld [vmem:[#allocation413_spill] sm:$0xff] }
 0x8c2   : > { %v13749_v28 = vadd.f32 %v15647_v63, %v2287_v23  ;;  %v13752_v59 = vadd.f32 %v15648_v12, %v2286_v62  ;;  %v4768_v41 = vmul.f32 %v8219_v56, %v4647_v51  ;;  %v5677_v42 = vadd.f32 %v15649_v20, %v4861_v27  ;;  %6588 = vst.msk [vmem:[%s13299_s15 + $0x138] sm:$0xff] %vm6548_vm0, %v6491_v37  ;;  %v15651_v26 = vld [vmem:[#allocation412_spill] sm:$0xff]  ;;  %v6247_v49 = vpop.permute.xlu1 %6246  ;;  %v6245_v24 = vpop.permute.xlu0 %6244  ;;  %v15655_v15 = vld [vmem:[#allocation189_spill] sm:$0xff]  ;;  %v15657_v52 = vld [vmem:[#allocation190_spill] sm:$0xff] }
 0x8c3   : > { %v5676_v21 = vadd.f32 %v15650_v45, %v4860_v38  ;;  %6587 = vst.msk [vmem:[%s13299_s15 + $0x130] sm:$0xff] %vm6548_vm0, %v6490_v9  ;;  %v4769_v36 = vmul.f32 %v8220_v3, %v4647_v51  ;;  %v4385_v29 = vadd.f32 %v15651_v26, %v3569_v61  ;;  %v4384_v31 = vadd.f32 %v15652_v10, %v3568_v53  ;;  %v15654_v62 = vld [vmem:[#allocation68_spill] sm:$0xff]  ;;  %v15656_v35 = vld [vmem:[#allocation69_spill] sm:$0xff]  ;;  %v15658_v33 = vld [vmem:[#allocation318_spill] sm:$0xff] }
 0x8c4   : > { %v4650_v34 = vstv %s15642_s10  ;;  %v4863_v22 = vadd.f32 %v4767_v17, %v4383_v1  ;;  %v4862_v23 = vadd.f32 %v4766_v5, %v4382_v55  ;;  %v6493_v25 = vadd.f32 %v6247_v49, %v5677_v42  ;;  %v15659_v19 = vld [vmem:[#allocation635_spill] sm:$0xff]  ;;  %v15660_v8 = vld [vmem:[#allocation319_spill] sm:$0xff]  ;;  %v8221_v16 = vld [vmem:[%s8504_s8 + $0x22a] sm:$0xff] }
 0x8c5   : > { %v6492_v60 = vadd.f32 %v6245_v24, %v5676_v21  ;;  %v2288_v7 = vadd.f32 %v15655_v15, %v15654_v62  ;;  %v2291_v39 = vadd.f32 %v15657_v52, %v15656_v35  ;;  %v3571_v13 = vadd.f32 %v15658_v33, %v13131_v0  ;;  %v15661_v17 = vld [vmem:[#allocation549_spill] sm:$0xff]  ;;  %v15662_v27 = vld [vmem:[#allocation550_spill] sm:$0xff]  ;;  %v15668_v46 = vld [vmem:[#allocation320_spill] sm:$0xff] }
 0x8c6   : > { %v13772_v30 = vadd.f32 %v15659_v19, %v2289_v11  ;;  %v3570_v50 = vadd.f32 %v15660_v8, %v13138_v14  ;;  %v4770_v5 = vmul.f32 %v8221_v16, %v4650_v34  ;;  %v5679_v51 = vadd.f32 %v15661_v17, %v4863_v22  ;;  %6590 = vst.msk [vmem:[%s13299_s15 + $0x148] sm:$0xff] %vm6548_vm0, %v6493_v25  ;;  %v8222_v2 = vld [vmem:[%s8504_s8 + $0x232] sm:$0xff]  ;;  %v6251_v44 = vpop.permute.xlu1 %6250  ;;  %v6249_v14 = vpop.permute.xlu0 %6248  ;;  %v15669_v53 = vld [vmem:[#allocation321_spill] sm:$0xff]  ;;  %v15670_v12 = vld [vmem:[#allocation108_spill] sm:$0xff] }
 0x8c7   : > { %v5678_v38 = vadd.f32 %v15662_v27, %v4862_v23  ;;  %6589 = vst.msk [vmem:[%s13299_s15 + $0x140] sm:$0xff] %vm6548_vm0, %v6492_v60  ;;  %v4771_v6 = vmul.f32 %v8222_v2, %v4650_v34  ;;  %v4653_v0 = vstv %s15653_s26  ;;  %v4865_v4 = vadd.f32 %v4769_v36, %v4385_v29  ;;  %v15664_v55 = vld [vmem:[#allocation414_spill] sm:$0xff]  ;;  %v15665_v9 = vld [vmem:[#allocation415_spill] sm:$0xff]  ;;  %v15672_v45 = vld [vmem:[#allocation551_spill] sm:$0xff] }
 0x8c8   : > { %v4864_v1 = vadd.f32 %v4768_v41, %v4384_v31  ;;  %v4387_v37 = vadd.f32 %v15664_v55, %v3571_v13  ;;  %v4386_v57 = vadd.f32 %v15665_v9, %v3570_v50  ;;  %v6495_v58 = vadd.f32 %v6251_v44, %v5679_v51  ;;  %v15666_v18 = vld [vmem:[#allocation70_spill] sm:$0xff]  ;;  %v15667_v47 = vld [vmem:[#allocation191_spill] sm:$0xff]  ;;  %v15673_v3 = vld [vmem:[#allocation552_spill] sm:$0xff] }
 0x8c9   : > { %v6494_v11 = vadd.f32 %v6249_v14, %v5678_v38  ;;  %v2290_v61 = vadd.f32 %v15667_v47, %v15666_v18  ;;  %v3573_v32 = vadd.f32 %v15668_v46, %v13141_v43  ;;  %v3572_v63 = vadd.f32 %v15669_v53, %v13144_v40  ;;  %v15671_v41 = vld [vmem:[#allocation638_spill] sm:$0xff]  ;;  %v8223_v26 = vld [vmem:[%s8504_s8 + $0x242] sm:$0xff]  ;;  %v8224_v29 = vld [vmem:[%s8504_s8 + $0x24a] sm:$0xff] }
 0x8ca   : > { %v13794_v56 = vadd.f32 %v15670_v12, %v2288_v7  ;;  %v13797_v20 = vadd.f32 %v15671_v41, %v2291_v39  ;;  %v4656_v42 = vstv %s15663_s27  ;;  %v5681_v21 = vadd.f32 %v15672_v45, %v4865_v4  ;;  %6592 = vst.msk [vmem:[%s13299_s15 + $0x158] sm:$0xff] %vm6548_vm0, %v6495_v58  ;;  %v15674_v10 = vld [vmem:[#allocation416_spill] sm:$0xff]  ;;  %v15675_v34 = vld [vmem:[#allocation417_spill] sm:$0xff]  ;;  %v6255_v24 = vpop.permute.xlu1 %6254  ;;  %v6253_v22 = vpop.permute.xlu0 %6252  ;;  %v15677_v15 = vld [vmem:[#allocation71_spill] sm:$0xff] }
 0x8cb   : > { %v5680_v36 = vadd.f32 %v15673_v3, %v4864_v1  ;;  %6591 = vst.msk [vmem:[%s13299_s15 + $0x150] sm:$0xff] %vm6548_vm0, %v6494_v11  ;;  %v4772_v43 = vmul.f32 %v8223_v26, %v4653_v0  ;;  %v4773_v40 = vmul.f32 %v8224_v29, %v4653_v0  ;;  %v4389_v31 = vadd.f32 %v15674_v10, %v3573_v32  ;;  %v15678_v7 = vld [vmem:[#allocation192_spill] sm:$0xff]  ;;  %v15680_v39 = vld [vmem:[#allocation193_spill] sm:$0xff]  ;;  %v15681_v13 = vld [vmem:[#allocation322_spill] sm:$0xff] }
 0x8cc   : > { %v4388_v49 = vadd.f32 %v15675_v34, %v3572_v63  ;;  %v4867_v23 = vadd.f32 %v4771_v6, %v4387_v37  ;;  %v4866_v25 = vadd.f32 %v4770_v5, %v4386_v57  ;;  %v6497_v60 = vadd.f32 %v6255_v24, %v5681_v21  ;;  %v15679_v52 = vld [vmem:[#allocation72_spill] sm:$0xff]  ;;  %v15682_v8 = vld [vmem:[#allocation109_spill] sm:$0xff]  ;;  %v15683_v16 = vld [vmem:[#allocation323_spill] sm:$0xff] }
 0x8cd   : > { %v6496_v62 = vadd.f32 %v6253_v22, %v5680_v36  ;;  %v2293_v35 = vadd.f32 %v15678_v7, %v15677_v15  ;;  %v2292_v33 = vadd.f32 %v15680_v39, %v15679_v52  ;;  %v3575_v19 = vadd.f32 %v15681_v13, %v13148_v48  ;;  %v8225_v51 = vld [vmem:[%s8504_s8 + $0x25a] sm:$0xff]  ;;  %v15684_v27 = vld [vmem:[#allocation553_spill] sm:$0xff]  ;;  %v8226_v0 = vld [vmem:[%s8504_s8 + $0x262] sm:$0xff] }
 0x8ce   : > { %v13817_v50 = vadd.f32 %v15682_v8, %v2290_v61  ;;  %v3574_v17 = vadd.f32 %v15683_v16, %v13151_v54  ;;  %v4774_v5 = vmul.f32 %v8225_v51, %v4656_v42  ;;  %v5683_v38 = vadd.f32 %v15684_v27, %v4867_v23  ;;  %v15685_v2 = vld [vmem:[#allocation554_spill] sm:$0xff]  ;;  %6594 = vst.msk [vmem:[%s13299_s15 + $0x168] sm:$0xff] %vm6548_vm0, %v6497_v60  ;;  %v6259_v14 = vpop.permute.xlu1 %6258  ;;  %v6257_v54 = vpop.permute.xlu0 %6256  ;;  %v15687_v55 = vld [vmem:[#allocation418_spill] sm:$0xff]  ;;  %v15689_v18 = vld [vmem:[#allocation73_spill] sm:$0xff] }
 0x8cf   : > { %v5682_v6 = vadd.f32 %v15685_v2, %v4866_v25  ;;  %6593 = vst.msk [vmem:[%s13299_s15 + $0x160] sm:$0xff] %vm6548_vm0, %v6496_v62  ;;  %v4775_v4 = vmul.f32 %v8226_v0, %v4656_v42  ;;  %v4659_v48 = vstv %s15676_s28  ;;  %v4869_v1 = vadd.f32 %v4773_v40, %v4389_v31  ;;  %v15688_v9 = vld [vmem:[#allocation419_spill] sm:$0xff]  ;;  %v15690_v47 = vld [vmem:[#allocation194_spill] sm:$0xff]  ;;  %v15691_v46 = vld [vmem:[#allocation145_spill] sm:$0xff] }
 0x8d0   : > { %v4868_v44 = vadd.f32 %v4772_v43, %v4388_v49  ;;  %v4391_v37 = vadd.f32 %v15687_v55, %v3575_v19  ;;  %v4390_v57 = vadd.f32 %v15688_v9, %v3574_v17  ;;  %v6499_v58 = vadd.f32 %v6259_v14, %v5683_v38  ;;  %v15692_v32 = vld [vmem:[#allocation324_spill] sm:$0xff]  ;;  %v15693_v63 = vld [vmem:[#allocation146_spill] sm:$0xff]  ;;  %v15694_v12 = vld [vmem:[#allocation325_spill] sm:$0xff] }
 0x8d1   : > { %v6498_v11 = vadd.f32 %v6257_v54, %v5682_v6  ;;  %v2295_v61 = vadd.f32 %v15690_v47, %v15689_v18  ;;  %v3577_v53 = vadd.f32 %v15692_v32, %v15691_v46  ;;  %v3576_v41 = vadd.f32 %v15694_v12, %v15693_v63  ;;  %v15695_v42 = vld [vmem:[#allocation637_spill] sm:$0xff]  ;;  %v15697_v26 = vld [vmem:[#allocation555_spill] sm:$0xff]  ;;  %v15698_v29 = vld [vmem:[#allocation556_spill] sm:$0xff] }
 0x8d2   : > { %v13839_v45 = vadd.f32 %v15695_v42, %v2293_v35  ;;  %v15696_v21 = vld [vmem:[#allocation110_spill] sm:$0xff]  ;;  %v4662_v36 = vstv %s15686_s29  ;;  %v5685_v43 = vadd.f32 %v15697_v26, %v4869_v1  ;;  %v5684_v40 = vadd.f32 %v15698_v29, %v4868_v44  ;;  %6596 = vst.msk [vmem:[%s13299_s15 + $0x178] sm:$0xff] %vm6548_vm0, %v6499_v58  ;;  %v8228_v34 = vld [vmem:[%s8504_s8 + $0x27a] sm:$0xff]  ;;  %v15700_v23 = vld [vmem:[#allocation421_spill] sm:$0xff]  ;;  %v6263_v60 = vpop.permute.xlu1 %6262  ;;  %v6261_v62 = vpop.permute.xlu0 %6260 }
 0x8d3   : > { %v13842_v3 = vadd.f32 %v15696_v21, %v2292_v33  ;;  %6595 = vst.msk [vmem:[%s13299_s15 + $0x170] sm:$0xff] %vm6548_vm0, %v6498_v11  ;;  %v8227_v10 = vld [vmem:[%s8504_s8 + $0x272] sm:$0xff]  ;;  %v4777_v49 = vmul.f32 %v8228_v34, %v4659_v48  ;;  %v15699_v24 = vld [vmem:[#allocation420_spill] sm:$0xff]  ;;  %v4392_v25 = vadd.f32 %v15700_v23, %v3576_v41  ;;  %v4871_v15 = vadd.f32 %v4775_v4, %v4391_v37  ;;  %v15708_v38 = vld [vmem:[#allocation640_spill] sm:$0xff] }
 0x8d4   : > { %v4776_v31 = vmul.f32 %v8227_v10, %v4659_v48  ;;  %v4393_v22 = vadd.f32 %v15699_v24, %v3577_v53  ;;  %v4870_v7 = vadd.f32 %v4774_v5, %v4390_v57  ;;  %v6501_v35 = vadd.f32 %v6263_v60, %v5685_v43  ;;  %v15702_v39 = vld [vmem:[#allocation74_spill] sm:$0xff]  ;;  %v15703_v33 = vld [vmem:[#allocation195_spill] sm:$0xff]  ;;  %v15705_v8 = vld [vmem:[#allocation196_spill] sm:$0xff] }
 0x8d5   : > { %v6500_v52 = vadd.f32 %v6261_v62, %v5684_v40  ;;  %v2294_v13 = vadd.f32 %v15703_v33, %v15702_v39  ;;  %v15704_v19 = vld [vmem:[#allocation75_spill] sm:$0xff]  ;;  %v15707_v51 = vld [vmem:[#allocation326_spill] sm:$0xff]  ;;  %v13862_v2 = vadd.f32 %v15708_v38, %v2295_v61  ;;  %v15709_v6 = vld [vmem:[#allocation148_spill] sm:$0xff]  ;;  %v4665_v9 = vstv %s15701_s30 }
 0x8d6   : > { %v2297_v16 = vadd.f32 %v15705_v8, %v15704_v19  ;;  %v15706_v17 = vld [vmem:[#allocation147_spill] sm:$0xff]  ;;  %v8229_v4 = vld [vmem:[%s8504_s8 + $0x28a] sm:$0xff]  ;;  %6598 = vst.msk [vmem:[%s13299_s15 + $0x188] sm:$0xff] %vm6548_vm0, %v6501_v35  ;;  %v4873_v57 = vadd.f32 %v4777_v49, %v4393_v22  ;;  %v4872_v58 = vadd.f32 %v4776_v31, %v4392_v25  ;;  %v6267_v11 = vpop.permute.xlu1 %6266  ;;  %v6265_v18 = vpop.permute.xlu0 %6264  ;;  %v15723_v34 = vld [vmem:[#allocation639_spill] sm:$0xff]  ;;  %v4668_v24 = vstv %s15713_s3 }
 0x8d7   : > { %v3579_v27 = vadd.f32 %v15707_v51, %v15706_v17  ;;  %v15710_v0 = vld [vmem:[#allocation327_spill] sm:$0xff]  ;;  %v4778_v5 = vmul.f32 %v8229_v4, %v4662_v36  ;;  %v15711_v1 = vld [vmem:[#allocation557_spill] sm:$0xff]  ;;  %6597 = vst.msk [vmem:[%s13299_s15 + $0x180] sm:$0xff] %vm6548_vm0, %v6500_v52  ;;  %v15716_v12 = vld [vmem:[#allocation604_spill] sm:$0xff] }
 0x8d8   : > { %v3578_v48 = vadd.f32 %v15710_v0, %v15709_v6  ;;  %v5687_v44 = vadd.f32 %v15711_v1, %v4871_v15  ;;  %v15712_v14 = vld [vmem:[#allocation558_spill] sm:$0xff]  ;;  %v15714_v47 = vld [vmem:[#allocation422_spill] sm:$0xff]  ;;  %v15717_v41 = vld [vmem:[#allocation197_spill] sm:$0xff]  ;;  %v13887_v49 = vadd.f32 %v15723_v34, %v2297_v16 }
 0x8d9   : > { %v5686_v54 = vadd.f32 %v15712_v14, %v4870_v7  ;;  %v8230_v55 = vld [vmem:[%s8504_s8 + $0x292] sm:$0xff]  ;;  %v4395_v61 = vadd.f32 %v15714_v47, %v3579_v27  ;;  %v2296_v42 = vadd.f32 %v15717_v41, %v15716_v12  ;;  %v15718_v21 = vld [vmem:[#allocation149_spill] sm:$0xff]  ;;  %v15724_v22 = vld [vmem:[#allocation559_spill] sm:$0xff] }
 0x8da   : > { %v4779_v37 = vmul.f32 %v8230_v55, %v4662_v36  ;;  %v15715_v46 = vld [vmem:[#allocation423_spill] sm:$0xff]  ;;  %v6503_v53 = vadd.f32 %v6267_v11, %v5687_v44  ;;  %v15719_v36 = vld [vmem:[#allocation328_spill] sm:$0xff]  ;;  %v15720_v43 = vld [vmem:[#allocation150_spill] sm:$0xff]  ;;  %v5689_v23 = vadd.f32 %v15724_v22, %v4873_v57  ;;  %v6271_v19 = vpop.permute.xlu1 %6270  ;;  %v6269_v8 = vpop.permute.xlu0 %6268 }
 0x8db   : > { %v4394_v32 = vadd.f32 %v15715_v46, %v3578_v48  ;;  %v6502_v63 = vadd.f32 %v6265_v18, %v5686_v54  ;;  %v3581_v26 = vadd.f32 %v15719_v36, %v15718_v21  ;;  %v15721_v29 = vld [vmem:[#allocation329_spill] sm:$0xff]  ;;  %v15722_v10 = vld [vmem:[#allocation111_spill] sm:$0xff]  ;;  %v15726_v52 = vld [vmem:[#allocation424_spill] sm:$0xff] }
 0x8dc   : > { %v3580_v40 = vadd.f32 %v15721_v29, %v15720_v43  ;;  %v13884_v31 = vadd.f32 %v15722_v10, %v2294_v13  ;;  %v15725_v25 = vld [vmem:[#allocation560_spill] sm:$0xff]  ;;  %6600 = vst.msk [vmem:[%s13299_s15 + $0x198] sm:$0xff] %vm6548_vm0, %v6503_v53  ;;  %v4875_v16 = vadd.f32 %v4779_v37, %v4395_v61  ;;  %v6505_v51 = vadd.f32 %v6271_v19, %v5689_v23  ;;  %v15729_v38 = vld [vmem:[#allocation76_spill] sm:$0xff]  ;;  %v15730_v6 = vld [vmem:[#allocation198_spill] sm:$0xff] }
 0x8dd   : > { %v5688_v60 = vadd.f32 %v15725_v25, %v4872_v58  ;;  %6599 = vst.msk [vmem:[%s13299_s15 + $0x190] sm:$0xff] %vm6548_vm0, %v6502_v63  ;;  %v8231_v62 = vld [vmem:[%s8504_s8 + $0x2a2] sm:$0xff]  ;;  %v8232_v7 = vld [vmem:[%s8504_s8 + $0x2aa] sm:$0xff]  ;;  %v4397_v39 = vadd.f32 %v15726_v52, %v3581_v26  ;;  %v4874_v17 = vadd.f32 %v4778_v5, %v4394_v32  ;;  %v2299_v0 = vadd.f32 %v15730_v6, %v15729_v38  ;;  %v15732_v4 = vld [vmem:[#allocation199_spill] sm:$0xff] }
 0x8de   : > { %v4780_v15 = vmul.f32 %v8231_v62, %v4665_v9  ;;  %v4781_v35 = vmul.f32 %v8232_v7, %v4665_v9  ;;  %v15727_v33 = vld [vmem:[#allocation425_spill] sm:$0xff]  ;;  %v15731_v48 = vld [vmem:[#allocation603_spill] sm:$0xff]  ;;  %v15733_v44 = vld [vmem:[#allocation330_spill] sm:$0xff]  ;;  %6602 = vst.msk [vmem:[%s13299_s15 + $0x1a8] sm:$0xff] %vm6548_vm0, %v6505_v51 }
 0x8df   : > { %v4396_v13 = vadd.f32 %v15727_v33, %v3580_v40  ;;  %v6504_v27 = vadd.f32 %v6269_v8, %v5688_v60  ;;  %v2298_v1 = vadd.f32 %v15732_v4, %v15731_v48  ;;  %v3583_v14 = vadd.f32 %v15733_v44, %v13749_v28  ;;  %v15734_v54 = vld [vmem:[#allocation112_spill] sm:$0xff]  ;;  %v15735_v9 = vld [vmem:[#allocation331_spill] sm:$0xff]  ;;  %v15736_v58 = vld [vmem:[#allocation561_spill] sm:$0xff]  ;;  %v6275_v63 = vpop.permute.xlu1 %6274 }
 0x8e0   : > { %v13907_v55 = vadd.f32 %v15734_v54, %v2296_v42  ;;  %v3582_v57 = vadd.f32 %v15735_v9, %v13752_v59  ;;  %v8233_v37 = vld [vmem:[%s8504_s8 + $0x2ba] sm:$0xff]  ;;  %v5691_v11 = vadd.f32 %v15736_v58, %v4875_v16  ;;  %v8234_v61 = vld [vmem:[%s8504_s8 + $0x2c2] sm:$0xff]  ;;  %v4671_v28 = vstv %s15728_s4  ;;  %v6273_v59 = vpop.permute.xlu0 %6272  ;;  %v15738_v12 = vld [vmem:[#allocation426_spill] sm:$0xff] }
 0x8e1   : > { %v4782_v5 = vmul.f32 %v8233_v37, %v4668_v24  ;;  %v15737_v18 = vld [vmem:[#allocation562_spill] sm:$0xff]  ;;  %6601 = vst.msk [vmem:[%s13299_s15 + $0x1a0] sm:$0xff] %vm6548_vm0, %v6504_v27  ;;  %v4783_v46 = vmul.f32 %v8234_v61, %v4668_v24  ;;  %v4877_v32 = vadd.f32 %v4781_v35, %v4397_v39  ;;  %v4876_v53 = vadd.f32 %v4780_v15, %v4396_v13  ;;  %v15740_v43 = vld [vmem:[#allocation77_spill] sm:$0xff]  ;;  %v15741_v29 = vld [vmem:[#allocation200_spill] sm:$0xff] }
 0x8e2   : > { %v5690_v47 = vadd.f32 %v15737_v18, %v4874_v17  ;;  %v4399_v41 = vadd.f32 %v15738_v12, %v3583_v14  ;;  %v15739_v42 = vld [vmem:[#allocation427_spill] sm:$0xff]  ;;  %v6507_v36 = vadd.f32 %v6275_v63, %v5691_v11  ;;  %v2301_v40 = vadd.f32 %v15741_v29, %v15740_v43  ;;  %v15742_v10 = vld [vmem:[#allocation332_spill] sm:$0xff]  ;;  %v15743_v24 = vld [vmem:[#allocation333_spill] sm:$0xff] }
 0x8e3   : > { %v4398_v21 = vadd.f32 %v15739_v42, %v3582_v57  ;;  %v3585_v34 = vadd.f32 %v15742_v10, %v13772_v30  ;;  %v3584_v22 = vadd.f32 %v15743_v24, %v13794_v56  ;;  %v15744_v23 = vld [vmem:[#allocation642_spill] sm:$0xff]  ;;  %v15745_v60 = vld [vmem:[#allocation113_spill] sm:$0xff]  ;;  %v4674_v15 = vstv %s11140_s13  ;;  %v15746_v7 = vld [vmem:[#allocation563_spill] sm:$0xff]  ;;  %v6279_v51 = vpop.permute.xlu1 %6278  ;;  %s15750_s13 = sld [smem:[#allocation495_spill]] }
 0x8e4   : > { %v6506_v26 = vadd.f32 %v6273_v59, %v5690_v47  ;;  %v13929_v25 = vadd.f32 %v15744_v23, %v2299_v0  ;;  %v13932_v62 = vadd.f32 %v15745_v60, %v2298_v1  ;;  %v5693_v35 = vadd.f32 %v15746_v7, %v4877_v32  ;;  %v15747_v52 = vld [vmem:[#allocation564_spill] sm:$0xff]  ;;  %6604 = vst.msk [vmem:[%s13299_s15 + $0x1b8] sm:$0xff] %vm6548_vm0, %v6507_v36  ;;  %v8235_v33 = vld [vmem:[%s8504_s8 + $0x2d2] sm:$0xff]  ;;  %v8236_v13 = vld [vmem:[%s8504_s8 + $0x2da] sm:$0xff]  ;;  %v6277_v27 = vpop.permute.xlu0 %6276 }
 0x8e5   : > { %v5692_v39 = vadd.f32 %v15747_v52, %v4876_v53  ;;  %v4784_v30 = vmul.f32 %v8235_v33, %v4671_v28  ;;  %v4785_v56 = vmul.f32 %v8236_v13, %v4671_v28  ;;  %v15748_v19 = vld [vmem:[#allocation428_spill] sm:$0xff]  ;;  %v15749_v16 = vld [vmem:[#allocation429_spill] sm:$0xff]  ;;  %v4879_v38 = vadd.f32 %v4783_v46, %v4399_v41  ;;  %v15751_v4 = vld [vmem:[#allocation606_spill] sm:$0xff] }
 0x8e6   : > { %6603 = vst.msk [vmem:[%s13299_s15 + $0x1b0] sm:$0xff] %vm6548_vm0, %v6506_v26  ;;  %v4401_v8 = vadd.f32 %v15748_v19, %v3585_v34  ;;  %v4400_v17 = vadd.f32 %v15749_v16, %v3584_v22  ;;  %v4878_v6 = vadd.f32 %v4782_v5, %v4398_v21  ;;  %v6509_v0 = vadd.f32 %v6279_v51, %v5693_v35  ;;  %v15752_v1 = vld [vmem:[#allocation201_spill] sm:$0xff]  ;;  %v15753_v14 = vld [vmem:[#allocation78_spill] sm:$0xff]  ;;  %v15757_v18 = vld [vmem:[#allocation335_spill] sm:$0xff] }
 0x8e7   : > { %v6508_v48 = vadd.f32 %v6277_v27, %v5692_v39  ;;  %v2300_v44 = vadd.f32 %v15752_v1, %v15751_v4  ;;  %v15754_v54 = vld [vmem:[#allocation202_spill] sm:$0xff]  ;;  %v3586_v47 = vadd.f32 %v15757_v18, %v13817_v50  ;;  %v15759_v32 = vld [vmem:[#allocation566_spill] sm:$0xff]  ;;  %v6283_v42 = vpop.permute.xlu1 %6282  ;;  %v15765_v22 = vld [vmem:[#allocation336_spill] sm:$0xff]  ;;  %v4680_v33 = vstv %s15760_s5 }
 0x8e8   : > { %v2303_v9 = vadd.f32 %v15754_v54, %v15753_v14  ;;  %v15755_v57 = vld [vmem:[#allocation334_spill] sm:$0xff]  ;;  %v5694_v53 = vadd.f32 %v15759_v32, %v4878_v6  ;;  %6606 = vst.msk [vmem:[%s13299_s15 + $0x1c8] sm:$0xff] %vm6548_vm0, %v6509_v0  ;;  %v4881_v12 = vadd.f32 %v4785_v56, %v4401_v8  ;;  %v4880_v41 = vadd.f32 %v4784_v30, %v4400_v17  ;;  %v6281_v50 = vpop.permute.xlu0 %6280  ;;  %v15762_v26 = vld [vmem:[#allocation431_spill] sm:$0xff]  ;;  %v15766_v60 = vld [vmem:[#allocation337_spill] sm:$0xff] }
 0x8e9   : > { %v3587_v37 = vadd.f32 %v15755_v57, %v13797_v20  ;;  %v15756_v58 = vld [vmem:[#allocation641_spill] sm:$0xff]  ;;  %6605 = vst.msk [vmem:[%s13299_s15 + $0x1c0] sm:$0xff] %vm6548_vm0, %v6508_v48  ;;  %v4677_v20 = vstv %s15750_s13  ;;  %v4402_v43 = vadd.f32 %v15762_v26, %v3586_v47  ;;  %v15764_v34 = vld [vmem:[#allocation203_spill] sm:$0xff]  ;;  %v3589_v23 = vadd.f32 %v15765_v22, %v13839_v45  ;;  %v15768_v52 = vld [vmem:[#allocation116_spill] sm:$0xff] }
 0x8ea   : > { %v13952_v11 = vadd.f32 %v15756_v58, %v2301_v40  ;;  %v8237_v61 = vld [vmem:[%s8504_s8 + $0x2ea] sm:$0xff]  ;;  %v8238_v63 = vld [vmem:[%s8504_s8 + $0x2f2] sm:$0xff]  ;;  %v6510_v40 = vadd.f32 %v6281_v50, %v5694_v53  ;;  %v13977_v39 = vadd.f32 %v15768_v52, %v2303_v9  ;;  %v15769_v30 = vld [vmem:[#allocation567_spill] sm:$0xff] }
 0x8eb   : > { %v4786_v5 = vmul.f32 %v8237_v61, %v4674_v15  ;;  %v15758_v46 = vld [vmem:[#allocation565_spill] sm:$0xff]  ;;  %v4787_v59 = vmul.f32 %v8238_v63, %v4674_v15  ;;  %v3588_v15 = vadd.f32 %v15766_v60, %v13842_v3  ;;  %v5697_v13 = vadd.f32 %v15769_v30, %v4881_v12  ;;  %v15770_v56 = vld [vmem:[#allocation568_spill] sm:$0xff]  ;;  %v15771_v17 = vld [vmem:[#allocation432_spill] sm:$0xff]  ;;  %v6287_v6 = vpop.permute.xlu1 %6286 }
 0x8ec   : > { %v5695_v28 = vadd.f32 %v15758_v46, %v4879_v38  ;;  %v15761_v21 = vld [vmem:[#allocation430_spill] sm:$0xff]  ;;  %v5696_v19 = vadd.f32 %v15770_v56, %v4880_v41  ;;  %6607 = vst.msk [vmem:[%s13299_s15 + $0x1d0] sm:$0xff] %vm6548_vm0, %v6510_v40  ;;  %v8239_v8 = vld [vmem:[%s8504_s8 + $0x302] sm:$0xff]  ;;  %v4405_v51 = vadd.f32 %v15771_v17, %v3589_v23  ;;  %v6285_v0 = vpop.permute.xlu0 %6284  ;;  %v15774_v14 = vld [vmem:[#allocation79_spill] sm:$0xff] }
 0x8ed   : > { %v4403_v36 = vadd.f32 %v15761_v21, %v3587_v37  ;;  %v15763_v10 = vld [vmem:[#allocation605_spill] sm:$0xff]  ;;  %v4788_v45 = vmul.f32 %v8239_v8, %v4677_v20  ;;  %v15772_v27 = vld [vmem:[#allocation433_spill] sm:$0xff]  ;;  %v4882_v4 = vadd.f32 %v4786_v5, %v4402_v43  ;;  %v6513_v1 = vadd.f32 %v6287_v6, %v5697_v13  ;;  %v15775_v54 = vld [vmem:[#allocation204_spill] sm:$0xff] }
 0x8ee   : > { %v6511_v29 = vadd.f32 %v6283_v42, %v5695_v28  ;;  %v2302_v24 = vadd.f32 %v15764_v34, %v15763_v10  ;;  %v15767_v7 = vld [vmem:[#allocation114_spill] sm:$0xff]  ;;  %v4404_v38 = vadd.f32 %v15772_v27, %v3588_v15  ;;  %v2305_v9 = vadd.f32 %v15775_v54, %v15774_v14  ;;  %v15776_v57 = vld [vmem:[#allocation608_spill] sm:$0xff]  ;;  %v15779_v61 = vld [vmem:[#allocation115_spill] sm:$0xff] }
 0x8ef   : > { %v13974_v35 = vadd.f32 %v15767_v7, %v2300_v44  ;;  %v8240_v16 = vld [vmem:[%s8504_s8 + $0x30a] sm:$0xff]  ;;  %v4883_v48 = vadd.f32 %v4787_v59, %v4403_v36  ;;  %v6512_v44 = vadd.f32 %v6285_v0, %v5696_v19  ;;  %v15780_v28 = vld [vmem:[#allocation339_spill] sm:$0xff]  ;;  %6610 = vst.msk [vmem:[%s13299_s15 + $0x1e8] sm:$0xff] %vm6548_vm0, %v6513_v1  ;;  %v8242_v41 = vld [vmem:[%s8504_s8 + $0x322] sm:$0xff]  ;;  %v6291_v36 = vpop.permute.xlu1 %6290  ;;  %v4686_v0 = vstv %s15787_s7 }
 0x8f0   : > { %6608 = vst.msk [vmem:[%s13299_s15 + $0x1d8] sm:$0xff] %vm6548_vm0, %v6511_v29  ;;  %v4789_v3 = vmul.f32 %v8240_v16, %v4677_v20  ;;  %v15777_v37 = vld [vmem:[#allocation205_spill] sm:$0xff]  ;;  %v15778_v18 = vld [vmem:[#allocation338_spill] sm:$0xff]  ;;  %v13997_v46 = vadd.f32 %v15779_v61, %v2302_v24  ;;  %v3590_v32 = vadd.f32 %v15780_v28, %v13884_v31  ;;  %v8241_v53 = vld [vmem:[%s8504_s8 + $0x31a] sm:$0xff]  ;;  %v4791_v42 = vmul.f32 %v8242_v41, %v4680_v33  ;;  %v6289_v31 = vpop.permute.xlu0 %6288 }
 0x8f1   : > { %v2304_v58 = vadd.f32 %v15777_v37, %v15776_v57  ;;  %v3591_v47 = vadd.f32 %v15778_v18, %v13862_v2  ;;  %v4790_v5 = vmul.f32 %v8241_v53, %v4680_v33  ;;  %v15781_v63 = vld [vmem:[#allocation569_spill] sm:$0xff]  ;;  %v15782_v20 = vld [vmem:[#allocation570_spill] sm:$0xff]  ;;  %6609 = vst.msk [vmem:[%s13299_s15 + $0x1e0] sm:$0xff] %vm6548_vm0, %v6512_v44  ;;  %v4683_v2 = vstv %s15773_s6  ;;  %v15785_v24 = vld [vmem:[#allocation80_spill] sm:$0xff] }
 0x8f2   : > { %v5699_v59 = vadd.f32 %v15781_v63, %v4883_v48  ;;  %v5698_v12 = vadd.f32 %v15782_v20, %v4882_v4  ;;  %v4885_v50 = vadd.f32 %v4789_v3, %v4405_v51  ;;  %v4884_v21 = vadd.f32 %v4788_v45, %v4404_v38  ;;  %v15783_v26 = vld [vmem:[#allocation434_spill] sm:$0xff]  ;;  %v15784_v29 = vld [vmem:[#allocation435_spill] sm:$0xff]  ;;  %v15788_v60 = vld [vmem:[#allocation340_spill] sm:$0xff] }
 0x8f3   : > { %v4407_v43 = vadd.f32 %v15783_v26, %v3591_v47  ;;  %v4406_v40 = vadd.f32 %v15784_v29, %v3590_v32  ;;  %v15786_v22 = vld [vmem:[#allocation206_spill] sm:$0xff]  ;;  %v3593_v15 = vadd.f32 %v15788_v60, %v13887_v49  ;;  %v15789_v7 = vld [vmem:[#allocation341_spill] sm:$0xff]  ;;  %v15791_v13 = vld [vmem:[#allocation643_spill] sm:$0xff]  ;;  %v6295_v48 = vpop.permute.xlu1 %6294 }
 0x8f4   : > { %v6515_v10 = vadd.f32 %v6291_v36, %v5699_v59  ;;  %v6514_v34 = vadd.f32 %v6289_v31, %v5698_v12  ;;  %v2307_v23 = vadd.f32 %v15786_v22, %v15785_v24  ;;  %v3592_v52 = vadd.f32 %v15789_v7, %v13907_v55  ;;  %v15790_v33 = vld [vmem:[#allocation117_spill] sm:$0xff]  ;;  %v8243_v19 = vld [vmem:[%s8504_s8 + $0x332] sm:$0xff]  ;;  %v15792_v45 = vld [vmem:[#allocation571_spill] sm:$0xff]  ;;  %v6293_v4 = vpop.permute.xlu0 %6292 }
 0x8f5   : > { %v14019_v30 = vadd.f32 %v15790_v33, %v2305_v9  ;;  %v14022_v56 = vadd.f32 %v15791_v13, %v2304_v58  ;;  %v4792_v8 = vmul.f32 %v8243_v19, %v4683_v2  ;;  %v5701_v16 = vadd.f32 %v15792_v45, %v4885_v50  ;;  %v15793_v3 = vld [vmem:[#allocation572_spill] sm:$0xff]  ;;  %v8244_v49 = vld [vmem:[%s8504_s8 + $0x33a] sm:$0xff]  ;;  %v15801_v61 = vld [vmem:[#allocation342_spill] sm:$0xff] }
 0x8f6   : > { %v5700_v17 = vadd.f32 %v15793_v3, %v4884_v21  ;;  %6612 = vst.msk [vmem:[%s13299_s15 + $0x1f8] sm:$0xff] %vm6548_vm0, %v6515_v10  ;;  %6611 = vst.msk [vmem:[%s13299_s15 + $0x1f0] sm:$0xff] %vm6548_vm0, %v6514_v34  ;;  %v4793_v51 = vmul.f32 %v8244_v49, %v4683_v2  ;;  %v15794_v55 = vld [vmem:[#allocation436_spill] sm:$0xff]  ;;  %v15795_v38 = vld [vmem:[#allocation437_spill] sm:$0xff]  ;;  %v4887_v1 = vadd.f32 %v4791_v42, %v4407_v43 }
 0x8f7   : > { %v4409_v27 = vadd.f32 %v15794_v55, %v3593_v15  ;;  %v4408_v6 = vadd.f32 %v15795_v38, %v3592_v52  ;;  %v4886_v44 = vadd.f32 %v4790_v5, %v4406_v40  ;;  %v6517_v14 = vadd.f32 %v6295_v48, %v5701_v16  ;;  %v15797_v9 = vld [vmem:[#allocation607_spill] sm:$0xff]  ;;  %v15798_v57 = vld [vmem:[#allocation207_spill] sm:$0xff]  ;;  %v15799_v58 = vld [vmem:[#allocation81_spill] sm:$0xff]  ;;  %v6299_v26 = vpop.permute.xlu1 %6298 }
 0x8f8   : > { %v6516_v54 = vadd.f32 %v6293_v4, %v5700_v17  ;;  %v2306_v37 = vadd.f32 %v15798_v57, %v15797_v9  ;;  %v15800_v18 = vld [vmem:[#allocation208_spill] sm:$0xff]  ;;  %v3595_v28 = vadd.f32 %v15801_v61, %v13929_v25  ;;  %v15802_v32 = vld [vmem:[#allocation118_spill] sm:$0xff]  ;;  %v15803_v63 = vld [vmem:[#allocation343_spill] sm:$0xff]  ;;  %v4689_v25 = vstv %s15796_s14 }
 0x8f9   : > { %v2309_v47 = vadd.f32 %v15800_v18, %v15799_v58  ;;  %v14042_v53 = vadd.f32 %v15802_v32, %v2307_v23  ;;  %v3594_v59 = vadd.f32 %v15803_v63, %v13932_v62  ;;  %v8245_v20 = vld [vmem:[%s8504_s8 + $0x34a] sm:$0xff]  ;;  %v15805_v42 = vld [vmem:[#allocation574_spill] sm:$0xff]  ;;  %6614 = vst.msk [vmem:[%s13299_s15 + $0x208] sm:$0xff] %vm6548_vm0, %v6517_v14  ;;  %v4889_v36 = vadd.f32 %v4793_v51, %v4409_v27  ;;  %v6297_v62 = vpop.permute.xlu0 %6296  ;;  %v15811_v15 = vld [vmem:[#allocation344_spill] sm:$0xff] }
 0x8fa   : > { %v4794_v5 = vmul.f32 %v8245_v20, %v4686_v0  ;;  %v15804_v12 = vld [vmem:[#allocation573_spill] sm:$0xff]  ;;  %v5702_v2 = vadd.f32 %v15805_v42, %v4886_v44  ;;  %6613 = vst.msk [vmem:[%s13299_s15 + $0x200] sm:$0xff] %vm6548_vm0, %v6516_v54  ;;  %v4888_v31 = vadd.f32 %v4792_v8, %v4408_v6  ;;  %v15807_v40 = vld [vmem:[#allocation439_spill] sm:$0xff]  ;;  %v15809_v23 = vld [vmem:[#allocation209_spill] sm:$0xff]  ;;  %v3597_v7 = vadd.f32 %v15811_v15, %v13952_v11 }
 0x8fb   : > { %v5703_v41 = vadd.f32 %v15804_v12, %v4887_v1  ;;  %v8246_v50 = vld [vmem:[%s8504_s8 + $0x352] sm:$0xff]  ;;  %v4410_v10 = vadd.f32 %v15807_v40, %v3594_v59  ;;  %v15812_v52 = vld [vmem:[#allocation345_spill] sm:$0xff]  ;;  %v15815_v17 = vld [vmem:[#allocation575_spill] sm:$0xff]  ;;  %v4692_v48 = vstv %s15810_s1  ;;  %v6303_v4 = vpop.permute.xlu1 %6302 }
 0x8fc   : > { %v4795_v21 = vmul.f32 %v8246_v50, %v4686_v0  ;;  %v15806_v43 = vld [vmem:[#allocation438_spill] sm:$0xff]  ;;  %v6518_v24 = vadd.f32 %v6297_v62, %v5702_v2  ;;  %v15808_v22 = vld [vmem:[#allocation610_spill] sm:$0xff]  ;;  %v3596_v33 = vadd.f32 %v15812_v52, %v13974_v35  ;;  %v8247_v16 = vld [vmem:[%s8504_s8 + $0x362] sm:$0xff]  ;;  %v5705_v49 = vadd.f32 %v15815_v17, %v4889_v36 }
 0x8fd   : > { %v4411_v29 = vadd.f32 %v15806_v43, %v3595_v28  ;;  %v6519_v34 = vadd.f32 %v6299_v26, %v5703_v41  ;;  %v2308_v60 = vadd.f32 %v15809_v23, %v15808_v22  ;;  %v15813_v13 = vld [vmem:[#allocation645_spill] sm:$0xff]  ;;  %v15814_v8 = vld [vmem:[#allocation119_spill] sm:$0xff]  ;;  %v4796_v3 = vmul.f32 %v8247_v16, %v4689_v25  ;;  %v15816_v51 = vld [vmem:[#allocation576_spill] sm:$0xff]  ;;  %v6301_v1 = vpop.permute.xlu0 %6300 }
 0x8fe   : > { %v14064_v19 = vadd.f32 %v15813_v13, %v2306_v37  ;;  %v14067_v45 = vadd.f32 %v15814_v8, %v2309_v47  ;;  %v5704_v55 = vadd.f32 %v15816_v51, %v4888_v31  ;;  %6615 = vst.msk [vmem:[%s13299_s15 + $0x210] sm:$0xff] %vm6548_vm0, %v6518_v24  ;;  %v8248_v11 = vld [vmem:[%s8504_s8 + $0x36a] sm:$0xff]  ;;  %v15817_v35 = vld [vmem:[#allocation440_spill] sm:$0xff]  ;;  %v4890_v14 = vadd.f32 %v4794_v5, %v4410_v10  ;;  %v15823_v47 = vld [vmem:[#allocation211_spill] sm:$0xff] }
 0x8ff   : > { %6616 = vst.msk [vmem:[%s13299_s15 + $0x218] sm:$0xff] %vm6548_vm0, %v6519_v34  ;;  %v4797_v27 = vmul.f32 %v8248_v11, %v4689_v25  ;;  %v4413_v38 = vadd.f32 %v15817_v35, %v3597_v7  ;;  %v15818_v6 = vld [vmem:[#allocation441_spill] sm:$0xff]  ;;  %v4891_v44 = vadd.f32 %v4795_v21, %v4411_v29  ;;  %v6521_v54 = vadd.f32 %v6303_v4, %v5705_v49  ;;  %v15820_v57 = vld [vmem:[#allocation82_spill] sm:$0xff]  ;;  %v15826_v20 = vld [vmem:[#allocation347_spill] sm:$0xff]  ;;  %v6307_v62 = vpop.permute.xlu1 %6306 }
 0x900   : > { %v4412_v0 = vadd.f32 %v15818_v6, %v3596_v33  ;;  %v6520_v9 = vadd.f32 %v6301_v1, %v5704_v55  ;;  %v15821_v37 = vld [vmem:[#allocation210_spill] sm:$0xff]  ;;  %v15825_v63 = vld [vmem:[#allocation644_spill] sm:$0xff]  ;;  %v3598_v12 = vadd.f32 %v15826_v20, %v13997_v46  ;;  %v8249_v41 = vld [vmem:[%s8504_s8 + $0x37a] sm:$0xff] }
 0x901   : > { %v2311_v58 = vadd.f32 %v15821_v37, %v15820_v57  ;;  %v15822_v18 = vld [vmem:[#allocation609_spill] sm:$0xff]  ;;  %v14087_v59 = vadd.f32 %v15825_v63, %v2308_v60  ;;  %v4798_v5 = vmul.f32 %v8249_v41, %v4692_v48  ;;  %v15828_v50 = vld [vmem:[#allocation578_spill] sm:$0xff]  ;;  %6618 = vst.msk [vmem:[%s13299_s15 + $0x228] sm:$0xff] %vm6548_vm0, %v6521_v54  ;;  %v8250_v25 = vld [vmem:[%s8504_s8 + $0x382] sm:$0xff]  ;;  %v4893_v31 = vadd.f32 %v4797_v27, %v4413_v38  ;;  %v6305_v46 = vpop.permute.xlu0 %6304 }
 0x902   : > { %v2310_v61 = vadd.f32 %v15823_v47, %v15822_v18  ;;  %v15824_v28 = vld [vmem:[#allocation346_spill] sm:$0xff]  ;;  %v5706_v21 = vadd.f32 %v15828_v50, %v4890_v14  ;;  %6617 = vst.msk [vmem:[%s13299_s15 + $0x220] sm:$0xff] %vm6548_vm0, %v6520_v9  ;;  %v4799_v36 = vmul.f32 %v8250_v25, %v4692_v48  ;;  %v4892_v26 = vadd.f32 %v4796_v3, %v4412_v0  ;;  %v15830_v40 = vld [vmem:[#allocation443_spill] sm:$0xff]  ;;  %v15832_v23 = vld [vmem:[#allocation212_spill] sm:$0xff] }
 0x903   : > { %v3599_v32 = vadd.f32 %v15824_v28, %v13977_v39  ;;  %v15827_v42 = vld [vmem:[#allocation577_spill] sm:$0xff]  ;;  %v4695_v39 = vstv %s15819_s2  ;;  %v4414_v10 = vadd.f32 %v15830_v40, %v3598_v12  ;;  %v15831_v22 = vld [vmem:[#allocation83_spill] sm:$0xff]  ;;  %v15834_v15 = vld [vmem:[#allocation348_spill] sm:$0xff]  ;;  %v4698_v48 = vstv %s15833_s16  ;;  %v6311_v4 = vpop.permute.xlu1 %6310 }
 0x904   : > { %v5707_v2 = vadd.f32 %v15827_v42, %v4891_v44  ;;  %v15829_v43 = vld [vmem:[#allocation442_spill] sm:$0xff]  ;;  %v6522_v24 = vadd.f32 %v6305_v46, %v5706_v21  ;;  %v2313_v60 = vadd.f32 %v15832_v23, %v15831_v22  ;;  %v3601_v7 = vadd.f32 %v15834_v15, %v14019_v30  ;;  %v15835_v52 = vld [vmem:[#allocation349_spill] sm:$0xff]  ;;  %v15836_v13 = vld [vmem:[#allocation646_spill] sm:$0xff] }
 0x905   : > { %v4415_v29 = vadd.f32 %v15829_v43, %v3599_v32  ;;  %v3600_v33 = vadd.f32 %v15835_v52, %v14022_v56  ;;  %v14109_v8 = vadd.f32 %v15836_v13, %v2311_v58  ;;  %v15837_v16 = vld [vmem:[#allocation120_spill] sm:$0xff]  ;;  %v8251_v17 = vld [vmem:[%s8504_s8 + $0x392] sm:$0xff]  ;;  %v15839_v11 = vld [vmem:[#allocation580_spill] sm:$0xff]  ;;  %v6309_v1 = vpop.permute.xlu0 %6308  ;;  %v4894_v14 = vadd.f32 %v4798_v5, %v4414_v10 }
 0x906   : > { %v6523_v34 = vadd.f32 %v6307_v62, %v5707_v2  ;;  %v14112_v3 = vadd.f32 %v15837_v16, %v2310_v61  ;;  %v4800_v49 = vmul.f32 %v8251_v17, %v4695_v39  ;;  %v15838_v51 = vld [vmem:[#allocation579_spill] sm:$0xff]  ;;  %v5708_v27 = vadd.f32 %v15839_v11, %v4892_v26  ;;  %6619 = vst.msk [vmem:[%s13299_s15 + $0x230] sm:$0xff] %vm6548_vm0, %v6522_v24  ;;  %v15841_v6 = vld [vmem:[#allocation445_spill] sm:$0xff]  ;;  %v15845_v47 = vld [vmem:[#allocation214_spill] sm:$0xff] }
 0x907   : > { %v5709_v55 = vadd.f32 %v15838_v51, %v4893_v31  ;;  %v8252_v30 = vld [vmem:[%s8504_s8 + $0x39a] sm:$0xff]  ;;  %v4416_v0 = vadd.f32 %v15841_v6, %v3600_v33  ;;  %v4895_v44 = vadd.f32 %v4799_v36, %v4415_v29  ;;  %v15842_v57 = vld [vmem:[#allocation612_spill] sm:$0xff]  ;;  %v15846_v28 = vld [vmem:[#allocation350_spill] sm:$0xff] }
 0x908   : > { %6620 = vst.msk [vmem:[%s13299_s15 + $0x238] sm:$0xff] %vm6548_vm0, %v6523_v34  ;;  %v4801_v35 = vmul.f32 %v8252_v30, %v4695_v39  ;;  %v15840_v56 = vld [vmem:[#allocation444_spill] sm:$0xff]  ;;  %v6524_v9 = vadd.f32 %v6309_v1, %v5708_v27  ;;  %v15843_v37 = vld [vmem:[#allocation213_spill] sm:$0xff]  ;;  %v3603_v32 = vadd.f32 %v15846_v28, %v14042_v53  ;;  %v15847_v63 = vld [vmem:[#allocation122_spill] sm:$0xff]  ;;  %v4701_v53 = vstv %s11158_s0  ;;  %v6315_v62 = vpop.permute.xlu1 %6314  ;;  %s15864_s0 = sld [smem:[#allocation504_spill]] }
 0x909   : > { %v4417_v38 = vadd.f32 %v15840_v56, %v3601_v7  ;;  %v6525_v54 = vadd.f32 %v6311_v4, %v5709_v55  ;;  %v2312_v58 = vadd.f32 %v15843_v37, %v15842_v57  ;;  %v15844_v18 = vld [vmem:[#allocation84_spill] sm:$0xff]  ;;  %v14132_v20 = vadd.f32 %v15847_v63, %v2313_v60  ;;  %v15848_v12 = vld [vmem:[#allocation351_spill] sm:$0xff]  ;;  %v8253_v42 = vld [vmem:[%s8504_s8 + $0x3aa] sm:$0xff] }
 0x90a   : > { %v2315_v61 = vadd.f32 %v15845_v47, %v15844_v18  ;;  %v3602_v41 = vadd.f32 %v15848_v12, %v14064_v19  ;;  %v4802_v5 = vmul.f32 %v8253_v42, %v4698_v48  ;;  %v15849_v2 = vld [vmem:[#allocation581_spill] sm:$0xff]  ;;  %v15850_v21 = vld [vmem:[#allocation582_spill] sm:$0xff]  ;;  %6621 = vst.msk [vmem:[%s13299_s15 + $0x240] sm:$0xff] %vm6548_vm0, %v6524_v9  ;;  %v4896_v26 = vadd.f32 %v4800_v49, %v4416_v0  ;;  %v6313_v19 = vpop.permute.xlu0 %6312  ;;  %v15853_v24 = vld [vmem:[#allocation611_spill] sm:$0xff] }
 0x90b   : > { %v5711_v50 = vadd.f32 %v15849_v2, %v4895_v44  ;;  %v5710_v25 = vadd.f32 %v15850_v21, %v4894_v14  ;;  %6622 = vst.msk [vmem:[%s13299_s15 + $0x248] sm:$0xff] %vm6548_vm0, %v6525_v54  ;;  %v8254_v36 = vld [vmem:[%s8504_s8 + $0x3b2] sm:$0xff]  ;;  %v4897_v31 = vadd.f32 %v4801_v35, %v4417_v38  ;;  %v15856_v60 = vld [vmem:[#allocation352_spill] sm:$0xff]  ;;  %v15857_v7 = vld [vmem:[#allocation353_spill] sm:$0xff]  ;;  %v4704_v0 = vstv %s15855_s17 }
 0x90c   : > { %v4803_v39 = vmul.f32 %v8254_v36, %v4698_v48  ;;  %v15851_v46 = vld [vmem:[#allocation446_spill] sm:$0xff]  ;;  %v15852_v29 = vld [vmem:[#allocation447_spill] sm:$0xff]  ;;  %v3605_v15 = vadd.f32 %v15856_v60, %v14067_v45  ;;  %v3604_v52 = vadd.f32 %v15857_v7, %v14087_v59  ;;  %v15858_v33 = vld [vmem:[#allocation121_spill] sm:$0xff]  ;;  %v6319_v48 = vpop.permute.xlu1 %6318 }
 0x90d   : > { %v4419_v43 = vadd.f32 %v15851_v46, %v3603_v32  ;;  %v4418_v40 = vadd.f32 %v15852_v29, %v3602_v41  ;;  %v6527_v10 = vadd.f32 %v6315_v62, %v5711_v50  ;;  %v6526_v34 = vadd.f32 %v6313_v19, %v5710_v25  ;;  %v15854_v22 = vld [vmem:[#allocation215_spill] sm:$0xff]  ;;  %v15859_v16 = vld [vmem:[#allocation124_spill] sm:$0xff]  ;;  %v15861_v27 = vld [vmem:[#allocation584_spill] sm:$0xff] }
 0x90e   : > { %v2314_v23 = vadd.f32 %v15854_v22, %v15853_v24  ;;  %v2792_v13 = vadd.f32 %v15858_v33, %v2312_v58  ;;  %v14155_v17 = vadd.f32 %v15859_v16, %v2315_v61  ;;  %v8255_v49 = vld [vmem:[%s8504_s8 + $0x3c2] sm:$0xff]  ;;  %v5712_v30 = vadd.f32 %v15861_v27, %v4896_v26  ;;  %v8256_v35 = vld [vmem:[%s8504_s8 + $0x3ca] sm:$0xff]  ;;  %v6317_v4 = vpop.permute.xlu0 %6316  ;;  %v15867_v58 = vld [vmem:[#allocation614_spill] sm:$0xff] }
 0x90f   : > { %v4804_v51 = vmul.f32 %v8255_v49, %v4701_v53  ;;  %v15860_v55 = vld [vmem:[#allocation583_spill] sm:$0xff]  ;;  %6624 = vst.msk [vmem:[%s13299_s15 + $0x258] sm:$0xff] %vm6548_vm0, %v6527_v10  ;;  %6623 = vst.msk [vmem:[%s13299_s15 + $0x250] sm:$0xff] %vm6548_vm0, %v6526_v34  ;;  %v4805_v45 = vmul.f32 %v8256_v35, %v4701_v53  ;;  %v15863_v38 = vld [vmem:[#allocation449_spill] sm:$0xff]  ;;  %v4899_v1 = vadd.f32 %v4803_v39, %v4419_v43  ;;  %v4707_v53 = vstv %s15864_s0 }
 0x910   : > { %v5713_v11 = vadd.f32 %v15860_v55, %v4897_v31  ;;  %v15862_v56 = vld [vmem:[#allocation448_spill] sm:$0xff]  ;;  %v4420_v6 = vadd.f32 %v15863_v38, %v3604_v52  ;;  %v4898_v44 = vadd.f32 %v4802_v5, %v4418_v40  ;;  %v6528_v54 = vadd.f32 %v6317_v4, %v5712_v30  ;;  %v15865_v9 = vld [vmem:[#allocation85_spill] sm:$0xff]  ;;  %v15869_v61 = vld [vmem:[#allocation354_spill] sm:$0xff]  ;;  %v6323_v26 = vpop.permute.xlu1 %6322 }
 0x911   : > { %v4421_v59 = vadd.f32 %v15862_v56, %v3605_v15  ;;  %v15866_v57 = vld [vmem:[#allocation216_spill] sm:$0xff]  ;;  %v15868_v18 = vld [vmem:[#allocation217_spill] sm:$0xff]  ;;  %v3607_v28 = vadd.f32 %v15869_v61, %v14109_v8  ;;  %v15870_v32 = vld [vmem:[#allocation123_spill] sm:$0xff]  ;;  %v4710_v38 = vstv %s15878_s18 }
 0x912   : > { %v6529_v14 = vadd.f32 %v6319_v48, %v5713_v11  ;;  %v2317_v37 = vadd.f32 %v15866_v57, %v15865_v9  ;;  %v2316_v47 = vadd.f32 %v15868_v18, %v15867_v58  ;;  %v2794_v63 = vadd.f32 %v15870_v32, %v2314_v23  ;;  %v15871_v12 = vld [vmem:[#allocation355_spill] sm:$0xff]  ;;  %v15872_v5 = vld [vmem:[#allocation585_spill] sm:$0xff]  ;;  %6625 = vst.msk [vmem:[%s13299_s15 + $0x260] sm:$0xff] %vm6548_vm0, %v6528_v54  ;;  %v8258_v36 = vld [vmem:[%s8504_s8 + $0x3e2] sm:$0xff] }
 0x913   : > { %v3606_v41 = vadd.f32 %v15871_v12, %v14112_v3  ;;  %v8257_v42 = vld [vmem:[%s8504_s8 + $0x3da] sm:$0xff]  ;;  %v5715_v50 = vadd.f32 %v15872_v5, %v4899_v1  ;;  %v4807_v39 = vmul.f32 %v8258_v36, %v4704_v0  ;;  %v4901_v8 = vadd.f32 %v4805_v45, %v4421_v59  ;;  %v6321_v3 = vpop.permute.xlu0 %6320  ;;  %v15874_v62 = vld [vmem:[#allocation450_spill] sm:$0xff]  ;;  %v15880_v60 = vld [vmem:[#allocation357_spill] sm:$0xff] }
 0x914   : > { %v4806_v2 = vmul.f32 %v8257_v42, %v4704_v0  ;;  %v15873_v21 = vld [vmem:[#allocation586_spill] sm:$0xff]  ;;  %6626 = vst.msk [vmem:[%s13299_s15 + $0x268] sm:$0xff] %vm6548_vm0, %v6529_v14  ;;  %v4900_v31 = vadd.f32 %v4804_v51, %v4420_v6  ;;  %v4423_v19 = vadd.f32 %v15874_v62, %v3607_v28  ;;  %v15876_v10 = vld [vmem:[#allocation86_spill] sm:$0xff]  ;;  %v15879_v22 = vld [vmem:[#allocation356_spill] sm:$0xff]  ;;  %v3608_v15 = vadd.f32 %v15880_v60, %v2792_v13  ;;  %v6327_v6 = vpop.permute.xlu1 %6326 }
 0x915   : > { %v5714_v25 = vadd.f32 %v15873_v21, %v4898_v44  ;;  %v15875_v46 = vld [vmem:[#allocation451_spill] sm:$0xff]  ;;  %v6531_v29 = vadd.f32 %v6323_v26, %v5715_v50  ;;  %v15877_v34 = vld [vmem:[#allocation218_spill] sm:$0xff]  ;;  %v3609_v23 = vadd.f32 %v15879_v22, %v14132_v20  ;;  %v15882_v33 = vld [vmem:[#allocation125_spill] sm:$0xff] }
 0x916   : > { %v4422_v43 = vadd.f32 %v15875_v46, %v3606_v41  ;;  %v2319_v24 = vadd.f32 %v15877_v34, %v15876_v10  ;;  %v15881_v7 = vld [vmem:[#allocation126_spill] sm:$0xff]  ;;  %v2796_v16 = vadd.f32 %v15882_v33, %v2316_v47  ;;  %v15883_v55 = vld [vmem:[#allocation587_spill] sm:$0xff]  ;;  %v15884_v27 = vld [vmem:[#allocation588_spill] sm:$0xff]  ;;  %v4903_v48 = vadd.f32 %v4807_v39, %v4423_v19 }
 0x917   : > { %v6530_v40 = vadd.f32 %v6321_v3, %v5714_v25  ;;  %v2797_v52 = vadd.f32 %v15881_v7, %v2317_v37  ;;  %v8259_v49 = vld [vmem:[%s8504_s8 + $0x3f2] sm:$0xff]  ;;  %v5717_v11 = vadd.f32 %v15883_v55, %v4901_v8  ;;  %v5716_v30 = vadd.f32 %v15884_v27, %v4900_v31  ;;  %6628 = vst.msk [vmem:[%s13299_s15 + $0x278] sm:$0xff] %vm6548_vm0, %v6531_v29  ;;  %v8260_v35 = vld [vmem:[%s8504_s8 + $0x3fa] sm:$0xff]  ;;  %v15886_v13 = vld [vmem:[#allocation453_spill] sm:$0xff]  ;;  %v6325_v0 = vpop.permute.xlu0 %6324 }
 0x918   : > { %v4808_v51 = vmul.f32 %v8259_v49, %v4707_v53  ;;  %v4809_v45 = vmul.f32 %v8260_v35, %v4707_v53  ;;  %v15885_v20 = vld [vmem:[#allocation452_spill] sm:$0xff]  ;;  %v4424_v59 = vadd.f32 %v15886_v13, %v3608_v15  ;;  %v4902_v4 = vadd.f32 %v4806_v2, %v4422_v43  ;;  %v15887_v14 = vld [vmem:[#allocation613_spill] sm:$0xff]  ;;  %v15888_v54 = vld [vmem:[#allocation219_spill] sm:$0xff]  ;;  %v6331_v8 = vpop.permute.xlu1 %6330 }
 0x919   : > { %6627 = vst.msk [vmem:[%s13299_s15 + $0x270] sm:$0xff] %vm6548_vm0, %v6530_v40  ;;  %v4425_v56 = vadd.f32 %v15885_v20, %v3609_v23  ;;  %v6533_v1 = vadd.f32 %v6327_v6, %v5717_v11  ;;  %v6532_v44 = vadd.f32 %v6325_v0, %v5716_v30  ;;  %v2318_v9 = vadd.f32 %v15888_v54, %v15887_v14  ;;  %v15889_v57 = vld [vmem:[#allocation87_spill] sm:$0xff]  ;;  %v15890_v37 = vld [vmem:[#allocation220_spill] sm:$0xff]  ;;  %v15891_v18 = vld [vmem:[#allocation358_spill] sm:$0xff] }
 0x91a   : > { %v2321_v58 = vadd.f32 %v15890_v37, %v15889_v57  ;;  %v3611_v47 = vadd.f32 %v15891_v18, %v14155_v17  ;;  %v15892_v61 = vld [vmem:[#allocation128_spill] sm:$0xff]  ;;  %v15893_v32 = vld [vmem:[#allocation359_spill] sm:$0xff]  ;;  %v8261_v41 = vld [vmem:[%s8504_s8 + $0x40a] sm:$0xff]  ;;  %v4713_v39 = vstv %s11166_s12  ;;  %v4904_v17 = vadd.f32 %v4808_v51, %v4424_v59 }
 0x91b   : > { %v2799_v28 = vadd.f32 %v15892_v61, %v2319_v24  ;;  %v3610_v12 = vadd.f32 %v15893_v32, %v2794_v63  ;;  %v4810_v42 = vmul.f32 %v8261_v41, %v4710_v38  ;;  %v15894_v5 = vld [vmem:[#allocation589_spill] sm:$0xff]  ;;  %v15895_v50 = vld [vmem:[#allocation590_spill] sm:$0xff]  ;;  %6630 = vst.msk [vmem:[%s13299_s15 + $0x288] sm:$0xff] %vm6548_vm0, %v6533_v1  ;;  %6629 = vst.msk [vmem:[%s13299_s15 + $0x280] sm:$0xff] %vm6548_vm0, %v6532_v44  ;;  %v6329_v63 = vpop.permute.xlu0 %6328 }
 0x91c   : > { %v5719_v2 = vadd.f32 %v15894_v5, %v4903_v48  ;;  %v5718_v21 = vadd.f32 %v15895_v50, %v4902_v4  ;;  %v8262_v25 = vld [vmem:[%s8504_s8 + $0x412] sm:$0xff]  ;;  %v4905_v53 = vadd.f32 %v4809_v45, %v4425_v56  ;;  %v15898_v43 = vld [vmem:[#allocation616_spill] sm:$0xff]  ;;  %v15900_v10 = vld [vmem:[#allocation360_spill] sm:$0xff]  ;;  %v4716_v56 = vstv %s11168_s11  ;;  %v6335_v13 = vpop.permute.xlu1 %6334  ;;  %s15919_s11 = sld [smem:[#allocation506_spill]] }
 0x91d   : > { %v4811_v36 = vmul.f32 %v8262_v25, %v4710_v38  ;;  %v15896_v31 = vld [vmem:[#allocation454_spill] sm:$0xff]  ;;  %v15897_v3 = vld [vmem:[#allocation455_spill] sm:$0xff]  ;;  %v15899_v29 = vld [vmem:[#allocation221_spill] sm:$0xff]  ;;  %v3613_v34 = vadd.f32 %v15900_v10, %v2797_v52  ;;  %v4719_v25 = vstv %s11170_s9 }
 0x91e   : > { %v4427_v26 = vadd.f32 %v15896_v31, %v3611_v47  ;;  %v4426_v62 = vadd.f32 %v15897_v3, %v3610_v12  ;;  %v6535_v19 = vadd.f32 %v6331_v8, %v5719_v2  ;;  %v6534_v46 = vadd.f32 %v6329_v63, %v5718_v21  ;;  %v15901_v24 = vld [vmem:[#allocation361_spill] sm:$0xff]  ;;  %v15902_v23 = vld [vmem:[#allocation127_spill] sm:$0xff]  ;;  %v15903_v15 = vld [vmem:[#allocation130_spill] sm:$0xff] }
 0x91f   : > { %v2320_v40 = vadd.f32 %v15899_v29, %v15898_v43  ;;  %v3612_v22 = vadd.f32 %v15901_v24, %v2796_v16  ;;  %v2798_v60 = vadd.f32 %v15902_v23, %v2318_v9  ;;  %v2801_v7 = vadd.f32 %v15903_v15, %v2321_v58  ;;  %v8263_v33 = vld [vmem:[%s8504_s8 + $0x422] sm:$0xff]  ;;  %v8264_v30 = vld [vmem:[%s8504_s8 + $0x42a] sm:$0xff]  ;;  %v6333_v59 = vpop.permute.xlu0 %6332  ;;  %v15911_v54 = vld [vmem:[#allocation223_spill] sm:$0xff] }
 0x920   : > { %v4812_v49 = vmul.f32 %v8263_v33, %v4713_v39  ;;  %v15904_v51 = vld [vmem:[#allocation591_spill] sm:$0xff]  ;;  %v15905_v11 = vld [vmem:[#allocation592_spill] sm:$0xff]  ;;  %6632 = vst.msk [vmem:[%s13299_s15 + $0x298] sm:$0xff] %vm6548_vm0, %v6535_v19  ;;  %6631 = vst.msk [vmem:[%s13299_s15 + $0x290] sm:$0xff] %vm6548_vm0, %v6534_v46  ;;  %v4813_v35 = vmul.f32 %v8264_v30, %v4713_v39  ;;  %v4907_v38 = vadd.f32 %v4811_v36, %v4427_v26  ;;  %v6339_v39 = vpop.permute.xlu1 %6338 }
 0x921   : > { %v5721_v55 = vadd.f32 %v15904_v51, %v4905_v53  ;;  %v5720_v27 = vadd.f32 %v15905_v11, %v4904_v17  ;;  %v15906_v52 = vld [vmem:[#allocation456_spill] sm:$0xff]  ;;  %v15907_v16 = vld [vmem:[#allocation457_spill] sm:$0xff]  ;;  %v4906_v6 = vadd.f32 %v4810_v42, %v4426_v62  ;;  %v15909_v1 = vld [vmem:[#allocation222_spill] sm:$0xff] }
 0x922   : > { %v4429_v45 = vadd.f32 %v15906_v52, %v3613_v34  ;;  %v4428_v20 = vadd.f32 %v15907_v16, %v3612_v22  ;;  %v15908_v4 = vld [vmem:[#allocation88_spill] sm:$0xff]  ;;  %v15912_v57 = vld [vmem:[#allocation362_spill] sm:$0xff]  ;;  %v15913_v58 = vld [vmem:[#allocation129_spill] sm:$0xff]  ;;  %v4722_v30 = vstv %s15919_s11 }
 0x923   : > { %v6537_v0 = vadd.f32 %v6335_v13, %v5721_v55  ;;  %v6536_v48 = vadd.f32 %v6333_v59, %v5720_v27  ;;  %v2323_v44 = vadd.f32 %v15909_v1, %v15908_v4  ;;  %v15910_v14 = vld [vmem:[#allocation615_spill] sm:$0xff]  ;;  %v3615_v37 = vadd.f32 %v15912_v57, %v2799_v28  ;;  %v15914_v47 = vld [vmem:[#allocation363_spill] sm:$0xff]  ;;  %v15915_v41 = vld [vmem:[#allocation593_spill] sm:$0xff]  ;;  %v6337_v53 = vpop.permute.xlu0 %6336 }
 0x924   : > { %v2322_v9 = vadd.f32 %v15911_v54, %v15910_v14  ;;  %v2800_v18 = vadd.f32 %v15913_v58, %v2320_v40  ;;  %v3614_v61 = vadd.f32 %v15914_v47, %v2798_v60  ;;  %v8265_v32 = vld [vmem:[%s8504_s8 + $0x43a] sm:$0xff]  ;;  %v5723_v5 = vadd.f32 %v15915_v41, %v4907_v38  ;;  %v8266_v50 = vld [vmem:[%s8504_s8 + $0x442] sm:$0xff]  ;;  %v15917_v17 = vld [vmem:[#allocation458_spill] sm:$0xff] }
 0x925   : > { %v4814_v12 = vmul.f32 %v8265_v32, %v4716_v56  ;;  %v15916_v42 = vld [vmem:[#allocation594_spill] sm:$0xff]  ;;  %6634 = vst.msk [vmem:[%s13299_s15 + $0x2a8] sm:$0xff] %vm6548_vm0, %v6537_v0  ;;  %6633 = vst.msk [vmem:[%s13299_s15 + $0x2a0] sm:$0xff] %vm6548_vm0, %v6536_v48  ;;  %v4815_v21 = vmul.f32 %v8266_v50, %v4716_v56  ;;  %v4909_v36 = vadd.f32 %v4813_v35, %v4429_v45  ;;  %v15920_v62 = vld [vmem:[#allocation364_spill] sm:$0xff]  ;;  %v6343_v35 = vpop.permute.xlu1 %6342 }
 0x926   : > { %v5722_v2 = vadd.f32 %v15916_v42, %v4906_v6  ;;  %v4908_v28 = vadd.f32 %v4812_v49, %v4428_v20  ;;  %v4431_v8 = vadd.f32 %v15917_v17, %v3615_v37  ;;  %v15918_v63 = vld [vmem:[#allocation459_spill] sm:$0xff]  ;;  %v6539_v26 = vadd.f32 %v6339_v39, %v5723_v5  ;;  %v15921_v46 = vld [vmem:[#allocation365_spill] sm:$0xff]  ;;  %v15922_v29 = vld [vmem:[#allocation132_spill] sm:$0xff] }
 0x927   : > { %v4430_v31 = vadd.f32 %v15918_v63, %v3614_v61  ;;  %v3617_v19 = vadd.f32 %v15920_v62, %v2801_v7  ;;  %v3616_v43 = vadd.f32 %v15921_v46, %v2800_v18  ;;  %v2803_v40 = vadd.f32 %v15922_v29, %v2323_v44  ;;  %v15923_v10 = vld [vmem:[#allocation131_spill] sm:$0xff]  ;;  %v15924_v23 = vld [vmem:[#allocation595_spill] sm:$0xff]  ;;  %v15925_v15 = vld [vmem:[#allocation596_spill] sm:$0xff]  ;;  %v6341_v52 = vpop.permute.xlu0 %6340 }
 0x928   : > { %v6538_v3 = vadd.f32 %v6337_v53, %v5722_v2  ;;  %v2802_v34 = vadd.f32 %v15923_v10, %v2322_v9  ;;  %v8267_v24 = vld [vmem:[%s8504_s8 + $0x452] sm:$0xff]  ;;  %v5725_v60 = vadd.f32 %v15924_v23, %v4909_v36  ;;  %v5724_v33 = vadd.f32 %v15925_v15, %v4908_v28  ;;  %6636 = vst.msk [vmem:[%s13299_s15 + $0x2b8] sm:$0xff] %vm6548_vm0, %v6539_v26  ;;  %v8268_v49 = vld [vmem:[%s8504_s8 + $0x45a] sm:$0xff]  ;;  %v15927_v11 = vld [vmem:[#allocation461_spill] sm:$0xff] }
 0x929   : > { %v4816_v22 = vmul.f32 %v8267_v24, %v4719_v25  ;;  %v4817_v7 = vmul.f32 %v8268_v49, %v4719_v25  ;;  %v15926_v51 = vld [vmem:[#allocation460_spill] sm:$0xff]  ;;  %v4432_v27 = vadd.f32 %v15927_v11, %v3616_v43  ;;  %v4911_v45 = vadd.f32 %v4815_v21, %v4431_v8  ;;  %v15928_v13 = vld [vmem:[#allocation366_spill] sm:$0xff]  ;;  %v15929_v38 = vld [vmem:[#allocation367_spill] sm:$0xff]  ;;  %v6347_v58 = vpop.permute.xlu1 %6346 }
 0x92a   : > { %6635 = vst.msk [vmem:[%s13299_s15 + $0x2b0] sm:$0xff] %vm6548_vm0, %v6538_v3  ;;  %v4433_v55 = vadd.f32 %v15926_v51, %v3617_v19  ;;  %v4910_v16 = vadd.f32 %v4814_v12, %v4430_v31  ;;  %v6541_v20 = vadd.f32 %v6343_v35, %v5725_v60  ;;  %v6540_v56 = vadd.f32 %v6341_v52, %v5724_v33  ;;  %v15930_v0 = vld [vmem:[#allocation597_spill] sm:$0xff]  ;;  %v15931_v4 = vld [vmem:[#allocation598_spill] sm:$0xff]  ;;  %v15934_v42 = vld [vmem:[#allocation599_spill] sm:$0xff] }
 0x92b   : > { %v3619_v59 = vadd.f32 %v15928_v13, %v2803_v40  ;;  %v3618_v6 = vadd.f32 %v15929_v38, %v2802_v34  ;;  %v5727_v48 = vadd.f32 %v15930_v0, %v4911_v45  ;;  %v8269_v44 = vld [vmem:[%s8504_s8 + $0x46a] sm:$0xff]  ;;  %v8270_v54 = vld [vmem:[%s8504_s8 + $0x472] sm:$0xff]  ;;  %v4912_v37 = vadd.f32 %v4816_v22, %v4432_v27  ;;  %v6345_v18 = vpop.permute.xlu0 %6344 }
 0x92c   : > { %v5726_v1 = vadd.f32 %v15931_v4, %v4910_v16  ;;  %6638 = vst.msk [vmem:[%s13299_s15 + $0x2c8] sm:$0xff] %vm6548_vm0, %v6541_v20  ;;  %6637 = vst.msk [vmem:[%s13299_s15 + $0x2c0] sm:$0xff] %vm6548_vm0, %v6540_v56  ;;  %v4818_v14 = vmul.f32 %v8269_v44, %v4722_v30  ;;  %v4819_v9 = vmul.f32 %v8270_v54, %v4722_v30  ;;  %v15932_v47 = vld [vmem:[#allocation462_spill] sm:$0xff]  ;;  %v15933_v32 = vld [vmem:[#allocation463_spill] sm:$0xff] }
 0x92d   : > { %v4913_v57 = vadd.f32 %v4817_v7, %v4433_v55  ;;  %v4435_v61 = vadd.f32 %v15932_v47, %v3619_v59  ;;  %v4434_v12 = vadd.f32 %v15933_v32, %v3618_v6  ;;  %v6543_v41 = vadd.f32 %v6347_v58, %v5727_v48  ;;  %v15935_v50 = vld [vmem:[#allocation600_spill] sm:$0xff]  ;;  %v6351_v25 = vpop.permute.xlu1 %6350  ;;  %v15936_v8 = vld [vmem:[#allocation601_spill] sm:$0xff]  ;;  %v15937_v31 = vld [vmem:[#allocation602_spill] sm:$0xff] }
 0x92e   : > { %v6542_v5 = vadd.f32 %v6345_v18, %v5726_v1  ;;  %v5728_v21 = vadd.f32 %v15935_v50, %v4912_v37 }
 0x92f   : > { %v5729_v2 = vadd.f32 %v15934_v42, %v4913_v57  ;;  %6640 = vst.msk [vmem:[%s13299_s15 + $0x2d8] sm:$0xff] %vm6548_vm0, %v6543_v41  ;;  %v6349_v36 = vpop.permute.xlu0 %6348  ;;  %v4915_v28 = vadd.f32 %v4819_v9, %v4435_v61  ;;  %v4914_v39 = vadd.f32 %v4818_v14, %v4434_v12 }
 0x930   : > { %6639 = vst.msk [vmem:[%s13299_s15 + $0x2d0] sm:$0xff] %vm6548_vm0, %v6542_v5  ;;  %v6544_v17 = vadd.f32 %v6349_v36, %v5728_v21 }
 0x931   : > { %v6545_v53 = vadd.f32 %v6351_v25, %v5729_v2  ;;  %v5731_v63 = vadd.f32 %v15936_v8, %v4915_v28  ;;  %v5730_v26 = vadd.f32 %v15937_v31, %v4914_v39  ;;  %v6355_v3 = vpop.permute.xlu1 %6354 }
 0x932   : > { %6641 = vst.msk [vmem:[%s13299_s15 + $0x2e0] sm:$0xff] %vm6548_vm0, %v6544_v17 }
 0x933   : > { %6642 = vst.msk [vmem:[%s13299_s15 + $0x2e8] sm:$0xff] %vm6548_vm0, %v6545_v53  ;;  %v6353_v62 = vpop.permute.xlu0 %6352  ;;  %v6547_v19 = vadd.f32 %v6355_v3, %v5731_v63 }
 0x934   : > { %v6546_v46 = vadd.f32 %v6353_v62, %v5730_v26 }
 0x935   : > { %6644 = vst.msk [vmem:[%s13299_s15 + $0x2f8] sm:$0xff] %vm6548_vm0, %v6547_v19 }
 0x936   : > { %6643 = vst.msk [vmem:[%s13299_s15 + $0x2f0] sm:$0xff] %vm6548_vm0, %v6546_v46 }
 0x937 PF: > { %s15938_s8 = sld [smem:[#allocation2_spill]] }
 0x93d   : > { %s12_s9 = sadd.s32 1, %s15938_s8  }
 0x93e   : > { %p9_p4 = scmp.ge.s32.totalorder %s12_s9, 4  }
 0x940   :  { %11 = sbr.rel (!%p9_p4) target bundleno = 4 (0x4), region = 61 }

</bundles_post_ra>
